<compile_context>
chip_gen: v5e
topology: v5e:2x2
jax: 0.10.0
libtpu: 0.0.40
codegen_flags: <defaults>
</compile_context>

<pallas_src>
import functools

import jax
import jax.numpy as jnp
from jax.experimental import pallas as pl
from jax.experimental.pallas import tpu as pltpu


# ----------------------------------------------------------------------------
# Generation-aware VMEM budget
# ----------------------------------------------------------------------------
def _derive_vmem_limit():
    cap = 128 * 1024 * 1024
    try:
        info = pltpu.get_tpu_info()
        cap = int(getattr(info, "vmem_capacity_bytes", cap))
    except Exception:
        pass
    # Leave headroom: never more than half of physical VMEM, capped at 64 MiB.
    return int(min(cap // 2, 64 * 1024 * 1024))


_VMEM_LIMIT = _derive_vmem_limit()


def _round_up(x, m):
    return (x + m - 1) // m * m


def _pick_tile(dim, candidates):
    """Largest candidate that divides `dim`; otherwise the full dim (legal block)."""
    for c in candidates:
        if dim % c == 0:
            return c
    return dim


# ----------------------------------------------------------------------------
# Pallas kernels
# ----------------------------------------------------------------------------
def _mm_kernel(x_ref, w_ref, s_ref, b_ref, o_ref, acc_ref, *, relu):
    @pl.when(pl.program_id(2) == 0)
    def _():
        acc_ref[...] = jnp.zeros_like(acc_ref)

    acc_ref[...] += jnp.dot(x_ref[...], w_ref[...],
                            preferred_element_type=jnp.float32)

    @pl.when(pl.program_id(2) == pl.num_programs(2) - 1)
    def _():
        y = acc_ref[...] * s_ref[...] + b_ref[...]
        if relu:
            y = jnp.maximum(y, 0.0)
        o_ref[...] = y.astype(o_ref.dtype)


def _mm_res_kernel(x_ref, w_ref, s_ref, b_ref, r_ref, o_ref, acc_ref, *, relu):
    @pl.when(pl.program_id(2) == 0)
    def _():
        acc_ref[...] = jnp.zeros_like(acc_ref)

    acc_ref[...] += jnp.dot(x_ref[...], w_ref[...],
                            preferred_element_type=jnp.float32)

    @pl.when(pl.program_id(2) == pl.num_programs(2) - 1)
    def _():
        y = acc_ref[...] * s_ref[...] + b_ref[...] + r_ref[...].astype(jnp.float32)
        if relu:
            y = jnp.maximum(y, 0.0)
        o_ref[...] = y.astype(o_ref.dtype)


def _maxpool9_kernel(v0, v1, v2, v3, v4, v5, v6, v7, v8, o_ref):
    m = jnp.maximum(jnp.maximum(jnp.maximum(v0[...], v1[...]),
                                jnp.maximum(v2[...], v3[...])),
                    jnp.maximum(jnp.maximum(v4[...], v5[...]),
                                jnp.maximum(v6[...], v7[...])))
    o_ref[...] = jnp.maximum(m, v8[...])


# ----------------------------------------------------------------------------
# Fused tiled matmul + BN epilogue (+ residual, + ReLU)
# ----------------------------------------------------------------------------
def fused_matmul(x, w, scale, bias, residual=None, relu=True,
                 out_dtype=jnp.bfloat16):
    """y = relu?((x @ w) * scale + bias [+ residual]); bf16 MXU, f32 accumulate."""
    M, K = x.shape
    K2, N = w.shape
    assert K == K2, (K, K2)
    scale = scale.reshape(1, N).astype(jnp.float32)
    bias = bias.reshape(1, N).astype(jnp.float32)

    tm = _pick_tile(M, (256, 128))
    tn = _pick_tile(N, (256, 128))
    tk = _pick_tile(K, (512, 256, 128))
    grid = (M // tm, N // tn, K // tk)

    x_spec = pl.BlockSpec((tm, tk), lambda i, j, k: (i, k))
    w_spec = pl.BlockSpec((tk, tn), lambda i, j, k: (k, j))
    v_spec = pl.BlockSpec((1, tn), lambda i, j, k: (0, j))
    o_spec = pl.BlockSpec((tm, tn), lambda i, j, k: (i, j))

    if residual is None:
        kern = functools.partial(_mm_kernel, relu=relu)
        in_specs = [x_spec, w_spec, v_spec, v_spec]
        args = (x, w, scale, bias)
    else:
        kern = functools.partial(_mm_res_kernel, relu=relu)
        in_specs = [x_spec, w_spec, v_spec, v_spec, o_spec]
        args = (x, w, scale, bias, residual.astype(jnp.bfloat16))

    return pl.pallas_call(
        kern,
        out_shape=jax.ShapeDtypeStruct((M, N), out_dtype),
        grid_spec=pltpu.PrefetchScalarGridSpec(
            num_scalar_prefetch=0,
            grid=grid,
            in_specs=in_specs,
            out_specs=o_spec,
            scratch_shapes=[pltpu.VMEM((tm, tn), jnp.float32)]),
        compiler_params=pltpu.CompilerParams(
            dimension_semantics=("parallel", "parallel", "arbitrary"),
            vmem_limit_bytes=_VMEM_LIMIT),
    )(*args)


# ----------------------------------------------------------------------------
# Conv / pool building blocks (im2col glue in JAX, hot path in Pallas)
# ----------------------------------------------------------------------------
def _im2col(x, kh, kw, stride, pad):
    """x: (B,H,W,C) NHWC -> patches (B*Ho*Wo, kh*kw*C), tap-major/channel-minor."""
    B, H, W, C = x.shape
    Ho = (H + 2 * pad - kh) // stride + 1
    Wo = (W + 2 * pad - kw) // stride + 1
    xp = jnp.pad(x, ((0, 0), (pad, pad), (pad, pad), (0, 0)))
    cols = []
    for i in range(kh):
        for j in range(kw):
            cols.append(xp[:, i:i + stride * Ho:stride, j:j + stride * Wo:stride, :])
    patches = jnp.concatenate(cols, axis=-1)
    return patches.reshape(B * Ho * Wo, kh * kw * C), Ho, Wo


def conv_bn(x, p, stride, pad, relu=True, residual=None):
    """x NHWC bf16; p = folded conv params (wmat already (Kp, Cout) bf16)."""
    B = x.shape[0]
    kh, kw, K = p['kh'], p['kw'], p['k']
    patches, Ho, Wo = _im2col(x, kh, kw, stride, pad)
    Kp, Cout = p['wmat'].shape
    if Kp > K:
        patches = jnp.pad(patches, ((0, 0), (0, Kp - K)))
    res = None if residual is None else residual.reshape(B * Ho * Wo, Cout)
    y = fused_matmul(patches, p['wmat'], p['scale'], p['bias'],
                     residual=res, relu=relu, out_dtype=jnp.bfloat16)
    return y.reshape(B, Ho, Wo, Cout)


def maxpool_3x3_s2(x):
    """MaxPool2d(kernel=3, stride=2, padding=1) in NHWC; reduction in Pallas."""
    B, H, W, C = x.shape
    pad, k, s = 1, 3, 2
    Ho = (H + 2 * pad - k) // s + 1
    Wo = (W + 2 * pad - k) // s + 1
    xp = jnp.pad(x, ((0, 0), (pad, pad), (pad, pad), (0, 0)),
                 constant_values=-jnp.inf)
    views = [xp[:, i:i + s * Ho:s, j:j + s * Wo:s, :].reshape(B * Ho * Wo, C)
             for i in range(k) for j in range(k)]
    M = B * Ho * Wo
    tm = _pick_tile(M, (512, 256, 128))
    spec = pl.BlockSpec((tm, C), lambda i: (i, 0))
    out = pl.pallas_call(
        _maxpool9_kernel,
        out_shape=jax.ShapeDtypeStruct((M, C), x.dtype),
        grid=(M // tm,),
        in_specs=[spec] * 9,
        out_specs=spec,
        compiler_params=pltpu.CompilerParams(
            dimension_semantics=("parallel",),
            vmem_limit_bytes=_VMEM_LIMIT),
    )(*views)
    return out.reshape(B, Ho, Wo, C)


def basic_block(x, p, stride):
    identity = x
    if 'downsample' in p:
        identity = conv_bn(x, p['downsample'], stride=stride, pad=0, relu=False)
    out = conv_bn(x, p['conv1'], stride=stride, pad=1, relu=True)
    out = conv_bn(out, p['conv2'], stride=1, pad=1, relu=True, residual=identity)
    return out


# ----------------------------------------------------------------------------
# Parameter init (deterministic, ResNet18 shapes) + one-time folding/layout prep
# ----------------------------------------------------------------------------
def init_params(key, n_classes=4):
    def conv_init(k, cout, cin, kh, kw):
        std = (2.0 / (cin * kh * kw)) ** 0.5
        return jax.random.normal(k, (cout, cin, kh, kw), jnp.float32) * std

    def bn_init(c):
        # (gamma, beta, running_mean, running_var) -- eval mode.
        return (jnp.ones((c,), jnp.float32), jnp.zeros((c,), jnp.float32),
                jnp.zeros((c,), jnp.float32), jnp.ones((c,), jnp.float32))

    keys = iter(jax.random.split(key, 64))
    params = {'conv1': {'w': conv_init(next(keys), 64, 3, 7, 7), 'bn': bn_init(64)}}
    cfg = [(64, 64, 1), (64, 128, 2), (128, 256, 2), (256, 512, 2)]
    layers = []
    for (cin, cout, stride) in cfg:
        blocks = []
        for b in range(2):
            s = stride if b == 0 else 1
            ic = cin if b == 0 else cout
            blk = {
                'conv1': {'w': conv_init(next(keys), cout, ic, 3, 3), 'bn': bn_init(cout)},
                'conv2': {'w': conv_init(next(keys), cout, cout, 3, 3), 'bn': bn_init(cout)},
            }
            if s != 1 or ic != cout:
                blk['downsample'] = {'w': conv_init(next(keys), cout, ic, 1, 1),
                                     'bn': bn_init(cout)}
            blocks.append(blk)
        layers.append(blocks)
    params['layers'] = layers
    fc_out = 2 * n_classes
    params['fc'] = {
        'w': jax.random.normal(next(keys), (fc_out, 512), jnp.float32) * (1.0 / 512) ** 0.5,
        'b': jnp.zeros((fc_out,), jnp.float32),
    }
    return params


def _fold_conv_bn(w, bn):
    """Fold BN into scale/bias, reshape weight to (K, Cout) matmul layout, pad K to 128."""
    Cout, Cin, kh, kw = w.shape
    gamma, beta, mean, var = bn
    scale = gamma / jnp.sqrt(var + 1e-5)
    bias = beta - mean * scale
    wmat = jnp.transpose(w, (2, 3, 1, 0)).reshape(kh * kw * Cin, Cout)
    K = kh * kw * Cin
    Kp = _round_up(K, 128)
    if Kp > K:
        wmat = jnp.pad(wmat, ((0, Kp - K), (0, 0)))
    return {'wmat': wmat.astype(jnp.bfloat16),
            'scale': scale.reshape(1, Cout).astype(jnp.float32),
            'bias': bias.reshape(1, Cout).astype(jnp.float32),
            'kh': kh, 'kw': kw, 'k': K}


def prepare_params(raw):
    prepared = {'conv1': _fold_conv_bn(raw['conv1']['w'], raw['conv1']['bn'])}
    layers = []
    for layer in raw['layers']:
        blocks = []
        for blk in layer:
            nb = {'conv1': _fold_conv_bn(blk['conv1']['w'], blk['conv1']['bn']),
                  'conv2': _fold_conv_bn(blk['conv2']['w'], blk['conv2']['bn'])}
            if 'downsample' in blk:
                nb['downsample'] = _fold_conv_bn(blk['downsample']['w'],
                                                 blk['downsample']['bn'])
            blocks.append(nb)
        layers.append(blocks)
    prepared['layers'] = layers

    # fc: transpose to (512, out) and zero-pad out-dim to 128 for lane-dense stores.
    w, b = raw['fc']['w'], raw['fc']['b']
    n_out = w.shape[0]
    n_pad = _round_up(max(n_out, 128), 128)
    wfc = jnp.zeros((w.shape[1], n_pad), jnp.float32).at[:, :n_out].set(w.T)
    bfc = jnp.zeros((n_pad,), jnp.float32).at[:n_out].set(b)
    prepared['fc'] = {'wmat': wfc.astype(jnp.bfloat16),
                      'scale': jnp.ones((1, n_pad), jnp.float32),
                      'bias': bfc.reshape(1, n_pad),
                      'n_out': n_out}
    return prepared


# ----------------------------------------------------------------------------
# Forward pass
# ----------------------------------------------------------------------------
def custom_net_forward(params, x_nchw):
    # NCHW (PyTorch convention) -> NHWC bf16 for the kernels.
    x = jnp.transpose(x_nchw, (0, 2, 3, 1)).astype(jnp.bfloat16)
    x = conv_bn(x, params['conv1'], stride=2, pad=3, relu=True)
    x = maxpool_3x3_s2(x)
    for layer, stride in zip(params['layers'], (1, 2, 2, 2)):
        for bi, blk in enumerate(layer):
            x = basic_block(x, blk, stride if bi == 0 else 1)
    # AdaptiveAvgPool2d(1) == mean over spatial dims (glue reduction, f32).
    x = jnp.mean(x.astype(jnp.float32), axis=(1, 2))  # (B, 512)
    fc = params['fc']
    out = fused_matmul(x.astype(jnp.bfloat16), fc['wmat'], fc['scale'], fc['bias'],
                       relu=False, out_dtype=jnp.float32)
    return out[:, :fc['n_out']]  # (B, 2*n_classes)


if __name__ == "__main__":
    key = jax.random.PRNGKey(0)
    pkey, xkey = jax.random.split(key)
    raw_params = init_params(pkey, n_classes=4)
    params = prepare_params(raw_params)
    # Small input consistent with resnet18: batch=2, 3 channels, 32x32 spatial.
    x = jax.random.normal(xkey, (2, 3, 32, 32), jnp.float32)
    fwd = jax.jit(lambda inp: custom_net_forward(params, inp))
    out = jax.block_until_ready(fwd(x))
    assert out.shape == (2, 8), out.shape
    print("KERNEL_OK")
</pallas_src>

<mosaic_0001>
module attributes {stable_mosaic.version = 11 : i64} {
  func.func @_mm_kernel(%arg0: i32, %arg1: i32, %arg2: i32, %arg3: memref<256x256xbf16, #tpu.memory_space<vmem>>, %arg4: memref<256x64xbf16, #tpu.memory_space<vmem>>, %arg5: memref<1x64xf32, #tpu.memory_space<vmem>>, %arg6: memref<1x64xf32, #tpu.memory_space<vmem>>, %arg7: memref<256x64xbf16, #tpu.memory_space<vmem>>, %arg8: memref<256x64xf32, #tpu.memory_space<vmem>>) attributes {dimension_semantics = [#tpu.dimension_semantics<parallel>, #tpu.dimension_semantics<parallel>, #tpu.dimension_semantics<arbitrary>], iteration_bounds = array<i64: 2, 1, 1>, scalar_prefetch = 0 : i64, scratch_operands = 1 : i64, tpu.core_type = #tpu.core_type<tc>, window_params = [{transform_indices = @transform_0, window_bounds = array<i64: 256, 256>}, {transform_indices = @transform_1, window_bounds = array<i64: 256, 64>}, {transform_indices = @transform_2, window_bounds = array<i64: 1, 64>}, {transform_indices = @transform_3, window_bounds = array<i64: 1, 64>}, {transform_indices = @transform_4, window_bounds = array<i64: 256, 64>}]} {
    %c0_i32 = arith.constant 0 : i32
    %0 = arith.cmpi eq, %arg2, %c0_i32 : i32
    %1 = arith.extui %0 : i1 to i32
    %c0_i32_0 = arith.constant 0 : i32
    %2 = arith.cmpi ne, %1, %c0_i32_0 : i32
    scf.if %2 {
      %cst_10 = arith.constant 0.000000e+00 : f32
      %12 = vector.broadcast %cst_10 : f32 to vector<256x64xf32>
      %c0_11 = arith.constant 0 : index
      %c0_12 = arith.constant 0 : index
      %13 = vector.load %arg8[%c0_11, %c0_12] : memref<256x64xf32, #tpu.memory_space<vmem>>, vector<256x64xf32>
      tpu.vector_store %arg8[%c0_11, %c0_12], %12 {strides = array<i32>} : memref<256x64xf32, #tpu.memory_space<vmem>>, vector<256x64xf32>,
    } else {
    }
    %c0 = arith.constant 0 : index
    %c0_1 = arith.constant 0 : index
    %3 = vector.load %arg8[%c0, %c0_1] : memref<256x64xf32, #tpu.memory_space<vmem>>, vector<256x64xf32>
    %c0_2 = arith.constant 0 : index
    %c0_3 = arith.constant 0 : index
    %4 = vector.load %arg3[%c0_2, %c0_3] : memref<256x256xbf16, #tpu.memory_space<vmem>>, vector<256x256xbf16>
    %c0_4 = arith.constant 0 : index
    %c0_5 = arith.constant 0 : index
    %5 = vector.load %arg4[%c0_4, %c0_5] : memref<256x64xbf16, #tpu.memory_space<vmem>>, vector<256x64xbf16>
    %cst = arith.constant dense<0.000000e+00> : vector<256x64xf32>
    %6 = tpu.matmul %4, %5, %cst {dimension_numbers = #tpu.dot_dimension_numbers<[1], [0], [0], [1], [0, 0, 1, 1], [], []>} : vector<256x256xbf16>, vector<256x64xbf16>, vector<256x64xf32> -> vector<256x64xf32>
    %7 = arith.addf %3, %6 : vector<256x64xf32>
    %c0_6 = arith.constant 0 : index
    %c0_7 = arith.constant 0 : index
    %8 = vector.load %arg8[%c0_6, %c0_7] : memref<256x64xf32, #tpu.memory_space<vmem>>, vector<256x64xf32>
    tpu.vector_store %arg8[%c0_6, %c0_7], %7 {strides = array<i32>} : memref<256x64xf32, #tpu.memory_space<vmem>>, vector<256x64xf32>,
    %c0_i32_8 = arith.constant 0 : i32
    %9 = arith.cmpi eq, %arg2, %c0_i32_8 : i32
    %10 = arith.extui %9 : i1 to i32
    %c0_i32_9 = arith.constant 0 : i32
    %11 = arith.cmpi ne, %10, %c0_i32_9 : i32
    scf.if %11 {
      %c0_10 = arith.constant 0 : index
      %c0_11 = arith.constant 0 : index
      %12 = vector.load %arg8[%c0_10, %c0_11] : memref<256x64xf32, #tpu.memory_space<vmem>>, vector<256x64xf32>
      %c0_12 = arith.constant 0 : index
      %c0_13 = arith.constant 0 : index
      %13 = vector.load %arg5[%c0_12, %c0_13] : memref<1x64xf32, #tpu.memory_space<vmem>>, vector<1x64xf32>
      %14 = vector.broadcast %13 : vector<1x64xf32> to vector<256x64xf32>
      %15 = arith.mulf %12, %14 : vector<256x64xf32>
      %c0_14 = arith.constant 0 : index
      %c0_15 = arith.constant 0 : index
      %16 = vector.load %arg6[%c0_14, %c0_15] : memref<1x64xf32, #tpu.memory_space<vmem>>, vector<1x64xf32>
      %17 = vector.broadcast %16 : vector<1x64xf32> to vector<256x64xf32>
      %18 = arith.addf %15, %17 : vector<256x64xf32>
      %cst_16 = arith.constant 0.000000e+00 : f32
      %19 = vector.broadcast %cst_16 : f32 to vector<256x64xf32>
      %20 = arith.maximumf %18, %19 : vector<256x64xf32>
      %21 = arith.truncf %20 : vector<256x64xf32> to vector<256x64xbf16>
      %c0_17 = arith.constant 0 : index
      %c0_18 = arith.constant 0 : index
      %22 = vector.load %arg7[%c0_17, %c0_18] : memref<256x64xbf16, #tpu.memory_space<vmem>>, vector<256x64xbf16>
      tpu.vector_store %arg7[%c0_17, %c0_18], %21 {strides = array<i32>} : memref<256x64xbf16, #tpu.memory_space<vmem>>, vector<256x64xbf16>,
    } else {
    }
    return
  }
  func.func @transform_0(%arg0: i32, %arg1: i32, %arg2: i32) -> (i32, i32) {
    %c0_i32 = arith.constant 0 : i32
    return %arg0, %arg2 : i32, i32
  }
  func.func @transform_1(%arg0: i32, %arg1: i32, %arg2: i32) -> (i32, i32) {
    %c0_i32 = arith.constant 0 : i32
    return %arg2, %arg1 : i32, i32
  }
  func.func @transform_2(%arg0: i32, %arg1: i32, %arg2: i32) -> (i32, i32) {
    %c0_i32 = arith.constant 0 : i32
    %c0_i32_0 = arith.constant 0 : i32
    return %c0_i32, %arg1 : i32, i32
  }
  func.func @transform_3(%arg0: i32, %arg1: i32, %arg2: i32) -> (i32, i32) {
    %c0_i32 = arith.constant 0 : i32
    %c0_i32_0 = arith.constant 0 : i32
    return %c0_i32, %arg1 : i32, i32
  }
  func.func @transform_4(%arg0: i32, %arg1: i32, %arg2: i32) -> (i32, i32) {
    %c0_i32 = arith.constant 0 : i32
    return %arg0, %arg1 : i32, i32
  }
}

module attributes {stable_mosaic.version = 11 : i64} {
  func.func @_maxpool9_kernel(%arg0: i32, %arg1: memref<128x64xbf16, #tpu.memory_space<vmem>>, %arg2: memref<128x64xbf16, #tpu.memory_space<vmem>>, %arg3: memref<128x64xbf16, #tpu.memory_space<vmem>>, %arg4: memref<128x64xbf16, #tpu.memory_space<vmem>>, %arg5: memref<128x64xbf16, #tpu.memory_space<vmem>>, %arg6: memref<128x64xbf16, #tpu.memory_space<vmem>>, %arg7: memref<128x64xbf16, #tpu.memory_space<vmem>>, %arg8: memref<128x64xbf16, #tpu.memory_space<vmem>>, %arg9: memref<128x64xbf16, #tpu.memory_space<vmem>>, %arg10: memref<128x64xbf16, #tpu.memory_space<vmem>>) attributes {dimension_semantics = [#tpu.dimension_semantics<parallel>], iteration_bounds = array<i64: 1>, scalar_prefetch = 0 : i64, scratch_operands = 0 : i64, tpu.core_type = #tpu.core_type<tc>, window_params = [{transform_indices = @transform_0, window_bounds = array<i64: 128, 64>}, {transform_indices = @transform_1, window_bounds = array<i64: 128, 64>}, {transform_indices = @transform_2, window_bounds = array<i64: 128, 64>}, {transform_indices = @transform_3, window_bounds = array<i64: 128, 64>}, {transform_indices = @transform_4, window_bounds = array<i64: 128, 64>}, {transform_indices = @transform_5, window_bounds = array<i64: 128, 64>}, {transform_indices = @transform_6, window_bounds = array<i64: 128, 64>}, {transform_indices = @transform_7, window_bounds = array<i64: 128, 64>}, {transform_indices = @transform_8, window_bounds = array<i64: 128, 64>}, {transform_indices = @transform_9, window_bounds = array<i64: 128, 64>}]} {
    %c0 = arith.constant 0 : index
    %c0_0 = arith.constant 0 : index
    %0 = vector.load %arg1[%c0, %c0_0] : memref<128x64xbf16, #tpu.memory_space<vmem>>, vector<128x64xbf16>
    %c0_1 = arith.constant 0 : index
    %c0_2 = arith.constant 0 : index
    %1 = vector.load %arg2[%c0_1, %c0_2] : memref<128x64xbf16, #tpu.memory_space<vmem>>, vector<128x64xbf16>
    %2 = arith.maximumf %0, %1 : vector<128x64xbf16>
    %c0_3 = arith.constant 0 : index
    %c0_4 = arith.constant 0 : index
    %3 = vector.load %arg3[%c0_3, %c0_4] : memref<128x64xbf16, #tpu.memory_space<vmem>>, vector<128x64xbf16>
    %c0_5 = arith.constant 0 : index
    %c0_6 = arith.constant 0 : index
    %4 = vector.load %arg4[%c0_5, %c0_6] : memref<128x64xbf16, #tpu.memory_space<vmem>>, vector<128x64xbf16>
    %5 = arith.maximumf %3, %4 : vector<128x64xbf16>
    %6 = arith.maximumf %2, %5 : vector<128x64xbf16>
    %c0_7 = arith.constant 0 : index
    %c0_8 = arith.constant 0 : index
    %7 = vector.load %arg5[%c0_7, %c0_8] : memref<128x64xbf16, #tpu.memory_space<vmem>>, vector<128x64xbf16>
    %c0_9 = arith.constant 0 : index
    %c0_10 = arith.constant 0 : index
    %8 = vector.load %arg6[%c0_9, %c0_10] : memref<128x64xbf16, #tpu.memory_space<vmem>>, vector<128x64xbf16>
    %9 = arith.maximumf %7, %8 : vector<128x64xbf16>
    %c0_11 = arith.constant 0 : index
    %c0_12 = arith.constant 0 : index
    %10 = vector.load %arg7[%c0_11, %c0_12] : memref<128x64xbf16, #tpu.memory_space<vmem>>, vector<128x64xbf16>
    %c0_13 = arith.constant 0 : index
    %c0_14 = arith.constant 0 : index
    %11 = vector.load %arg8[%c0_13, %c0_14] : memref<128x64xbf16, #tpu.memory_space<vmem>>, vector<128x64xbf16>
    %12 = arith.maximumf %10, %11 : vector<128x64xbf16>
    %13 = arith.maximumf %9, %12 : vector<128x64xbf16>
    %14 = arith.maximumf %6, %13 : vector<128x64xbf16>
    %c0_15 = arith.constant 0 : index
    %c0_16 = arith.constant 0 : index
    %15 = vector.load %arg9[%c0_15, %c0_16] : memref<128x64xbf16, #tpu.memory_space<vmem>>, vector<128x64xbf16>
    %16 = arith.maximumf %14, %15 : vector<128x64xbf16>
    %c0_17 = arith.constant 0 : index
    %c0_18 = arith.constant 0 : index
    %17 = vector.load %arg10[%c0_17, %c0_18] : memref<128x64xbf16, #tpu.memory_space<vmem>>, vector<128x64xbf16>
    tpu.vector_store %arg10[%c0_17, %c0_18], %16 {strides = array<i32>} : memref<128x64xbf16, #tpu.memory_space<vmem>>, vector<128x64xbf16>,
    return
  }
  func.func @transform_0(%arg0: i32) -> (i32, i32) {
    %c0_i32 = arith.constant 0 : i32
    %c0_i32_0 = arith.constant 0 : i32
    return %arg0, %c0_i32 : i32, i32
  }
  func.func @transform_1(%arg0: i32) -> (i32, i32) {
    %c0_i32 = arith.constant 0 : i32
    %c0_i32_0 = arith.constant 0 : i32
    return %arg0, %c0_i32 : i32, i32
  }
  func.func @transform_2(%arg0: i32) -> (i32, i32) {
    %c0_i32 = arith.constant 0 : i32
    %c0_i32_0 = arith.constant 0 : i32
    return %arg0, %c0_i32 : i32, i32
  }
  func.func @transform_3(%arg0: i32) -> (i32, i32) {
    %c0_i32 = arith.constant 0 : i32
    %c0_i32_0 = arith.constant 0 : i32
    return %arg0, %c0_i32 : i32, i32
  }
  func.func @transform_4(%arg0: i32) -> (i32, i32) {
    %c0_i32 = arith.constant 0 : i32
    %c0_i32_0 = arith.constant 0 : i32
    return %arg0, %c0_i32 : i32, i32
  }
  func.func @transform_5(%arg0: i32) -> (i32, i32) {
    %c0_i32 = arith.constant 0 : i32
    %c0_i32_0 = arith.constant 0 : i32
    return %arg0, %c0_i32 : i32, i32
  }
  func.func @transform_6(%arg0: i32) -> (i32, i32) {
    %c0_i32 = arith.constant 0 : i32
    %c0_i32_0 = arith.constant 0 : i32
    return %arg0, %c0_i32 : i32, i32
  }
  func.func @transform_7(%arg0: i32) -> (i32, i32) {
    %c0_i32 = arith.constant 0 : i32
    %c0_i32_0 = arith.constant 0 : i32
    return %arg0, %c0_i32 : i32, i32
  }
  func.func @transform_8(%arg0: i32) -> (i32, i32) {
    %c0_i32 = arith.constant 0 : i32
    %c0_i32_0 = arith.constant 0 : i32
    return %arg0, %c0_i32 : i32, i32
  }
  func.func @transform_9(%arg0: i32) -> (i32, i32) {
    %c0_i32 = arith.constant 0 : i32
    %c0_i32_0 = arith.constant 0 : i32
    return %arg0, %c0_i32 : i32, i32
  }
}

module attributes {stable_mosaic.version = 11 : i64} {
  func.func @_mm_kernel(%arg0: i32, %arg1: i32, %arg2: i32, %arg3: memref<128x128xbf16, #tpu.memory_space<vmem>>, %arg4: memref<128x64xbf16, #tpu.memory_space<vmem>>, %arg5: memref<1x64xf32, #tpu.memory_space<vmem>>, %arg6: memref<1x64xf32, #tpu.memory_space<vmem>>, %arg7: memref<128x64xbf16, #tpu.memory_space<vmem>>, %arg8: memref<128x64xf32, #tpu.memory_space<vmem>>) attributes {dimension_semantics = [#tpu.dimension_semantics<parallel>, #tpu.dimension_semantics<parallel>, #tpu.dimension_semantics<arbitrary>], iteration_bounds = array<i64: 1, 1, 5>, scalar_prefetch = 0 : i64, scratch_operands = 1 : i64, tpu.core_type = #tpu.core_type<tc>, window_params = [{transform_indices = @transform_0, window_bounds = array<i64: 128, 128>}, {transform_indices = @transform_1, window_bounds = array<i64: 128, 64>}, {transform_indices = @transform_2, window_bounds = array<i64: 1, 64>}, {transform_indices = @transform_3, window_bounds = array<i64: 1, 64>}, {transform_indices = @transform_4, window_bounds = array<i64: 128, 64>}]} {
    %c0_i32 = arith.constant 0 : i32
    %0 = arith.cmpi eq, %arg2, %c0_i32 : i32
    %1 = arith.extui %0 : i1 to i32
    %c0_i32_0 = arith.constant 0 : i32
    %2 = arith.cmpi ne, %1, %c0_i32_0 : i32
    scf.if %2 {
      %cst_9 = arith.constant 0.000000e+00 : f32
      %12 = vector.broadcast %cst_9 : f32 to vector<128x64xf32>
      %c0_10 = arith.constant 0 : index
      %c0_11 = arith.constant 0 : index
      %13 = vector.load %arg8[%c0_10, %c0_11] : memref<128x64xf32, #tpu.memory_space<vmem>>, vector<128x64xf32>
      tpu.vector_store %arg8[%c0_10, %c0_11], %12 {strides = array<i32>} : memref<128x64xf32, #tpu.memory_space<vmem>>, vector<128x64xf32>,
    } else {
    }
    %c0 = arith.constant 0 : index
    %c0_1 = arith.constant 0 : index
    %3 = vector.load %arg8[%c0, %c0_1] : memref<128x64xf32, #tpu.memory_space<vmem>>, vector<128x64xf32>
    %c0_2 = arith.constant 0 : index
    %c0_3 = arith.constant 0 : index
    %4 = vector.load %arg3[%c0_2, %c0_3] : memref<128x128xbf16, #tpu.memory_space<vmem>>, vector<128x128xbf16>
    %c0_4 = arith.constant 0 : index
    %c0_5 = arith.constant 0 : index
    %5 = vector.load %arg4[%c0_4, %c0_5] : memref<128x64xbf16, #tpu.memory_space<vmem>>, vector<128x64xbf16>
    %cst = arith.constant dense<0.000000e+00> : vector<128x64xf32>
    %6 = tpu.matmul %4, %5, %cst {dimension_numbers = #tpu.dot_dimension_numbers<[1], [0], [0], [1], [0, 0, 1, 1], [], []>} : vector<128x128xbf16>, vector<128x64xbf16>, vector<128x64xf32> -> vector<128x64xf32>
    %7 = arith.addf %3, %6 : vector<128x64xf32>
    %c0_6 = arith.constant 0 : index
    %c0_7 = arith.constant 0 : index
    %8 = vector.load %arg8[%c0_6, %c0_7] : memref<128x64xf32, #tpu.memory_space<vmem>>, vector<128x64xf32>
    tpu.vector_store %arg8[%c0_6, %c0_7], %7 {strides = array<i32>} : memref<128x64xf32, #tpu.memory_space<vmem>>, vector<128x64xf32>,
    %c4_i32 = arith.constant 4 : i32
    %9 = arith.cmpi eq, %arg2, %c4_i32 : i32
    %10 = arith.extui %9 : i1 to i32
    %c0_i32_8 = arith.constant 0 : i32
    %11 = arith.cmpi ne, %10, %c0_i32_8 : i32
    scf.if %11 {
      %c0_9 = arith.constant 0 : index
      %c0_10 = arith.constant 0 : index
      %12 = vector.load %arg8[%c0_9, %c0_10] : memref<128x64xf32, #tpu.memory_space<vmem>>, vector<128x64xf32>
      %c0_11 = arith.constant 0 : index
      %c0_12 = arith.constant 0 : index
      %13 = vector.load %arg5[%c0_11, %c0_12] : memref<1x64xf32, #tpu.memory_space<vmem>>, vector<1x64xf32>
      %14 = vector.broadcast %13 : vector<1x64xf32> to vector<128x64xf32>
      %15 = arith.mulf %12, %14 : vector<128x64xf32>
      %c0_13 = arith.constant 0 : index
      %c0_14 = arith.constant 0 : index
      %16 = vector.load %arg6[%c0_13, %c0_14] : memref<1x64xf32, #tpu.memory_space<vmem>>, vector<1x64xf32>
      %17 = vector.broadcast %16 : vector<1x64xf32> to vector<128x64xf32>
      %18 = arith.addf %15, %17 : vector<128x64xf32>
      %cst_15 = arith.constant 0.000000e+00 : f32
      %19 = vector.broadcast %cst_15 : f32 to vector<128x64xf32>
      %20 = arith.maximumf %18, %19 : vector<128x64xf32>
      %21 = arith.truncf %20 : vector<128x64xf32> to vector<128x64xbf16>
      %c0_16 = arith.constant 0 : index
      %c0_17 = arith.constant 0 : index
      %22 = vector.load %arg7[%c0_16, %c0_17] : memref<128x64xbf16, #tpu.memory_space<vmem>>, vector<128x64xbf16>
      tpu.vector_store %arg7[%c0_16, %c0_17], %21 {strides = array<i32>} : memref<128x64xbf16, #tpu.memory_space<vmem>>, vector<128x64xbf16>,
    } else {
    }
    return
  }
  func.func @transform_0(%arg0: i32, %arg1: i32, %arg2: i32) -> (i32, i32) {
    %c0_i32 = arith.constant 0 : i32
    return %arg0, %arg2 : i32, i32
  }
  func.func @transform_1(%arg0: i32, %arg1: i32, %arg2: i32) -> (i32, i32) {
    %c0_i32 = arith.constant 0 : i32
    return %arg2, %arg1 : i32, i32
  }
  func.func @transform_2(%arg0: i32, %arg1: i32, %arg2: i32) -> (i32, i32) {
    %c0_i32 = arith.constant 0 : i32
    %c0_i32_0 = arith.constant 0 : i32
    return %c0_i32, %arg1 : i32, i32
  }
  func.func @transform_3(%arg0: i32, %arg1: i32, %arg2: i32) -> (i32, i32) {
    %c0_i32 = arith.constant 0 : i32
    %c0_i32_0 = arith.constant 0 : i32
    return %c0_i32, %arg1 : i32, i32
  }
  func.func @transform_4(%arg0: i32, %arg1: i32, %arg2: i32) -> (i32, i32) {
    %c0_i32 = arith.constant 0 : i32
    return %arg0, %arg1 : i32, i32
  }
}

module attributes {stable_mosaic.version = 11 : i64} {
  func.func @_mm_res_kernel(%arg0: i32, %arg1: i32, %arg2: i32, %arg3: memref<128x128xbf16, #tpu.memory_space<vmem>>, %arg4: memref<128x64xbf16, #tpu.memory_space<vmem>>, %arg5: memref<1x64xf32, #tpu.memory_space<vmem>>, %arg6: memref<1x64xf32, #tpu.memory_space<vmem>>, %arg7: memref<128x64xbf16, #tpu.memory_space<vmem>>, %arg8: memref<128x64xbf16, #tpu.memory_space<vmem>>, %arg9: memref<128x64xf32, #tpu.memory_space<vmem>>) attributes {dimension_semantics = [#tpu.dimension_semantics<parallel>, #tpu.dimension_semantics<parallel>, #tpu.dimension_semantics<arbitrary>], iteration_bounds = array<i64: 1, 1, 5>, scalar_prefetch = 0 : i64, scratch_operands = 1 : i64, tpu.core_type = #tpu.core_type<tc>, window_params = [{transform_indices = @transform_0, window_bounds = array<i64: 128, 128>}, {transform_indices = @transform_1, window_bounds = array<i64: 128, 64>}, {transform_indices = @transform_2, window_bounds = array<i64: 1, 64>}, {transform_indices = @transform_3, window_bounds = array<i64: 1, 64>}, {transform_indices = @transform_4, window_bounds = array<i64: 128, 64>}, {transform_indices = @transform_5, window_bounds = array<i64: 128, 64>}]} {
    %c0_i32 = arith.constant 0 : i32
    %0 = arith.cmpi eq, %arg2, %c0_i32 : i32
    %1 = arith.extui %0 : i1 to i32
    %c0_i32_0 = arith.constant 0 : i32
    %2 = arith.cmpi ne, %1, %c0_i32_0 : i32
    scf.if %2 {
      %cst_9 = arith.constant 0.000000e+00 : f32
      %12 = vector.broadcast %cst_9 : f32 to vector<128x64xf32>
      %c0_10 = arith.constant 0 : index
      %c0_11 = arith.constant 0 : index
      %13 = vector.load %arg9[%c0_10, %c0_11] : memref<128x64xf32, #tpu.memory_space<vmem>>, vector<128x64xf32>
      tpu.vector_store %arg9[%c0_10, %c0_11], %12 {strides = array<i32>} : memref<128x64xf32, #tpu.memory_space<vmem>>, vector<128x64xf32>,
    } else {
    }
    %c0 = arith.constant 0 : index
    %c0_1 = arith.constant 0 : index
    %3 = vector.load %arg9[%c0, %c0_1] : memref<128x64xf32, #tpu.memory_space<vmem>>, vector<128x64xf32>
    %c0_2 = arith.constant 0 : index
    %c0_3 = arith.constant 0 : index
    %4 = vector.load %arg3[%c0_2, %c0_3] : memref<128x128xbf16, #tpu.memory_space<vmem>>, vector<128x128xbf16>
    %c0_4 = arith.constant 0 : index
    %c0_5 = arith.constant 0 : index
    %5 = vector.load %arg4[%c0_4, %c0_5] : memref<128x64xbf16, #tpu.memory_space<vmem>>, vector<128x64xbf16>
    %cst = arith.constant dense<0.000000e+00> : vector<128x64xf32>
    %6 = tpu.matmul %4, %5, %cst {dimension_numbers = #tpu.dot_dimension_numbers<[1], [0], [0], [1], [0, 0, 1, 1], [], []>} : vector<128x128xbf16>, vector<128x64xbf16>, vector<128x64xf32> -> vector<128x64xf32>
    %7 = arith.addf %3, %6 : vector<128x64xf32>
    %c0_6 = arith.constant 0 : index
    %c0_7 = arith.constant 0 : index
    %8 = vector.load %arg9[%c0_6, %c0_7] : memref<128x64xf32, #tpu.memory_space<vmem>>, vector<128x64xf32>
    tpu.vector_store %arg9[%c0_6, %c0_7], %7 {strides = array<i32>} : memref<128x64xf32, #tpu.memory_space<vmem>>, vector<128x64xf32>,
    %c4_i32 = arith.constant 4 : i32
    %9 = arith.cmpi eq, %arg2, %c4_i32 : i32
    %10 = arith.extui %9 : i1 to i32
    %c0_i32_8 = arith.constant 0 : i32
    %11 = arith.cmpi ne, %10, %c0_i32_8 : i32
    scf.if %11 {
      %c0_9 = arith.constant 0 : index
      %c0_10 = arith.constant 0 : index
      %12 = vector.load %arg9[%c0_9, %c0_10] : memref<128x64xf32, #tpu.memory_space<vmem>>, vector<128x64xf32>
      %c0_11 = arith.constant 0 : index
      %c0_12 = arith.constant 0 : index
      %13 = vector.load %arg5[%c0_11, %c0_12] : memref<1x64xf32, #tpu.memory_space<vmem>>, vector<1x64xf32>
      %14 = vector.broadcast %13 : vector<1x64xf32> to vector<128x64xf32>
      %15 = arith.mulf %12, %14 : vector<128x64xf32>
      %c0_13 = arith.constant 0 : index
      %c0_14 = arith.constant 0 : index
      %16 = vector.load %arg6[%c0_13, %c0_14] : memref<1x64xf32, #tpu.memory_space<vmem>>, vector<1x64xf32>
      %17 = vector.broadcast %16 : vector<1x64xf32> to vector<128x64xf32>
      %18 = arith.addf %15, %17 : vector<128x64xf32>
      %c0_15 = arith.constant 0 : index
      %c0_16 = arith.constant 0 : index
      %19 = vector.load %arg7[%c0_15, %c0_16] : memref<128x64xbf16, #tpu.memory_space<vmem>>, vector<128x64xbf16>
      %20 = arith.extf %19 : vector<128x64xbf16> to vector<128x64xf32>
      %21 = arith.addf %18, %20 : vector<128x64xf32>
      %cst_17 = arith.constant 0.000000e+00 : f32
      %22 = vector.broadcast %cst_17 : f32 to vector<128x64xf32>
      %23 = arith.maximumf %21, %22 : vector<128x64xf32>
      %24 = arith.truncf %23 : vector<128x64xf32> to vector<128x64xbf16>
      %c0_18 = arith.constant 0 : index
      %c0_19 = arith.constant 0 : index
      %25 = vector.load %arg8[%c0_18, %c0_19] : memref<128x64xbf16, #tpu.memory_space<vmem>>, vector<128x64xbf16>
      tpu.vector_store %arg8[%c0_18, %c0_19], %24 {strides = array<i32>} : memref<128x64xbf16, #tpu.memory_space<vmem>>, vector<128x64xbf16>,
    } else {
    }
    return
  }
  func.func @transform_0(%arg0: i32, %arg1: i32, %arg2: i32) -> (i32, i32) {
    %c0_i32 = arith.constant 0 : i32
    return %arg0, %arg2 : i32, i32
  }
  func.func @transform_1(%arg0: i32, %arg1: i32, %arg2: i32) -> (i32, i32) {
    %c0_i32 = arith.constant 0 : i32
    return %arg2, %arg1 : i32, i32
  }
  func.func @transform_2(%arg0: i32, %arg1: i32, %arg2: i32) -> (i32, i32) {
    %c0_i32 = arith.constant 0 : i32
    %c0_i32_0 = arith.constant 0 : i32
    return %c0_i32, %arg1 : i32, i32
  }
  func.func @transform_3(%arg0: i32, %arg1: i32, %arg2: i32) -> (i32, i32) {
    %c0_i32 = arith.constant 0 : i32
    %c0_i32_0 = arith.constant 0 : i32
    return %c0_i32, %arg1 : i32, i32
  }
  func.func @transform_4(%arg0: i32, %arg1: i32, %arg2: i32) -> (i32, i32) {
    %c0_i32 = arith.constant 0 : i32
    return %arg0, %arg1 : i32, i32
  }
  func.func @transform_5(%arg0: i32, %arg1: i32, %arg2: i32) -> (i32, i32) {
    %c0_i32 = arith.constant 0 : i32
    return %arg0, %arg1 : i32, i32
  }
}

module attributes {stable_mosaic.version = 11 : i64} {
  func.func @_mm_kernel(%arg0: i32, %arg1: i32, %arg2: i32, %arg3: memref<32x128xbf16, #tpu.memory_space<vmem>>, %arg4: memref<128x128xbf16, #tpu.memory_space<vmem>>, %arg5: memref<1x128xf32, #tpu.memory_space<vmem>>, %arg6: memref<1x128xf32, #tpu.memory_space<vmem>>, %arg7: memref<32x128xbf16, #tpu.memory_space<vmem>>, %arg8: memref<32x128xf32, #tpu.memory_space<vmem>>) attributes {dimension_semantics = [#tpu.dimension_semantics<parallel>, #tpu.dimension_semantics<parallel>, #tpu.dimension_semantics<arbitrary>], iteration_bounds = array<i64: 1, 1, 5>, scalar_prefetch = 0 : i64, scratch_operands = 1 : i64, tpu.core_type = #tpu.core_type<tc>, window_params = [{transform_indices = @transform_0, window_bounds = array<i64: 32, 128>}, {transform_indices = @transform_1, window_bounds = array<i64: 128, 128>}, {transform_indices = @transform_2, window_bounds = array<i64: 1, 128>}, {transform_indices = @transform_3, window_bounds = array<i64: 1, 128>}, {transform_indices = @transform_4, window_bounds = array<i64: 32, 128>}]} {
    %c0_i32 = arith.constant 0 : i32
    %0 = arith.cmpi eq, %arg2, %c0_i32 : i32
    %1 = arith.extui %0 : i1 to i32
    %c0_i32_0 = arith.constant 0 : i32
    %2 = arith.cmpi ne, %1, %c0_i32_0 : i32
    scf.if %2 {
      %cst_9 = arith.constant 0.000000e+00 : f32
      %12 = vector.broadcast %cst_9 : f32 to vector<32x128xf32>
      %c0_10 = arith.constant 0 : index
      %c0_11 = arith.constant 0 : index
      %13 = vector.load %arg8[%c0_10, %c0_11] : memref<32x128xf32, #tpu.memory_space<vmem>>, vector<32x128xf32>
      tpu.vector_store %arg8[%c0_10, %c0_11], %12 {strides = array<i32>} : memref<32x128xf32, #tpu.memory_space<vmem>>, vector<32x128xf32>,
    } else {
    }
    %c0 = arith.constant 0 : index
    %c0_1 = arith.constant 0 : index
    %3 = vector.load %arg8[%c0, %c0_1] : memref<32x128xf32, #tpu.memory_space<vmem>>, vector<32x128xf32>
    %c0_2 = arith.constant 0 : index
    %c0_3 = arith.constant 0 : index
    %4 = vector.load %arg3[%c0_2, %c0_3] : memref<32x128xbf16, #tpu.memory_space<vmem>>, vector<32x128xbf16>
    %c0_4 = arith.constant 0 : index
    %c0_5 = arith.constant 0 : index
    %5 = vector.load %arg4[%c0_4, %c0_5] : memref<128x128xbf16, #tpu.memory_space<vmem>>, vector<128x128xbf16>
    %cst = arith.constant dense<0.000000e+00> : vector<32x128xf32>
    %6 = tpu.matmul %4, %5, %cst {dimension_numbers = #tpu.dot_dimension_numbers<[1], [0], [0], [1], [0, 0, 1, 1], [], []>} : vector<32x128xbf16>, vector<128x128xbf16>, vector<32x128xf32> -> vector<32x128xf32>
    %7 = arith.addf %3, %6 : vector<32x128xf32>
    %c0_6 = arith.constant 0 : index
    %c0_7 = arith.constant 0 : index
    %8 = vector.load %arg8[%c0_6, %c0_7] : memref<32x128xf32, #tpu.memory_space<vmem>>, vector<32x128xf32>
    tpu.vector_store %arg8[%c0_6, %c0_7], %7 {strides = array<i32>} : memref<32x128xf32, #tpu.memory_space<vmem>>, vector<32x128xf32>,
    %c4_i32 = arith.constant 4 : i32
    %9 = arith.cmpi eq, %arg2, %c4_i32 : i32
    %10 = arith.extui %9 : i1 to i32
    %c0_i32_8 = arith.constant 0 : i32
    %11 = arith.cmpi ne, %10, %c0_i32_8 : i32
    scf.if %11 {
      %c0_9 = arith.constant 0 : index
      %c0_10 = arith.constant 0 : index
      %12 = vector.load %arg8[%c0_9, %c0_10] : memref<32x128xf32, #tpu.memory_space<vmem>>, vector<32x128xf32>
      %c0_11 = arith.constant 0 : index
      %c0_12 = arith.constant 0 : index
      %13 = vector.load %arg5[%c0_11, %c0_12] : memref<1x128xf32, #tpu.memory_space<vmem>>, vector<1x128xf32>
      %14 = vector.broadcast %13 : vector<1x128xf32> to vector<32x128xf32>
      %15 = arith.mulf %12, %14 : vector<32x128xf32>
      %c0_13 = arith.constant 0 : index
      %c0_14 = arith.constant 0 : index
      %16 = vector.load %arg6[%c0_13, %c0_14] : memref<1x128xf32, #tpu.memory_space<vmem>>, vector<1x128xf32>
      %17 = vector.broadcast %16 : vector<1x128xf32> to vector<32x128xf32>
      %18 = arith.addf %15, %17 : vector<32x128xf32>
      %cst_15 = arith.constant 0.000000e+00 : f32
      %19 = vector.broadcast %cst_15 : f32 to vector<32x128xf32>
      %20 = arith.maximumf %18, %19 : vector<32x128xf32>
      %21 = arith.truncf %20 : vector<32x128xf32> to vector<32x128xbf16>
      %c0_16 = arith.constant 0 : index
      %c0_17 = arith.constant 0 : index
      %22 = vector.load %arg7[%c0_16, %c0_17] : memref<32x128xbf16, #tpu.memory_space<vmem>>, vector<32x128xbf16>
      tpu.vector_store %arg7[%c0_16, %c0_17], %21 {strides = array<i32>} : memref<32x128xbf16, #tpu.memory_space<vmem>>, vector<32x128xbf16>,
    } else {
    }
    return
  }
  func.func @transform_0(%arg0: i32, %arg1: i32, %arg2: i32) -> (i32, i32) {
    %c0_i32 = arith.constant 0 : i32
    return %arg0, %arg2 : i32, i32
  }
  func.func @transform_1(%arg0: i32, %arg1: i32, %arg2: i32) -> (i32, i32) {
    %c0_i32 = arith.constant 0 : i32
    return %arg2, %arg1 : i32, i32
  }
  func.func @transform_2(%arg0: i32, %arg1: i32, %arg2: i32) -> (i32, i32) {
    %c0_i32 = arith.constant 0 : i32
    %c0_i32_0 = arith.constant 0 : i32
    return %c0_i32, %arg1 : i32, i32
  }
  func.func @transform_3(%arg0: i32, %arg1: i32, %arg2: i32) -> (i32, i32) {
    %c0_i32 = arith.constant 0 : i32
    %c0_i32_0 = arith.constant 0 : i32
    return %c0_i32, %arg1 : i32, i32
  }
  func.func @transform_4(%arg0: i32, %arg1: i32, %arg2: i32) -> (i32, i32) {
    %c0_i32 = arith.constant 0 : i32
    return %arg0, %arg1 : i32, i32
  }
}

module attributes {stable_mosaic.version = 11 : i64} {
  func.func @_mm_kernel(%arg0: i32, %arg1: i32, %arg2: i32, %arg3: memref<32x128xbf16, #tpu.memory_space<vmem>>, %arg4: memref<128x128xbf16, #tpu.memory_space<vmem>>, %arg5: memref<1x128xf32, #tpu.memory_space<vmem>>, %arg6: memref<1x128xf32, #tpu.memory_space<vmem>>, %arg7: memref<32x128xbf16, #tpu.memory_space<vmem>>, %arg8: memref<32x128xf32, #tpu.memory_space<vmem>>) attributes {dimension_semantics = [#tpu.dimension_semantics<parallel>, #tpu.dimension_semantics<parallel>, #tpu.dimension_semantics<arbitrary>], iteration_bounds = array<i64: 1, 1, 1>, scalar_prefetch = 0 : i64, scratch_operands = 1 : i64, tpu.core_type = #tpu.core_type<tc>, window_params = [{transform_indices = @transform_0, window_bounds = array<i64: 32, 128>}, {transform_indices = @transform_1, window_bounds = array<i64: 128, 128>}, {transform_indices = @transform_2, window_bounds = array<i64: 1, 128>}, {transform_indices = @transform_3, window_bounds = array<i64: 1, 128>}, {transform_indices = @transform_4, window_bounds = array<i64: 32, 128>}]} {
    %c0_i32 = arith.constant 0 : i32
    %0 = arith.cmpi eq, %arg2, %c0_i32 : i32
    %1 = arith.extui %0 : i1 to i32
    %c0_i32_0 = arith.constant 0 : i32
    %2 = arith.cmpi ne, %1, %c0_i32_0 : i32
    scf.if %2 {
      %cst_10 = arith.constant 0.000000e+00 : f32
      %12 = vector.broadcast %cst_10 : f32 to vector<32x128xf32>
      %c0_11 = arith.constant 0 : index
      %c0_12 = arith.constant 0 : index
      %13 = vector.load %arg8[%c0_11, %c0_12] : memref<32x128xf32, #tpu.memory_space<vmem>>, vector<32x128xf32>
      tpu.vector_store %arg8[%c0_11, %c0_12], %12 {strides = array<i32>} : memref<32x128xf32, #tpu.memory_space<vmem>>, vector<32x128xf32>,
    } else {
    }
    %c0 = arith.constant 0 : index
    %c0_1 = arith.constant 0 : index
    %3 = vector.load %arg8[%c0, %c0_1] : memref<32x128xf32, #tpu.memory_space<vmem>>, vector<32x128xf32>
    %c0_2 = arith.constant 0 : index
    %c0_3 = arith.constant 0 : index
    %4 = vector.load %arg3[%c0_2, %c0_3] : memref<32x128xbf16, #tpu.memory_space<vmem>>, vector<32x128xbf16>
    %c0_4 = arith.constant 0 : index
    %c0_5 = arith.constant 0 : index
    %5 = vector.load %arg4[%c0_4, %c0_5] : memref<128x128xbf16, #tpu.memory_space<vmem>>, vector<128x128xbf16>
    %cst = arith.constant dense<0.000000e+00> : vector<32x128xf32>
    %6 = tpu.matmul %4, %5, %cst {dimension_numbers = #tpu.dot_dimension_numbers<[1], [0], [0], [1], [0, 0, 1, 1], [], []>} : vector<32x128xbf16>, vector<128x128xbf16>, vector<32x128xf32> -> vector<32x128xf32>
    %7 = arith.addf %3, %6 : vector<32x128xf32>
    %c0_6 = arith.constant 0 : index
    %c0_7 = arith.constant 0 : index
    %8 = vector.load %arg8[%c0_6, %c0_7] : memref<32x128xf32, #tpu.memory_space<vmem>>, vector<32x128xf32>
    tpu.vector_store %arg8[%c0_6, %c0_7], %7 {strides = array<i32>} : memref<32x128xf32, #tpu.memory_space<vmem>>, vector<32x128xf32>,
    %c0_i32_8 = arith.constant 0 : i32
    %9 = arith.cmpi eq, %arg2, %c0_i32_8 : i32
    %10 = arith.extui %9 : i1 to i32
    %c0_i32_9 = arith.constant 0 : i32
    %11 = arith.cmpi ne, %10, %c0_i32_9 : i32
    scf.if %11 {
      %c0_10 = arith.constant 0 : index
      %c0_11 = arith.constant 0 : index
      %12 = vector.load %arg8[%c0_10, %c0_11] : memref<32x128xf32, #tpu.memory_space<vmem>>, vector<32x128xf32>
      %c0_12 = arith.constant 0 : index
      %c0_13 = arith.constant 0 : index
      %13 = vector.load %arg5[%c0_12, %c0_13] : memref<1x128xf32, #tpu.memory_space<vmem>>, vector<1x128xf32>
      %14 = vector.broadcast %13 : vector<1x128xf32> to vector<32x128xf32>
      %15 = arith.mulf %12, %14 : vector<32x128xf32>
      %c0_14 = arith.constant 0 : index
      %c0_15 = arith.constant 0 : index
      %16 = vector.load %arg6[%c0_14, %c0_15] : memref<1x128xf32, #tpu.memory_space<vmem>>, vector<1x128xf32>
      %17 = vector.broadcast %16 : vector<1x128xf32> to vector<32x128xf32>
      %18 = arith.addf %15, %17 : vector<32x128xf32>
      %19 = arith.truncf %18 : vector<32x128xf32> to vector<32x128xbf16>
      %c0_16 = arith.constant 0 : index
      %c0_17 = arith.constant 0 : index
      %20 = vector.load %arg7[%c0_16, %c0_17] : memref<32x128xbf16, #tpu.memory_space<vmem>>, vector<32x128xbf16>
      tpu.vector_store %arg7[%c0_16, %c0_17], %19 {strides = array<i32>} : memref<32x128xbf16, #tpu.memory_space<vmem>>, vector<32x128xbf16>,
    } else {
    }
    return
  }
  func.func @transform_0(%arg0: i32, %arg1: i32, %arg2: i32) -> (i32, i32) {
    %c0_i32 = arith.constant 0 : i32
    return %arg0, %arg2 : i32, i32
  }
  func.func @transform_1(%arg0: i32, %arg1: i32, %arg2: i32) -> (i32, i32) {
    %c0_i32 = arith.constant 0 : i32
    return %arg2, %arg1 : i32, i32
  }
  func.func @transform_2(%arg0: i32, %arg1: i32, %arg2: i32) -> (i32, i32) {
    %c0_i32 = arith.constant 0 : i32
    %c0_i32_0 = arith.constant 0 : i32
    return %c0_i32, %arg1 : i32, i32
  }
  func.func @transform_3(%arg0: i32, %arg1: i32, %arg2: i32) -> (i32, i32) {
    %c0_i32 = arith.constant 0 : i32
    %c0_i32_0 = arith.constant 0 : i32
    return %c0_i32, %arg1 : i32, i32
  }
  func.func @transform_4(%arg0: i32, %arg1: i32, %arg2: i32) -> (i32, i32) {
    %c0_i32 = arith.constant 0 : i32
    return %arg0, %arg1 : i32, i32
  }
}

module attributes {stable_mosaic.version = 11 : i64} {
  func.func @_mm_res_kernel(%arg0: i32, %arg1: i32, %arg2: i32, %arg3: memref<32x128xbf16, #tpu.memory_space<vmem>>, %arg4: memref<128x128xbf16, #tpu.memory_space<vmem>>, %arg5: memref<1x128xf32, #tpu.memory_space<vmem>>, %arg6: memref<1x128xf32, #tpu.memory_space<vmem>>, %arg7: memref<32x128xbf16, #tpu.memory_space<vmem>>, %arg8: memref<32x128xbf16, #tpu.memory_space<vmem>>, %arg9: memref<32x128xf32, #tpu.memory_space<vmem>>) attributes {dimension_semantics = [#tpu.dimension_semantics<parallel>, #tpu.dimension_semantics<parallel>, #tpu.dimension_semantics<arbitrary>], iteration_bounds = array<i64: 1, 1, 9>, scalar_prefetch = 0 : i64, scratch_operands = 1 : i64, tpu.core_type = #tpu.core_type<tc>, window_params = [{transform_indices = @transform_0, window_bounds = array<i64: 32, 128>}, {transform_indices = @transform_1, window_bounds = array<i64: 128, 128>}, {transform_indices = @transform_2, window_bounds = array<i64: 1, 128>}, {transform_indices = @transform_3, window_bounds = array<i64: 1, 128>}, {transform_indices = @transform_4, window_bounds = array<i64: 32, 128>}, {transform_indices = @transform_5, window_bounds = array<i64: 32, 128>}]} {
    %c0_i32 = arith.constant 0 : i32
    %0 = arith.cmpi eq, %arg2, %c0_i32 : i32
    %1 = arith.extui %0 : i1 to i32
    %c0_i32_0 = arith.constant 0 : i32
    %2 = arith.cmpi ne, %1, %c0_i32_0 : i32
    scf.if %2 {
      %cst_9 = arith.constant 0.000000e+00 : f32
      %12 = vector.broadcast %cst_9 : f32 to vector<32x128xf32>
      %c0_10 = arith.constant 0 : index
      %c0_11 = arith.constant 0 : index
      %13 = vector.load %arg9[%c0_10, %c0_11] : memref<32x128xf32, #tpu.memory_space<vmem>>, vector<32x128xf32>
      tpu.vector_store %arg9[%c0_10, %c0_11], %12 {strides = array<i32>} : memref<32x128xf32, #tpu.memory_space<vmem>>, vector<32x128xf32>,
    } else {
    }
    %c0 = arith.constant 0 : index
    %c0_1 = arith.constant 0 : index
    %3 = vector.load %arg9[%c0, %c0_1] : memref<32x128xf32, #tpu.memory_space<vmem>>, vector<32x128xf32>
    %c0_2 = arith.constant 0 : index
    %c0_3 = arith.constant 0 : index
    %4 = vector.load %arg3[%c0_2, %c0_3] : memref<32x128xbf16, #tpu.memory_space<vmem>>, vector<32x128xbf16>
    %c0_4 = arith.constant 0 : index
    %c0_5 = arith.constant 0 : index
    %5 = vector.load %arg4[%c0_4, %c0_5] : memref<128x128xbf16, #tpu.memory_space<vmem>>, vector<128x128xbf16>
    %cst = arith.constant dense<0.000000e+00> : vector<32x128xf32>
    %6 = tpu.matmul %4, %5, %cst {dimension_numbers = #tpu.dot_dimension_numbers<[1], [0], [0], [1], [0, 0, 1, 1], [], []>} : vector<32x128xbf16>, vector<128x128xbf16>, vector<32x128xf32> -> vector<32x128xf32>
    %7 = arith.addf %3, %6 : vector<32x128xf32>
    %c0_6 = arith.constant 0 : index
    %c0_7 = arith.constant 0 : index
    %8 = vector.load %arg9[%c0_6, %c0_7] : memref<32x128xf32, #tpu.memory_space<vmem>>, vector<32x128xf32>
    tpu.vector_store %arg9[%c0_6, %c0_7], %7 {strides = array<i32>} : memref<32x128xf32, #tpu.memory_space<vmem>>, vector<32x128xf32>,
    %c8_i32 = arith.constant 8 : i32
    %9 = arith.cmpi eq, %arg2, %c8_i32 : i32
    %10 = arith.extui %9 : i1 to i32
    %c0_i32_8 = arith.constant 0 : i32
    %11 = arith.cmpi ne, %10, %c0_i32_8 : i32
    scf.if %11 {
      %c0_9 = arith.constant 0 : index
      %c0_10 = arith.constant 0 : index
      %12 = vector.load %arg9[%c0_9, %c0_10] : memref<32x128xf32, #tpu.memory_space<vmem>>, vector<32x128xf32>
      %c0_11 = arith.constant 0 : index
      %c0_12 = arith.constant 0 : index
      %13 = vector.load %arg5[%c0_11, %c0_12] : memref<1x128xf32, #tpu.memory_space<vmem>>, vector<1x128xf32>
      %14 = vector.broadcast %13 : vector<1x128xf32> to vector<32x128xf32>
      %15 = arith.mulf %12, %14 : vector<32x128xf32>
      %c0_13 = arith.constant 0 : index
      %c0_14 = arith.constant 0 : index
      %16 = vector.load %arg6[%c0_13, %c0_14] : memref<1x128xf32, #tpu.memory_space<vmem>>, vector<1x128xf32>
      %17 = vector.broadcast %16 : vector<1x128xf32> to vector<32x128xf32>
      %18 = arith.addf %15, %17 : vector<32x128xf32>
      %c0_15 = arith.constant 0 : index
      %c0_16 = arith.constant 0 : index
      %19 = vector.load %arg7[%c0_15, %c0_16] : memref<32x128xbf16, #tpu.memory_space<vmem>>, vector<32x128xbf16>
      %20 = arith.extf %19 : vector<32x128xbf16> to vector<32x128xf32>
      %21 = arith.addf %18, %20 : vector<32x128xf32>
      %cst_17 = arith.constant 0.000000e+00 : f32
      %22 = vector.broadcast %cst_17 : f32 to vector<32x128xf32>
      %23 = arith.maximumf %21, %22 : vector<32x128xf32>
      %24 = arith.truncf %23 : vector<32x128xf32> to vector<32x128xbf16>
      %c0_18 = arith.constant 0 : index
      %c0_19 = arith.constant 0 : index
      %25 = vector.load %arg8[%c0_18, %c0_19] : memref<32x128xbf16, #tpu.memory_space<vmem>>, vector<32x128xbf16>
      tpu.vector_store %arg8[%c0_18, %c0_19], %24 {strides = array<i32>} : memref<32x128xbf16, #tpu.memory_space<vmem>>, vector<32x128xbf16>,
    } else {
    }
    return
  }
  func.func @transform_0(%arg0: i32, %arg1: i32, %arg2: i32) -> (i32, i32) {
    %c0_i32 = arith.constant 0 : i32
    return %arg0, %arg2 : i32, i32
  }
  func.func @transform_1(%arg0: i32, %arg1: i32, %arg2: i32) -> (i32, i32) {
    %c0_i32 = arith.constant 0 : i32
    return %arg2, %arg1 : i32, i32
  }
  func.func @transform_2(%arg0: i32, %arg1: i32, %arg2: i32) -> (i32, i32) {
    %c0_i32 = arith.constant 0 : i32
    %c0_i32_0 = arith.constant 0 : i32
    return %c0_i32, %arg1 : i32, i32
  }
  func.func @transform_3(%arg0: i32, %arg1: i32, %arg2: i32) -> (i32, i32) {
    %c0_i32 = arith.constant 0 : i32
    %c0_i32_0 = arith.constant 0 : i32
    return %c0_i32, %arg1 : i32, i32
  }
  func.func @transform_4(%arg0: i32, %arg1: i32, %arg2: i32) -> (i32, i32) {
    %c0_i32 = arith.constant 0 : i32
    return %arg0, %arg1 : i32, i32
  }
  func.func @transform_5(%arg0: i32, %arg1: i32, %arg2: i32) -> (i32, i32) {
    %c0_i32 = arith.constant 0 : i32
    return %arg0, %arg1 : i32, i32
  }
}

module attributes {stable_mosaic.version = 11 : i64} {
  func.func @_mm_kernel(%arg0: i32, %arg1: i32, %arg2: i32, %arg3: memref<32x128xbf16, #tpu.memory_space<vmem>>, %arg4: memref<128x128xbf16, #tpu.memory_space<vmem>>, %arg5: memref<1x128xf32, #tpu.memory_space<vmem>>, %arg6: memref<1x128xf32, #tpu.memory_space<vmem>>, %arg7: memref<32x128xbf16, #tpu.memory_space<vmem>>, %arg8: memref<32x128xf32, #tpu.memory_space<vmem>>) attributes {dimension_semantics = [#tpu.dimension_semantics<parallel>, #tpu.dimension_semantics<parallel>, #tpu.dimension_semantics<arbitrary>], iteration_bounds = array<i64: 1, 1, 9>, scalar_prefetch = 0 : i64, scratch_operands = 1 : i64, tpu.core_type = #tpu.core_type<tc>, window_params = [{transform_indices = @transform_0, window_bounds = array<i64: 32, 128>}, {transform_indices = @transform_1, window_bounds = array<i64: 128, 128>}, {transform_indices = @transform_2, window_bounds = array<i64: 1, 128>}, {transform_indices = @transform_3, window_bounds = array<i64: 1, 128>}, {transform_indices = @transform_4, window_bounds = array<i64: 32, 128>}]} {
    %c0_i32 = arith.constant 0 : i32
    %0 = arith.cmpi eq, %arg2, %c0_i32 : i32
    %1 = arith.extui %0 : i1 to i32
    %c0_i32_0 = arith.constant 0 : i32
    %2 = arith.cmpi ne, %1, %c0_i32_0 : i32
    scf.if %2 {
      %cst_9 = arith.constant 0.000000e+00 : f32
      %12 = vector.broadcast %cst_9 : f32 to vector<32x128xf32>
      %c0_10 = arith.constant 0 : index
      %c0_11 = arith.constant 0 : index
      %13 = vector.load %arg8[%c0_10, %c0_11] : memref<32x128xf32, #tpu.memory_space<vmem>>, vector<32x128xf32>
      tpu.vector_store %arg8[%c0_10, %c0_11], %12 {strides = array<i32>} : memref<32x128xf32, #tpu.memory_space<vmem>>, vector<32x128xf32>,
    } else {
    }
    %c0 = arith.constant 0 : index
    %c0_1 = arith.constant 0 : index
    %3 = vector.load %arg8[%c0, %c0_1] : memref<32x128xf32, #tpu.memory_space<vmem>>, vector<32x128xf32>
    %c0_2 = arith.constant 0 : index
    %c0_3 = arith.constant 0 : index
    %4 = vector.load %arg3[%c0_2, %c0_3] : memref<32x128xbf16, #tpu.memory_space<vmem>>, vector<32x128xbf16>
    %c0_4 = arith.constant 0 : index
    %c0_5 = arith.constant 0 : index
    %5 = vector.load %arg4[%c0_4, %c0_5] : memref<128x128xbf16, #tpu.memory_space<vmem>>, vector<128x128xbf16>
    %cst = arith.constant dense<0.000000e+00> : vector<32x128xf32>
    %6 = tpu.matmul %4, %5, %cst {dimension_numbers = #tpu.dot_dimension_numbers<[1], [0], [0], [1], [0, 0, 1, 1], [], []>} : vector<32x128xbf16>, vector<128x128xbf16>, vector<32x128xf32> -> vector<32x128xf32>
    %7 = arith.addf %3, %6 : vector<32x128xf32>
    %c0_6 = arith.constant 0 : index
    %c0_7 = arith.constant 0 : index
    %8 = vector.load %arg8[%c0_6, %c0_7] : memref<32x128xf32, #tpu.memory_space<vmem>>, vector<32x128xf32>
    tpu.vector_store %arg8[%c0_6, %c0_7], %7 {strides = array<i32>} : memref<32x128xf32, #tpu.memory_space<vmem>>, vector<32x128xf32>,
    %c8_i32 = arith.constant 8 : i32
    %9 = arith.cmpi eq, %arg2, %c8_i32 : i32
    %10 = arith.extui %9 : i1 to i32
    %c0_i32_8 = arith.constant 0 : i32
    %11 = arith.cmpi ne, %10, %c0_i32_8 : i32
    scf.if %11 {
      %c0_9 = arith.constant 0 : index
      %c0_10 = arith.constant 0 : index
      %12 = vector.load %arg8[%c0_9, %c0_10] : memref<32x128xf32, #tpu.memory_space<vmem>>, vector<32x128xf32>
      %c0_11 = arith.constant 0 : index
      %c0_12 = arith.constant 0 : index
      %13 = vector.load %arg5[%c0_11, %c0_12] : memref<1x128xf32, #tpu.memory_space<vmem>>, vector<1x128xf32>
      %14 = vector.broadcast %13 : vector<1x128xf32> to vector<32x128xf32>
      %15 = arith.mulf %12, %14 : vector<32x128xf32>
      %c0_13 = arith.constant 0 : index
      %c0_14 = arith.constant 0 : index
      %16 = vector.load %arg6[%c0_13, %c0_14] : memref<1x128xf32, #tpu.memory_space<vmem>>, vector<1x128xf32>
      %17 = vector.broadcast %16 : vector<1x128xf32> to vector<32x128xf32>
      %18 = arith.addf %15, %17 : vector<32x128xf32>
      %cst_15 = arith.constant 0.000000e+00 : f32
      %19 = vector.broadcast %cst_15 : f32 to vector<32x128xf32>
      %20 = arith.maximumf %18, %19 : vector<32x128xf32>
      %21 = arith.truncf %20 : vector<32x128xf32> to vector<32x128xbf16>
      %c0_16 = arith.constant 0 : index
      %c0_17 = arith.constant 0 : index
      %22 = vector.load %arg7[%c0_16, %c0_17] : memref<32x128xbf16, #tpu.memory_space<vmem>>, vector<32x128xbf16>
      tpu.vector_store %arg7[%c0_16, %c0_17], %21 {strides = array<i32>} : memref<32x128xbf16, #tpu.memory_space<vmem>>, vector<32x128xbf16>,
    } else {
    }
    return
  }
  func.func @transform_0(%arg0: i32, %arg1: i32, %arg2: i32) -> (i32, i32) {
    %c0_i32 = arith.constant 0 : i32
    return %arg0, %arg2 : i32, i32
  }
  func.func @transform_1(%arg0: i32, %arg1: i32, %arg2: i32) -> (i32, i32) {
    %c0_i32 = arith.constant 0 : i32
    return %arg2, %arg1 : i32, i32
  }
  func.func @transform_2(%arg0: i32, %arg1: i32, %arg2: i32) -> (i32, i32) {
    %c0_i32 = arith.constant 0 : i32
    %c0_i32_0 = arith.constant 0 : i32
    return %c0_i32, %arg1 : i32, i32
  }
  func.func @transform_3(%arg0: i32, %arg1: i32, %arg2: i32) -> (i32, i32) {
    %c0_i32 = arith.constant 0 : i32
    %c0_i32_0 = arith.constant 0 : i32
    return %c0_i32, %arg1 : i32, i32
  }
  func.func @transform_4(%arg0: i32, %arg1: i32, %arg2: i32) -> (i32, i32) {
    %c0_i32 = arith.constant 0 : i32
    return %arg0, %arg1 : i32, i32
  }
}

module attributes {stable_mosaic.version = 11 : i64} {
  func.func @_mm_kernel(%arg0: i32, %arg1: i32, %arg2: i32, %arg3: memref<8x128xbf16, #tpu.memory_space<vmem>>, %arg4: memref<128x256xbf16, #tpu.memory_space<vmem>>, %arg5: memref<1x256xf32, #tpu.memory_space<vmem>>, %arg6: memref<1x256xf32, #tpu.memory_space<vmem>>, %arg7: memref<8x256xbf16, #tpu.memory_space<vmem>>, %arg8: memref<8x256xf32, #tpu.memory_space<vmem>>) attributes {dimension_semantics = [#tpu.dimension_semantics<parallel>, #tpu.dimension_semantics<parallel>, #tpu.dimension_semantics<arbitrary>], iteration_bounds = array<i64: 1, 1, 9>, scalar_prefetch = 0 : i64, scratch_operands = 1 : i64, tpu.core_type = #tpu.core_type<tc>, window_params = [{transform_indices = @transform_0, window_bounds = array<i64: 8, 128>}, {transform_indices = @transform_1, window_bounds = array<i64: 128, 256>}, {transform_indices = @transform_2, window_bounds = array<i64: 1, 256>}, {transform_indices = @transform_3, window_bounds = array<i64: 1, 256>}, {transform_indices = @transform_4, window_bounds = array<i64: 8, 256>}]} {
    %c0_i32 = arith.constant 0 : i32
    %0 = arith.cmpi eq, %arg2, %c0_i32 : i32
    %1 = arith.extui %0 : i1 to i32
    %c0_i32_0 = arith.constant 0 : i32
    %2 = arith.cmpi ne, %1, %c0_i32_0 : i32
    scf.if %2 {
      %cst_9 = arith.constant 0.000000e+00 : f32
      %12 = vector.broadcast %cst_9 : f32 to vector<8x256xf32>
      %c0_10 = arith.constant 0 : index
      %c0_11 = arith.constant 0 : index
      %13 = vector.load %arg8[%c0_10, %c0_11] : memref<8x256xf32, #tpu.memory_space<vmem>>, vector<8x256xf32>
      tpu.vector_store %arg8[%c0_10, %c0_11], %12 {strides = array<i32>} : memref<8x256xf32, #tpu.memory_space<vmem>>, vector<8x256xf32>,
    } else {
    }
    %c0 = arith.constant 0 : index
    %c0_1 = arith.constant 0 : index
    %3 = vector.load %arg8[%c0, %c0_1] : memref<8x256xf32, #tpu.memory_space<vmem>>, vector<8x256xf32>
    %c0_2 = arith.constant 0 : index
    %c0_3 = arith.constant 0 : index
    %4 = vector.load %arg3[%c0_2, %c0_3] : memref<8x128xbf16, #tpu.memory_space<vmem>>, vector<8x128xbf16>
    %c0_4 = arith.constant 0 : index
    %c0_5 = arith.constant 0 : index
    %5 = vector.load %arg4[%c0_4, %c0_5] : memref<128x256xbf16, #tpu.memory_space<vmem>>, vector<128x256xbf16>
    %cst = arith.constant dense<0.000000e+00> : vector<8x256xf32>
    %6 = tpu.matmul %4, %5, %cst {dimension_numbers = #tpu.dot_dimension_numbers<[1], [0], [0], [1], [0, 0, 1, 1], [], []>} : vector<8x128xbf16>, vector<128x256xbf16>, vector<8x256xf32> -> vector<8x256xf32>
    %7 = arith.addf %3, %6 : vector<8x256xf32>
    %c0_6 = arith.constant 0 : index
    %c0_7 = arith.constant 0 : index
    %8 = vector.load %arg8[%c0_6, %c0_7] : memref<8x256xf32, #tpu.memory_space<vmem>>, vector<8x256xf32>
    tpu.vector_store %arg8[%c0_6, %c0_7], %7 {strides = array<i32>} : memref<8x256xf32, #tpu.memory_space<vmem>>, vector<8x256xf32>,
    %c8_i32 = arith.constant 8 : i32
    %9 = arith.cmpi eq, %arg2, %c8_i32 : i32
    %10 = arith.extui %9 : i1 to i32
    %c0_i32_8 = arith.constant 0 : i32
    %11 = arith.cmpi ne, %10, %c0_i32_8 : i32
    scf.if %11 {
      %c0_9 = arith.constant 0 : index
      %c0_10 = arith.constant 0 : index
      %12 = vector.load %arg8[%c0_9, %c0_10] : memref<8x256xf32, #tpu.memory_space<vmem>>, vector<8x256xf32>
      %c0_11 = arith.constant 0 : index
      %c0_12 = arith.constant 0 : index
      %13 = vector.load %arg5[%c0_11, %c0_12] : memref<1x256xf32, #tpu.memory_space<vmem>>, vector<1x256xf32>
      %14 = vector.broadcast %13 : vector<1x256xf32> to vector<8x256xf32>
      %15 = arith.mulf %12, %14 : vector<8x256xf32>
      %c0_13 = arith.constant 0 : index
      %c0_14 = arith.constant 0 : index
      %16 = vector.load %arg6[%c0_13, %c0_14] : memref<1x256xf32, #tpu.memory_space<vmem>>, vector<1x256xf32>
      %17 = vector.broadcast %16 : vector<1x256xf32> to vector<8x256xf32>
      %18 = arith.addf %15, %17 : vector<8x256xf32>
      %cst_15 = arith.constant 0.000000e+00 : f32
      %19 = vector.broadcast %cst_15 : f32 to vector<8x256xf32>
      %20 = arith.maximumf %18, %19 : vector<8x256xf32>
      %21 = arith.truncf %20 : vector<8x256xf32> to vector<8x256xbf16>
      %c0_16 = arith.constant 0 : index
      %c0_17 = arith.constant 0 : index
      %22 = vector.load %arg7[%c0_16, %c0_17] : memref<8x256xbf16, #tpu.memory_space<vmem>>, vector<8x256xbf16>
      tpu.vector_store %arg7[%c0_16, %c0_17], %21 {strides = array<i32>} : memref<8x256xbf16, #tpu.memory_space<vmem>>, vector<8x256xbf16>,
    } else {
    }
    return
  }
  func.func @transform_0(%arg0: i32, %arg1: i32, %arg2: i32) -> (i32, i32) {
    %c0_i32 = arith.constant 0 : i32
    return %arg0, %arg2 : i32, i32
  }
  func.func @transform_1(%arg0: i32, %arg1: i32, %arg2: i32) -> (i32, i32) {
    %c0_i32 = arith.constant 0 : i32
    return %arg2, %arg1 : i32, i32
  }
  func.func @transform_2(%arg0: i32, %arg1: i32, %arg2: i32) -> (i32, i32) {
    %c0_i32 = arith.constant 0 : i32
    %c0_i32_0 = arith.constant 0 : i32
    return %c0_i32, %arg1 : i32, i32
  }
  func.func @transform_3(%arg0: i32, %arg1: i32, %arg2: i32) -> (i32, i32) {
    %c0_i32 = arith.constant 0 : i32
    %c0_i32_0 = arith.constant 0 : i32
    return %c0_i32, %arg1 : i32, i32
  }
  func.func @transform_4(%arg0: i32, %arg1: i32, %arg2: i32) -> (i32, i32) {
    %c0_i32 = arith.constant 0 : i32
    return %arg0, %arg1 : i32, i32
  }
}

module attributes {stable_mosaic.version = 11 : i64} {
  func.func @_mm_kernel(%arg0: i32, %arg1: i32, %arg2: i32, %arg3: memref<8x128xbf16, #tpu.memory_space<vmem>>, %arg4: memref<128x256xbf16, #tpu.memory_space<vmem>>, %arg5: memref<1x256xf32, #tpu.memory_space<vmem>>, %arg6: memref<1x256xf32, #tpu.memory_space<vmem>>, %arg7: memref<8x256xbf16, #tpu.memory_space<vmem>>, %arg8: memref<8x256xf32, #tpu.memory_space<vmem>>) attributes {dimension_semantics = [#tpu.dimension_semantics<parallel>, #tpu.dimension_semantics<parallel>, #tpu.dimension_semantics<arbitrary>], iteration_bounds = array<i64: 1, 1, 1>, scalar_prefetch = 0 : i64, scratch_operands = 1 : i64, tpu.core_type = #tpu.core_type<tc>, window_params = [{transform_indices = @transform_0, window_bounds = array<i64: 8, 128>}, {transform_indices = @transform_1, window_bounds = array<i64: 128, 256>}, {transform_indices = @transform_2, window_bounds = array<i64: 1, 256>}, {transform_indices = @transform_3, window_bounds = array<i64: 1, 256>}, {transform_indices = @transform_4, window_bounds = array<i64: 8, 256>}]} {
    %c0_i32 = arith.constant 0 : i32
    %0 = arith.cmpi eq, %arg2, %c0_i32 : i32
    %1 = arith.extui %0 : i1 to i32
    %c0_i32_0 = arith.constant 0 : i32
    %2 = arith.cmpi ne, %1, %c0_i32_0 : i32
    scf.if %2 {
      %cst_10 = arith.constant 0.000000e+00 : f32
      %12 = vector.broadcast %cst_10 : f32 to vector<8x256xf32>
      %c0_11 = arith.constant 0 : index
      %c0_12 = arith.constant 0 : index
      %13 = vector.load %arg8[%c0_11, %c0_12] : memref<8x256xf32, #tpu.memory_space<vmem>>, vector<8x256xf32>
      tpu.vector_store %arg8[%c0_11, %c0_12], %12 {strides = array<i32>} : memref<8x256xf32, #tpu.memory_space<vmem>>, vector<8x256xf32>,
    } else {
    }
    %c0 = arith.constant 0 : index
    %c0_1 = arith.constant 0 : index
    %3 = vector.load %arg8[%c0, %c0_1] : memref<8x256xf32, #tpu.memory_space<vmem>>, vector<8x256xf32>
    %c0_2 = arith.constant 0 : index
    %c0_3 = arith.constant 0 : index
    %4 = vector.load %arg3[%c0_2, %c0_3] : memref<8x128xbf16, #tpu.memory_space<vmem>>, vector<8x128xbf16>
    %c0_4 = arith.constant 0 : index
    %c0_5 = arith.constant 0 : index
    %5 = vector.load %arg4[%c0_4, %c0_5] : memref<128x256xbf16, #tpu.memory_space<vmem>>, vector<128x256xbf16>
    %cst = arith.constant dense<0.000000e+00> : vector<8x256xf32>
    %6 = tpu.matmul %4, %5, %cst {dimension_numbers = #tpu.dot_dimension_numbers<[1], [0], [0], [1], [0, 0, 1, 1], [], []>} : vector<8x128xbf16>, vector<128x256xbf16>, vector<8x256xf32> -> vector<8x256xf32>
    %7 = arith.addf %3, %6 : vector<8x256xf32>
    %c0_6 = arith.constant 0 : index
    %c0_7 = arith.constant 0 : index
    %8 = vector.load %arg8[%c0_6, %c0_7] : memref<8x256xf32, #tpu.memory_space<vmem>>, vector<8x256xf32>
    tpu.vector_store %arg8[%c0_6, %c0_7], %7 {strides = array<i32>} : memref<8x256xf32, #tpu.memory_space<vmem>>, vector<8x256xf32>,
    %c0_i32_8 = arith.constant 0 : i32
    %9 = arith.cmpi eq, %arg2, %c0_i32_8 : i32
    %10 = arith.extui %9 : i1 to i32
    %c0_i32_9 = arith.constant 0 : i32
    %11 = arith.cmpi ne, %10, %c0_i32_9 : i32
    scf.if %11 {
      %c0_10 = arith.constant 0 : index
      %c0_11 = arith.constant 0 : index
      %12 = vector.load %arg8[%c0_10, %c0_11] : memref<8x256xf32, #tpu.memory_space<vmem>>, vector<8x256xf32>
      %c0_12 = arith.constant 0 : index
      %c0_13 = arith.constant 0 : index
      %13 = vector.load %arg5[%c0_12, %c0_13] : memref<1x256xf32, #tpu.memory_space<vmem>>, vector<1x256xf32>
      %14 = vector.broadcast %13 : vector<1x256xf32> to vector<8x256xf32>
      %15 = arith.mulf %12, %14 : vector<8x256xf32>
      %c0_14 = arith.constant 0 : index
      %c0_15 = arith.constant 0 : index
      %16 = vector.load %arg6[%c0_14, %c0_15] : memref<1x256xf32, #tpu.memory_space<vmem>>, vector<1x256xf32>
      %17 = vector.broadcast %16 : vector<1x256xf32> to vector<8x256xf32>
      %18 = arith.addf %15, %17 : vector<8x256xf32>
      %19 = arith.truncf %18 : vector<8x256xf32> to vector<8x256xbf16>
      %c0_16 = arith.constant 0 : index
      %c0_17 = arith.constant 0 : index
      %20 = vector.load %arg7[%c0_16, %c0_17] : memref<8x256xbf16, #tpu.memory_space<vmem>>, vector<8x256xbf16>
      tpu.vector_store %arg7[%c0_16, %c0_17], %19 {strides = array<i32>} : memref<8x256xbf16, #tpu.memory_space<vmem>>, vector<8x256xbf16>,
    } else {
    }
    return
  }
  func.func @transform_0(%arg0: i32, %arg1: i32, %arg2: i32) -> (i32, i32) {
    %c0_i32 = arith.constant 0 : i32
    return %arg0, %arg2 : i32, i32
  }
  func.func @transform_1(%arg0: i32, %arg1: i32, %arg2: i32) -> (i32, i32) {
    %c0_i32 = arith.constant 0 : i32
    return %arg2, %arg1 : i32, i32
  }
  func.func @transform_2(%arg0: i32, %arg1: i32, %arg2: i32) -> (i32, i32) {
    %c0_i32 = arith.constant 0 : i32
    %c0_i32_0 = arith.constant 0 : i32
    return %c0_i32, %arg1 : i32, i32
  }
  func.func @transform_3(%arg0: i32, %arg1: i32, %arg2: i32) -> (i32, i32) {
    %c0_i32 = arith.constant 0 : i32
    %c0_i32_0 = arith.constant 0 : i32
    return %c0_i32, %arg1 : i32, i32
  }
  func.func @transform_4(%arg0: i32, %arg1: i32, %arg2: i32) -> (i32, i32) {
    %c0_i32 = arith.constant 0 : i32
    return %arg0, %arg1 : i32, i32
  }
}

module attributes {stable_mosaic.version = 11 : i64} {
  func.func @_mm_res_kernel(%arg0: i32, %arg1: i32, %arg2: i32, %arg3: memref<8x256xbf16, #tpu.memory_space<vmem>>, %arg4: memref<256x256xbf16, #tpu.memory_space<vmem>>, %arg5: memref<1x256xf32, #tpu.memory_space<vmem>>, %arg6: memref<1x256xf32, #tpu.memory_space<vmem>>, %arg7: memref<8x256xbf16, #tpu.memory_space<vmem>>, %arg8: memref<8x256xbf16, #tpu.memory_space<vmem>>, %arg9: memref<8x256xf32, #tpu.memory_space<vmem>>) attributes {dimension_semantics = [#tpu.dimension_semantics<parallel>, #tpu.dimension_semantics<parallel>, #tpu.dimension_semantics<arbitrary>], iteration_bounds = array<i64: 1, 1, 9>, scalar_prefetch = 0 : i64, scratch_operands = 1 : i64, tpu.core_type = #tpu.core_type<tc>, window_params = [{transform_indices = @transform_0, window_bounds = array<i64: 8, 256>}, {transform_indices = @transform_1, window_bounds = array<i64: 256, 256>}, {transform_indices = @transform_2, window_bounds = array<i64: 1, 256>}, {transform_indices = @transform_3, window_bounds = array<i64: 1, 256>}, {transform_indices = @transform_4, window_bounds = array<i64: 8, 256>}, {transform_indices = @transform_5, window_bounds = array<i64: 8, 256>}]} {
    %c0_i32 = arith.constant 0 : i32
    %0 = arith.cmpi eq, %arg2, %c0_i32 : i32
    %1 = arith.extui %0 : i1 to i32
    %c0_i32_0 = arith.constant 0 : i32
    %2 = arith.cmpi ne, %1, %c0_i32_0 : i32
    scf.if %2 {
      %cst_9 = arith.constant 0.000000e+00 : f32
      %12 = vector.broadcast %cst_9 : f32 to vector<8x256xf32>
      %c0_10 = arith.constant 0 : index
      %c0_11 = arith.constant 0 : index
      %13 = vector.load %arg9[%c0_10, %c0_11] : memref<8x256xf32, #tpu.memory_space<vmem>>, vector<8x256xf32>
      tpu.vector_store %arg9[%c0_10, %c0_11], %12 {strides = array<i32>} : memref<8x256xf32, #tpu.memory_space<vmem>>, vector<8x256xf32>,
    } else {
    }
    %c0 = arith.constant 0 : index
    %c0_1 = arith.constant 0 : index
    %3 = vector.load %arg9[%c0, %c0_1] : memref<8x256xf32, #tpu.memory_space<vmem>>, vector<8x256xf32>
    %c0_2 = arith.constant 0 : index
    %c0_3 = arith.constant 0 : index
    %4 = vector.load %arg3[%c0_2, %c0_3] : memref<8x256xbf16, #tpu.memory_space<vmem>>, vector<8x256xbf16>
    %c0_4 = arith.constant 0 : index
    %c0_5 = arith.constant 0 : index
    %5 = vector.load %arg4[%c0_4, %c0_5] : memref<256x256xbf16, #tpu.memory_space<vmem>>, vector<256x256xbf16>
    %cst = arith.constant dense<0.000000e+00> : vector<8x256xf32>
    %6 = tpu.matmul %4, %5, %cst {dimension_numbers = #tpu.dot_dimension_numbers<[1], [0], [0], [1], [0, 0, 1, 1], [], []>} : vector<8x256xbf16>, vector<256x256xbf16>, vector<8x256xf32> -> vector<8x256xf32>
    %7 = arith.addf %3, %6 : vector<8x256xf32>
    %c0_6 = arith.constant 0 : index
    %c0_7 = arith.constant 0 : index
    %8 = vector.load %arg9[%c0_6, %c0_7] : memref<8x256xf32, #tpu.memory_space<vmem>>, vector<8x256xf32>
    tpu.vector_store %arg9[%c0_6, %c0_7], %7 {strides = array<i32>} : memref<8x256xf32, #tpu.memory_space<vmem>>, vector<8x256xf32>,
    %c8_i32 = arith.constant 8 : i32
    %9 = arith.cmpi eq, %arg2, %c8_i32 : i32
    %10 = arith.extui %9 : i1 to i32
    %c0_i32_8 = arith.constant 0 : i32
    %11 = arith.cmpi ne, %10, %c0_i32_8 : i32
    scf.if %11 {
      %c0_9 = arith.constant 0 : index
      %c0_10 = arith.constant 0 : index
      %12 = vector.load %arg9[%c0_9, %c0_10] : memref<8x256xf32, #tpu.memory_space<vmem>>, vector<8x256xf32>
      %c0_11 = arith.constant 0 : index
      %c0_12 = arith.constant 0 : index
      %13 = vector.load %arg5[%c0_11, %c0_12] : memref<1x256xf32, #tpu.memory_space<vmem>>, vector<1x256xf32>
      %14 = vector.broadcast %13 : vector<1x256xf32> to vector<8x256xf32>
      %15 = arith.mulf %12, %14 : vector<8x256xf32>
      %c0_13 = arith.constant 0 : index
      %c0_14 = arith.constant 0 : index
      %16 = vector.load %arg6[%c0_13, %c0_14] : memref<1x256xf32, #tpu.memory_space<vmem>>, vector<1x256xf32>
      %17 = vector.broadcast %16 : vector<1x256xf32> to vector<8x256xf32>
      %18 = arith.addf %15, %17 : vector<8x256xf32>
      %c0_15 = arith.constant 0 : index
      %c0_16 = arith.constant 0 : index
      %19 = vector.load %arg7[%c0_15, %c0_16] : memref<8x256xbf16, #tpu.memory_space<vmem>>, vector<8x256xbf16>
      %20 = arith.extf %19 : vector<8x256xbf16> to vector<8x256xf32>
      %21 = arith.addf %18, %20 : vector<8x256xf32>
      %cst_17 = arith.constant 0.000000e+00 : f32
      %22 = vector.broadcast %cst_17 : f32 to vector<8x256xf32>
      %23 = arith.maximumf %21, %22 : vector<8x256xf32>
      %24 = arith.truncf %23 : vector<8x256xf32> to vector<8x256xbf16>
      %c0_18 = arith.constant 0 : index
      %c0_19 = arith.constant 0 : index
      %25 = vector.load %arg8[%c0_18, %c0_19] : memref<8x256xbf16, #tpu.memory_space<vmem>>, vector<8x256xbf16>
      tpu.vector_store %arg8[%c0_18, %c0_19], %24 {strides = array<i32>} : memref<8x256xbf16, #tpu.memory_space<vmem>>, vector<8x256xbf16>,
    } else {
    }
    return
  }
  func.func @transform_0(%arg0: i32, %arg1: i32, %arg2: i32) -> (i32, i32) {
    %c0_i32 = arith.constant 0 : i32
    return %arg0, %arg2 : i32, i32
  }
  func.func @transform_1(%arg0: i32, %arg1: i32, %arg2: i32) -> (i32, i32) {
    %c0_i32 = arith.constant 0 : i32
    return %arg2, %arg1 : i32, i32
  }
  func.func @transform_2(%arg0: i32, %arg1: i32, %arg2: i32) -> (i32, i32) {
    %c0_i32 = arith.constant 0 : i32
    %c0_i32_0 = arith.constant 0 : i32
    return %c0_i32, %arg1 : i32, i32
  }
  func.func @transform_3(%arg0: i32, %arg1: i32, %arg2: i32) -> (i32, i32) {
    %c0_i32 = arith.constant 0 : i32
    %c0_i32_0 = arith.constant 0 : i32
    return %c0_i32, %arg1 : i32, i32
  }
  func.func @transform_4(%arg0: i32, %arg1: i32, %arg2: i32) -> (i32, i32) {
    %c0_i32 = arith.constant 0 : i32
    return %arg0, %arg1 : i32, i32
  }
  func.func @transform_5(%arg0: i32, %arg1: i32, %arg2: i32) -> (i32, i32) {
    %c0_i32 = arith.constant 0 : i32
    return %arg0, %arg1 : i32, i32
  }
}

module attributes {stable_mosaic.version = 11 : i64} {
  func.func @_mm_kernel(%arg0: i32, %arg1: i32, %arg2: i32, %arg3: memref<8x256xbf16, #tpu.memory_space<vmem>>, %arg4: memref<256x256xbf16, #tpu.memory_space<vmem>>, %arg5: memref<1x256xf32, #tpu.memory_space<vmem>>, %arg6: memref<1x256xf32, #tpu.memory_space<vmem>>, %arg7: memref<8x256xbf16, #tpu.memory_space<vmem>>, %arg8: memref<8x256xf32, #tpu.memory_space<vmem>>) attributes {dimension_semantics = [#tpu.dimension_semantics<parallel>, #tpu.dimension_semantics<parallel>, #tpu.dimension_semantics<arbitrary>], iteration_bounds = array<i64: 1, 1, 9>, scalar_prefetch = 0 : i64, scratch_operands = 1 : i64, tpu.core_type = #tpu.core_type<tc>, window_params = [{transform_indices = @transform_0, window_bounds = array<i64: 8, 256>}, {transform_indices = @transform_1, window_bounds = array<i64: 256, 256>}, {transform_indices = @transform_2, window_bounds = array<i64: 1, 256>}, {transform_indices = @transform_3, window_bounds = array<i64: 1, 256>}, {transform_indices = @transform_4, window_bounds = array<i64: 8, 256>}]} {
    %c0_i32 = arith.constant 0 : i32
    %0 = arith.cmpi eq, %arg2, %c0_i32 : i32
    %1 = arith.extui %0 : i1 to i32
    %c0_i32_0 = arith.constant 0 : i32
    %2 = arith.cmpi ne, %1, %c0_i32_0 : i32
    scf.if %2 {
      %cst_9 = arith.constant 0.000000e+00 : f32
      %12 = vector.broadcast %cst_9 : f32 to vector<8x256xf32>
      %c0_10 = arith.constant 0 : index
      %c0_11 = arith.constant 0 : index
      %13 = vector.load %arg8[%c0_10, %c0_11] : memref<8x256xf32, #tpu.memory_space<vmem>>, vector<8x256xf32>
      tpu.vector_store %arg8[%c0_10, %c0_11], %12 {strides = array<i32>} : memref<8x256xf32, #tpu.memory_space<vmem>>, vector<8x256xf32>,
    } else {
    }
    %c0 = arith.constant 0 : index
    %c0_1 = arith.constant 0 : index
    %3 = vector.load %arg8[%c0, %c0_1] : memref<8x256xf32, #tpu.memory_space<vmem>>, vector<8x256xf32>
    %c0_2 = arith.constant 0 : index
    %c0_3 = arith.constant 0 : index
    %4 = vector.load %arg3[%c0_2, %c0_3] : memref<8x256xbf16, #tpu.memory_space<vmem>>, vector<8x256xbf16>
    %c0_4 = arith.constant 0 : index
    %c0_5 = arith.constant 0 : index
    %5 = vector.load %arg4[%c0_4, %c0_5] : memref<256x256xbf16, #tpu.memory_space<vmem>>, vector<256x256xbf16>
    %cst = arith.constant dense<0.000000e+00> : vector<8x256xf32>
    %6 = tpu.matmul %4, %5, %cst {dimension_numbers = #tpu.dot_dimension_numbers<[1], [0], [0], [1], [0, 0, 1, 1], [], []>} : vector<8x256xbf16>, vector<256x256xbf16>, vector<8x256xf32> -> vector<8x256xf32>
    %7 = arith.addf %3, %6 : vector<8x256xf32>
    %c0_6 = arith.constant 0 : index
    %c0_7 = arith.constant 0 : index
    %8 = vector.load %arg8[%c0_6, %c0_7] : memref<8x256xf32, #tpu.memory_space<vmem>>, vector<8x256xf32>
    tpu.vector_store %arg8[%c0_6, %c0_7], %7 {strides = array<i32>} : memref<8x256xf32, #tpu.memory_space<vmem>>, vector<8x256xf32>,
    %c8_i32 = arith.constant 8 : i32
    %9 = arith.cmpi eq, %arg2, %c8_i32 : i32
    %10 = arith.extui %9 : i1 to i32
    %c0_i32_8 = arith.constant 0 : i32
    %11 = arith.cmpi ne, %10, %c0_i32_8 : i32
    scf.if %11 {
      %c0_9 = arith.constant 0 : index
      %c0_10 = arith.constant 0 : index
      %12 = vector.load %arg8[%c0_9, %c0_10] : memref<8x256xf32, #tpu.memory_space<vmem>>, vector<8x256xf32>
      %c0_11 = arith.constant 0 : index
      %c0_12 = arith.constant 0 : index
      %13 = vector.load %arg5[%c0_11, %c0_12] : memref<1x256xf32, #tpu.memory_space<vmem>>, vector<1x256xf32>
      %14 = vector.broadcast %13 : vector<1x256xf32> to vector<8x256xf32>
      %15 = arith.mulf %12, %14 : vector<8x256xf32>
      %c0_13 = arith.constant 0 : index
      %c0_14 = arith.constant 0 : index
      %16 = vector.load %arg6[%c0_13, %c0_14] : memref<1x256xf32, #tpu.memory_space<vmem>>, vector<1x256xf32>
      %17 = vector.broadcast %16 : vector<1x256xf32> to vector<8x256xf32>
      %18 = arith.addf %15, %17 : vector<8x256xf32>
      %cst_15 = arith.constant 0.000000e+00 : f32
      %19 = vector.broadcast %cst_15 : f32 to vector<8x256xf32>
      %20 = arith.maximumf %18, %19 : vector<8x256xf32>
      %21 = arith.truncf %20 : vector<8x256xf32> to vector<8x256xbf16>
      %c0_16 = arith.constant 0 : index
      %c0_17 = arith.constant 0 : index
      %22 = vector.load %arg7[%c0_16, %c0_17] : memref<8x256xbf16, #tpu.memory_space<vmem>>, vector<8x256xbf16>
      tpu.vector_store %arg7[%c0_16, %c0_17], %21 {strides = array<i32>} : memref<8x256xbf16, #tpu.memory_space<vmem>>, vector<8x256xbf16>,
    } else {
    }
    return
  }
  func.func @transform_0(%arg0: i32, %arg1: i32, %arg2: i32) -> (i32, i32) {
    %c0_i32 = arith.constant 0 : i32
    return %arg0, %arg2 : i32, i32
  }
  func.func @transform_1(%arg0: i32, %arg1: i32, %arg2: i32) -> (i32, i32) {
    %c0_i32 = arith.constant 0 : i32
    return %arg2, %arg1 : i32, i32
  }
  func.func @transform_2(%arg0: i32, %arg1: i32, %arg2: i32) -> (i32, i32) {
    %c0_i32 = arith.constant 0 : i32
    %c0_i32_0 = arith.constant 0 : i32
    return %c0_i32, %arg1 : i32, i32
  }
  func.func @transform_3(%arg0: i32, %arg1: i32, %arg2: i32) -> (i32, i32) {
    %c0_i32 = arith.constant 0 : i32
    %c0_i32_0 = arith.constant 0 : i32
    return %c0_i32, %arg1 : i32, i32
  }
  func.func @transform_4(%arg0: i32, %arg1: i32, %arg2: i32) -> (i32, i32) {
    %c0_i32 = arith.constant 0 : i32
    return %arg0, %arg1 : i32, i32
  }
}

module attributes {stable_mosaic.version = 11 : i64} {
  func.func @_mm_kernel(%arg0: i32, %arg1: i32, %arg2: i32, %arg3: memref<2x256xbf16, #tpu.memory_space<vmem>>, %arg4: memref<256x256xbf16, #tpu.memory_space<vmem>>, %arg5: memref<1x256xf32, #tpu.memory_space<vmem>>, %arg6: memref<1x256xf32, #tpu.memory_space<vmem>>, %arg7: memref<2x256xbf16, #tpu.memory_space<vmem>>, %arg8: memref<2x256xf32, #tpu.memory_space<vmem>>) attributes {dimension_semantics = [#tpu.dimension_semantics<parallel>, #tpu.dimension_semantics<parallel>, #tpu.dimension_semantics<arbitrary>], iteration_bounds = array<i64: 1, 2, 9>, scalar_prefetch = 0 : i64, scratch_operands = 1 : i64, tpu.core_type = #tpu.core_type<tc>, window_params = [{transform_indices = @transform_0, window_bounds = array<i64: 2, 256>}, {transform_indices = @transform_1, window_bounds = array<i64: 256, 256>}, {transform_indices = @transform_2, window_bounds = array<i64: 1, 256>}, {transform_indices = @transform_3, window_bounds = array<i64: 1, 256>}, {transform_indices = @transform_4, window_bounds = array<i64: 2, 256>}]} {
    %c0_i32 = arith.constant 0 : i32
    %0 = arith.cmpi eq, %arg2, %c0_i32 : i32
    %1 = arith.extui %0 : i1 to i32
    %c0_i32_0 = arith.constant 0 : i32
    %2 = arith.cmpi ne, %1, %c0_i32_0 : i32
    scf.if %2 {
      %cst_9 = arith.constant 0.000000e+00 : f32
      %12 = vector.broadcast %cst_9 : f32 to vector<2x256xf32>
      %c0_10 = arith.constant 0 : index
      %c0_11 = arith.constant 0 : index
      %13 = vector.load %arg8[%c0_10, %c0_11] : memref<2x256xf32, #tpu.memory_space<vmem>>, vector<2x256xf32>
      tpu.vector_store %arg8[%c0_10, %c0_11], %12 {strides = array<i32>} : memref<2x256xf32, #tpu.memory_space<vmem>>, vector<2x256xf32>,
    } else {
    }
    %c0 = arith.constant 0 : index
    %c0_1 = arith.constant 0 : index
    %3 = vector.load %arg8[%c0, %c0_1] : memref<2x256xf32, #tpu.memory_space<vmem>>, vector<2x256xf32>
    %c0_2 = arith.constant 0 : index
    %c0_3 = arith.constant 0 : index
    %4 = vector.load %arg3[%c0_2, %c0_3] : memref<2x256xbf16, #tpu.memory_space<vmem>>, vector<2x256xbf16>
    %c0_4 = arith.constant 0 : index
    %c0_5 = arith.constant 0 : index
    %5 = vector.load %arg4[%c0_4, %c0_5] : memref<256x256xbf16, #tpu.memory_space<vmem>>, vector<256x256xbf16>
    %cst = arith.constant dense<0.000000e+00> : vector<2x256xf32>
    %6 = tpu.matmul %4, %5, %cst {dimension_numbers = #tpu.dot_dimension_numbers<[1], [0], [0], [1], [0, 0, 1, 1], [], []>} : vector<2x256xbf16>, vector<256x256xbf16>, vector<2x256xf32> -> vector<2x256xf32>
    %7 = arith.addf %3, %6 : vector<2x256xf32>
    %c0_6 = arith.constant 0 : index
    %c0_7 = arith.constant 0 : index
    %8 = vector.load %arg8[%c0_6, %c0_7] : memref<2x256xf32, #tpu.memory_space<vmem>>, vector<2x256xf32>
    tpu.vector_store %arg8[%c0_6, %c0_7], %7 {strides = array<i32>} : memref<2x256xf32, #tpu.memory_space<vmem>>, vector<2x256xf32>,
    %c8_i32 = arith.constant 8 : i32
    %9 = arith.cmpi eq, %arg2, %c8_i32 : i32
    %10 = arith.extui %9 : i1 to i32
    %c0_i32_8 = arith.constant 0 : i32
    %11 = arith.cmpi ne, %10, %c0_i32_8 : i32
    scf.if %11 {
      %c0_9 = arith.constant 0 : index
      %c0_10 = arith.constant 0 : index
      %12 = vector.load %arg8[%c0_9, %c0_10] : memref<2x256xf32, #tpu.memory_space<vmem>>, vector<2x256xf32>
      %c0_11 = arith.constant 0 : index
      %c0_12 = arith.constant 0 : index
      %13 = vector.load %arg5[%c0_11, %c0_12] : memref<1x256xf32, #tpu.memory_space<vmem>>, vector<1x256xf32>
      %14 = vector.broadcast %13 : vector<1x256xf32> to vector<2x256xf32>
      %15 = arith.mulf %12, %14 : vector<2x256xf32>
      %c0_13 = arith.constant 0 : index
      %c0_14 = arith.constant 0 : index
      %16 = vector.load %arg6[%c0_13, %c0_14] : memref<1x256xf32, #tpu.memory_space<vmem>>, vector<1x256xf32>
      %17 = vector.broadcast %16 : vector<1x256xf32> to vector<2x256xf32>
      %18 = arith.addf %15, %17 : vector<2x256xf32>
      %cst_15 = arith.constant 0.000000e+00 : f32
      %19 = vector.broadcast %cst_15 : f32 to vector<2x256xf32>
      %20 = arith.maximumf %18, %19 : vector<2x256xf32>
      %21 = arith.truncf %20 : vector<2x256xf32> to vector<2x256xbf16>
      %c0_16 = arith.constant 0 : index
      %c0_17 = arith.constant 0 : index
      %22 = vector.load %arg7[%c0_16, %c0_17] : memref<2x256xbf16, #tpu.memory_space<vmem>>, vector<2x256xbf16>
      tpu.vector_store %arg7[%c0_16, %c0_17], %21 {strides = array<i32>} : memref<2x256xbf16, #tpu.memory_space<vmem>>, vector<2x256xbf16>,
    } else {
    }
    return
  }
  func.func @transform_0(%arg0: i32, %arg1: i32, %arg2: i32) -> (i32, i32) {
    %c0_i32 = arith.constant 0 : i32
    return %arg0, %arg2 : i32, i32
  }
  func.func @transform_1(%arg0: i32, %arg1: i32, %arg2: i32) -> (i32, i32) {
    %c0_i32 = arith.constant 0 : i32
    return %arg2, %arg1 : i32, i32
  }
  func.func @transform_2(%arg0: i32, %arg1: i32, %arg2: i32) -> (i32, i32) {
    %c0_i32 = arith.constant 0 : i32
    %c0_i32_0 = arith.constant 0 : i32
    return %c0_i32, %arg1 : i32, i32
  }
  func.func @transform_3(%arg0: i32, %arg1: i32, %arg2: i32) -> (i32, i32) {
    %c0_i32 = arith.constant 0 : i32
    %c0_i32_0 = arith.constant 0 : i32
    return %c0_i32, %arg1 : i32, i32
  }
  func.func @transform_4(%arg0: i32, %arg1: i32, %arg2: i32) -> (i32, i32) {
    %c0_i32 = arith.constant 0 : i32
    return %arg0, %arg1 : i32, i32
  }
}

module attributes {stable_mosaic.version = 11 : i64} {
  func.func @_mm_kernel(%arg0: i32, %arg1: i32, %arg2: i32, %arg3: memref<2x512xbf16, #tpu.memory_space<vmem>>, %arg4: memref<512x256xbf16, #tpu.memory_space<vmem>>, %arg5: memref<1x256xf32, #tpu.memory_space<vmem>>, %arg6: memref<1x256xf32, #tpu.memory_space<vmem>>, %arg7: memref<2x256xbf16, #tpu.memory_space<vmem>>, %arg8: memref<2x256xf32, #tpu.memory_space<vmem>>) attributes {dimension_semantics = [#tpu.dimension_semantics<parallel>, #tpu.dimension_semantics<parallel>, #tpu.dimension_semantics<arbitrary>], iteration_bounds = array<i64: 1, 2, 9>, scalar_prefetch = 0 : i64, scratch_operands = 1 : i64, tpu.core_type = #tpu.core_type<tc>, window_params = [{transform_indices = @transform_0, window_bounds = array<i64: 2, 512>}, {transform_indices = @transform_1, window_bounds = array<i64: 512, 256>}, {transform_indices = @transform_2, window_bounds = array<i64: 1, 256>}, {transform_indices = @transform_3, window_bounds = array<i64: 1, 256>}, {transform_indices = @transform_4, window_bounds = array<i64: 2, 256>}]} {
    %c0_i32 = arith.constant 0 : i32
    %0 = arith.cmpi eq, %arg2, %c0_i32 : i32
    %1 = arith.extui %0 : i1 to i32
    %c0_i32_0 = arith.constant 0 : i32
    %2 = arith.cmpi ne, %1, %c0_i32_0 : i32
    scf.if %2 {
      %cst_9 = arith.constant 0.000000e+00 : f32
      %12 = vector.broadcast %cst_9 : f32 to vector<2x256xf32>
      %c0_10 = arith.constant 0 : index
      %c0_11 = arith.constant 0 : index
      %13 = vector.load %arg8[%c0_10, %c0_11] : memref<2x256xf32, #tpu.memory_space<vmem>>, vector<2x256xf32>
      tpu.vector_store %arg8[%c0_10, %c0_11], %12 {strides = array<i32>} : memref<2x256xf32, #tpu.memory_space<vmem>>, vector<2x256xf32>,
    } else {
    }
    %c0 = arith.constant 0 : index
    %c0_1 = arith.constant 0 : index
    %3 = vector.load %arg8[%c0, %c0_1] : memref<2x256xf32, #tpu.memory_space<vmem>>, vector<2x256xf32>
    %c0_2 = arith.constant 0 : index
    %c0_3 = arith.constant 0 : index
    %4 = vector.load %arg3[%c0_2, %c0_3] : memref<2x512xbf16, #tpu.memory_space<vmem>>, vector<2x512xbf16>
    %c0_4 = arith.constant 0 : index
    %c0_5 = arith.constant 0 : index
    %5 = vector.load %arg4[%c0_4, %c0_5] : memref<512x256xbf16, #tpu.memory_space<vmem>>, vector<512x256xbf16>
    %cst = arith.constant dense<0.000000e+00> : vector<2x256xf32>
    %6 = tpu.matmul %4, %5, %cst {dimension_numbers = #tpu.dot_dimension_numbers<[1], [0], [0], [1], [0, 0, 1, 1], [], []>} : vector<2x512xbf16>, vector<512x256xbf16>, vector<2x256xf32> -> vector<2x256xf32>
    %7 = arith.addf %3, %6 : vector<2x256xf32>
    %c0_6 = arith.constant 0 : index
    %c0_7 = arith.constant 0 : index
    %8 = vector.load %arg8[%c0_6, %c0_7] : memref<2x256xf32, #tpu.memory_space<vmem>>, vector<2x256xf32>
    tpu.vector_store %arg8[%c0_6, %c0_7], %7 {strides = array<i32>} : memref<2x256xf32, #tpu.memory_space<vmem>>, vector<2x256xf32>,
    %c8_i32 = arith.constant 8 : i32
    %9 = arith.cmpi eq, %arg2, %c8_i32 : i32
    %10 = arith.extui %9 : i1 to i32
    %c0_i32_8 = arith.constant 0 : i32
    %11 = arith.cmpi ne, %10, %c0_i32_8 : i32
    scf.if %11 {
      %c0_9 = arith.constant 0 : index
      %c0_10 = arith.constant 0 : index
      %12 = vector.load %arg8[%c0_9, %c0_10] : memref<2x256xf32, #tpu.memory_space<vmem>>, vector<2x256xf32>
      %c0_11 = arith.constant 0 : index
      %c0_12 = arith.constant 0 : index
      %13 = vector.load %arg5[%c0_11, %c0_12] : memref<1x256xf32, #tpu.memory_space<vmem>>, vector<1x256xf32>
      %14 = vector.broadcast %13 : vector<1x256xf32> to vector<2x256xf32>
      %15 = arith.mulf %12, %14 : vector<2x256xf32>
      %c0_13 = arith.constant 0 : index
      %c0_14 = arith.constant 0 : index
      %16 = vector.load %arg6[%c0_13, %c0_14] : memref<1x256xf32, #tpu.memory_space<vmem>>, vector<1x256xf32>
      %17 = vector.broadcast %16 : vector<1x256xf32> to vector<2x256xf32>
      %18 = arith.addf %15, %17 : vector<2x256xf32>
      %cst_15 = arith.constant 0.000000e+00 : f32
      %19 = vector.broadcast %cst_15 : f32 to vector<2x256xf32>
      %20 = arith.maximumf %18, %19 : vector<2x256xf32>
      %21 = arith.truncf %20 : vector<2x256xf32> to vector<2x256xbf16>
      %c0_16 = arith.constant 0 : index
      %c0_17 = arith.constant 0 : index
      %22 = vector.load %arg7[%c0_16, %c0_17] : memref<2x256xbf16, #tpu.memory_space<vmem>>, vector<2x256xbf16>
      tpu.vector_store %arg7[%c0_16, %c0_17], %21 {strides = array<i32>} : memref<2x256xbf16, #tpu.memory_space<vmem>>, vector<2x256xbf16>,
    } else {
    }
    return
  }
  func.func @transform_0(%arg0: i32, %arg1: i32, %arg2: i32) -> (i32, i32) {
    %c0_i32 = arith.constant 0 : i32
    return %arg0, %arg2 : i32, i32
  }
  func.func @transform_1(%arg0: i32, %arg1: i32, %arg2: i32) -> (i32, i32) {
    %c0_i32 = arith.constant 0 : i32
    return %arg2, %arg1 : i32, i32
  }
  func.func @transform_2(%arg0: i32, %arg1: i32, %arg2: i32) -> (i32, i32) {
    %c0_i32 = arith.constant 0 : i32
    %c0_i32_0 = arith.constant 0 : i32
    return %c0_i32, %arg1 : i32, i32
  }
  func.func @transform_3(%arg0: i32, %arg1: i32, %arg2: i32) -> (i32, i32) {
    %c0_i32 = arith.constant 0 : i32
    %c0_i32_0 = arith.constant 0 : i32
    return %c0_i32, %arg1 : i32, i32
  }
  func.func @transform_4(%arg0: i32, %arg1: i32, %arg2: i32) -> (i32, i32) {
    %c0_i32 = arith.constant 0 : i32
    return %arg0, %arg1 : i32, i32
  }
}

module attributes {stable_mosaic.version = 11 : i64} {
  func.func @_mm_kernel(%arg0: i32, %arg1: i32, %arg2: i32, %arg3: memref<2x256xbf16, #tpu.memory_space<vmem>>, %arg4: memref<256x256xbf16, #tpu.memory_space<vmem>>, %arg5: memref<1x256xf32, #tpu.memory_space<vmem>>, %arg6: memref<1x256xf32, #tpu.memory_space<vmem>>, %arg7: memref<2x256xbf16, #tpu.memory_space<vmem>>, %arg8: memref<2x256xf32, #tpu.memory_space<vmem>>) attributes {dimension_semantics = [#tpu.dimension_semantics<parallel>, #tpu.dimension_semantics<parallel>, #tpu.dimension_semantics<arbitrary>], iteration_bounds = array<i64: 1, 2, 1>, scalar_prefetch = 0 : i64, scratch_operands = 1 : i64, tpu.core_type = #tpu.core_type<tc>, window_params = [{transform_indices = @transform_0, window_bounds = array<i64: 2, 256>}, {transform_indices = @transform_1, window_bounds = array<i64: 256, 256>}, {transform_indices = @transform_2, window_bounds = array<i64: 1, 256>}, {transform_indices = @transform_3, window_bounds = array<i64: 1, 256>}, {transform_indices = @transform_4, window_bounds = array<i64: 2, 256>}]} {
    %c0_i32 = arith.constant 0 : i32
    %0 = arith.cmpi eq, %arg2, %c0_i32 : i32
    %1 = arith.extui %0 : i1 to i32
    %c0_i32_0 = arith.constant 0 : i32
    %2 = arith.cmpi ne, %1, %c0_i32_0 : i32
    scf.if %2 {
      %cst_10 = arith.constant 0.000000e+00 : f32
      %12 = vector.broadcast %cst_10 : f32 to vector<2x256xf32>
      %c0_11 = arith.constant 0 : index
      %c0_12 = arith.constant 0 : index
      %13 = vector.load %arg8[%c0_11, %c0_12] : memref<2x256xf32, #tpu.memory_space<vmem>>, vector<2x256xf32>
      tpu.vector_store %arg8[%c0_11, %c0_12], %12 {strides = array<i32>} : memref<2x256xf32, #tpu.memory_space<vmem>>, vector<2x256xf32>,
    } else {
    }
    %c0 = arith.constant 0 : index
    %c0_1 = arith.constant 0 : index
    %3 = vector.load %arg8[%c0, %c0_1] : memref<2x256xf32, #tpu.memory_space<vmem>>, vector<2x256xf32>
    %c0_2 = arith.constant 0 : index
    %c0_3 = arith.constant 0 : index
    %4 = vector.load %arg3[%c0_2, %c0_3] : memref<2x256xbf16, #tpu.memory_space<vmem>>, vector<2x256xbf16>
    %c0_4 = arith.constant 0 : index
    %c0_5 = arith.constant 0 : index
    %5 = vector.load %arg4[%c0_4, %c0_5] : memref<256x256xbf16, #tpu.memory_space<vmem>>, vector<256x256xbf16>
    %cst = arith.constant dense<0.000000e+00> : vector<2x256xf32>
    %6 = tpu.matmul %4, %5, %cst {dimension_numbers = #tpu.dot_dimension_numbers<[1], [0], [0], [1], [0, 0, 1, 1], [], []>} : vector<2x256xbf16>, vector<256x256xbf16>, vector<2x256xf32> -> vector<2x256xf32>
    %7 = arith.addf %3, %6 : vector<2x256xf32>
    %c0_6 = arith.constant 0 : index
    %c0_7 = arith.constant 0 : index
    %8 = vector.load %arg8[%c0_6, %c0_7] : memref<2x256xf32, #tpu.memory_space<vmem>>, vector<2x256xf32>
    tpu.vector_store %arg8[%c0_6, %c0_7], %7 {strides = array<i32>} : memref<2x256xf32, #tpu.memory_space<vmem>>, vector<2x256xf32>,
    %c0_i32_8 = arith.constant 0 : i32
    %9 = arith.cmpi eq, %arg2, %c0_i32_8 : i32
    %10 = arith.extui %9 : i1 to i32
    %c0_i32_9 = arith.constant 0 : i32
    %11 = arith.cmpi ne, %10, %c0_i32_9 : i32
    scf.if %11 {
      %c0_10 = arith.constant 0 : index
      %c0_11 = arith.constant 0 : index
      %12 = vector.load %arg8[%c0_10, %c0_11] : memref<2x256xf32, #tpu.memory_space<vmem>>, vector<2x256xf32>
      %c0_12 = arith.constant 0 : index
      %c0_13 = arith.constant 0 : index
      %13 = vector.load %arg5[%c0_12, %c0_13] : memref<1x256xf32, #tpu.memory_space<vmem>>, vector<1x256xf32>
      %14 = vector.broadcast %13 : vector<1x256xf32> to vector<2x256xf32>
      %15 = arith.mulf %12, %14 : vector<2x256xf32>
      %c0_14 = arith.constant 0 : index
      %c0_15 = arith.constant 0 : index
      %16 = vector.load %arg6[%c0_14, %c0_15] : memref<1x256xf32, #tpu.memory_space<vmem>>, vector<1x256xf32>
      %17 = vector.broadcast %16 : vector<1x256xf32> to vector<2x256xf32>
      %18 = arith.addf %15, %17 : vector<2x256xf32>
      %19 = arith.truncf %18 : vector<2x256xf32> to vector<2x256xbf16>
      %c0_16 = arith.constant 0 : index
      %c0_17 = arith.constant 0 : index
      %20 = vector.load %arg7[%c0_16, %c0_17] : memref<2x256xbf16, #tpu.memory_space<vmem>>, vector<2x256xbf16>
      tpu.vector_store %arg7[%c0_16, %c0_17], %19 {strides = array<i32>} : memref<2x256xbf16, #tpu.memory_space<vmem>>, vector<2x256xbf16>,
    } else {
    }
    return
  }
  func.func @transform_0(%arg0: i32, %arg1: i32, %arg2: i32) -> (i32, i32) {
    %c0_i32 = arith.constant 0 : i32
    return %arg0, %arg2 : i32, i32
  }
  func.func @transform_1(%arg0: i32, %arg1: i32, %arg2: i32) -> (i32, i32) {
    %c0_i32 = arith.constant 0 : i32
    return %arg2, %arg1 : i32, i32
  }
  func.func @transform_2(%arg0: i32, %arg1: i32, %arg2: i32) -> (i32, i32) {
    %c0_i32 = arith.constant 0 : i32
    %c0_i32_0 = arith.constant 0 : i32
    return %c0_i32, %arg1 : i32, i32
  }
  func.func @transform_3(%arg0: i32, %arg1: i32, %arg2: i32) -> (i32, i32) {
    %c0_i32 = arith.constant 0 : i32
    %c0_i32_0 = arith.constant 0 : i32
    return %c0_i32, %arg1 : i32, i32
  }
  func.func @transform_4(%arg0: i32, %arg1: i32, %arg2: i32) -> (i32, i32) {
    %c0_i32 = arith.constant 0 : i32
    return %arg0, %arg1 : i32, i32
  }
}

module attributes {stable_mosaic.version = 11 : i64} {
  func.func @_mm_res_kernel(%arg0: i32, %arg1: i32, %arg2: i32, %arg3: memref<2x512xbf16, #tpu.memory_space<vmem>>, %arg4: memref<512x256xbf16, #tpu.memory_space<vmem>>, %arg5: memref<1x256xf32, #tpu.memory_space<vmem>>, %arg6: memref<1x256xf32, #tpu.memory_space<vmem>>, %arg7: memref<2x256xbf16, #tpu.memory_space<vmem>>, %arg8: memref<2x256xbf16, #tpu.memory_space<vmem>>, %arg9: memref<2x256xf32, #tpu.memory_space<vmem>>) attributes {dimension_semantics = [#tpu.dimension_semantics<parallel>, #tpu.dimension_semantics<parallel>, #tpu.dimension_semantics<arbitrary>], iteration_bounds = array<i64: 1, 2, 9>, scalar_prefetch = 0 : i64, scratch_operands = 1 : i64, tpu.core_type = #tpu.core_type<tc>, window_params = [{transform_indices = @transform_0, window_bounds = array<i64: 2, 512>}, {transform_indices = @transform_1, window_bounds = array<i64: 512, 256>}, {transform_indices = @transform_2, window_bounds = array<i64: 1, 256>}, {transform_indices = @transform_3, window_bounds = array<i64: 1, 256>}, {transform_indices = @transform_4, window_bounds = array<i64: 2, 256>}, {transform_indices = @transform_5, window_bounds = array<i64: 2, 256>}]} {
    %c0_i32 = arith.constant 0 : i32
    %0 = arith.cmpi eq, %arg2, %c0_i32 : i32
    %1 = arith.extui %0 : i1 to i32
    %c0_i32_0 = arith.constant 0 : i32
    %2 = arith.cmpi ne, %1, %c0_i32_0 : i32
    scf.if %2 {
      %cst_9 = arith.constant 0.000000e+00 : f32
      %12 = vector.broadcast %cst_9 : f32 to vector<2x256xf32>
      %c0_10 = arith.constant 0 : index
      %c0_11 = arith.constant 0 : index
      %13 = vector.load %arg9[%c0_10, %c0_11] : memref<2x256xf32, #tpu.memory_space<vmem>>, vector<2x256xf32>
      tpu.vector_store %arg9[%c0_10, %c0_11], %12 {strides = array<i32>} : memref<2x256xf32, #tpu.memory_space<vmem>>, vector<2x256xf32>,
    } else {
    }
    %c0 = arith.constant 0 : index
    %c0_1 = arith.constant 0 : index
    %3 = vector.load %arg9[%c0, %c0_1] : memref<2x256xf32, #tpu.memory_space<vmem>>, vector<2x256xf32>
    %c0_2 = arith.constant 0 : index
    %c0_3 = arith.constant 0 : index
    %4 = vector.load %arg3[%c0_2, %c0_3] : memref<2x512xbf16, #tpu.memory_space<vmem>>, vector<2x512xbf16>
    %c0_4 = arith.constant 0 : index
    %c0_5 = arith.constant 0 : index
    %5 = vector.load %arg4[%c0_4, %c0_5] : memref<512x256xbf16, #tpu.memory_space<vmem>>, vector<512x256xbf16>
    %cst = arith.constant dense<0.000000e+00> : vector<2x256xf32>
    %6 = tpu.matmul %4, %5, %cst {dimension_numbers = #tpu.dot_dimension_numbers<[1], [0], [0], [1], [0, 0, 1, 1], [], []>} : vector<2x512xbf16>, vector<512x256xbf16>, vector<2x256xf32> -> vector<2x256xf32>
    %7 = arith.addf %3, %6 : vector<2x256xf32>
    %c0_6 = arith.constant 0 : index
    %c0_7 = arith.constant 0 : index
    %8 = vector.load %arg9[%c0_6, %c0_7] : memref<2x256xf32, #tpu.memory_space<vmem>>, vector<2x256xf32>
    tpu.vector_store %arg9[%c0_6, %c0_7], %7 {strides = array<i32>} : memref<2x256xf32, #tpu.memory_space<vmem>>, vector<2x256xf32>,
    %c8_i32 = arith.constant 8 : i32
    %9 = arith.cmpi eq, %arg2, %c8_i32 : i32
    %10 = arith.extui %9 : i1 to i32
    %c0_i32_8 = arith.constant 0 : i32
    %11 = arith.cmpi ne, %10, %c0_i32_8 : i32
    scf.if %11 {
      %c0_9 = arith.constant 0 : index
      %c0_10 = arith.constant 0 : index
      %12 = vector.load %arg9[%c0_9, %c0_10] : memref<2x256xf32, #tpu.memory_space<vmem>>, vector<2x256xf32>
      %c0_11 = arith.constant 0 : index
      %c0_12 = arith.constant 0 : index
      %13 = vector.load %arg5[%c0_11, %c0_12] : memref<1x256xf32, #tpu.memory_space<vmem>>, vector<1x256xf32>
      %14 = vector.broadcast %13 : vector<1x256xf32> to vector<2x256xf32>
      %15 = arith.mulf %12, %14 : vector<2x256xf32>
      %c0_13 = arith.constant 0 : index
      %c0_14 = arith.constant 0 : index
      %16 = vector.load %arg6[%c0_13, %c0_14] : memref<1x256xf32, #tpu.memory_space<vmem>>, vector<1x256xf32>
      %17 = vector.broadcast %16 : vector<1x256xf32> to vector<2x256xf32>
      %18 = arith.addf %15, %17 : vector<2x256xf32>
      %c0_15 = arith.constant 0 : index
      %c0_16 = arith.constant 0 : index
      %19 = vector.load %arg7[%c0_15, %c0_16] : memref<2x256xbf16, #tpu.memory_space<vmem>>, vector<2x256xbf16>
      %20 = arith.extf %19 : vector<2x256xbf16> to vector<2x256xf32>
      %21 = arith.addf %18, %20 : vector<2x256xf32>
      %cst_17 = arith.constant 0.000000e+00 : f32
      %22 = vector.broadcast %cst_17 : f32 to vector<2x256xf32>
      %23 = arith.maximumf %21, %22 : vector<2x256xf32>
      %24 = arith.truncf %23 : vector<2x256xf32> to vector<2x256xbf16>
      %c0_18 = arith.constant 0 : index
      %c0_19 = arith.constant 0 : index
      %25 = vector.load %arg8[%c0_18, %c0_19] : memref<2x256xbf16, #tpu.memory_space<vmem>>, vector<2x256xbf16>
      tpu.vector_store %arg8[%c0_18, %c0_19], %24 {strides = array<i32>} : memref<2x256xbf16, #tpu.memory_space<vmem>>, vector<2x256xbf16>,
    } else {
    }
    return
  }
  func.func @transform_0(%arg0: i32, %arg1: i32, %arg2: i32) -> (i32, i32) {
    %c0_i32 = arith.constant 0 : i32
    return %arg0, %arg2 : i32, i32
  }
  func.func @transform_1(%arg0: i32, %arg1: i32, %arg2: i32) -> (i32, i32) {
    %c0_i32 = arith.constant 0 : i32
    return %arg2, %arg1 : i32, i32
  }
  func.func @transform_2(%arg0: i32, %arg1: i32, %arg2: i32) -> (i32, i32) {
    %c0_i32 = arith.constant 0 : i32
    %c0_i32_0 = arith.constant 0 : i32
    return %c0_i32, %arg1 : i32, i32
  }
  func.func @transform_3(%arg0: i32, %arg1: i32, %arg2: i32) -> (i32, i32) {
    %c0_i32 = arith.constant 0 : i32
    %c0_i32_0 = arith.constant 0 : i32
    return %c0_i32, %arg1 : i32, i32
  }
  func.func @transform_4(%arg0: i32, %arg1: i32, %arg2: i32) -> (i32, i32) {
    %c0_i32 = arith.constant 0 : i32
    return %arg0, %arg1 : i32, i32
  }
  func.func @transform_5(%arg0: i32, %arg1: i32, %arg2: i32) -> (i32, i32) {
    %c0_i32 = arith.constant 0 : i32
    return %arg0, %arg1 : i32, i32
  }
}

module attributes {stable_mosaic.version = 11 : i64} {
  func.func @_mm_kernel(%arg0: i32, %arg1: i32, %arg2: i32, %arg3: memref<2x512xbf16, #tpu.memory_space<vmem>>, %arg4: memref<512x128xbf16, #tpu.memory_space<vmem>>, %arg5: memref<1x128xf32, #tpu.memory_space<vmem>>, %arg6: memref<1x128xf32, #tpu.memory_space<vmem>>, %arg7: memref<2x128xf32, #tpu.memory_space<vmem>>, %arg8: memref<2x128xf32, #tpu.memory_space<vmem>>) attributes {dimension_semantics = [#tpu.dimension_semantics<parallel>, #tpu.dimension_semantics<parallel>, #tpu.dimension_semantics<arbitrary>], iteration_bounds = array<i64: 1, 1, 1>, scalar_prefetch = 0 : i64, scratch_operands = 1 : i64, tpu.core_type = #tpu.core_type<tc>, window_params = [{transform_indices = @transform_0, window_bounds = array<i64: 2, 512>}, {transform_indices = @transform_1, window_bounds = array<i64: 512, 128>}, {transform_indices = @transform_2, window_bounds = array<i64: 1, 128>}, {transform_indices = @transform_3, window_bounds = array<i64: 1, 128>}, {transform_indices = @transform_4, window_bounds = array<i64: 2, 128>}]} {
    %c0_i32 = arith.constant 0 : i32
    %0 = arith.cmpi eq, %arg2, %c0_i32 : i32
    %1 = arith.extui %0 : i1 to i32
    %c0_i32_0 = arith.constant 0 : i32
    %2 = arith.cmpi ne, %1, %c0_i32_0 : i32
    scf.if %2 {
      %cst_10 = arith.constant 0.000000e+00 : f32
      %12 = vector.broadcast %cst_10 : f32 to vector<2x128xf32>
      %c0_11 = arith.constant 0 : index
      %c0_12 = arith.constant 0 : index
      %13 = vector.load %arg8[%c0_11, %c0_12] : memref<2x128xf32, #tpu.memory_space<vmem>>, vector<2x128xf32>
      tpu.vector_store %arg8[%c0_11, %c0_12], %12 {strides = array<i32>} : memref<2x128xf32, #tpu.memory_space<vmem>>, vector<2x128xf32>,
    } else {
    }
    %c0 = arith.constant 0 : index
    %c0_1 = arith.constant 0 : index
    %3 = vector.load %arg8[%c0, %c0_1] : memref<2x128xf32, #tpu.memory_space<vmem>>, vector<2x128xf32>
    %c0_2 = arith.constant 0 : index
    %c0_3 = arith.constant 0 : index
    %4 = vector.load %arg3[%c0_2, %c0_3] : memref<2x512xbf16, #tpu.memory_space<vmem>>, vector<2x512xbf16>
    %c0_4 = arith.constant 0 : index
    %c0_5 = arith.constant 0 : index
    %5 = vector.load %arg4[%c0_4, %c0_5] : memref<512x128xbf16, #tpu.memory_space<vmem>>, vector<512x128xbf16>
    %cst = arith.constant dense<0.000000e+00> : vector<2x128xf32>
    %6 = tpu.matmul %4, %5, %cst {dimension_numbers = #tpu.dot_dimension_numbers<[1], [0], [0], [1], [0, 0, 1, 1], [], []>} : vector<2x512xbf16>, vector<512x128xbf16>, vector<2x128xf32> -> vector<2x128xf32>
    %7 = arith.addf %3, %6 : vector<2x128xf32>
    %c0_6 = arith.constant 0 : index
    %c0_7 = arith.constant 0 : index
    %8 = vector.load %arg8[%c0_6, %c0_7] : memref<2x128xf32, #tpu.memory_space<vmem>>, vector<2x128xf32>
    tpu.vector_store %arg8[%c0_6, %c0_7], %7 {strides = array<i32>} : memref<2x128xf32, #tpu.memory_space<vmem>>, vector<2x128xf32>,
    %c0_i32_8 = arith.constant 0 : i32
    %9 = arith.cmpi eq, %arg2, %c0_i32_8 : i32
    %10 = arith.extui %9 : i1 to i32
    %c0_i32_9 = arith.constant 0 : i32
    %11 = arith.cmpi ne, %10, %c0_i32_9 : i32
    scf.if %11 {
      %c0_10 = arith.constant 0 : index
      %c0_11 = arith.constant 0 : index
      %12 = vector.load %arg8[%c0_10, %c0_11] : memref<2x128xf32, #tpu.memory_space<vmem>>, vector<2x128xf32>
      %c0_12 = arith.constant 0 : index
      %c0_13 = arith.constant 0 : index
      %13 = vector.load %arg5[%c0_12, %c0_13] : memref<1x128xf32, #tpu.memory_space<vmem>>, vector<1x128xf32>
      %14 = vector.broadcast %13 : vector<1x128xf32> to vector<2x128xf32>
      %15 = arith.mulf %12, %14 : vector<2x128xf32>
      %c0_14 = arith.constant 0 : index
      %c0_15 = arith.constant 0 : index
      %16 = vector.load %arg6[%c0_14, %c0_15] : memref<1x128xf32, #tpu.memory_space<vmem>>, vector<1x128xf32>
      %17 = vector.broadcast %16 : vector<1x128xf32> to vector<2x128xf32>
      %18 = arith.addf %15, %17 : vector<2x128xf32>
      %c0_16 = arith.constant 0 : index
      %c0_17 = arith.constant 0 : index
      %19 = vector.load %arg7[%c0_16, %c0_17] : memref<2x128xf32, #tpu.memory_space<vmem>>, vector<2x128xf32>
      tpu.vector_store %arg7[%c0_16, %c0_17], %18 {strides = array<i32>} : memref<2x128xf32, #tpu.memory_space<vmem>>, vector<2x128xf32>,
    } else {
    }
    return
  }
  func.func @transform_0(%arg0: i32, %arg1: i32, %arg2: i32) -> (i32, i32) {
    %c0_i32 = arith.constant 0 : i32
    return %arg0, %arg2 : i32, i32
  }
  func.func @transform_1(%arg0: i32, %arg1: i32, %arg2: i32) -> (i32, i32) {
    %c0_i32 = arith.constant 0 : i32
    return %arg2, %arg1 : i32, i32
  }
  func.func @transform_2(%arg0: i32, %arg1: i32, %arg2: i32) -> (i32, i32) {
    %c0_i32 = arith.constant 0 : i32
    %c0_i32_0 = arith.constant 0 : i32
    return %c0_i32, %arg1 : i32, i32
  }
  func.func @transform_3(%arg0: i32, %arg1: i32, %arg2: i32) -> (i32, i32) {
    %c0_i32 = arith.constant 0 : i32
    %c0_i32_0 = arith.constant 0 : i32
    return %c0_i32, %arg1 : i32, i32
  }
  func.func @transform_4(%arg0: i32, %arg1: i32, %arg2: i32) -> (i32, i32) {
    %c0_i32 = arith.constant 0 : i32
    return %arg0, %arg1 : i32, i32
  }
}

</mosaic_0001>

<bundles_post_ra>
// kernel: _lambda_.23
= control target key start
LH: loop header
LB: loop body
LE: loop exit
PB: predicated region body
PF: predicated region fallthrough
CT: control target
= control target key end

     0   :  { %vm688_vm0 = vcmask 519168   ;;  %s1414_s0 = inlined_call_operand.vmem [shape: bf16[128,64], index: 0, kind: input, shape index: {}]   ;;  %s1415_s1 = inlined_call_operand.vmem [shape: bf16[128,64], index: 1, kind: input, shape index: {}]   ;;  %s1416_s2 = inlined_call_operand.vmem [shape: bf16[128,64], index: 2, kind: input, shape index: {}]   ;;  %s1417_s3 = inlined_call_operand.vmem [shape: bf16[128,64], index: 3, kind: input, shape index: {}]   ;;  %s1418_s4 = inlined_call_operand.vmem [shape: bf16[128,64], index: 4, kind: input, shape index: {}]   ;;  %s1419_s5 = inlined_call_operand.vmem [shape: bf16[128,64], index: 5, kind: input, shape index: {}]   ;;  %s1420_s6 = inlined_call_operand.vmem [shape: bf16[128,64], index: 6, kind: input, shape index: {}]   ;;  %s1421_s7 = inlined_call_operand.vmem [shape: bf16[128,64], index: 7, kind: input, shape index: {}]   ;;  %s1422_s8 = inlined_call_operand.vmem [shape: bf16[128,64], index: 8, kind: input, shape index: {}]   ;;  %s1423_s9 = inlined_call_operand.vmem [shape: bf16[128,64], index: 9, kind: output, shape index: {}]  }
   0x1   :  { %v710_v0 = vld [vmem:[%s1414_s0] sm:$0xff]   ;;  %v997_v25 = vld [vmem:[%s1414_s0 + $0x8] sm:$0xff]  }
   0x2   :  { %v742_v1 = vld [vmem:[%s1415_s1] sm:$0xff]   ;;  %v711_v3 = vunpack.c.l.bf16 %v710_v0  ;;  %v712_v9 = vunpack.c.h.bf16 %v710_v0  ;;  %v1004_v30 = vld [vmem:[%s1415_s1 + $0x8] sm:$0xff]   ;;  %v715_v42 = vunpack.c.l.bf16 %v997_v25  ;;  %v716_v0 = vunpack.c.h.bf16 %v997_v25 }
   0x3   :  { %v774_v2 = vld [vmem:[%s1416_s2] sm:$0xff]   ;;  %v743_v4 = vunpack.c.l.bf16 %v742_v1  ;;  %v744_v16 = vunpack.c.h.bf16 %v742_v1  ;;  %v1011_v31 = vld [vmem:[%s1416_s2 + $0x8] sm:$0xff]   ;;  %v747_v45 = vunpack.c.l.bf16 %v1004_v30  ;;  %v748_v1 = vunpack.c.h.bf16 %v1004_v30  ;;  %v1199_v30 = vld [vmem:[%s1422_s8 + $0x10] sm:$0xff]  }
   0x4   :  { %v775_v5 = vunpack.c.l.bf16 %v774_v2  ;;  %v806_v6 = vld [vmem:[%s1417_s3] sm:$0xff]   ;;  %v776_v24 = vunpack.c.h.bf16 %v774_v2  ;;  %v1018_v32 = vld [vmem:[%s1417_s3 + $0x8] sm:$0xff]   ;;  %v779_v46 = vunpack.c.l.bf16 %v1011_v31 }
   0x5   :  { %v838_v7 = vld [vmem:[%s1418_s4] sm:$0xff]   ;;  %v807_v10 = vunpack.c.l.bf16 %v806_v6  ;;  %v96_v17 = vmax.f32 %v711_v3, %v743_v4  ;;  %v97_v23 = vmax.f32 %v712_v9, %v744_v16  ;;  %v808_v27 = vunpack.c.h.bf16 %v806_v6  ;;  %v1025_v37 = vld [vmem:[%s1418_s4 + $0x8] sm:$0xff]   ;;  %v998_v6 = vld [vmem:[%s1414_s0 + $0x10] sm:$0xff]  }
   0x6   :  { %v870_v8 = vld [vmem:[%s1419_s5] sm:$0xff]   ;;  %v839_v11 = vunpack.c.l.bf16 %v838_v7  ;;  %v840_v28 = vunpack.c.h.bf16 %v838_v7  ;;  %v1032_v38 = vld [vmem:[%s1419_s5 + $0x8] sm:$0xff]   ;;  %v811_v47 = vunpack.c.l.bf16 %v1018_v32  ;;  %v843_v52 = vunpack.c.l.bf16 %v1025_v37 }
   0x7   :  { %v871_v12 = vunpack.c.l.bf16 %v870_v8  ;;  %v902_v13 = vld [vmem:[%s1420_s6] sm:$0xff]   ;;  %v192_v21 = vmax.f32 %v775_v5, %v807_v10  ;;  %v872_v29 = vunpack.c.h.bf16 %v870_v8  ;;  %v193_v40 = vmax.f32 %v776_v24, %v808_v27  ;;  %v1039_v43 = vld [vmem:[%s1420_s6 + $0x8] sm:$0xff]   ;;  %v1040_v24 = vld [vmem:[%s1420_s6 + $0x10] sm:$0xff]  }
   0x8   :  { %v934_v14 = vld [vmem:[%s1421_s7] sm:$0xff]   ;;  %v903_v18 = vunpack.c.l.bf16 %v902_v13  ;;  %v904_v34 = vunpack.c.h.bf16 %v902_v13  ;;  %v1046_v48 = vld [vmem:[%s1421_s7 + $0x8] sm:$0xff]   ;;  %v875_v53 = vunpack.c.l.bf16 %v1032_v38  ;;  %v98_v55 = vmax.f32 %v715_v42, %v747_v45 }
   0x9   :  { %v966_v15 = vld [vmem:[%s1422_s8] sm:$0xff]   ;;  %v935_v19 = vunpack.c.l.bf16 %v934_v14  ;;  %v352_v22 = vmax.f32 %v839_v11, %v871_v12  ;;  %v256_v33 = vmax.f32 %v96_v17, %v192_v21  ;;  %v936_v35 = vunpack.c.h.bf16 %v934_v14  ;;  %v1164_v49 = vld [vmem:[%s1422_s8 + $0x8] sm:$0xff]   ;;  %v1005_v11 = vld [vmem:[%s1415_s1 + $0x10] sm:$0xff]  }
   0xa   :  { %v967_v20 = vunpack.c.l.bf16 %v966_v15  ;;  %v968_v36 = vunpack.c.h.bf16 %v966_v15  ;;  %v353_v41 = vmax.f32 %v840_v28, %v872_v29  ;;  %v257_v51 = vmax.f32 %v97_v23, %v193_v40  ;;  %v1012_v12 = vld [vmem:[%s1416_s2 + $0x10] sm:$0xff]  }
   0xb   :  { %v448_v26 = vmax.f32 %v903_v18, %v935_v19  ;;  %v449_v44 = vmax.f32 %v904_v34, %v936_v35  ;;  %v194_v56 = vmax.f32 %v779_v46, %v811_v47  ;;  %v907_v57 = vunpack.c.l.bf16 %v1039_v43  ;;  %v1019_v17 = vld [vmem:[%s1417_s3 + $0x10] sm:$0xff]  }
   0xc   :  { %v354_v59 = vmax.f32 %v843_v52, %v875_v53  ;;  %v939_v60 = vunpack.c.l.bf16 %v1046_v48  ;;  %v971_v61 = vunpack.c.l.bf16 %v1164_v49  ;;  %v780_v4 = vunpack.c.h.bf16 %v1011_v31  ;;  %v1026_v18 = vld [vmem:[%s1418_s4 + $0x10] sm:$0xff]  }
   0xd   :  { %v512_v39 = vmax.f32 %v352_v22, %v448_v26  ;;  %v513_v54 = vmax.f32 %v353_v41, %v449_v44  ;;  %v258_v63 = vmax.f32 %v98_v55, %v194_v56  ;;  %v812_v5 = vunpack.c.h.bf16 %v1018_v32  ;;  %v1033_v19 = vld [vmem:[%s1419_s5 + $0x10] sm:$0xff]   ;;  %v1006_v56 = vld [vmem:[%s1415_s1 + $0x18] sm:$0xff]  }
   0xe   :  { %v450_v3 = vmax.f32 %v907_v57, %v939_v60  ;;  %v99_v8 = vmax.f32 %v716_v0, %v748_v1  ;;  %v844_v9 = vunpack.c.h.bf16 %v1025_v37  ;;  %v876_v10 = vunpack.c.h.bf16 %v1032_v38  ;;  %v1047_v29 = vld [vmem:[%s1421_s7 + $0x10] sm:$0xff]   ;;  %v1013_v57 = vld [vmem:[%s1416_s2 + $0x18] sm:$0xff]  }
   0xf   :  { %v576_v50 = vmax.f32 %v256_v33, %v512_v39  ;;  %v577_v62 = vmax.f32 %v257_v51, %v513_v54  ;;  %v195_v14 = vmax.f32 %v780_v4, %v812_v5  ;;  %v908_v15 = vunpack.c.h.bf16 %v1039_v43  ;;  %v999_v51 = vld [vmem:[%s1414_s0 + $0x18] sm:$0xff]  }
  0x10   :  { %v514_v13 = vmax.f32 %v354_v59, %v450_v3  ;;  %v940_v16 = vunpack.c.h.bf16 %v1046_v48  ;;  %v355_v21 = vmax.f32 %v844_v9, %v876_v10  ;;  %v972_v22 = vunpack.c.h.bf16 %v1164_v49  ;;  %v1034_v0 = vld [vmem:[%s1419_s5 + $0x18] sm:$0xff]  }
  0x11   :  { %v656_v58 = vmax.f32 %v576_v50, %v967_v20  ;;  %v657_v7 = vmax.f32 %v577_v62, %v968_v36  ;;  %v719_v23 = vunpack.c.l.bf16 %v998_v6  ;;  %v259_v26 = vmax.f32 %v99_v8, %v195_v14  ;;  %v1020_v62 = vld [vmem:[%s1417_s3 + $0x18] sm:$0xff]  }
  0x12   :  { %v578_v25 = vmax.f32 %v258_v63, %v514_v13  ;;  %v451_v27 = vmax.f32 %v908_v15, %v940_v16  ;;  %v751_v28 = vunpack.c.l.bf16 %v1005_v11  ;;  %v783_v31 = vunpack.c.l.bf16 %v1012_v12  ;;  %v1027_v63 = vld [vmem:[%s1418_s4 + $0x18] sm:$0xff]  }
  0x13   :  { %v672_v2 = vpack.c.bf16 %v656_v58, %v656_v58  ;;  %v673_v20 = vpack.c.bf16 %v657_v7, %v657_v7  ;;  %v815_v32 = vunpack.c.l.bf16 %v1019_v17  ;;  %v847_v33 = vunpack.c.l.bf16 %v1026_v18  ;;  %v1041_v5 = vld [vmem:[%s1420_s6 + $0x18] sm:$0xff]  }
  0x14   :  { %v879_v34 = vunpack.c.l.bf16 %v1033_v19  ;;  %v658_v35 = vmax.f32 %v578_v25, %v971_v61  ;;  %v515_v36 = vmax.f32 %v355_v21, %v451_v27  ;;  %v100_v37 = vmax.f32 %v719_v23, %v751_v28  ;;  %v1048_v10 = vld [vmem:[%s1421_s7 + $0x18] sm:$0xff]  }
  0x15   :  { %689 = vst.msk [vmem:[%s1423_s9] sm:$0xf] %vm688_vm0, %v672_v2  ;;  %v911_v38 = vunpack.c.l.bf16 %v1040_v24  ;;  %v196_v39 = vmax.f32 %v783_v31, %v815_v32  ;;  %v943_v41 = vunpack.c.l.bf16 %v1047_v29  ;;  %v975_v42 = vunpack.c.l.bf16 %v1199_v30  ;;  %v1000_v32 = vld [vmem:[%s1414_s0 + $0x20] sm:$0xff]  }
  0x16   :  { %690 = vst.msk [vmem:[%s1423_s9 + $0x4] sm:$0xf] %vm688_vm0, %v673_v20  ;;  %v356_v40 = vmax.f32 %v847_v33, %v879_v34  ;;  %v674_v43 = vpack.c.bf16 %v658_v35, %v658_v35  ;;  %v579_v44 = vmax.f32 %v259_v26, %v515_v36  ;;  %v720_v45 = vunpack.c.h.bf16 %v998_v6 }
  0x17   :  { %v752_v46 = vunpack.c.h.bf16 %v1005_v11  ;;  %v260_v47 = vmax.f32 %v100_v37, %v196_v39  ;;  %v452_v48 = vmax.f32 %v911_v38, %v943_v41  ;;  %v784_v49 = vunpack.c.h.bf16 %v1012_v12  ;;  %v1238_v11 = vld [vmem:[%s1422_s8 + $0x18] sm:$0xff]   ;;  %v1007_v37 = vld [vmem:[%s1415_s1 + $0x20] sm:$0xff]  }
  0x18   :  { %v816_v50 = vunpack.c.h.bf16 %v1019_v17  ;;  %691 = vst.msk [vmem:[%s1423_s9 + $0x8] sm:$0xf] %vm688_vm0, %v674_v43  ;;  %v659_v52 = vmax.f32 %v579_v44, %v972_v22  ;;  %v848_v54 = vunpack.c.h.bf16 %v1026_v18  ;;  %v880_v55 = vunpack.c.h.bf16 %v1033_v19  ;;  %v1014_v38 = vld [vmem:[%s1416_s2 + $0x20] sm:$0xff]  }
  0x19   :  { %v101_v53 = vmax.f32 %v720_v45, %v752_v46  ;;  %v516_v58 = vmax.f32 %v356_v40, %v452_v48  ;;  %v912_v60 = vunpack.c.h.bf16 %v1040_v24  ;;  %v944_v61 = vunpack.c.h.bf16 %v1047_v29  ;;  %v1021_v43 = vld [vmem:[%s1417_s3 + $0x20] sm:$0xff]  }
  0x1a   :  { %v197_v59 = vmax.f32 %v784_v49, %v816_v50  ;;  %v675_v1 = vpack.c.bf16 %v659_v52, %v659_v52  ;;  %v357_v2 = vmax.f32 %v848_v54, %v880_v55  ;;  %v976_v3 = vunpack.c.h.bf16 %v1199_v30  ;;  %v1028_v44 = vld [vmem:[%s1418_s4 + $0x20] sm:$0xff]  }
  0x1b   :  { %v723_v4 = vunpack.c.l.bf16 %v999_v51  ;;  %v580_v6 = vmax.f32 %v260_v47, %v516_v58  ;;  %v453_v8 = vmax.f32 %v912_v60, %v944_v61  ;;  %v755_v9 = vunpack.c.l.bf16 %v1006_v56  ;;  %v1035_v45 = vld [vmem:[%s1419_s5 + $0x20] sm:$0xff]  }
  0x1c   :  { %v261_v7 = vmax.f32 %v101_v53, %v197_v59  ;;  %692 = vst.msk [vmem:[%s1423_s9 + $0xc] sm:$0xf] %vm688_vm0, %v675_v1  ;;  %v787_v12 = vunpack.c.l.bf16 %v1013_v57  ;;  %v819_v13 = vunpack.c.l.bf16 %v1020_v62  ;;  %v851_v14 = vunpack.c.l.bf16 %v1027_v63  ;;  %v1042_v50 = vld [vmem:[%s1420_s6 + $0x20] sm:$0xff]  }
  0x1d   :  { %v883_v15 = vunpack.c.l.bf16 %v1034_v0  ;;  %v660_v16 = vmax.f32 %v580_v6, %v975_v42  ;;  %v517_v17 = vmax.f32 %v357_v2, %v453_v8  ;;  %v102_v18 = vmax.f32 %v723_v4, %v755_v9  ;;  %v1049_v55 = vld [vmem:[%s1421_s7 + $0x20] sm:$0xff]  }
  0x1e   :  { %v915_v19 = vunpack.c.l.bf16 %v1041_v5  ;;  %v198_v20 = vmax.f32 %v787_v12, %v819_v13  ;;  %v947_v22 = vunpack.c.l.bf16 %v1048_v10  ;;  %v979_v23 = vunpack.c.l.bf16 %v1238_v11  ;;  %v1001_v13 = vld [vmem:[%s1414_s0 + $0x28] sm:$0xff]  }
  0x1f   :  { %v358_v21 = vmax.f32 %v851_v14, %v883_v15  ;;  %v676_v24 = vpack.c.bf16 %v660_v16, %v660_v16  ;;  %v581_v25 = vmax.f32 %v261_v7, %v517_v17  ;;  %v724_v26 = vunpack.c.h.bf16 %v999_v51 }
  0x20   :  { %v756_v27 = vunpack.c.h.bf16 %v1006_v56  ;;  %v262_v28 = vmax.f32 %v102_v18, %v198_v20  ;;  %v454_v29 = vmax.f32 %v915_v19, %v947_v22  ;;  %v788_v30 = vunpack.c.h.bf16 %v1013_v57  ;;  %v1277_v56 = vld [vmem:[%s1422_s8 + $0x20] sm:$0xff]   ;;  %v1008_v18 = vld [vmem:[%s1415_s1 + $0x28] sm:$0xff]  }
  0x21   :  { %v820_v31 = vunpack.c.h.bf16 %v1020_v62  ;;  %693 = vst.msk [vmem:[%s1423_s9 + $0x10] sm:$0xf] %vm688_vm0, %v676_v24  ;;  %v661_v33 = vmax.f32 %v581_v25, %v976_v3  ;;  %v852_v35 = vunpack.c.h.bf16 %v1027_v63  ;;  %v884_v36 = vunpack.c.h.bf16 %v1034_v0  ;;  %v1015_v19 = vld [vmem:[%s1416_s2 + $0x28] sm:$0xff]  }
  0x22   :  { %v103_v34 = vmax.f32 %v724_v26, %v756_v27  ;;  %v518_v39 = vmax.f32 %v358_v21, %v454_v29  ;;  %v916_v41 = vunpack.c.h.bf16 %v1041_v5  ;;  %v948_v42 = vunpack.c.h.bf16 %v1048_v10  ;;  %v1022_v24 = vld [vmem:[%s1417_s3 + $0x28] sm:$0xff]  }
  0x23   :  { %v199_v40 = vmax.f32 %v788_v30, %v820_v31  ;;  %v677_v46 = vpack.c.bf16 %v661_v33, %v661_v33  ;;  %v359_v47 = vmax.f32 %v852_v35, %v884_v36  ;;  %v980_v48 = vunpack.c.h.bf16 %v1238_v11  ;;  %v1029_v25 = vld [vmem:[%s1418_s4 + $0x28] sm:$0xff]  }
  0x24   :  { %v727_v49 = vunpack.c.l.bf16 %v1000_v32  ;;  %v582_v51 = vmax.f32 %v262_v28, %v518_v39  ;;  %v455_v53 = vmax.f32 %v916_v41, %v948_v42  ;;  %v759_v54 = vunpack.c.l.bf16 %v1007_v37  ;;  %v1036_v26 = vld [vmem:[%s1419_s5 + $0x28] sm:$0xff]  }
  0x25   :  { %v263_v52 = vmax.f32 %v103_v34, %v199_v40  ;;  %694 = vst.msk [vmem:[%s1423_s9 + $0x14] sm:$0xf] %vm688_vm0, %v677_v46  ;;  %v791_v57 = vunpack.c.l.bf16 %v1014_v38  ;;  %v823_v58 = vunpack.c.l.bf16 %v1021_v43  ;;  %v855_v59 = vunpack.c.l.bf16 %v1028_v44  ;;  %v1043_v31 = vld [vmem:[%s1420_s6 + $0x28] sm:$0xff]  }
  0x26   :  { %v887_v60 = vunpack.c.l.bf16 %v1035_v45  ;;  %v662_v61 = vmax.f32 %v582_v51, %v979_v23  ;;  %v519_v62 = vmax.f32 %v359_v47, %v455_v53  ;;  %v104_v63 = vmax.f32 %v727_v49, %v759_v54  ;;  %v1050_v36 = vld [vmem:[%s1421_s7 + $0x28] sm:$0xff]  }
  0x27   :  { %v919_v0 = vunpack.c.l.bf16 %v1042_v50  ;;  %v200_v1 = vmax.f32 %v791_v57, %v823_v58  ;;  %v951_v3 = vunpack.c.l.bf16 %v1049_v55  ;;  %v983_v4 = vunpack.c.l.bf16 %v1277_v56  ;;  %v1002_v58 = vld [vmem:[%s1414_s0 + $0x30] sm:$0xff]  }
  0x28   :  { %v360_v2 = vmax.f32 %v855_v59, %v887_v60  ;;  %v678_v5 = vpack.c.bf16 %v662_v61, %v662_v61  ;;  %v583_v6 = vmax.f32 %v263_v52, %v519_v62  ;;  %v728_v7 = vunpack.c.h.bf16 %v1000_v32 }
  0x29   :  { %v760_v8 = vunpack.c.h.bf16 %v1007_v37  ;;  %v264_v9 = vmax.f32 %v104_v63, %v200_v1  ;;  %v456_v10 = vmax.f32 %v919_v0, %v951_v3  ;;  %v792_v11 = vunpack.c.h.bf16 %v1014_v38  ;;  %v1316_v37 = vld [vmem:[%s1422_s8 + $0x28] sm:$0xff]   ;;  %v1009_v63 = vld [vmem:[%s1415_s1 + $0x30] sm:$0xff]  }
  0x2a   :  { %v824_v12 = vunpack.c.h.bf16 %v1021_v43  ;;  %695 = vst.msk [vmem:[%s1423_s9 + $0x18] sm:$0xf] %vm688_vm0, %v678_v5  ;;  %v663_v14 = vmax.f32 %v583_v6, %v980_v48  ;;  %v856_v16 = vunpack.c.h.bf16 %v1028_v44  ;;  %v888_v17 = vunpack.c.h.bf16 %v1035_v45  ;;  %v1016_v0 = vld [vmem:[%s1416_s2 + $0x30] sm:$0xff]  }
  0x2b   :  { %v105_v15 = vmax.f32 %v728_v7, %v760_v8  ;;  %v520_v20 = vmax.f32 %v360_v2, %v456_v10  ;;  %v920_v22 = vunpack.c.h.bf16 %v1042_v50  ;;  %v952_v23 = vunpack.c.h.bf16 %v1049_v55  ;;  %v1023_v5 = vld [vmem:[%s1417_s3 + $0x30] sm:$0xff]  }
  0x2c   :  { %v201_v21 = vmax.f32 %v792_v11, %v824_v12  ;;  %v679_v27 = vpack.c.bf16 %v663_v14, %v663_v14  ;;  %v361_v28 = vmax.f32 %v856_v16, %v888_v17  ;;  %v984_v29 = vunpack.c.h.bf16 %v1277_v56  ;;  %v1030_v6 = vld [vmem:[%s1418_s4 + $0x30] sm:$0xff]  }
  0x2d   :  { %v731_v30 = vunpack.c.l.bf16 %v1001_v13  ;;  %v584_v32 = vmax.f32 %v264_v9, %v520_v20  ;;  %v457_v34 = vmax.f32 %v920_v22, %v952_v23  ;;  %v763_v35 = vunpack.c.l.bf16 %v1008_v18  ;;  %v1037_v7 = vld [vmem:[%s1419_s5 + $0x30] sm:$0xff]  }
  0x2e   :  { %v265_v33 = vmax.f32 %v105_v15, %v201_v21  ;;  %696 = vst.msk [vmem:[%s1423_s9 + $0x1c] sm:$0xf] %vm688_vm0, %v679_v27  ;;  %v795_v38 = vunpack.c.l.bf16 %v1015_v19  ;;  %v827_v39 = vunpack.c.l.bf16 %v1022_v24  ;;  %v859_v40 = vunpack.c.l.bf16 %v1029_v25  ;;  %v1044_v12 = vld [vmem:[%s1420_s6 + $0x30] sm:$0xff]  }
  0x2f   :  { %v891_v41 = vunpack.c.l.bf16 %v1036_v26  ;;  %v664_v42 = vmax.f32 %v584_v32, %v983_v4  ;;  %v521_v43 = vmax.f32 %v361_v28, %v457_v34  ;;  %v106_v44 = vmax.f32 %v731_v30, %v763_v35  ;;  %v1051_v17 = vld [vmem:[%s1421_s7 + $0x30] sm:$0xff]  }
  0x30   :  { %v923_v45 = vunpack.c.l.bf16 %v1043_v31  ;;  %v202_v46 = vmax.f32 %v795_v38, %v827_v39  ;;  %v955_v48 = vunpack.c.l.bf16 %v1050_v36  ;;  %v987_v49 = vunpack.c.l.bf16 %v1316_v37  ;;  %v1003_v39 = vld [vmem:[%s1414_s0 + $0x38] sm:$0xff]  }
  0x31   :  { %v362_v47 = vmax.f32 %v859_v40, %v891_v41  ;;  %v680_v50 = vpack.c.bf16 %v664_v42, %v664_v42  ;;  %v585_v51 = vmax.f32 %v265_v33, %v521_v43  ;;  %v732_v52 = vunpack.c.h.bf16 %v1001_v13 }
  0x32   :  { %v764_v53 = vunpack.c.h.bf16 %v1008_v18  ;;  %v266_v54 = vmax.f32 %v106_v44, %v202_v46  ;;  %v458_v55 = vmax.f32 %v923_v45, %v955_v48  ;;  %v796_v56 = vunpack.c.h.bf16 %v1015_v19  ;;  %v1355_v18 = vld [vmem:[%s1422_s8 + $0x30] sm:$0xff]   ;;  %v1010_v44 = vld [vmem:[%s1415_s1 + $0x38] sm:$0xff]  }
  0x33   :  { %v828_v57 = vunpack.c.h.bf16 %v1022_v24  ;;  %697 = vst.msk [vmem:[%s1423_s9 + $0x20] sm:$0xf] %vm688_vm0, %v680_v50  ;;  %v665_v59 = vmax.f32 %v585_v51, %v984_v29  ;;  %v860_v61 = vunpack.c.h.bf16 %v1029_v25  ;;  %v892_v62 = vunpack.c.h.bf16 %v1036_v26  ;;  %v1017_v45 = vld [vmem:[%s1416_s2 + $0x38] sm:$0xff]  }
  0x34   :  { %v107_v60 = vmax.f32 %v732_v52, %v764_v53  ;;  %v522_v1 = vmax.f32 %v362_v47, %v458_v55  ;;  %v924_v3 = vunpack.c.h.bf16 %v1043_v31  ;;  %v956_v4 = vunpack.c.h.bf16 %v1050_v36  ;;  %v1024_v50 = vld [vmem:[%s1417_s3 + $0x38] sm:$0xff]  }
  0x35   :  { %v203_v2 = vmax.f32 %v796_v56, %v828_v57  ;;  %v681_v8 = vpack.c.bf16 %v665_v59, %v665_v59  ;;  %v363_v9 = vmax.f32 %v860_v61, %v892_v62  ;;  %v988_v10 = vunpack.c.h.bf16 %v1316_v37  ;;  %v1031_v51 = vld [vmem:[%s1418_s4 + $0x38] sm:$0xff]  }
  0x36   :  { %v735_v11 = vunpack.c.l.bf16 %v1002_v58  ;;  %v586_v13 = vmax.f32 %v266_v54, %v522_v1  ;;  %v459_v15 = vmax.f32 %v924_v3, %v956_v4  ;;  %v767_v16 = vunpack.c.l.bf16 %v1009_v63  ;;  %v1038_v52 = vld [vmem:[%s1419_s5 + $0x38] sm:$0xff]  }
  0x37   :  { %v267_v14 = vmax.f32 %v107_v60, %v203_v2  ;;  %698 = vst.msk [vmem:[%s1423_s9 + $0x24] sm:$0xf] %vm688_vm0, %v681_v8  ;;  %v799_v19 = vunpack.c.l.bf16 %v1016_v0  ;;  %v831_v20 = vunpack.c.l.bf16 %v1023_v5  ;;  %v863_v21 = vunpack.c.l.bf16 %v1030_v6  ;;  %v1045_v57 = vld [vmem:[%s1420_s6 + $0x38] sm:$0xff]  }
  0x38   :  { %v895_v22 = vunpack.c.l.bf16 %v1037_v7  ;;  %v666_v23 = vmax.f32 %v586_v13, %v987_v49  ;;  %v523_v24 = vmax.f32 %v363_v9, %v459_v15  ;;  %v108_v25 = vmax.f32 %v735_v11, %v767_v16  ;;  %v1052_v62 = vld [vmem:[%s1421_s7 + $0x38] sm:$0xff]  }
  0x39   :  { %v927_v26 = vunpack.c.l.bf16 %v1044_v12  ;;  %v204_v27 = vmax.f32 %v799_v19, %v831_v20  ;;  %v959_v29 = vunpack.c.l.bf16 %v1051_v17  ;;  %v991_v30 = vunpack.c.l.bf16 %v1355_v18 }
  0x3a   :  { %v364_v28 = vmax.f32 %v863_v21, %v895_v22  ;;  %v682_v31 = vpack.c.bf16 %v666_v23, %v666_v23  ;;  %v587_v32 = vmax.f32 %v267_v14, %v523_v24  ;;  %v736_v33 = vunpack.c.h.bf16 %v1002_v58 }
  0x3b   :  { %v768_v34 = vunpack.c.h.bf16 %v1009_v63  ;;  %v268_v35 = vmax.f32 %v108_v25, %v204_v27  ;;  %v460_v36 = vmax.f32 %v927_v26, %v959_v29  ;;  %v800_v37 = vunpack.c.h.bf16 %v1016_v0  ;;  %v1059_v63 = vld [vmem:[%s1422_s8 + $0x38] sm:$0xff]  }
  0x3c   :  { %v832_v38 = vunpack.c.h.bf16 %v1023_v5  ;;  %699 = vst.msk [vmem:[%s1423_s9 + $0x28] sm:$0xf] %vm688_vm0, %v682_v31  ;;  %v667_v40 = vmax.f32 %v587_v32, %v988_v10  ;;  %v864_v42 = vunpack.c.h.bf16 %v1030_v6  ;;  %v896_v43 = vunpack.c.h.bf16 %v1037_v7 }
  0x3d   :  { %v109_v41 = vmax.f32 %v736_v33, %v768_v34  ;;  %v524_v46 = vmax.f32 %v364_v28, %v460_v36  ;;  %v928_v48 = vunpack.c.h.bf16 %v1044_v12  ;;  %v960_v49 = vunpack.c.h.bf16 %v1051_v17 }
  0x3e   :  { %v205_v47 = vmax.f32 %v800_v37, %v832_v38  ;;  %v683_v53 = vpack.c.bf16 %v667_v40, %v667_v40  ;;  %v365_v54 = vmax.f32 %v864_v42, %v896_v43  ;;  %v992_v55 = vunpack.c.h.bf16 %v1355_v18 }
  0x3f   :  { %v739_v56 = vunpack.c.l.bf16 %v1003_v39  ;;  %v588_v58 = vmax.f32 %v268_v35, %v524_v46  ;;  %v461_v60 = vmax.f32 %v928_v48, %v960_v49  ;;  %v771_v61 = vunpack.c.l.bf16 %v1010_v44 }
  0x40   :  { %v269_v59 = vmax.f32 %v109_v41, %v205_v47  ;;  %700 = vst.msk [vmem:[%s1423_s9 + $0x2c] sm:$0xf] %vm688_vm0, %v683_v53  ;;  %v803_v0 = vunpack.c.l.bf16 %v1017_v45  ;;  %v835_v1 = vunpack.c.l.bf16 %v1024_v50  ;;  %v867_v2 = vunpack.c.l.bf16 %v1031_v51 }
  0x41   :  { %v899_v3 = vunpack.c.l.bf16 %v1038_v52  ;;  %v668_v4 = vmax.f32 %v588_v58, %v991_v30  ;;  %v525_v5 = vmax.f32 %v365_v54, %v461_v60  ;;  %v110_v6 = vmax.f32 %v739_v56, %v771_v61 }
  0x42   :  { %v931_v7 = vunpack.c.l.bf16 %v1045_v57  ;;  %v206_v8 = vmax.f32 %v803_v0, %v835_v1  ;;  %v963_v10 = vunpack.c.l.bf16 %v1052_v62  ;;  %v995_v11 = vunpack.c.l.bf16 %v1059_v63 }
  0x43   :  { %v366_v9 = vmax.f32 %v867_v2, %v899_v3  ;;  %v684_v12 = vpack.c.bf16 %v668_v4, %v668_v4  ;;  %v589_v13 = vmax.f32 %v269_v59, %v525_v5  ;;  %v740_v14 = vunpack.c.h.bf16 %v1003_v39 }
  0x44   :  { %v772_v15 = vunpack.c.h.bf16 %v1010_v44  ;;  %v270_v16 = vmax.f32 %v110_v6, %v206_v8  ;;  %v462_v17 = vmax.f32 %v931_v7, %v963_v10  ;;  %v804_v18 = vunpack.c.h.bf16 %v1017_v45 }
  0x45   :  { %v836_v19 = vunpack.c.h.bf16 %v1024_v50  ;;  %701 = vst.msk [vmem:[%s1423_s9 + $0x30] sm:$0xf] %vm688_vm0, %v684_v12  ;;  %v669_v20 = vmax.f32 %v589_v13, %v992_v55  ;;  %v868_v22 = vunpack.c.h.bf16 %v1031_v51  ;;  %v900_v23 = vunpack.c.h.bf16 %v1038_v52 }
  0x46   :  { %v111_v21 = vmax.f32 %v740_v14, %v772_v15  ;;  %v526_v24 = vmax.f32 %v366_v9, %v462_v17  ;;  %v932_v26 = vunpack.c.h.bf16 %v1045_v57  ;;  %v964_v27 = vunpack.c.h.bf16 %v1052_v62 }
  0x47   :  { %v207_v25 = vmax.f32 %v804_v18, %v836_v19  ;;  %v685_v28 = vpack.c.bf16 %v669_v20, %v669_v20  ;;  %v367_v29 = vmax.f32 %v868_v22, %v900_v23  ;;  %v996_v35 = vunpack.c.h.bf16 %v1059_v63 }
  0x48   :  { %v590_v30 = vmax.f32 %v270_v16, %v526_v24  ;;  %v463_v32 = vmax.f32 %v932_v26, %v964_v27 }
  0x49   :  { %v271_v31 = vmax.f32 %v111_v21, %v207_v25  ;;  %702 = vst.msk [vmem:[%s1423_s9 + $0x34] sm:$0xf] %vm688_vm0, %v685_v28 }
  0x4a   :  { %v670_v33 = vmax.f32 %v590_v30, %v995_v11  ;;  %v527_v34 = vmax.f32 %v367_v29, %v463_v32 }
  0x4c   :  { %v686_v36 = vpack.c.bf16 %v670_v33, %v670_v33  ;;  %v591_v37 = vmax.f32 %v271_v31, %v527_v34 }
  0x4e   :  { %703 = vst.msk [vmem:[%s1423_s9 + $0x38] sm:$0xf] %vm688_vm0, %v686_v36  ;;  %v671_v38 = vmax.f32 %v591_v37, %v996_v35 }
  0x50   :  { %v687_v39 = vpack.c.bf16 %v671_v38, %v671_v38 }
  0x52   :  { %704 = vst.msk [vmem:[%s1423_s9 + $0x3c] sm:$0xf] %vm688_vm0, %v687_v39 }

// kernel: _lambda_.22
= control target key start
LH: loop header
LB: loop body
LE: loop exit
PB: predicated region body
PF: predicated region fallthrough
CT: control target
= control target key end

     0   :  { %s1619_s15 = smov 0   ;;  %s1621_s16 = smov 0   ;;  %s1977_s0 = inlined_call_operand.vmem [shape: bf16[512,256], index: 0, kind: input, shape index: {}]   ;;  %s1978_s1 = inlined_call_operand.vmem [shape: bf16[256,64], index: 1, kind: input, shape index: {}]   ;;  %s1979_s2 = inlined_call_operand.vmem [shape: f32[1,64], index: 2, kind: input, shape index: {}]   ;;  %s1980_s3 = inlined_call_operand.vmem [shape: f32[1,64], index: 3, kind: input, shape index: {}]   ;;  %s1981_s4 = inlined_call_operand.vmem [shape: bf16[512,64], index: 4, kind: output, shape index: {}]  }
   0x1   :  { %s1623_s17 = smov 0  }
   0x2 LB: > { %s33_s18 = sadd.s32 1, %s1587_s16  ;;  %p1277_p0 = scmp.ge.s32.totalorder %s1591_s17, 1  ;;  %s1591_s17 = sphi %s1623_s17, %s14_s17   ;;  %s1587_s16 = sphi %s1621_s16, %s1983_s16   ;;  %s1583_s15 = sphi %s1619_s15, %s1982_s15  }
   0x3   : > { %p35_p1 = scmp.ge.s32.totalorder %s33_s18, 2  ;;  %p224_p2 = scmp.lt.s32.totalorder %s1591_s17, 3 }
   0x5   : > { %s1985_s18 = smov (%p35_p1, %s33_s18), 0  ;;  %p225_p3 = pnand %p1277_p0, %p224_p2 }
   0x6   : > { %s1278_s5 = sshll.u32 (!%p225_p3), %s1583_s15, 5 }
   0x7   : > { %228 = sbr.rel (%p225_p3) target bundleno = 319 (0x13f), region = 36  ;;  %p274_p4 = scmp.lt.s32.totalorder (!%p225_p3), %s1278_s5, 63 }
   0xc   : > { %v1517_v0 = vld [vmem:[%s1978_s1 + $0x38] sm:$0xff]  ;;  %v1516_v2 = vld [vmem:[%s1978_s1 + $0x30] sm:$0xff]  ;;  %v1515_v4 = vld [vmem:[%s1978_s1 + $0x28] sm:$0xff]  ;;  %s1987_s5 = smov (!%p274_p4, %s1278_s5), 63  ;;  %vm312_vm0 = vcmask 523264   ;;  %vm1111_vm1 = vcmask 519168  }
   0xd   : > { %v1525_v1 = vld [vmem:[%s1978_s1 + $0x78] sm:$0xff]  ;;  %697 = vmatpush.bf16.msra.mxu0 %v1517_v0  ;;  %1526 = vmatpush.bf16.msra.mxu2 %v1517_v0  ;;  %v1524_v3 = vld [vmem:[%s1978_s1 + $0x70] sm:$0xff]  ;;  %v1523_v5 = vld [vmem:[%s1978_s1 + $0x68] sm:$0xff]  ;;  %s1477_s21 = sshll.u32 %s1987_s5, 3  ;;  %s1282_s12 = sshll.u32 %s1987_s5, 2 }
   0xe   : > { %786 = vmatpush.bf16.msra.mxu1 %v1525_v1  ;;  %1534 = vmatpush.bf16.msra.mxu3 %v1525_v1  ;;  %v1514_v6 = vld [vmem:[%s1978_s1 + $0x20] sm:$0xff]  ;;  %v1513_v8 = vld [vmem:[%s1978_s1 + $0x18] sm:$0xff]  ;;  %v1512_v10 = vld [vmem:[%s1978_s1 + $0x10] sm:$0xff]  ;;  %s1685_s26 = scalar_lea.vmem %s1977_s0, %s1477_s21  ;;  %s1811_s15 = scalar_lea.vmem %s1981_s4, %s1282_s12 }
   0xf   : > { %v1522_v7 = vld [vmem:[%s1978_s1 + $0x60] sm:$0xff]  ;;  %v1521_v9 = vld [vmem:[%s1978_s1 + $0x58] sm:$0xff]  ;;  %v1520_v11 = vld [vmem:[%s1978_s1 + $0x50] sm:$0xff] }
  0x10   : > { %v1511_v12 = vld [vmem:[%s1978_s1 + $0x8] sm:$0xff]  ;;  %v1510_v14 = vld [vmem:[%s1978_s1] sm:$0xff]  ;;  %v1293_v28 = vld [vmem:[%s1685_s26 + $0x10] sm:$0xf] }
  0x11   : > { %698 = vmatpush.bf16.msra.mxu0 %v1516_v2  ;;  %1527 = vmatpush.bf16.msra.mxu2 %v1516_v2  ;;  %v1519_v13 = vld [vmem:[%s1978_s1 + $0x48] sm:$0xff]  ;;  %v1518_v15 = vld [vmem:[%s1978_s1 + $0x40] sm:$0xff]  ;;  %v1481_v29 = vld [vmem:[%s1685_s26 + $0x14] sm:$0xf0] }
  0x12   : > { %787 = vmatpush.bf16.msra.mxu1 %v1524_v3  ;;  %1535 = vmatpush.bf16.msra.mxu3 %v1524_v3  ;;  %v1285_v16 = vld [vmem:[%s1685_s26] sm:$0xf]  ;;  %v1479_v17 = vld [vmem:[%s1685_s26 + $0x4] sm:$0xf0]  ;;  %v1478_v20 = vld [vmem:[%s1685_s26 + $0x4] sm:$0xf]  ;;  %v1294_v36 = vor.u32 %v1481_v29, %v1293_v28 }
  0x13   : > { %v1349_v18 = vld [vmem:[%s1685_s26 + $0x80] sm:$0xf]  ;;  %v1495_v19 = vld [vmem:[%s1685_s26 + $0x84] sm:$0xf0]  ;;  %v1287_v21 = vld [vmem:[%s1685_s26 + $0x8] sm:$0xf0]  ;;  %v1286_v24 = vor.u32 %v1479_v17, %v1285_v16 }
  0x14   : > { %v1494_v22 = vld [vmem:[%s1685_s26 + $0x84] sm:$0xf]  ;;  %v1351_v23 = vld [vmem:[%s1685_s26 + $0x88] sm:$0xf0]  ;;  %v1350_v25 = vor.u32 %v1495_v19, %v1349_v18  ;;  %v1290_v26 = vor.u32 %v1478_v20, %v1287_v21  ;;  %v1357_v30 = vld [vmem:[%s1685_s26 + $0x90] sm:$0xf] }
  0x15   : > { %699 = vmatpush.bf16.msra.mxu0 %v1515_v4  ;;  %1528 = vmatpush.bf16.msra.mxu2 %v1515_v4  ;;  %v1354_v27 = vor.u32 %v1494_v22, %v1351_v23  ;;  %v1497_v31 = vld [vmem:[%s1685_s26 + $0x94] sm:$0xf0]  ;;  %v1480_v32 = vld [vmem:[%s1685_s26 + $0x14] sm:$0xf]  ;;  %v1295_v33 = vld [vmem:[%s1685_s26 + $0x18] sm:$0xf0] }
  0x16   : > { %788 = vmatpush.bf16.msra.mxu1 %v1523_v5  ;;  %1536 = vmatpush.bf16.msra.mxu3 %v1523_v5  ;;  %v1496_v34 = vld [vmem:[%s1685_s26 + $0x94] sm:$0xf]  ;;  %v1359_v35 = vld [vmem:[%s1685_s26 + $0x98] sm:$0xf0]  ;;  %v1358_v37 = vor.u32 %v1497_v31, %v1357_v30  ;;  %v1298_v38 = vor.u32 %v1480_v32, %v1295_v33  ;;  %v1301_v40 = vld [vmem:[%s1685_s26 + $0x20] sm:$0xf] }
  0x17   : > { %v1362_v39 = vor.u32 %v1496_v34, %v1359_v35  ;;  %v1483_v41 = vld [vmem:[%s1685_s26 + $0x24] sm:$0xf0]  ;;  %v1365_v42 = vld [vmem:[%s1685_s26 + $0xa0] sm:$0xf]  ;;  %v1482_v44 = vld [vmem:[%s1685_s26 + $0x24] sm:$0xf] }
  0x18   : > { %v1499_v43 = vld [vmem:[%s1685_s26 + $0xa4] sm:$0xf0]  ;;  %v1303_v45 = vld [vmem:[%s1685_s26 + $0x28] sm:$0xf0]  ;;  %v1498_v46 = vld [vmem:[%s1685_s26 + $0xa4] sm:$0xf]  ;;  %v1302_v48 = vor.u32 %v1483_v41, %v1301_v40 }
  0x19   : > { %700 = vmatpush.bf16.msra.mxu0 %v1514_v6  ;;  %1529 = vmatpush.bf16.msra.mxu2 %v1514_v6  ;;  %v1367_v47 = vld [vmem:[%s1685_s26 + $0xa8] sm:$0xf0]  ;;  %v1366_v49 = vor.u32 %v1499_v43, %v1365_v42  ;;  %v1306_v50 = vor.u32 %v1482_v44, %v1303_v45  ;;  %v1309_v52 = vld [vmem:[%s1685_s26 + $0x30] sm:$0xf]  ;;  %v1485_v53 = vld [vmem:[%s1685_s26 + $0x34] sm:$0xf0] }
  0x1a   : > { %789 = vmatpush.bf16.msra.mxu1 %v1522_v7  ;;  %1537 = vmatpush.bf16.msra.mxu3 %v1522_v7  ;;  %v1370_v51 = vor.u32 %v1498_v46, %v1367_v47  ;;  %v1373_v54 = vld [vmem:[%s1685_s26 + $0xb0] sm:$0xf]  ;;  %v1501_v55 = vld [vmem:[%s1685_s26 + $0xb4] sm:$0xf0]  ;;  %v1484_v56 = vld [vmem:[%s1685_s26 + $0x34] sm:$0xf]  ;;  %v1310_v60 = vor.u32 %v1485_v53, %v1309_v52 }
  0x1b   : > { %v1311_v57 = vld [vmem:[%s1685_s26 + $0x38] sm:$0xf0]  ;;  %v1500_v58 = vld [vmem:[%s1685_s26 + $0xb4] sm:$0xf]  ;;  %v1374_v61 = vor.u32 %v1501_v55, %v1373_v54  ;;  %v1317_v0 = vld [vmem:[%s1685_s26 + $0x40] sm:$0xf] }
  0x1c   : > { %v1375_v59 = vld [vmem:[%s1685_s26 + $0xb8] sm:$0xf0]  ;;  %v1314_v62 = vor.u32 %v1484_v56, %v1311_v57  ;;  %v1487_v1 = vld [vmem:[%s1685_s26 + $0x44] sm:$0xf0]  ;;  %v1381_v2 = vld [vmem:[%s1685_s26 + $0xc0] sm:$0xf] }
  0x1d   : > { %701 = vmatpush.bf16.msra.mxu0 %v1513_v8  ;;  %1530 = vmatpush.bf16.msra.mxu2 %v1513_v8  ;;  %v1378_v63 = vor.u32 %v1500_v58, %v1375_v59  ;;  %v1503_v3 = vld [vmem:[%s1685_s26 + $0xc4] sm:$0xf0]  ;;  %v1486_v4 = vld [vmem:[%s1685_s26 + $0x44] sm:$0xf]  ;;  %v1319_v5 = vld [vmem:[%s1685_s26 + $0x48] sm:$0xf0]  ;;  %v1318_v8 = vor.u32 %v1487_v1, %v1317_v0 }
  0x1e   : > { %790 = vmatpush.bf16.msra.mxu1 %v1521_v9  ;;  %1538 = vmatpush.bf16.msra.mxu3 %v1521_v9  ;;  %v1502_v6 = vld [vmem:[%s1685_s26 + $0xc4] sm:$0xf]  ;;  %v1383_v7 = vld [vmem:[%s1685_s26 + $0xc8] sm:$0xf0]  ;;  %v1382_v9 = vor.u32 %v1503_v3, %v1381_v2  ;;  %v1488_v16 = vld [vmem:[%s1685_s26 + $0x54] sm:$0xf] }
  0x1f   : > { %v1327_v17 = vld [vmem:[%s1685_s26 + $0x58] sm:$0xf0]  ;;  %v1504_v18 = vld [vmem:[%s1685_s26 + $0xd4] sm:$0xf]  ;;  %v1490_v28 = vld [vmem:[%s1685_s26 + $0x64] sm:$0xf] }
  0x20   : > { %v1391_v19 = vld [vmem:[%s1685_s26 + $0xd8] sm:$0xf0]  ;;  %v1330_v22 = vor.u32 %v1488_v16, %v1327_v17  ;;  %v1335_v29 = vld [vmem:[%s1685_s26 + $0x68] sm:$0xf0]  ;;  %v1506_v30 = vld [vmem:[%s1685_s26 + $0xe4] sm:$0xf] }
  0x21   : > { %702 = vmatpush.bf16.msra.mxu0 %v1512_v10  ;;  %1531 = vmatpush.bf16.msra.mxu2 %v1512_v10  ;;  %v1322_v10 = vor.u32 %v1486_v4, %v1319_v5  ;;  %v1394_v23 = vor.u32 %v1504_v18, %v1391_v19  ;;  %v1399_v31 = vld [vmem:[%s1685_s26 + $0xe8] sm:$0xf0]  ;;  %v1338_v34 = vor.u32 %v1490_v28, %v1335_v29  ;;  %v1509_v40 = vld [vmem:[%s1685_s26 + $0xf4] sm:$0xf0]  ;;  %v1492_v41 = vld [vmem:[%s1685_s26 + $0x74] sm:$0xf] }
  0x22   : > { %791 = vmatpush.bf16.msra.mxu1 %v1520_v11  ;;  %1539 = vmatpush.bf16.msra.mxu3 %v1520_v11  ;;  %v1386_v11 = vor.u32 %v1502_v6, %v1383_v7  ;;  %v1402_v35 = vor.u32 %v1506_v30, %v1399_v31  ;;  %v1343_v42 = vld [vmem:[%s1685_s26 + $0x78] sm:$0xf0]  ;;  %v1508_v43 = vld [vmem:[%s1685_s26 + $0xf4] sm:$0xf]  ;;  %v1801_v0 = vld [vmem:[%s1980_s3] ss:$0 sm:$0xff] }
  0x23   : > { %v1407_v44 = vld [vmem:[%s1685_s26 + $0xf8] sm:$0xf0]  ;;  %v1346_v47 = vor.u32 %v1492_v41, %v1343_v42 }
  0x25   : > { %703 = vmatpush.bf16.msra.mxu0 %v1511_v12  ;;  %1532 = vmatpush.bf16.msra.mxu2 %v1511_v12  ;;  %v1325_v12 = vld [vmem:[%s1685_s26 + $0x50] sm:$0xf] }
  0x26   : > { %792 = vmatpush.bf16.msra.mxu1 %v1519_v13  ;;  %1540 = vmatpush.bf16.msra.mxu3 %v1519_v13  ;;  %v1489_v13 = vld [vmem:[%s1685_s26 + $0x54] sm:$0xf0] }
  0x27   : > { %v1326_v20 = vor.u32 %v1489_v13, %v1325_v12 }
  0x29   : > { %704 = vmatpush.bf16.msra.mxu0 %v1510_v14  ;;  %1533 = vmatpush.bf16.msra.mxu2 %v1510_v14  ;;  %v1389_v14 = vld [vmem:[%s1685_s26 + $0xd0] sm:$0xf] }
  0x2a   : > { %793 = vmatpush.bf16.msra.mxu1 %v1518_v15  ;;  %1541 = vmatpush.bf16.msra.mxu3 %v1518_v15  ;;  %v1505_v15 = vld [vmem:[%s1685_s26 + $0xd4] sm:$0xf0] }
  0x2b   : > { %v1390_v21 = vor.u32 %v1505_v15, %v1389_v14 }
  0x2c   : > { %705 = vmatmul.bf16.vlgmr.msra.gmra.mxu0 %v1286_v24  ;;  %745 = vmatmul.bf16.vlgmr.msra.gmra.mxu2 %v1350_v25  ;;  %v1333_v24 = vld [vmem:[%s1685_s26 + $0x60] sm:$0xf]  ;;  %v1491_v25 = vld [vmem:[%s1685_s26 + $0x64] sm:$0xf0] }
  0x2d   : > { %794 = vmatmul.bf16.vlgmr.msra.gmra.mxu1 %v1290_v26  ;;  %834 = vmatmul.bf16.vlgmr.msra.gmra.mxu3 %v1354_v27  ;;  %v1397_v26 = vld [vmem:[%s1685_s26 + $0xe0] sm:$0xf]  ;;  %v1507_v27 = vld [vmem:[%s1685_s26 + $0xe4] sm:$0xf0]  ;;  %v1334_v32 = vor.u32 %v1491_v25, %v1333_v24 }
  0x2e   : > { %v1398_v33 = vor.u32 %v1507_v27, %v1397_v26 }
  0x3c   : > { %710 = vmatmul.bf16.gmra.mxu0 %v1294_v36  ;;  %750 = vmatmul.bf16.gmra.mxu2 %v1358_v37  ;;  %v1593_v36 = vmov 0.0   ;;  %v1341_v37 = vld [vmem:[%s1685_s26 + $0x70] sm:$0xf] }
  0x3d   : > { %799 = vmatmul.bf16.gmra.mxu1 %v1298_v38  ;;  %839 = vmatmul.bf16.gmra.mxu3 %v1362_v39  ;;  %313 = vst.msk [vmem:[#allocation2] sm:$0xff] %vm312_vm0, %v1593_v36  ;;  %v1493_v38 = vld [vmem:[%s1685_s26 + $0x74] sm:$0xf0]  ;;  %v1405_v39 = vld [vmem:[%s1685_s26 + $0xf0] sm:$0xf] }
  0x3e   : > { %314 = vst.msk [vmem:[#allocation2 + $0x8] sm:$0xff] %vm312_vm0, %v1593_v36  ;;  %v1342_v45 = vor.u32 %v1493_v38, %v1341_v37  ;;  %v1406_v46 = vor.u32 %v1509_v40, %v1405_v39 }
  0x3f   : > { %315 = vst.msk [vmem:[#allocation2 + $0x10] sm:$0xff] %vm312_vm0, %v1593_v36 }
  0x40   : > { %316 = vst.msk [vmem:[#allocation2 + $0x18] sm:$0xff] %vm312_vm0, %v1593_v36 }
  0x41   : > { %317 = vst.msk [vmem:[#allocation2 + $0x20] sm:$0xff] %vm312_vm0, %v1593_v36 }
  0x42   : > { %318 = vst.msk [vmem:[#allocation2 + $0x28] sm:$0xff] %vm312_vm0, %v1593_v36 }
  0x43   : > { %319 = vst.msk [vmem:[#allocation2 + $0x30] sm:$0xff] %vm312_vm0, %v1593_v36 }
  0x44   : > { %320 = vst.msk [vmem:[#allocation2 + $0x38] sm:$0xff] %vm312_vm0, %v1593_v36 }
  0x45   : > { %321 = vst.msk [vmem:[#allocation2 + $0x40] sm:$0xff] %vm312_vm0, %v1593_v36  ;;  %v346_v59 = vld [vmem:[#allocation2 + $0x8] sm:$0xff] }
  0x46   : > { %322 = vst.msk [vmem:[#allocation2 + $0x48] sm:$0xff] %vm312_vm0, %v1593_v36 }
  0x47   : > { %323 = vst.msk [vmem:[#allocation2 + $0x50] sm:$0xff] %vm312_vm0, %v1593_v36  ;;  %v348_v29 = vld [vmem:[#allocation2 + $0x18] sm:$0xff] }
  0x48   : > { %324 = vst.msk [vmem:[#allocation2 + $0x58] sm:$0xff] %vm312_vm0, %v1593_v36 }
  0x49   : > { %325 = vst.msk [vmem:[#allocation2 + $0x60] sm:$0xff] %vm312_vm0, %v1593_v36 }
  0x4a   : > { %326 = vst.msk [vmem:[#allocation2 + $0x68] sm:$0xff] %vm312_vm0, %v1593_v36 }
  0x4b   : > { %327 = vst.msk [vmem:[#allocation2 + $0x70] sm:$0xff] %vm312_vm0, %v1593_v36 }
  0x4c   : > { %715 = vmatmul.bf16.gmra.mxu0 %v1302_v48  ;;  %755 = vmatmul.bf16.gmra.mxu2 %v1366_v49  ;;  %v1410_v48 = vor.u32 %v1508_v43, %v1407_v44  ;;  %328 = vst.msk [vmem:[#allocation2 + $0x78] sm:$0xff] %vm312_vm0, %v1593_v36 }
  0x4d   : > { %804 = vmatmul.bf16.gmra.mxu1 %v1306_v50  ;;  %844 = vmatmul.bf16.gmra.mxu3 %v1370_v51  ;;  %329 = vst.msk [vmem:[#allocation2 + $0x80] sm:$0xff] %vm312_vm0, %v1593_v36  ;;  %v345_v50 = vld [vmem:[#allocation2] sm:$0xff] }
  0x4e   : > { %330 = vst.msk [vmem:[#allocation2 + $0x88] sm:$0xff] %vm312_vm0, %v1593_v36 }
  0x4f   : > { %331 = vst.msk [vmem:[#allocation2 + $0x90] sm:$0xff] %vm312_vm0, %v1593_v36 }
  0x50   : > { %332 = vst.msk [vmem:[#allocation2 + $0x98] sm:$0xff] %vm312_vm0, %v1593_v36 }
  0x51   : > { %333 = vst.msk [vmem:[#allocation2 + $0xa0] sm:$0xff] %vm312_vm0, %v1593_v36 }
  0x52   : > { %334 = vst.msk [vmem:[#allocation2 + $0xa8] sm:$0xff] %vm312_vm0, %v1593_v36 }
  0x53   : > { %335 = vst.msk [vmem:[#allocation2 + $0xb0] sm:$0xff] %vm312_vm0, %v1593_v36 }
  0x54   : > { %336 = vst.msk [vmem:[#allocation2 + $0xb8] sm:$0xff] %vm312_vm0, %v1593_v36  ;;  %v361_v55 = vld [vmem:[#allocation2 + $0x80] sm:$0xff] }
  0x55   : > { %337 = vst.msk [vmem:[#allocation2 + $0xc0] sm:$0xff] %vm312_vm0, %v1593_v36  ;;  %v362_v5 = vld [vmem:[#allocation2 + $0x88] sm:$0xff] }
  0x56   : > { %338 = vst.msk [vmem:[#allocation2 + $0xc8] sm:$0xff] %vm312_vm0, %v1593_v36 }
  0x57   : > { %339 = vst.msk [vmem:[#allocation2 + $0xd0] sm:$0xff] %vm312_vm0, %v1593_v36  ;;  %v364_v43 = vld [vmem:[#allocation2 + $0x98] sm:$0xff] }
  0x58   : > { %340 = vst.msk [vmem:[#allocation2 + $0xd8] sm:$0xff] %vm312_vm0, %v1593_v36 }
  0x59   : > { %341 = vst.msk [vmem:[#allocation2 + $0xe0] sm:$0xff] %vm312_vm0, %v1593_v36 }
  0x5a   : > { %342 = vst.msk [vmem:[#allocation2 + $0xe8] sm:$0xff] %vm312_vm0, %v1593_v36 }
  0x5b   : > { %343 = vst.msk [vmem:[#allocation2 + $0xf0] sm:$0xff] %vm312_vm0, %v1593_v36 }
  0x5c   : > { %720 = vmatmul.bf16.gmra.mxu0 %v1310_v60  ;;  %760 = vmatmul.bf16.gmra.mxu2 %v1374_v61  ;;  %344 = vst.msk [vmem:[#allocation2 + $0xf8] sm:$0xff] %vm312_vm0, %v1593_v36  ;;  %v1796_v61 = vld [vmem:[%s1979_s2] ss:$0 sm:$0xff] }
  0x5d   : > { %809 = vmatmul.bf16.gmra.mxu1 %v1314_v62  ;;  %849 = vmatmul.bf16.gmra.mxu3 %v1378_v63 }
  0x6c   : > { %725 = vmatmul.bf16.gmra.mxu0 %v1318_v8  ;;  %765 = vmatmul.bf16.gmra.mxu2 %v1382_v9 }
  0x6d   : > { %814 = vmatmul.bf16.gmra.mxu1 %v1322_v10  ;;  %854 = vmatmul.bf16.gmra.mxu3 %v1386_v11  ;;  %v347_v10 = vld [vmem:[#allocation2 + $0x10] sm:$0xff] }
  0x7c   : > { %730 = vmatmul.bf16.gmra.mxu0 %v1326_v20  ;;  %770 = vmatmul.bf16.gmra.mxu2 %v1390_v21 }
  0x7d   : > { %819 = vmatmul.bf16.gmra.mxu1 %v1330_v22  ;;  %859 = vmatmul.bf16.gmra.mxu3 %v1394_v23  ;;  %v363_v23 = vld [vmem:[#allocation2 + $0x90] sm:$0xff] }
  0x8c   : > { %735 = vmatmul.bf16.gmra.mxu0 %v1334_v32  ;;  %775 = vmatmul.bf16.gmra.mxu2 %v1398_v33 }
  0x8d   : > { %824 = vmatmul.bf16.gmra.mxu1 %v1338_v34  ;;  %864 = vmatmul.bf16.gmra.mxu3 %v1402_v35 }
  0x9c   : > { %740 = vmatmul.bf16.gmra.mxu0 %v1342_v45  ;;  %780 = vmatmul.bf16.gmra.mxu2 %v1406_v46 }
  0x9d   : > { %829 = vmatmul.bf16.gmra.mxu1 %v1346_v47  ;;  %869 = vmatmul.bf16.gmra.mxu3 %v1410_v48 }
  0xa9   : > { %v706_v49 = vpop.f32.mrf.mxu0 }
  0xaa   : > { %v795_v51 = vpop.f32.mrf.mxu1 }
  0xab   : > { %v796_v52 = vadd.f32 %v795_v51, %v706_v49  ;;  %v349_v49 = vld [vmem:[#allocation2 + $0x20] sm:$0xff] }
  0xad   : > { %v875_v53 = vadd.f32 %v796_v52, %v345_v50 }
  0xaf   : > { %908 = vst.msk [vmem:[#allocation2] sm:$0xff] %vm312_vm0, %v875_v53  ;;  %v746_v54 = vpop.f32.mrf.mxu2 }
  0xb0   : > { %v835_v56 = vpop.f32.mrf.mxu3 }
  0xb1   : > { %v836_v57 = vadd.f32 %v835_v56, %v746_v54  ;;  %v708_v58 = vpop.f32.mrf.mxu0 }
  0xb2   : > { %v797_v60 = vpop.f32.mrf.mxu1 }
  0xb3   : > { %v891_v62 = vadd.f32 %v836_v57, %v361_v55  ;;  %v798_v63 = vadd.f32 %v797_v60, %v708_v58 }
  0xb5   : > { %924 = vst.msk [vmem:[#allocation2 + $0x80] sm:$0xff] %vm312_vm0, %v891_v62  ;;  %v876_v1 = vadd.f32 %v798_v63, %v346_v59 }
  0xb6   : > { %v943_v2 = vld [vmem:[#allocation2] sm:$0xff] }
  0xb7   : > { %v979_v3 = vmul.f32 %v1796_v61, %v943_v2  ;;  %909 = vst.msk [vmem:[#allocation2 + $0x8] sm:$0xff] %vm312_vm0, %v876_v1  ;;  %v748_v4 = vpop.f32.mrf.mxu2  ;;  %v365_v1 = vld [vmem:[#allocation2 + $0xa0] sm:$0xff] }
  0xb8   : > { %v837_v6 = vpop.f32.mrf.mxu3 }
  0xb9   : > { %v1015_v7 = vadd.f32 %v1801_v0, %v979_v3  ;;  %v838_v8 = vadd.f32 %v837_v6, %v748_v4  ;;  %v711_v9 = vpop.f32.mrf.mxu0 }
  0xba   : > { %v800_v11 = vpop.f32.mrf.mxu1 }
  0xbb   : > { %v1047_v12 = vmax.f32 %v1015_v7, 0.0  ;;  %v892_v13 = vadd.f32 %v838_v8, %v362_v5  ;;  %v801_v14 = vadd.f32 %v800_v11, %v711_v9  ;;  %v350_v7 = vld [vmem:[#allocation2 + $0x28] sm:$0xff] }
  0xbc   : > { %v959_v15 = vld [vmem:[#allocation2 + $0x80] sm:$0xff] }
  0xbd   : > { %v1079_v16 = vpack.c.bf16 %v1047_v12, %v1047_v12  ;;  %v995_v17 = vmul.f32 %v1796_v61, %v959_v15  ;;  %925 = vst.msk [vmem:[#allocation2 + $0x88] sm:$0xff] %vm312_vm0, %v892_v13  ;;  %v877_v18 = vadd.f32 %v801_v14, %v347_v10 }
  0xbe   : > { %v944_v19 = vld [vmem:[#allocation2 + $0x8] sm:$0xff] }
  0xbf   : > { %1112 = vst.msk [vmem:[%s1811_s15] sm:$0xf] %vm1111_vm1, %v1079_v16  ;;  %v1031_v20 = vadd.f32 %v1801_v0, %v995_v17  ;;  %v980_v21 = vmul.f32 %v1796_v61, %v944_v19  ;;  %v751_v22 = vpop.f32.mrf.mxu2 }
  0xc0   : > { %910 = vst.msk [vmem:[#allocation2 + $0x10] sm:$0xff] %vm312_vm0, %v877_v18  ;;  %v840_v24 = vpop.f32.mrf.mxu3 }
  0xc1   : > { %v1063_v25 = vmax.f32 %v1031_v20, 0.0  ;;  %v1016_v26 = vadd.f32 %v1801_v0, %v980_v21  ;;  %v841_v27 = vadd.f32 %v840_v24, %v751_v22  ;;  %v713_v28 = vpop.f32.mrf.mxu0  ;;  %v366_v21 = vld [vmem:[#allocation2 + $0xa8] sm:$0xff] }
  0xc2   : > { %v802_v30 = vpop.f32.mrf.mxu1 }
  0xc3   : > { %v1095_v31 = vpack.c.bf16 %v1063_v25, %v1063_v25  ;;  %v1048_v32 = vmax.f32 %v1016_v26, 0.0  ;;  %v893_v33 = vadd.f32 %v841_v27, %v363_v23  ;;  %v803_v34 = vadd.f32 %v802_v30, %v713_v28  ;;  %v351_v27 = vld [vmem:[#allocation2 + $0x30] sm:$0xff] }
  0xc4   : > { %v960_v35 = vld [vmem:[#allocation2 + $0x88] sm:$0xff] }
  0xc5   : > { %1128 = vst.msk [vmem:[%s1811_s15 + $0x40] sm:$0xf] %vm1111_vm1, %v1095_v31  ;;  %v1080_v36 = vpack.c.bf16 %v1048_v32, %v1048_v32  ;;  %v996_v37 = vmul.f32 %v1796_v61, %v960_v35  ;;  %v878_v38 = vadd.f32 %v803_v34, %v348_v29 }
  0xc6   : > { %926 = vst.msk [vmem:[#allocation2 + $0x90] sm:$0xff] %vm312_vm0, %v893_v33 }
  0xc7   : > { %1113 = vst.msk [vmem:[%s1811_s15 + $0x4] sm:$0xf] %vm1111_vm1, %v1080_v36  ;;  %v1032_v39 = vadd.f32 %v1801_v0, %v996_v37  ;;  %v945_v40 = vld [vmem:[#allocation2 + $0x10] sm:$0xff]  ;;  %v753_v41 = vpop.f32.mrf.mxu2 }
  0xc8   : > { %v981_v42 = vmul.f32 %v1796_v61, %v945_v40  ;;  %911 = vst.msk [vmem:[#allocation2 + $0x18] sm:$0xff] %vm312_vm0, %v878_v38  ;;  %v842_v44 = vpop.f32.mrf.mxu3 }
  0xc9   : > { %v1064_v45 = vmax.f32 %v1032_v39, 0.0  ;;  %v843_v46 = vadd.f32 %v842_v44, %v753_v41  ;;  %v716_v47 = vpop.f32.mrf.mxu0  ;;  %v367_v41 = vld [vmem:[#allocation2 + $0xb0] sm:$0xff] }
  0xca   : > { %v1017_v48 = vadd.f32 %v1801_v0, %v981_v42  ;;  %v805_v50 = vpop.f32.mrf.mxu1 }
  0xcb   : > { %v1096_v51 = vpack.c.bf16 %v1064_v45, %v1064_v45  ;;  %v894_v52 = vadd.f32 %v843_v46, %v364_v43  ;;  %v806_v53 = vadd.f32 %v805_v50, %v716_v47  ;;  %v352_v47 = vld [vmem:[#allocation2 + $0x38] sm:$0xff] }
  0xcc   : > { %v1049_v54 = vmax.f32 %v1017_v48, 0.0 }
  0xcd   : > { %1129 = vst.msk [vmem:[%s1811_s15 + $0x44] sm:$0xf] %vm1111_vm1, %v1096_v51  ;;  %v961_v55 = vld [vmem:[#allocation2 + $0x90] sm:$0xff]  ;;  %v879_v56 = vadd.f32 %v806_v53, %v349_v49 }
  0xce   : > { %v1081_v57 = vpack.c.bf16 %v1049_v54, %v1049_v54  ;;  %v997_v58 = vmul.f32 %v1796_v61, %v961_v55  ;;  %927 = vst.msk [vmem:[#allocation2 + $0x98] sm:$0xff] %vm312_vm0, %v894_v52 }
  0xcf   : > { %v946_v59 = vld [vmem:[#allocation2 + $0x18] sm:$0xff]  ;;  %912 = vst.msk [vmem:[#allocation2 + $0x20] sm:$0xff] %vm312_vm0, %v879_v56  ;;  %v756_v60 = vpop.f32.mrf.mxu2 }
  0xd0   : > { %1114 = vst.msk [vmem:[%s1811_s15 + $0x8] sm:$0xf] %vm1111_vm1, %v1081_v57  ;;  %v1033_v62 = vadd.f32 %v1801_v0, %v997_v58  ;;  %v982_v63 = vmul.f32 %v1796_v61, %v946_v59  ;;  %v845_v2 = vpop.f32.mrf.mxu3 }
  0xd1   : > { %v846_v3 = vadd.f32 %v845_v2, %v756_v60  ;;  %v718_v4 = vpop.f32.mrf.mxu0 }
  0xd2   : > { %v1065_v5 = vmax.f32 %v1033_v62, 0.0  ;;  %v1018_v6 = vadd.f32 %v1801_v0, %v982_v63  ;;  %v807_v8 = vpop.f32.mrf.mxu1  ;;  %v368_v62 = vld [vmem:[#allocation2 + $0xb8] sm:$0xff] }
  0xd3   : > { %v895_v9 = vadd.f32 %v846_v3, %v365_v1  ;;  %v808_v10 = vadd.f32 %v807_v8, %v718_v4 }
  0xd4   : > { %v1097_v11 = vpack.c.bf16 %v1065_v5, %v1065_v5  ;;  %v1050_v12 = vmax.f32 %v1018_v6, 0.0  ;;  %v353_v5 = vld [vmem:[#allocation2 + $0x40] sm:$0xff] }
  0xd5   : > { %v962_v13 = vld [vmem:[#allocation2 + $0x98] sm:$0xff]  ;;  %928 = vst.msk [vmem:[#allocation2 + $0xa0] sm:$0xff] %vm312_vm0, %v895_v9  ;;  %v880_v14 = vadd.f32 %v808_v10, %v350_v7 }
  0xd6   : > { %1130 = vst.msk [vmem:[%s1811_s15 + $0x48] sm:$0xf] %vm1111_vm1, %v1097_v11  ;;  %v1082_v15 = vpack.c.bf16 %v1050_v12, %v1050_v12  ;;  %v998_v16 = vmul.f32 %v1796_v61, %v962_v13  ;;  %v947_v17 = vld [vmem:[#allocation2 + $0x20] sm:$0xff] }
  0xd7   : > { %v983_v18 = vmul.f32 %v1796_v61, %v947_v17  ;;  %913 = vst.msk [vmem:[#allocation2 + $0x28] sm:$0xff] %vm312_vm0, %v880_v14  ;;  %v758_v19 = vpop.f32.mrf.mxu2 }
  0xd8   : > { %1115 = vst.msk [vmem:[%s1811_s15 + $0xc] sm:$0xf] %vm1111_vm1, %v1082_v15  ;;  %v1034_v20 = vadd.f32 %v1801_v0, %v998_v16  ;;  %v847_v22 = vpop.f32.mrf.mxu3 }
  0xd9   : > { %v1019_v23 = vadd.f32 %v1801_v0, %v983_v18  ;;  %v848_v24 = vadd.f32 %v847_v22, %v758_v19  ;;  %v721_v25 = vpop.f32.mrf.mxu0  ;;  %v369_v19 = vld [vmem:[#allocation2 + $0xc0] sm:$0xff] }
  0xda   : > { %v1066_v26 = vmax.f32 %v1034_v20, 0.0  ;;  %v810_v28 = vpop.f32.mrf.mxu1 }
  0xdb   : > { %v1051_v29 = vmax.f32 %v1019_v23, 0.0  ;;  %v896_v30 = vadd.f32 %v848_v24, %v366_v21  ;;  %v811_v31 = vadd.f32 %v810_v28, %v721_v25  ;;  %v354_v25 = vld [vmem:[#allocation2 + $0x48] sm:$0xff] }
  0xdc   : > { %v1098_v32 = vpack.c.bf16 %v1066_v26, %v1066_v26  ;;  %v963_v33 = vld [vmem:[#allocation2 + $0xa0] sm:$0xff] }
  0xdd   : > { %v1083_v34 = vpack.c.bf16 %v1051_v29, %v1051_v29  ;;  %v999_v35 = vmul.f32 %v1796_v61, %v963_v33  ;;  %929 = vst.msk [vmem:[#allocation2 + $0xa8] sm:$0xff] %vm312_vm0, %v896_v30  ;;  %v881_v36 = vadd.f32 %v811_v31, %v351_v27 }
  0xde   : > { %1131 = vst.msk [vmem:[%s1811_s15 + $0x4c] sm:$0xf] %vm1111_vm1, %v1098_v32  ;;  %v948_v37 = vld [vmem:[#allocation2 + $0x28] sm:$0xff] }
  0xdf   : > { %1116 = vst.msk [vmem:[%s1811_s15 + $0x10] sm:$0xf] %vm1111_vm1, %v1083_v34  ;;  %v1035_v38 = vadd.f32 %v1801_v0, %v999_v35  ;;  %v984_v39 = vmul.f32 %v1796_v61, %v948_v37  ;;  %v761_v40 = vpop.f32.mrf.mxu2 }
  0xe0   : > { %914 = vst.msk [vmem:[#allocation2 + $0x30] sm:$0xff] %vm312_vm0, %v881_v36  ;;  %v850_v42 = vpop.f32.mrf.mxu3 }
  0xe1   : > { %v1067_v43 = vmax.f32 %v1035_v38, 0.0  ;;  %v1020_v44 = vadd.f32 %v1801_v0, %v984_v39  ;;  %v851_v45 = vadd.f32 %v850_v42, %v761_v40  ;;  %v723_v46 = vpop.f32.mrf.mxu0  ;;  %v370_v39 = vld [vmem:[#allocation2 + $0xc8] sm:$0xff] }
  0xe2   : > { %v812_v48 = vpop.f32.mrf.mxu1 }
  0xe3   : > { %v1099_v49 = vpack.c.bf16 %v1067_v43, %v1067_v43  ;;  %v1052_v50 = vmax.f32 %v1020_v44, 0.0  ;;  %v897_v51 = vadd.f32 %v851_v45, %v367_v41  ;;  %v813_v52 = vadd.f32 %v812_v48, %v723_v46  ;;  %v355_v45 = vld [vmem:[#allocation2 + $0x50] sm:$0xff] }
  0xe4   : > { %v964_v53 = vld [vmem:[#allocation2 + $0xa8] sm:$0xff] }
  0xe5   : > { %1132 = vst.msk [vmem:[%s1811_s15 + $0x50] sm:$0xf] %vm1111_vm1, %v1099_v49  ;;  %v1084_v54 = vpack.c.bf16 %v1052_v50, %v1052_v50  ;;  %v1000_v55 = vmul.f32 %v1796_v61, %v964_v53  ;;  %v882_v56 = vadd.f32 %v813_v52, %v352_v47 }
  0xe6   : > { %930 = vst.msk [vmem:[#allocation2 + $0xb0] sm:$0xff] %vm312_vm0, %v897_v51 }
  0xe7   : > { %1117 = vst.msk [vmem:[%s1811_s15 + $0x14] sm:$0xf] %vm1111_vm1, %v1084_v54  ;;  %v1036_v57 = vadd.f32 %v1801_v0, %v1000_v55  ;;  %v949_v58 = vld [vmem:[#allocation2 + $0x30] sm:$0xff]  ;;  %v763_v59 = vpop.f32.mrf.mxu2 }
  0xe8   : > { %v985_v60 = vmul.f32 %v1796_v61, %v949_v58  ;;  %915 = vst.msk [vmem:[#allocation2 + $0x38] sm:$0xff] %vm312_vm0, %v882_v56  ;;  %v852_v63 = vpop.f32.mrf.mxu3 }
  0xe9   : > { %v1068_v1 = vmax.f32 %v1036_v57, 0.0  ;;  %v853_v2 = vadd.f32 %v852_v63, %v763_v59  ;;  %v726_v3 = vpop.f32.mrf.mxu0  ;;  %v371_v59 = vld [vmem:[#allocation2 + $0xd0] sm:$0xff] }
  0xea   : > { %v1021_v4 = vadd.f32 %v1801_v0, %v985_v60  ;;  %v815_v6 = vpop.f32.mrf.mxu1 }
  0xeb   : > { %v1100_v7 = vpack.c.bf16 %v1068_v1, %v1068_v1  ;;  %v898_v8 = vadd.f32 %v853_v2, %v368_v62  ;;  %v816_v9 = vadd.f32 %v815_v6, %v726_v3  ;;  %v356_v3 = vld [vmem:[#allocation2 + $0x58] sm:$0xff] }
  0xec   : > { %v1053_v10 = vmax.f32 %v1021_v4, 0.0 }
  0xed   : > { %1133 = vst.msk [vmem:[%s1811_s15 + $0x54] sm:$0xf] %vm1111_vm1, %v1100_v7  ;;  %v965_v11 = vld [vmem:[#allocation2 + $0xb0] sm:$0xff]  ;;  %v883_v12 = vadd.f32 %v816_v9, %v353_v5 }
  0xee   : > { %v1085_v13 = vpack.c.bf16 %v1053_v10, %v1053_v10  ;;  %v1001_v14 = vmul.f32 %v1796_v61, %v965_v11  ;;  %931 = vst.msk [vmem:[#allocation2 + $0xb8] sm:$0xff] %vm312_vm0, %v898_v8 }
  0xef   : > { %v950_v15 = vld [vmem:[#allocation2 + $0x38] sm:$0xff]  ;;  %916 = vst.msk [vmem:[#allocation2 + $0x40] sm:$0xff] %vm312_vm0, %v883_v12  ;;  %v766_v16 = vpop.f32.mrf.mxu2 }
  0xf0   : > { %1118 = vst.msk [vmem:[%s1811_s15 + $0x18] sm:$0xf] %vm1111_vm1, %v1085_v13  ;;  %v1037_v17 = vadd.f32 %v1801_v0, %v1001_v14  ;;  %v986_v18 = vmul.f32 %v1796_v61, %v950_v15  ;;  %v855_v20 = vpop.f32.mrf.mxu3 }
  0xf1   : > { %v856_v21 = vadd.f32 %v855_v20, %v766_v16  ;;  %v728_v22 = vpop.f32.mrf.mxu0 }
  0xf2   : > { %v1069_v23 = vmax.f32 %v1037_v17, 0.0  ;;  %v1022_v24 = vadd.f32 %v1801_v0, %v986_v18  ;;  %v817_v26 = vpop.f32.mrf.mxu1  ;;  %v372_v17 = vld [vmem:[#allocation2 + $0xd8] sm:$0xff] }
  0xf3   : > { %v899_v27 = vadd.f32 %v856_v21, %v369_v19  ;;  %v818_v28 = vadd.f32 %v817_v26, %v728_v22 }
  0xf4   : > { %v1101_v29 = vpack.c.bf16 %v1069_v23, %v1069_v23  ;;  %v1054_v30 = vmax.f32 %v1022_v24, 0.0  ;;  %v357_v23 = vld [vmem:[#allocation2 + $0x60] sm:$0xff] }
  0xf5   : > { %v966_v31 = vld [vmem:[#allocation2 + $0xb8] sm:$0xff]  ;;  %932 = vst.msk [vmem:[#allocation2 + $0xc0] sm:$0xff] %vm312_vm0, %v899_v27  ;;  %v884_v32 = vadd.f32 %v818_v28, %v354_v25 }
  0xf6   : > { %1134 = vst.msk [vmem:[%s1811_s15 + $0x58] sm:$0xf] %vm1111_vm1, %v1101_v29  ;;  %v1086_v33 = vpack.c.bf16 %v1054_v30, %v1054_v30  ;;  %v1002_v34 = vmul.f32 %v1796_v61, %v966_v31  ;;  %v951_v35 = vld [vmem:[#allocation2 + $0x40] sm:$0xff] }
  0xf7   : > { %v987_v36 = vmul.f32 %v1796_v61, %v951_v35  ;;  %917 = vst.msk [vmem:[#allocation2 + $0x48] sm:$0xff] %vm312_vm0, %v884_v32  ;;  %v768_v37 = vpop.f32.mrf.mxu2 }
  0xf8   : > { %1119 = vst.msk [vmem:[%s1811_s15 + $0x1c] sm:$0xf] %vm1111_vm1, %v1086_v33  ;;  %v1038_v38 = vadd.f32 %v1801_v0, %v1002_v34  ;;  %v857_v40 = vpop.f32.mrf.mxu3 }
  0xf9   : > { %v1023_v41 = vadd.f32 %v1801_v0, %v987_v36  ;;  %v858_v42 = vadd.f32 %v857_v40, %v768_v37  ;;  %v731_v43 = vpop.f32.mrf.mxu0  ;;  %v373_v37 = vld [vmem:[#allocation2 + $0xe0] sm:$0xff] }
  0xfa   : > { %v1070_v44 = vmax.f32 %v1038_v38, 0.0  ;;  %v820_v46 = vpop.f32.mrf.mxu1 }
  0xfb   : > { %v1055_v47 = vmax.f32 %v1023_v41, 0.0  ;;  %v900_v48 = vadd.f32 %v858_v42, %v370_v39  ;;  %v821_v49 = vadd.f32 %v820_v46, %v731_v43  ;;  %v358_v43 = vld [vmem:[#allocation2 + $0x68] sm:$0xff] }
  0xfc   : > { %v1102_v50 = vpack.c.bf16 %v1070_v44, %v1070_v44  ;;  %v967_v51 = vld [vmem:[#allocation2 + $0xc0] sm:$0xff] }
  0xfd   : > { %v1087_v52 = vpack.c.bf16 %v1055_v47, %v1055_v47  ;;  %v1003_v53 = vmul.f32 %v1796_v61, %v967_v51  ;;  %933 = vst.msk [vmem:[#allocation2 + $0xc8] sm:$0xff] %vm312_vm0, %v900_v48  ;;  %v885_v54 = vadd.f32 %v821_v49, %v355_v45 }
  0xfe   : > { %1135 = vst.msk [vmem:[%s1811_s15 + $0x5c] sm:$0xf] %vm1111_vm1, %v1102_v50  ;;  %v952_v55 = vld [vmem:[#allocation2 + $0x48] sm:$0xff] }
  0xff   : > { %1120 = vst.msk [vmem:[%s1811_s15 + $0x20] sm:$0xf] %vm1111_vm1, %v1087_v52  ;;  %v1039_v56 = vadd.f32 %v1801_v0, %v1003_v53  ;;  %v988_v57 = vmul.f32 %v1796_v61, %v952_v55  ;;  %v771_v58 = vpop.f32.mrf.mxu2 }
 0x100   : > { %918 = vst.msk [vmem:[#allocation2 + $0x50] sm:$0xff] %vm312_vm0, %v885_v54  ;;  %v860_v60 = vpop.f32.mrf.mxu3 }
 0x101   : > { %v1071_v62 = vmax.f32 %v1039_v56, 0.0  ;;  %v1024_v63 = vadd.f32 %v1801_v0, %v988_v57  ;;  %v861_v1 = vadd.f32 %v860_v60, %v771_v58  ;;  %v733_v2 = vpop.f32.mrf.mxu0  ;;  %v374_v57 = vld [vmem:[#allocation2 + $0xe8] sm:$0xff] }
 0x102   : > { %v822_v4 = vpop.f32.mrf.mxu1 }
 0x103   : > { %v1103_v5 = vpack.c.bf16 %v1071_v62, %v1071_v62  ;;  %v1056_v6 = vmax.f32 %v1024_v63, 0.0  ;;  %v901_v7 = vadd.f32 %v861_v1, %v371_v59  ;;  %v823_v8 = vadd.f32 %v822_v4, %v733_v2  ;;  %v359_v1 = vld [vmem:[#allocation2 + $0x70] sm:$0xff] }
 0x104   : > { %v968_v9 = vld [vmem:[#allocation2 + $0xc8] sm:$0xff] }
 0x105   : > { %1136 = vst.msk [vmem:[%s1811_s15 + $0x60] sm:$0xf] %vm1111_vm1, %v1103_v5  ;;  %v1088_v10 = vpack.c.bf16 %v1056_v6, %v1056_v6  ;;  %v1004_v11 = vmul.f32 %v1796_v61, %v968_v9  ;;  %v886_v12 = vadd.f32 %v823_v8, %v356_v3 }
 0x106   : > { %934 = vst.msk [vmem:[#allocation2 + $0xd0] sm:$0xff] %vm312_vm0, %v901_v7 }
 0x107   : > { %1121 = vst.msk [vmem:[%s1811_s15 + $0x24] sm:$0xf] %vm1111_vm1, %v1088_v10  ;;  %v1040_v13 = vadd.f32 %v1801_v0, %v1004_v11  ;;  %v953_v14 = vld [vmem:[#allocation2 + $0x50] sm:$0xff]  ;;  %v773_v15 = vpop.f32.mrf.mxu2 }
 0x108   : > { %v989_v16 = vmul.f32 %v1796_v61, %v953_v14  ;;  %919 = vst.msk [vmem:[#allocation2 + $0x58] sm:$0xff] %vm312_vm0, %v886_v12  ;;  %v862_v18 = vpop.f32.mrf.mxu3 }
 0x109   : > { %v1072_v19 = vmax.f32 %v1040_v13, 0.0  ;;  %v863_v20 = vadd.f32 %v862_v18, %v773_v15  ;;  %v736_v21 = vpop.f32.mrf.mxu0  ;;  %v375_v15 = vld [vmem:[#allocation2 + $0xf0] sm:$0xff] }
 0x10a   : > { %v1025_v22 = vadd.f32 %v1801_v0, %v989_v16  ;;  %v825_v24 = vpop.f32.mrf.mxu1 }
 0x10b   : > { %v1104_v25 = vpack.c.bf16 %v1072_v19, %v1072_v19  ;;  %v902_v26 = vadd.f32 %v863_v20, %v372_v17  ;;  %v826_v27 = vadd.f32 %v825_v24, %v736_v21  ;;  %v360_v21 = vld [vmem:[#allocation2 + $0x78] sm:$0xff] }
 0x10c   : > { %v1057_v28 = vmax.f32 %v1025_v22, 0.0 }
 0x10d   : > { %1137 = vst.msk [vmem:[%s1811_s15 + $0x64] sm:$0xf] %vm1111_vm1, %v1104_v25  ;;  %v969_v29 = vld [vmem:[#allocation2 + $0xd0] sm:$0xff]  ;;  %v887_v30 = vadd.f32 %v826_v27, %v357_v23 }
 0x10e   : > { %v1089_v31 = vpack.c.bf16 %v1057_v28, %v1057_v28  ;;  %v1005_v32 = vmul.f32 %v1796_v61, %v969_v29  ;;  %935 = vst.msk [vmem:[#allocation2 + $0xd8] sm:$0xff] %vm312_vm0, %v902_v26 }
 0x10f   : > { %v954_v33 = vld [vmem:[#allocation2 + $0x58] sm:$0xff]  ;;  %920 = vst.msk [vmem:[#allocation2 + $0x60] sm:$0xff] %vm312_vm0, %v887_v30  ;;  %v776_v34 = vpop.f32.mrf.mxu2 }
 0x110   : > { %1122 = vst.msk [vmem:[%s1811_s15 + $0x28] sm:$0xf] %vm1111_vm1, %v1089_v31  ;;  %v1041_v35 = vadd.f32 %v1801_v0, %v1005_v32  ;;  %v990_v36 = vmul.f32 %v1796_v61, %v954_v33  ;;  %v865_v38 = vpop.f32.mrf.mxu3 }
 0x111   : > { %v866_v39 = vadd.f32 %v865_v38, %v776_v34  ;;  %v738_v40 = vpop.f32.mrf.mxu0 }
 0x112   : > { %v1073_v41 = vmax.f32 %v1041_v35, 0.0  ;;  %v1026_v42 = vadd.f32 %v1801_v0, %v990_v36  ;;  %v827_v44 = vpop.f32.mrf.mxu1  ;;  %v376_v35 = vld [vmem:[#allocation2 + $0xf8] sm:$0xff] }
 0x113   : > { %v903_v45 = vadd.f32 %v866_v39, %v373_v37  ;;  %v828_v46 = vadd.f32 %v827_v44, %v738_v40 }
 0x114   : > { %v1105_v47 = vpack.c.bf16 %v1073_v41, %v1073_v41  ;;  %v1058_v48 = vmax.f32 %v1026_v42, 0.0 }
 0x115   : > { %v970_v49 = vld [vmem:[#allocation2 + $0xd8] sm:$0xff]  ;;  %936 = vst.msk [vmem:[#allocation2 + $0xe0] sm:$0xff] %vm312_vm0, %v903_v45  ;;  %v888_v50 = vadd.f32 %v828_v46, %v358_v43 }
 0x116   : > { %1138 = vst.msk [vmem:[%s1811_s15 + $0x68] sm:$0xf] %vm1111_vm1, %v1105_v47  ;;  %v1090_v51 = vpack.c.bf16 %v1058_v48, %v1058_v48  ;;  %v1006_v52 = vmul.f32 %v1796_v61, %v970_v49  ;;  %v955_v53 = vld [vmem:[#allocation2 + $0x60] sm:$0xff] }
 0x117   : > { %v991_v54 = vmul.f32 %v1796_v61, %v955_v53  ;;  %921 = vst.msk [vmem:[#allocation2 + $0x68] sm:$0xff] %vm312_vm0, %v888_v50  ;;  %v778_v55 = vpop.f32.mrf.mxu2 }
 0x118   : > { %1123 = vst.msk [vmem:[%s1811_s15 + $0x2c] sm:$0xf] %vm1111_vm1, %v1090_v51  ;;  %v1042_v56 = vadd.f32 %v1801_v0, %v1006_v52  ;;  %v867_v58 = vpop.f32.mrf.mxu3 }
 0x119   : > { %v1027_v59 = vadd.f32 %v1801_v0, %v991_v54  ;;  %v868_v60 = vadd.f32 %v867_v58, %v778_v55  ;;  %v741_v62 = vpop.f32.mrf.mxu0 }
 0x11a   : > { %v1074_v63 = vmax.f32 %v1042_v56, 0.0  ;;  %v830_v2 = vpop.f32.mrf.mxu1 }
 0x11b   : > { %v1059_v3 = vmax.f32 %v1027_v59, 0.0  ;;  %v904_v4 = vadd.f32 %v868_v60, %v374_v57  ;;  %v831_v5 = vadd.f32 %v830_v2, %v741_v62 }
 0x11c   : > { %v1106_v6 = vpack.c.bf16 %v1074_v63, %v1074_v63  ;;  %v971_v7 = vld [vmem:[#allocation2 + $0xe0] sm:$0xff] }
 0x11d   : > { %v1091_v8 = vpack.c.bf16 %v1059_v3, %v1059_v3  ;;  %v1007_v9 = vmul.f32 %v1796_v61, %v971_v7  ;;  %937 = vst.msk [vmem:[#allocation2 + $0xe8] sm:$0xff] %vm312_vm0, %v904_v4  ;;  %v889_v10 = vadd.f32 %v831_v5, %v359_v1 }
 0x11e   : > { %1139 = vst.msk [vmem:[%s1811_s15 + $0x6c] sm:$0xf] %vm1111_vm1, %v1106_v6  ;;  %v956_v11 = vld [vmem:[#allocation2 + $0x68] sm:$0xff] }
 0x11f   : > { %1124 = vst.msk [vmem:[%s1811_s15 + $0x30] sm:$0xf] %vm1111_vm1, %v1091_v8  ;;  %v1043_v12 = vadd.f32 %v1801_v0, %v1007_v9  ;;  %v992_v13 = vmul.f32 %v1796_v61, %v956_v11  ;;  %v781_v14 = vpop.f32.mrf.mxu2 }
 0x120   : > { %922 = vst.msk [vmem:[#allocation2 + $0x70] sm:$0xff] %vm312_vm0, %v889_v10  ;;  %v870_v16 = vpop.f32.mrf.mxu3 }
 0x121   : > { %v1075_v17 = vmax.f32 %v1043_v12, 0.0  ;;  %v1028_v18 = vadd.f32 %v1801_v0, %v992_v13  ;;  %v871_v19 = vadd.f32 %v870_v16, %v781_v14  ;;  %v743_v20 = vpop.f32.mrf.mxu0 }
 0x122   : > { %v832_v22 = vpop.f32.mrf.mxu1 }
 0x123   : > { %v1107_v23 = vpack.c.bf16 %v1075_v17, %v1075_v17  ;;  %v1060_v24 = vmax.f32 %v1028_v18, 0.0  ;;  %v905_v25 = vadd.f32 %v871_v19, %v375_v15  ;;  %v833_v26 = vadd.f32 %v832_v22, %v743_v20 }
 0x124   : > { %v972_v27 = vld [vmem:[#allocation2 + $0xe8] sm:$0xff] }
 0x125   : > { %1140 = vst.msk [vmem:[%s1811_s15 + $0x70] sm:$0xf] %vm1111_vm1, %v1107_v23  ;;  %v1092_v28 = vpack.c.bf16 %v1060_v24, %v1060_v24  ;;  %v1008_v29 = vmul.f32 %v1796_v61, %v972_v27  ;;  %v890_v30 = vadd.f32 %v833_v26, %v360_v21 }
 0x126   : > { %938 = vst.msk [vmem:[#allocation2 + $0xf0] sm:$0xff] %vm312_vm0, %v905_v25 }
 0x127   : > { %1125 = vst.msk [vmem:[%s1811_s15 + $0x34] sm:$0xf] %vm1111_vm1, %v1092_v28  ;;  %v1044_v31 = vadd.f32 %v1801_v0, %v1008_v29  ;;  %v957_v32 = vld [vmem:[#allocation2 + $0x70] sm:$0xff]  ;;  %v783_v33 = vpop.f32.mrf.mxu2 }
 0x128   : > { %v993_v34 = vmul.f32 %v1796_v61, %v957_v32  ;;  %923 = vst.msk [vmem:[#allocation2 + $0x78] sm:$0xff] %vm312_vm0, %v890_v30  ;;  %v872_v36 = vpop.f32.mrf.mxu3 }
 0x129   : > { %v1076_v37 = vmax.f32 %v1044_v31, 0.0  ;;  %v873_v38 = vadd.f32 %v872_v36, %v783_v33 }
 0x12a   : > { %v1029_v39 = vadd.f32 %v1801_v0, %v993_v34 }
 0x12b   : > { %v1108_v40 = vpack.c.bf16 %v1076_v37, %v1076_v37  ;;  %v906_v41 = vadd.f32 %v873_v38, %v376_v35 }
 0x12c   : > { %v1061_v42 = vmax.f32 %v1029_v39, 0.0 }
 0x12d   : > { %1141 = vst.msk [vmem:[%s1811_s15 + $0x74] sm:$0xf] %vm1111_vm1, %v1108_v40  ;;  %v973_v43 = vld [vmem:[#allocation2 + $0xf0] sm:$0xff] }
 0x12e   : > { %v1093_v44 = vpack.c.bf16 %v1061_v42, %v1061_v42  ;;  %v1009_v45 = vmul.f32 %v1796_v61, %v973_v43  ;;  %939 = vst.msk [vmem:[#allocation2 + $0xf8] sm:$0xff] %vm312_vm0, %v906_v41 }
 0x12f   : > { %v958_v46 = vld [vmem:[#allocation2 + $0x78] sm:$0xff] }
 0x130   : > { %1126 = vst.msk [vmem:[%s1811_s15 + $0x38] sm:$0xf] %vm1111_vm1, %v1093_v44  ;;  %v1045_v47 = vadd.f32 %v1801_v0, %v1009_v45  ;;  %v994_v48 = vmul.f32 %v1796_v61, %v958_v46 }
 0x132   : > { %v1077_v49 = vmax.f32 %v1045_v47, 0.0  ;;  %v1030_v50 = vadd.f32 %v1801_v0, %v994_v48 }
 0x134   : > { %v1109_v51 = vpack.c.bf16 %v1077_v49, %v1077_v49  ;;  %v1062_v52 = vmax.f32 %v1030_v50, 0.0 }
 0x135   : > { %v974_v53 = vld [vmem:[#allocation2 + $0xf8] sm:$0xff] }
 0x136   : > { %1142 = vst.msk [vmem:[%s1811_s15 + $0x78] sm:$0xf] %vm1111_vm1, %v1109_v51  ;;  %v1094_v54 = vpack.c.bf16 %v1062_v52, %v1062_v52  ;;  %v1010_v55 = vmul.f32 %v1796_v61, %v974_v53 }
 0x138   : > { %1127 = vst.msk [vmem:[%s1811_s15 + $0x3c] sm:$0xf] %vm1111_vm1, %v1094_v54  ;;  %v1046_v56 = vadd.f32 %v1801_v0, %v1010_v55 }
 0x13a   : > { %v1078_v57 = vmax.f32 %v1046_v56, 0.0 }
 0x13c   : > { %v1110_v58 = vpack.c.bf16 %v1078_v57, %v1078_v57 }
 0x13e   : > { %1143 = vst.msk [vmem:[%s1811_s15 + $0x7c] sm:$0xf] %vm1111_vm1, %v1110_v58 }
 0x13f PF: > { %s14_s17 = sadd.s32 1, %s1591_s17   ;;  %s1982_s15 = smov %s1587_s16 }
 0x140   : > { %p11_p5 = scmp.ge.s32.totalorder %s14_s17, 4   ;;  %s1983_s16 = smov %s1985_s18 }
 0x142   :  { %13 = sbr.rel (!%p11_p5) target bundleno = 2 (0x2), region = 83 }

// kernel: _lambda_.25
= control target key start
LH: loop header
LB: loop body
LE: loop exit
PB: predicated region body
PF: predicated region fallthrough
CT: control target
= control target key end

     0   :  { %s1275_s18 = smov 0   ;;  %s1277_s19 = smov 0   ;;  %s1542_s0 = inlined_call_operand.vmem [shape: bf16[128,640], index: 0, kind: input, shape index: {}]   ;;  %s1543_s1 = inlined_call_operand.vmem [shape: bf16[640,64], index: 1, kind: input, shape index: {}]   ;;  %s1544_s2 = inlined_call_operand.vmem [shape: f32[1,64], index: 2, kind: input, shape index: {}]   ;;  %s1545_s3 = inlined_call_operand.vmem [shape: f32[1,64], index: 3, kind: input, shape index: {}]   ;;  %s1546_s4 = inlined_call_operand.vmem [shape: bf16[128,64], index: 4, kind: input, shape index: {}]   ;;  %s1547_s5 = inlined_call_operand.vmem [shape: bf16[128,64], index: 5, kind: output, shape index: {}]  }
   0x1   :  { %s1279_s20 = smov 0   ;;  %s1281_s21 = smov 0  }
   0x2   :  { %s1283_s22 = smov 0  }
   0x3 LB: > { %s27_s23 = sadd.s32 1, %s1238_s21  ;;  %p50_p1 = scmp.ne.s32.totalorder %s1230_s19, %s1226_s18  ;;  %s1242_s22 = sphi %s1283_s22, %s15_s22   ;;  %s1238_s21 = sphi %s1281_s21, %s1551_s21   ;;  %s1234_s20 = sphi %s1279_s20, %s1550_s20   ;;  %s1230_s19 = sphi %s1277_s19, %s1549_s19   ;;  %s1226_s18 = sphi %s1275_s18, %s1548_s18  }
   0x4   : > { %p28_p0 = scmp.ge.s32.totalorder %s27_s23, 5  ;;  %p51_p2 = scmp.eq.s32.totalorder %s1242_s22, 0 }
   0x5   : > { %s43_s25 = sadd.s32 1, %s1230_s19  ;;  %p1005_p5 = scmp.ge.s32.totalorder %s1242_s22, 5 }
   0x6   : > { %s1553_s23 = smov (%p28_p0, %s27_s23), 0  ;;  %p52_p3 = por %p51_p2, %p50_p1 }
   0x7   : > { %s39_s24 = ssub.s32 %s1238_s21, %s1553_s23  ;;  %236 = sbr.rel (%p1005_p5) target bundleno = 32 (0x20), region = 28 }
   0x8   : > { %p41_p4 = scmp.eq.s32.totalorder %s39_s24, 0 }
   0xa   : > { %s1310_s26 = scalar_select %p41_p4, %s1230_s19, %s43_s25  }
   0xc   : > { %239 = sbr.rel (!%p52_p3) target bundleno = 32 (0x20), region = 32  ;;  %s241_s27 = sand.u32 (%p52_p3), 1, %s1230_s19  }
   0xd   : > { %s1007_s28 = sshll.u32 (%p52_p3), %s1238_s21, 2  ;;  %s1006_s29 = sshll.u32 (%p52_p3), %s241_s27, 6 }
   0xe   : > { %s1318_s7 = scalar_lea.vmem (%p52_p3), %s1542_s0, %s1007_s28  ;;  %s243_s8 = scalar_lea.vmem (%p52_p3), [#allocation3], %s1006_s29 }
   0xf   : > { %v265_v0 = vld [vmem:[%s1318_s7] sm:$0xf] (%p52_p3)  ;;  %v267_v1 = vld [vmem:[%s1318_s7 + $0x14] sm:$0xf] (%p52_p3)  ;;  %v269_v2 = vld [vmem:[%s1318_s7 + $0x28] sm:$0xf] (%p52_p3) }
  0x10   : > { %266 = vst [vmem:[%s243_s8] sm:$0xf] (%p52_p3), %v265_v0  ;;  %v271_v3 = vld [vmem:[%s1318_s7 + $0x3c] sm:$0xf] (%p52_p3)  ;;  %v273_v4 = vld [vmem:[%s1318_s7 + $0x50] sm:$0xf] (%p52_p3) }
  0x11   : > { %268 = vst [vmem:[%s243_s8 + $0x4] sm:$0xf] %v267_v1  ;;  %v275_v5 = vld [vmem:[%s1318_s7 + $0x64] sm:$0xf]  ;;  %v277_v6 = vld [vmem:[%s1318_s7 + $0x78] sm:$0xf] }
  0x12   : > { %270 = vst [vmem:[%s243_s8 + $0x8] sm:$0xf] %v269_v2  ;;  %v279_v7 = vld [vmem:[%s1318_s7 + $0x8c] sm:$0xf]  ;;  %v281_v8 = vld [vmem:[%s1318_s7 + $0xa0] sm:$0xf] }
  0x13   : > { %272 = vst [vmem:[%s243_s8 + $0xc] sm:$0xf] %v271_v3  ;;  %v283_v9 = vld [vmem:[%s1318_s7 + $0xb4] sm:$0xf]  ;;  %v285_v10 = vld [vmem:[%s1318_s7 + $0xc8] sm:$0xf] }
  0x14   : > { %274 = vst [vmem:[%s243_s8 + $0x10] sm:$0xf] %v273_v4  ;;  %v287_v11 = vld [vmem:[%s1318_s7 + $0xdc] sm:$0xf]  ;;  %v289_v12 = vld [vmem:[%s1318_s7 + $0xf0] sm:$0xf] }
  0x15   : > { %276 = vst [vmem:[%s243_s8 + $0x14] sm:$0xf] %v275_v5  ;;  %v291_v13 = vld [vmem:[%s1318_s7 + $0x104] sm:$0xf]  ;;  %v293_v14 = vld [vmem:[%s1318_s7 + $0x118] sm:$0xf] }
  0x16   : > { %278 = vst [vmem:[%s243_s8 + $0x18] sm:$0xf] %v277_v6  ;;  %v295_v15 = vld [vmem:[%s1318_s7 + $0x12c] sm:$0xf] }
  0x17   : > { %280 = vst [vmem:[%s243_s8 + $0x1c] sm:$0xf] %v279_v7 }
  0x18   : > { %282 = vst [vmem:[%s243_s8 + $0x20] sm:$0xf] %v281_v8 }
  0x19   : > { %284 = vst [vmem:[%s243_s8 + $0x24] sm:$0xf] %v283_v9 }
  0x1a   : > { %286 = vst [vmem:[%s243_s8 + $0x28] sm:$0xf] %v285_v10 }
  0x1b   : > { %288 = vst [vmem:[%s243_s8 + $0x2c] sm:$0xf] %v287_v11 }
  0x1c   : > { %290 = vst [vmem:[%s243_s8 + $0x30] sm:$0xf] %v289_v12 }
  0x1d   : > { %292 = vst [vmem:[%s243_s8 + $0x34] sm:$0xf] %v291_v13 }
  0x1e   : > { %294 = vst [vmem:[%s243_s8 + $0x38] sm:$0xf] %v293_v14 }
  0x1f   : > { %296 = vst [vmem:[%s243_s8 + $0x3c] sm:$0xf] %v295_v15 }
  0x20 PF: > { %p1008_p6 = scmp.ge.s32.totalorder %s1242_s22, 1  ;;  %p363_p7 = scmp.lt.s32.totalorder %s1242_s22, 6 }
  0x22   : > { %p364_p8 = pnand %p1008_p6, %p363_p7 }
  0x23   : > { %s370_s9 = sand.u32 (!%p364_p8), 1, %s1226_s18   ;;  %s1010_s10 = sshll.u32 (!%p364_p8), %s1234_s20, 4 }
  0x24   : > { %367 = sbr.rel (%p364_p8) target bundleno = 289 (0x121), region = 77  ;;  %s1009_s11 = sshll.u32 (!%p364_p8), %s370_s9, 6 }
  0x25   : > { %p424_p9 = scmp.lt.s32.totalorder (!%p364_p8), %s1010_s10, 79  ;;  %s1345_s16 = scalar_lea.vmem (!%p364_p8), [#allocation3], %s1009_s11 }
  0x26   : > { %p1012_p10 = scmp.ne.s32.totalorder (!%p364_p8), %s1234_s20, 0 }
  0x29   : > { %s1555_s10 = smov (!%p424_p9, %s1010_s10), 79  ;;  %459 = sbr.rel (%p1012_p10) target bundleno = 63 (0x3f), region = 85 }
  0x2a   : > { %s1011_s12 = sshll.u32 %s1555_s10, 2 }
  0x2b   : > { %s1343_s15 = scalar_lea.vmem %s1543_s1, %s1011_s12 }
  0x2e   : > { %vm460_vm0 = vcmask 523264   ;;  %v1244_v16 = vmov 0.0  }
  0x2f   : > { %461 = vst.msk [vmem:[#allocation2] sm:$0xff] %vm460_vm0, %v1244_v16 }
  0x30   : > { %462 = vst.msk [vmem:[#allocation2 + $0x8] sm:$0xff] %vm460_vm0, %v1244_v16 }
  0x31   : > { %463 = vst.msk [vmem:[#allocation2 + $0x10] sm:$0xff] %vm460_vm0, %v1244_v16 }
  0x32   : > { %464 = vst.msk [vmem:[#allocation2 + $0x18] sm:$0xff] %vm460_vm0, %v1244_v16 }
  0x33   : > { %465 = vst.msk [vmem:[#allocation2 + $0x20] sm:$0xff] %vm460_vm0, %v1244_v16 }
  0x34   : > { %466 = vst.msk [vmem:[#allocation2 + $0x28] sm:$0xff] %vm460_vm0, %v1244_v16 }
  0x35   : > { %467 = vst.msk [vmem:[#allocation2 + $0x30] sm:$0xff] %vm460_vm0, %v1244_v16 }
  0x36   : > { %468 = vst.msk [vmem:[#allocation2 + $0x38] sm:$0xff] %vm460_vm0, %v1244_v16 }
  0x37   : > { %469 = vst.msk [vmem:[#allocation2 + $0x40] sm:$0xff] %vm460_vm0, %v1244_v16 }
  0x38   : > { %470 = vst.msk [vmem:[#allocation2 + $0x48] sm:$0xff] %vm460_vm0, %v1244_v16 }
  0x39   : > { %471 = vst.msk [vmem:[#allocation2 + $0x50] sm:$0xff] %vm460_vm0, %v1244_v16 }
  0x3a   : > { %472 = vst.msk [vmem:[#allocation2 + $0x58] sm:$0xff] %vm460_vm0, %v1244_v16 }
  0x3b   : > { %473 = vst.msk [vmem:[#allocation2 + $0x60] sm:$0xff] %vm460_vm0, %v1244_v16 }
  0x3c   : > { %474 = vst.msk [vmem:[#allocation2 + $0x68] sm:$0xff] %vm460_vm0, %v1244_v16 }
  0x3d   : > { %475 = vst.msk [vmem:[#allocation2 + $0x70] sm:$0xff] %vm460_vm0, %v1244_v16 }
  0x3e   : > { %476 = vst.msk [vmem:[#allocation2 + $0x78] sm:$0xff] %vm460_vm0, %v1244_v16 }
  0x3f PF: > { %v1097_v17 = vld [vmem:[%s1343_s15 + $0x38] sm:$0xff]  ;;  %v1096_v18 = vld [vmem:[%s1343_s15 + $0x30] sm:$0xff]  ;;  %v1095_v19 = vld [vmem:[%s1343_s15 + $0x28] sm:$0xff]  ;;  %vm686_vm1 = vcmask 523264   ;;  %p1077_p11 = scmp.ne.s32.totalorder %s1234_s20, 4 }
  0x40   : > { %621 = vmatpush.bf16.msra.mxu0 %v1097_v17  ;;  %1137 = vmatpush.bf16.msra.mxu1 %v1097_v17  ;;  %v1094_v20 = vld [vmem:[%s1343_s15 + $0x20] sm:$0xff]  ;;  %v1093_v21 = vld [vmem:[%s1343_s15 + $0x18] sm:$0xff]  ;;  %v1092_v22 = vld [vmem:[%s1343_s15 + $0x10] sm:$0xff] }
  0x41   : > { %1138 = vmatpush.bf16.msra.mxu2 %v1097_v17  ;;  %1139 = vmatpush.bf16.msra.mxu3 %v1097_v17  ;;  %v1091_v23 = vld [vmem:[%s1343_s15 + $0x8] sm:$0xff]  ;;  %v1090_v24 = vld [vmem:[%s1343_s15] sm:$0xff]  ;;  %v1084_v26 = vld [vmem:[%s1345_s16 + $0x10] sm:$0xff] }
  0x42   : > { %v1082_v25 = vld [vmem:[%s1345_s16] sm:$0xff]  ;;  %v1088_v28 = vld [vmem:[%s1345_s16 + $0x30] sm:$0xff]  ;;  %v1083_v29 = vld [vmem:[%s1345_s16 + $0x8] sm:$0xff] }
  0x43   : > { %v1086_v27 = vld [vmem:[%s1345_s16 + $0x20] sm:$0xff]  ;;  %v1085_v30 = vld [vmem:[%s1345_s16 + $0x18] sm:$0xff]  ;;  %v1087_v31 = vld [vmem:[%s1345_s16 + $0x28] sm:$0xff] }
  0x44   : > { %622 = vmatpush.bf16.msra.mxu0 %v1096_v18  ;;  %1140 = vmatpush.bf16.msra.mxu1 %v1096_v18  ;;  %v1089_v32 = vld [vmem:[%s1345_s16 + $0x38] sm:$0xff]  ;;  %v477_v33 = vld [vmem:[#allocation2] sm:$0xff]  ;;  %v478_v41 = vld [vmem:[#allocation2 + $0x8] sm:$0xff] }
  0x45   : > { %1141 = vmatpush.bf16.msra.mxu2 %v1096_v18  ;;  %1142 = vmatpush.bf16.msra.mxu3 %v1096_v18  ;;  %v481_v34 = vld [vmem:[#allocation2 + $0x20] sm:$0xff]  ;;  %v482_v42 = vld [vmem:[#allocation2 + $0x28] sm:$0xff]  ;;  %v479_v53 = vld [vmem:[#allocation2 + $0x10] sm:$0xff] }
  0x46   : > { %v485_v39 = vld [vmem:[#allocation2 + $0x40] sm:$0xff]  ;;  %v486_v51 = vld [vmem:[#allocation2 + $0x48] sm:$0xff]  ;;  %v483_v54 = vld [vmem:[#allocation2 + $0x30] sm:$0xff] }
  0x47   : > { %v489_v40 = vld [vmem:[#allocation2 + $0x60] sm:$0xff]  ;;  %v490_v52 = vld [vmem:[#allocation2 + $0x68] sm:$0xff]  ;;  %v487_v63 = vld [vmem:[#allocation2 + $0x50] sm:$0xff] }
  0x48   : > { %623 = vmatpush.bf16.msra.mxu0 %v1095_v19  ;;  %1143 = vmatpush.bf16.msra.mxu1 %v1095_v19  ;;  %v491_v0 = vld [vmem:[#allocation2 + $0x70] sm:$0xff]  ;;  %v480_v1 = vld [vmem:[#allocation2 + $0x18] sm:$0xff] }
  0x49   : > { %1144 = vmatpush.bf16.msra.mxu2 %v1095_v19  ;;  %1145 = vmatpush.bf16.msra.mxu3 %v1095_v19  ;;  %v484_v2 = vld [vmem:[#allocation2 + $0x38] sm:$0xff] }
  0x4a   : > { %v488_v11 = vld [vmem:[#allocation2 + $0x58] sm:$0xff] }
  0x4b   : > { %v492_v12 = vld [vmem:[#allocation2 + $0x78] sm:$0xff] }
  0x4c   : > { %624 = vmatpush.bf16.msra.mxu0 %v1094_v20  ;;  %1146 = vmatpush.bf16.msra.mxu1 %v1094_v20 }
  0x4d   : > { %1147 = vmatpush.bf16.msra.mxu2 %v1094_v20  ;;  %1148 = vmatpush.bf16.msra.mxu3 %v1094_v20 }
  0x50   : > { %625 = vmatpush.bf16.msra.mxu0 %v1093_v21  ;;  %1149 = vmatpush.bf16.msra.mxu1 %v1093_v21 }
  0x51   : > { %1150 = vmatpush.bf16.msra.mxu2 %v1093_v21  ;;  %1151 = vmatpush.bf16.msra.mxu3 %v1093_v21 }
  0x54   : > { %626 = vmatpush.bf16.msra.mxu0 %v1092_v22  ;;  %1152 = vmatpush.bf16.msra.mxu1 %v1092_v22 }
  0x55   : > { %1153 = vmatpush.bf16.msra.mxu2 %v1092_v22  ;;  %1154 = vmatpush.bf16.msra.mxu3 %v1092_v22 }
  0x58   : > { %627 = vmatpush.bf16.msra.mxu0 %v1091_v23  ;;  %1155 = vmatpush.bf16.msra.mxu1 %v1091_v23 }
  0x59   : > { %1156 = vmatpush.bf16.msra.mxu2 %v1091_v23  ;;  %1157 = vmatpush.bf16.msra.mxu3 %v1091_v23 }
  0x5c   : > { %628 = vmatpush.bf16.msra.mxu0 %v1090_v24  ;;  %1158 = vmatpush.bf16.msra.mxu1 %v1090_v24 }
  0x5d   : > { %1159 = vmatpush.bf16.msra.mxu2 %v1090_v24  ;;  %1160 = vmatpush.bf16.msra.mxu3 %v1090_v24 }
  0x5f   : > { %629 = vmatmul.bf16.vlgmr.msra.gmra.mxu0 %v1082_v25  ;;  %639 = vmatmul.bf16.vlgmr.msra.gmra.mxu1 %v1084_v26 }
  0x60   : > { %649 = vmatmul.bf16.vlgmr.msra.gmra.mxu2 %v1086_v27  ;;  %659 = vmatmul.bf16.vlgmr.msra.gmra.mxu3 %v1088_v28 }
  0x6f   : > { %634 = vmatmul.bf16.gmra.mxu0 %v1083_v29  ;;  %644 = vmatmul.bf16.gmra.mxu1 %v1085_v30 }
  0x70   : > { %654 = vmatmul.bf16.gmra.mxu2 %v1087_v31  ;;  %664 = vmatmul.bf16.gmra.mxu3 %v1089_v32 }
  0xdc   : > { %v630_v35 = vpop.f32.mrf.mxu0  ;;  %v640_v36 = vpop.f32.mrf.mxu1 }
  0xdd   : > { %v670_v37 = vadd.f32 %v630_v35, %v477_v33  ;;  %v674_v38 = vadd.f32 %v640_v36, %v481_v34 }
  0xdf   : > { %687 = vst.msk [vmem:[#allocation2] sm:$0xff] %vm686_vm1, %v670_v37 }
  0xe0   : > { %691 = vst.msk [vmem:[#allocation2 + $0x20] sm:$0xff] %vm686_vm1, %v674_v38 }
  0xe3   : > { %v650_v43 = vpop.f32.mrf.mxu2  ;;  %v660_v44 = vpop.f32.mrf.mxu3 }
  0xe4   : > { %v678_v45 = vadd.f32 %v650_v43, %v485_v39  ;;  %v682_v46 = vadd.f32 %v660_v44, %v489_v40  ;;  %v632_v47 = vpop.f32.mrf.mxu0  ;;  %v642_v48 = vpop.f32.mrf.mxu1 }
  0xe5   : > { %v671_v49 = vadd.f32 %v632_v47, %v478_v41  ;;  %v675_v50 = vadd.f32 %v642_v48, %v482_v42 }
  0xe6   : > { %695 = vst.msk [vmem:[#allocation2 + $0x40] sm:$0xff] %vm686_vm1, %v678_v45 }
  0xe7   : > { %699 = vst.msk [vmem:[#allocation2 + $0x60] sm:$0xff] %vm686_vm1, %v682_v46 }
  0xe8   : > { %688 = vst.msk [vmem:[#allocation2 + $0x8] sm:$0xff] %vm686_vm1, %v671_v49 }
  0xe9   : > { %692 = vst.msk [vmem:[#allocation2 + $0x28] sm:$0xff] %vm686_vm1, %v675_v50 }
  0xeb   : > { %v652_v55 = vpop.f32.mrf.mxu2  ;;  %v662_v56 = vpop.f32.mrf.mxu3 }
  0xec   : > { %v679_v57 = vadd.f32 %v652_v55, %v486_v51  ;;  %v683_v58 = vadd.f32 %v662_v56, %v490_v52  ;;  %v635_v59 = vpop.f32.mrf.mxu0  ;;  %v645_v60 = vpop.f32.mrf.mxu1 }
  0xed   : > { %v672_v61 = vadd.f32 %v635_v59, %v479_v53  ;;  %v676_v62 = vadd.f32 %v645_v60, %v483_v54 }
  0xee   : > { %696 = vst.msk [vmem:[#allocation2 + $0x48] sm:$0xff] %vm686_vm1, %v679_v57 }
  0xef   : > { %700 = vst.msk [vmem:[#allocation2 + $0x68] sm:$0xff] %vm686_vm1, %v683_v58 }
  0xf0   : > { %689 = vst.msk [vmem:[#allocation2 + $0x10] sm:$0xff] %vm686_vm1, %v672_v61 }
  0xf1   : > { %693 = vst.msk [vmem:[#allocation2 + $0x30] sm:$0xff] %vm686_vm1, %v676_v62 }
  0xf3   : > { %v655_v3 = vpop.f32.mrf.mxu2  ;;  %v665_v4 = vpop.f32.mrf.mxu3 }
  0xf4   : > { %v680_v5 = vadd.f32 %v655_v3, %v487_v63  ;;  %v684_v6 = vadd.f32 %v665_v4, %v491_v0  ;;  %v637_v7 = vpop.f32.mrf.mxu0  ;;  %v647_v8 = vpop.f32.mrf.mxu1 }
  0xf5   : > { %v673_v9 = vadd.f32 %v637_v7, %v480_v1  ;;  %v677_v10 = vadd.f32 %v647_v8, %v484_v2 }
  0xf6   : > { %697 = vst.msk [vmem:[#allocation2 + $0x50] sm:$0xff] %vm686_vm1, %v680_v5 }
  0xf7   : > { %701 = vst.msk [vmem:[#allocation2 + $0x70] sm:$0xff] %vm686_vm1, %v684_v6 }
  0xf8   : > { %690 = vst.msk [vmem:[#allocation2 + $0x18] sm:$0xff] %vm686_vm1, %v673_v9 }
  0xf9   : > { %694 = vst.msk [vmem:[#allocation2 + $0x38] sm:$0xff] %vm686_vm1, %v677_v10 }
  0xfb   : > { %v657_v13 = vpop.f32.mrf.mxu2  ;;  %v667_v14 = vpop.f32.mrf.mxu3  ;;  %706 = sbr.rel (%p1077_p11) target bundleno = 289 (0x121), region = 89 }
  0xfc   : > { %v681_v15 = vadd.f32 %v657_v13, %v488_v11  ;;  %v685_v16 = vadd.f32 %v667_v14, %v492_v12 }
  0xfe   : > { %698 = vst.msk [vmem:[#allocation2 + $0x58] sm:$0xff] %vm686_vm1, %v681_v15 }
  0xff   : > { %702 = vst.msk [vmem:[#allocation2 + $0x78] sm:$0xff] %vm686_vm1, %v685_v16 }
 0x100   : > { %v707_v17 = vld [vmem:[#allocation2] sm:$0xff]  ;;  %vm843_vm2 = vcmask 519168   ;;  %v708_v23 = vld [vmem:[#allocation2 + $0x8] sm:$0xff]  ;;  %v709_v25 = vld [vmem:[#allocation2 + $0x10] sm:$0xff] }
 0x101   : > { %v1400_v18 = vld [vmem:[%s1544_s2] ss:$0 sm:$0xff]  ;;  %v1130_v26 = vld [vmem:[%s1546_s4 + $0x8] sm:$0xff]   ;;  %v710_v30 = vld [vmem:[#allocation2 + $0x18] sm:$0xff] }
 0x102   : > { %v1405_v19 = vld [vmem:[%s1545_s3] ss:$0 sm:$0xff]  ;;  %v727_v21 = vmul.f32 %v1400_v18, %v707_v17  ;;  %v728_v27 = vmul.f32 %v1400_v18, %v708_v23  ;;  %v729_v28 = vmul.f32 %v1400_v18, %v709_v25  ;;  %v1104_v29 = vunpack.c.l.bf16 %v1130_v26  ;;  %v1131_v33 = vld [vmem:[%s1546_s4 + $0x10] sm:$0xff]   ;;  %v712_v38 = vld [vmem:[#allocation2 + $0x28] sm:$0xff] }
 0x103   : > { %v1099_v20 = vld [vmem:[%s1546_s4] sm:$0xff]   ;;  %v1105_v31 = vunpack.c.h.bf16 %v1130_v26  ;;  %v730_v35 = vmul.f32 %v1400_v18, %v710_v30  ;;  %v1108_v37 = vunpack.c.l.bf16 %v1131_v33  ;;  %v713_v39 = vld [vmem:[#allocation2 + $0x30] sm:$0xff]  ;;  %v1132_v40 = vld [vmem:[%s1546_s4 + $0x18] sm:$0xff]   ;;  %v732_v43 = vmul.f32 %v1400_v18, %v712_v38 }
 0x104   : > { %v1100_v22 = vunpack.c.l.bf16 %v1099_v20  ;;  %v1101_v24 = vunpack.c.h.bf16 %v1099_v20  ;;  %v711_v32 = vld [vmem:[#allocation2 + $0x20] sm:$0xff]  ;;  %v747_v34 = vadd.f32 %v1405_v19, %v727_v21  ;;  %v748_v41 = vadd.f32 %v1405_v19, %v728_v27  ;;  %v714_v49 = vld [vmem:[#allocation2 + $0x38] sm:$0xff]  ;;  %v716_v4 = vld [vmem:[#allocation2 + $0x48] sm:$0xff] }
 0x105   : > { %v731_v36 = vmul.f32 %v1400_v18, %v711_v32  ;;  %v749_v42 = vadd.f32 %v1405_v19, %v729_v28  ;;  %v1109_v44 = vunpack.c.h.bf16 %v1131_v33  ;;  %v750_v46 = vadd.f32 %v1405_v19, %v730_v35  ;;  %v715_v2 = vld [vmem:[#allocation2 + $0x40] sm:$0xff]  ;;  %v717_v9 = vld [vmem:[#allocation2 + $0x50] sm:$0xff]  ;;  %v1134_v14 = vld [vmem:[%s1546_s4 + $0x28] sm:$0xff]  }
 0x106   : > { %v795_v45 = vadd.f32 %v1100_v22, %v747_v34  ;;  %v733_v48 = vmul.f32 %v1400_v18, %v713_v39  ;;  %v796_v50 = vadd.f32 %v1101_v24, %v748_v41  ;;  %v752_v52 = vadd.f32 %v1405_v19, %v732_v43  ;;  %v1133_v3 = vld [vmem:[%s1546_s4 + $0x20] sm:$0xff]   ;;  %v718_v15 = vld [vmem:[#allocation2 + $0x58] sm:$0xff]  ;;  %v1135_v27 = vld [vmem:[%s1546_s4 + $0x30] sm:$0xff]  }
 0x107   : > { %v751_v47 = vadd.f32 %v1405_v19, %v731_v36  ;;  %v797_v51 = vadd.f32 %v1104_v29, %v749_v42  ;;  %v1112_v53 = vunpack.c.l.bf16 %v1132_v40  ;;  %v798_v55 = vadd.f32 %v1105_v31, %v750_v46  ;;  %v719_v22 = vld [vmem:[#allocation2 + $0x60] sm:$0xff]  ;;  %v720_v32 = vld [vmem:[#allocation2 + $0x68] sm:$0xff]  ;;  %v721_v41 = vld [vmem:[#allocation2 + $0x70] sm:$0xff] }
 0x108   : > { %v811_v54 = vmax.f32 %v795_v45, 0.0  ;;  %v753_v57 = vadd.f32 %v1405_v19, %v733_v48  ;;  %v812_v58 = vmax.f32 %v796_v50, 0.0  ;;  %v800_v60 = vadd.f32 %v1109_v44, %v752_v52  ;;  %v1136_v46 = vld [vmem:[%s1546_s4 + $0x38] sm:$0xff]  }
 0x109   : > { %v799_v56 = vadd.f32 %v1108_v37, %v751_v47  ;;  %v813_v59 = vmax.f32 %v797_v51, 0.0  ;;  %v734_v61 = vmul.f32 %v1400_v18, %v714_v49  ;;  %v814_v63 = vmax.f32 %v798_v55, 0.0  ;;  %v722_v55 = vld [vmem:[#allocation2 + $0x78] sm:$0xff] }
 0x10a   : > { %v827_v62 = vpack.c.bf16 %v811_v54, %v811_v54  ;;  %v801_v1 = vadd.f32 %v1112_v53, %v753_v57  ;;  %v828_v5 = vpack.c.bf16 %v812_v58, %v812_v58  ;;  %v816_v7 = vmax.f32 %v800_v60, 0.0 }
 0x10b   : > { %v815_v0 = vmax.f32 %v799_v56, 0.0  ;;  %v829_v6 = vpack.c.bf16 %v813_v59, %v813_v59  ;;  %v754_v8 = vadd.f32 %v1405_v19, %v734_v61  ;;  %v830_v10 = vpack.c.bf16 %v814_v63, %v814_v63 }
 0x10c   : > { %844 = vst.msk [vmem:[%s1547_s5] sm:$0xf] %vm843_vm2, %v827_v62  ;;  %v817_v12 = vmax.f32 %v801_v1, 0.0  ;;  %v1113_v13 = vunpack.c.h.bf16 %v1132_v40  ;;  %v832_v16 = vpack.c.bf16 %v816_v7, %v816_v7  ;;  %v735_v17 = vmul.f32 %v1400_v18, %v715_v2 }
 0x10d   : > { %v831_v11 = vpack.c.bf16 %v815_v0, %v815_v0  ;;  %845 = vst.msk [vmem:[%s1547_s5 + $0x4] sm:$0xf] %vm843_vm2, %v828_v5  ;;  %v1116_v20 = vunpack.c.l.bf16 %v1133_v3  ;;  %v736_v21 = vmul.f32 %v1400_v18, %v716_v4  ;;  %v1117_v25 = vunpack.c.h.bf16 %v1133_v3 }
 0x10e   : > { %846 = vst.msk [vmem:[%s1547_s5 + $0x8] sm:$0xf] %vm843_vm2, %v829_v6  ;;  %v833_v23 = vpack.c.bf16 %v817_v12, %v817_v12  ;;  %v802_v24 = vadd.f32 %v1113_v13, %v754_v8  ;;  %v737_v26 = vmul.f32 %v1400_v18, %v717_v9  ;;  %v755_v28 = vadd.f32 %v1405_v19, %v735_v17 }
 0x10f   : > { %847 = vst.msk [vmem:[%s1547_s5 + $0xc] sm:$0xf] %vm843_vm2, %v830_v10  ;;  %v756_v29 = vadd.f32 %v1405_v19, %v736_v21  ;;  %v1120_v30 = vunpack.c.l.bf16 %v1134_v14  ;;  %v738_v31 = vmul.f32 %v1400_v18, %v718_v15  ;;  %v1121_v35 = vunpack.c.h.bf16 %v1134_v14 }
 0x110   : > { %848 = vst.msk [vmem:[%s1547_s5 + $0x10] sm:$0xf] %vm843_vm2, %v831_v11  ;;  %v818_v33 = vmax.f32 %v802_v24, 0.0  ;;  %v757_v34 = vadd.f32 %v1405_v19, %v737_v26  ;;  %v739_v36 = vmul.f32 %v1400_v18, %v719_v22  ;;  %v803_v37 = vadd.f32 %v1116_v20, %v755_v28 }
 0x111   : > { %849 = vst.msk [vmem:[%s1547_s5 + $0x14] sm:$0xf] %vm843_vm2, %v832_v16  ;;  %v804_v38 = vadd.f32 %v1117_v25, %v756_v29  ;;  %v758_v39 = vadd.f32 %v1405_v19, %v738_v31  ;;  %v1124_v40 = vunpack.c.l.bf16 %v1135_v27  ;;  %v740_v45 = vmul.f32 %v1400_v18, %v720_v32 }
 0x112   : > { %850 = vst.msk [vmem:[%s1547_s5 + $0x18] sm:$0xf] %vm843_vm2, %v833_v23  ;;  %v834_v42 = vpack.c.bf16 %v818_v33, %v818_v33  ;;  %v805_v43 = vadd.f32 %v1120_v30, %v757_v34  ;;  %v759_v44 = vadd.f32 %v1405_v19, %v739_v36  ;;  %v819_v47 = vmax.f32 %v803_v37, 0.0 }
 0x113   : > { %v820_v48 = vmax.f32 %v804_v38, 0.0  ;;  %v806_v49 = vadd.f32 %v1121_v35, %v758_v39  ;;  %v1125_v50 = vunpack.c.h.bf16 %v1135_v27  ;;  %v760_v53 = vadd.f32 %v1405_v19, %v740_v45 }
 0x114   : > { %851 = vst.msk [vmem:[%s1547_s5 + $0x1c] sm:$0xf] %vm843_vm2, %v834_v42  ;;  %v821_v51 = vmax.f32 %v805_v43, 0.0  ;;  %v807_v52 = vadd.f32 %v1124_v40, %v759_v44  ;;  %v741_v54 = vmul.f32 %v1400_v18, %v721_v41  ;;  %v835_v56 = vpack.c.bf16 %v819_v47, %v819_v47 }
 0x115   : > { %v836_v57 = vpack.c.bf16 %v820_v48, %v820_v48  ;;  %v822_v58 = vmax.f32 %v806_v49, 0.0  ;;  %v1128_v59 = vunpack.c.l.bf16 %v1136_v46  ;;  %v808_v62 = vadd.f32 %v1125_v50, %v760_v53 }
 0x116   : > { %v837_v60 = vpack.c.bf16 %v821_v51, %v821_v51  ;;  %v823_v61 = vmax.f32 %v807_v52, 0.0  ;;  %v761_v63 = vadd.f32 %v1405_v19, %v741_v54  ;;  %852 = vst.msk [vmem:[%s1547_s5 + $0x20] sm:$0xf] %vm843_vm2, %v835_v56  ;;  %v742_v1 = vmul.f32 %v1400_v18, %v722_v55 }
 0x117   : > { %v838_v0 = vpack.c.bf16 %v822_v58, %v822_v58  ;;  %v1129_v2 = vunpack.c.h.bf16 %v1136_v46  ;;  %853 = vst.msk [vmem:[%s1547_s5 + $0x24] sm:$0xf] %vm843_vm2, %v836_v57  ;;  %v824_v4 = vmax.f32 %v808_v62, 0.0 }
 0x118   : > { %v839_v3 = vpack.c.bf16 %v823_v61, %v823_v61  ;;  %v809_v5 = vadd.f32 %v1128_v59, %v761_v63  ;;  %854 = vst.msk [vmem:[%s1547_s5 + $0x28] sm:$0xf] %vm843_vm2, %v837_v60  ;;  %v762_v6 = vadd.f32 %v1405_v19, %v742_v1 }
 0x119   : > { %855 = vst.msk [vmem:[%s1547_s5 + $0x2c] sm:$0xf] %vm843_vm2, %v838_v0  ;;  %v840_v18 = vpack.c.bf16 %v824_v4, %v824_v4 }
 0x11a   : > { %v825_v7 = vmax.f32 %v809_v5, 0.0  ;;  %856 = vst.msk [vmem:[%s1547_s5 + $0x30] sm:$0xf] %vm843_vm2, %v839_v3  ;;  %v810_v8 = vadd.f32 %v1129_v2, %v762_v6 }
 0x11b   : > { %857 = vst.msk [vmem:[%s1547_s5 + $0x34] sm:$0xf] %vm843_vm2, %v840_v18 }
 0x11c   : > { %v841_v9 = vpack.c.bf16 %v825_v7, %v825_v7  ;;  %v826_v19 = vmax.f32 %v810_v8, 0.0 }
 0x11e   : > { %858 = vst.msk [vmem:[%s1547_s5 + $0x38] sm:$0xf] %vm843_vm2, %v841_v9  ;;  %v842_v10 = vpack.c.bf16 %v826_v19, %v826_v19 }
 0x120   : > { %859 = vst.msk [vmem:[%s1547_s5 + $0x3c] sm:$0xf] %vm843_vm2, %v842_v10 }
 0x121 PF: > { %s15_s22 = sadd.s32 1, %s1242_s22   ;;  %s1548_s18 = smov %s1230_s19 }
 0x122   : > { %p12_p12 = scmp.ge.s32.totalorder %s15_s22, 7   ;;  %s1549_s19 = smov %s1310_s26 }
 0x123   : > { %s1550_s20 = smov %s1238_s21  ;;  %s1551_s21 = smov %s1553_s23 }
 0x124   :  { %14 = sbr.rel (!%p12_p12) target bundleno = 3 (0x3), region = 136 }

// kernel: _lambda_.24
= control target key start
LH: loop header
LB: loop body
LE: loop exit
PB: predicated region body
PF: predicated region fallthrough
CT: control target
= control target key end

     0   :  { %s1104_s15 = smov 0   ;;  %s1106_s16 = smov 0   ;;  %s1347_s0 = inlined_call_operand.vmem [shape: bf16[128,640], index: 0, kind: input, shape index: {}]   ;;  %s1348_s1 = inlined_call_operand.vmem [shape: bf16[640,64], index: 1, kind: input, shape index: {}]   ;;  %s1349_s2 = inlined_call_operand.vmem [shape: f32[1,64], index: 2, kind: input, shape index: {}]   ;;  %s1350_s3 = inlined_call_operand.vmem [shape: f32[1,64], index: 3, kind: input, shape index: {}]   ;;  %s1351_s4 = inlined_call_operand.vmem [shape: bf16[128,64], index: 4, kind: output, shape index: {}]  }
   0x1   :  { %s1108_s17 = smov 0   ;;  %s1110_s18 = smov 0  }
   0x2   :  { %s1112_s19 = smov 0  }
   0x3 LB: > { %s26_s20 = sadd.s32 1, %s1072_s18  ;;  %p49_p1 = scmp.ne.s32.totalorder %s1064_s16, %s1060_s15  ;;  %s1076_s19 = sphi %s1112_s19, %s14_s19   ;;  %s1072_s18 = sphi %s1110_s18, %s1355_s18   ;;  %s1068_s17 = sphi %s1108_s17, %s1354_s17   ;;  %s1064_s16 = sphi %s1106_s16, %s1353_s16   ;;  %s1060_s15 = sphi %s1104_s15, %s1352_s15  }
   0x4   : > { %p27_p0 = scmp.ge.s32.totalorder %s26_s20, 5  ;;  %p50_p2 = scmp.eq.s32.totalorder %s1076_s19, 0 }
   0x5   : > { %s42_s22 = sadd.s32 1, %s1064_s16  ;;  %p878_p5 = scmp.ge.s32.totalorder %s1076_s19, 5 }
   0x6   : > { %s1357_s20 = smov (%p27_p0, %s26_s20), 0  ;;  %p51_p3 = por %p50_p2, %p49_p1 }
   0x7   : > { %s38_s21 = ssub.s32 %s1072_s18, %s1357_s20  ;;  %195 = sbr.rel (%p878_p5) target bundleno = 32 (0x20), region = 24 }
   0x8   : > { %p40_p4 = scmp.eq.s32.totalorder %s38_s21, 0 }
   0xa   : > { %s1139_s23 = scalar_select %p40_p4, %s1064_s16, %s42_s22  }
   0xc   : > { %198 = sbr.rel (!%p51_p3) target bundleno = 32 (0x20), region = 28  ;;  %s200_s24 = sand.u32 (%p51_p3), 1, %s1064_s16  }
   0xd   : > { %s880_s25 = sshll.u32 (%p51_p3), %s1072_s18, 2  ;;  %s879_s26 = sshll.u32 (%p51_p3), %s200_s24, 6 }
   0xe   : > { %s1147_s29 = scalar_lea.vmem (%p51_p3), %s1347_s0, %s880_s25  ;;  %s202_s30 = scalar_lea.vmem (%p51_p3), [#allocation3], %s879_s26 }
   0xf   : > { %v224_v0 = vld [vmem:[%s1147_s29] sm:$0xf] (%p51_p3)  ;;  %v226_v1 = vld [vmem:[%s1147_s29 + $0x14] sm:$0xf] (%p51_p3)  ;;  %v228_v2 = vld [vmem:[%s1147_s29 + $0x28] sm:$0xf] (%p51_p3) }
  0x10   : > { %225 = vst [vmem:[%s202_s30] sm:$0xf] (%p51_p3), %v224_v0  ;;  %v230_v3 = vld [vmem:[%s1147_s29 + $0x3c] sm:$0xf] (%p51_p3)  ;;  %v232_v4 = vld [vmem:[%s1147_s29 + $0x50] sm:$0xf] (%p51_p3) }
  0x11   : > { %227 = vst [vmem:[%s202_s30 + $0x4] sm:$0xf] %v226_v1  ;;  %v234_v5 = vld [vmem:[%s1147_s29 + $0x64] sm:$0xf]  ;;  %v236_v6 = vld [vmem:[%s1147_s29 + $0x78] sm:$0xf] }
  0x12   : > { %229 = vst [vmem:[%s202_s30 + $0x8] sm:$0xf] %v228_v2  ;;  %v238_v7 = vld [vmem:[%s1147_s29 + $0x8c] sm:$0xf]  ;;  %v240_v8 = vld [vmem:[%s1147_s29 + $0xa0] sm:$0xf] }
  0x13   : > { %231 = vst [vmem:[%s202_s30 + $0xc] sm:$0xf] %v230_v3  ;;  %v242_v9 = vld [vmem:[%s1147_s29 + $0xb4] sm:$0xf]  ;;  %v244_v10 = vld [vmem:[%s1147_s29 + $0xc8] sm:$0xf] }
  0x14   : > { %233 = vst [vmem:[%s202_s30 + $0x10] sm:$0xf] %v232_v4  ;;  %v246_v11 = vld [vmem:[%s1147_s29 + $0xdc] sm:$0xf]  ;;  %v248_v12 = vld [vmem:[%s1147_s29 + $0xf0] sm:$0xf] }
  0x15   : > { %235 = vst [vmem:[%s202_s30 + $0x14] sm:$0xf] %v234_v5  ;;  %v250_v13 = vld [vmem:[%s1147_s29 + $0x104] sm:$0xf]  ;;  %v252_v14 = vld [vmem:[%s1147_s29 + $0x118] sm:$0xf] }
  0x16   : > { %237 = vst [vmem:[%s202_s30 + $0x18] sm:$0xf] %v236_v6  ;;  %v254_v15 = vld [vmem:[%s1147_s29 + $0x12c] sm:$0xf] }
  0x17   : > { %239 = vst [vmem:[%s202_s30 + $0x1c] sm:$0xf] %v238_v7 }
  0x18   : > { %241 = vst [vmem:[%s202_s30 + $0x20] sm:$0xf] %v240_v8 }
  0x19   : > { %243 = vst [vmem:[%s202_s30 + $0x24] sm:$0xf] %v242_v9 }
  0x1a   : > { %245 = vst [vmem:[%s202_s30 + $0x28] sm:$0xf] %v244_v10 }
  0x1b   : > { %247 = vst [vmem:[%s202_s30 + $0x2c] sm:$0xf] %v246_v11 }
  0x1c   : > { %249 = vst [vmem:[%s202_s30 + $0x30] sm:$0xf] %v248_v12 }
  0x1d   : > { %251 = vst [vmem:[%s202_s30 + $0x34] sm:$0xf] %v250_v13 }
  0x1e   : > { %253 = vst [vmem:[%s202_s30 + $0x38] sm:$0xf] %v252_v14 }
  0x1f   : > { %255 = vst [vmem:[%s202_s30 + $0x3c] sm:$0xf] %v254_v15 }
  0x20 PF: > { %p881_p6 = scmp.ge.s32.totalorder %s1076_s19, 1  ;;  %p322_p7 = scmp.lt.s32.totalorder %s1076_s19, 6 }
  0x22   : > { %p323_p8 = pnand %p881_p6, %p322_p7 }
  0x23   : > { %s329_s5 = sand.u32 (!%p323_p8), 1, %s1060_s15   ;;  %s883_s6 = sshll.u32 (!%p323_p8), %s1068_s17, 4 }
  0x24   : > { %326 = sbr.rel (%p323_p8) target bundleno = 282 (0x11a), region = 73  ;;  %s882_s7 = sshll.u32 (!%p323_p8), %s329_s5, 6 }
  0x25   : > { %p373_p9 = scmp.lt.s32.totalorder (!%p323_p8), %s883_s6, 79  ;;  %s1174_s12 = scalar_lea.vmem (!%p323_p8), [#allocation3], %s882_s7 }
  0x26   : > { %p885_p10 = scmp.ne.s32.totalorder (!%p323_p8), %s1068_s17, 0 }
  0x29   : > { %s1359_s6 = smov (!%p373_p9, %s883_s6), 79  ;;  %399 = sbr.rel (%p885_p10) target bundleno = 63 (0x3f), region = 81 }
  0x2a   : > { %s884_s8 = sshll.u32 %s1359_s6, 2 }
  0x2b   : > { %s1172_s11 = scalar_lea.vmem %s1348_s1, %s884_s8 }
  0x2e   : > { %vm400_vm0 = vcmask 523264   ;;  %v1078_v16 = vmov 0.0  }
  0x2f   : > { %401 = vst.msk [vmem:[#allocation2] sm:$0xff] %vm400_vm0, %v1078_v16 }
  0x30   : > { %402 = vst.msk [vmem:[#allocation2 + $0x8] sm:$0xff] %vm400_vm0, %v1078_v16 }
  0x31   : > { %403 = vst.msk [vmem:[#allocation2 + $0x10] sm:$0xff] %vm400_vm0, %v1078_v16 }
  0x32   : > { %404 = vst.msk [vmem:[#allocation2 + $0x18] sm:$0xff] %vm400_vm0, %v1078_v16 }
  0x33   : > { %405 = vst.msk [vmem:[#allocation2 + $0x20] sm:$0xff] %vm400_vm0, %v1078_v16 }
  0x34   : > { %406 = vst.msk [vmem:[#allocation2 + $0x28] sm:$0xff] %vm400_vm0, %v1078_v16 }
  0x35   : > { %407 = vst.msk [vmem:[#allocation2 + $0x30] sm:$0xff] %vm400_vm0, %v1078_v16 }
  0x36   : > { %408 = vst.msk [vmem:[#allocation2 + $0x38] sm:$0xff] %vm400_vm0, %v1078_v16 }
  0x37   : > { %409 = vst.msk [vmem:[#allocation2 + $0x40] sm:$0xff] %vm400_vm0, %v1078_v16 }
  0x38   : > { %410 = vst.msk [vmem:[#allocation2 + $0x48] sm:$0xff] %vm400_vm0, %v1078_v16 }
  0x39   : > { %411 = vst.msk [vmem:[#allocation2 + $0x50] sm:$0xff] %vm400_vm0, %v1078_v16 }
  0x3a   : > { %412 = vst.msk [vmem:[#allocation2 + $0x58] sm:$0xff] %vm400_vm0, %v1078_v16 }
  0x3b   : > { %413 = vst.msk [vmem:[#allocation2 + $0x60] sm:$0xff] %vm400_vm0, %v1078_v16 }
  0x3c   : > { %414 = vst.msk [vmem:[#allocation2 + $0x68] sm:$0xff] %vm400_vm0, %v1078_v16 }
  0x3d   : > { %415 = vst.msk [vmem:[#allocation2 + $0x70] sm:$0xff] %vm400_vm0, %v1078_v16 }
  0x3e   : > { %416 = vst.msk [vmem:[#allocation2 + $0x78] sm:$0xff] %vm400_vm0, %v1078_v16 }
  0x3f PF: > { %v970_v17 = vld [vmem:[%s1172_s11 + $0x38] sm:$0xff]  ;;  %v969_v18 = vld [vmem:[%s1172_s11 + $0x30] sm:$0xff]  ;;  %v968_v19 = vld [vmem:[%s1172_s11 + $0x28] sm:$0xff]  ;;  %vm626_vm1 = vcmask 523264   ;;  %p950_p11 = scmp.ne.s32.totalorder %s1068_s17, 4 }
  0x40   : > { %561 = vmatpush.bf16.msra.mxu0 %v970_v17  ;;  %971 = vmatpush.bf16.msra.mxu1 %v970_v17  ;;  %v967_v20 = vld [vmem:[%s1172_s11 + $0x20] sm:$0xff]  ;;  %v966_v21 = vld [vmem:[%s1172_s11 + $0x18] sm:$0xff]  ;;  %v965_v22 = vld [vmem:[%s1172_s11 + $0x10] sm:$0xff] }
  0x41   : > { %972 = vmatpush.bf16.msra.mxu2 %v970_v17  ;;  %973 = vmatpush.bf16.msra.mxu3 %v970_v17  ;;  %v964_v23 = vld [vmem:[%s1172_s11 + $0x8] sm:$0xff]  ;;  %v963_v24 = vld [vmem:[%s1172_s11] sm:$0xff]  ;;  %v957_v26 = vld [vmem:[%s1174_s12 + $0x10] sm:$0xff] }
  0x42   : > { %v955_v25 = vld [vmem:[%s1174_s12] sm:$0xff]  ;;  %v961_v28 = vld [vmem:[%s1174_s12 + $0x30] sm:$0xff]  ;;  %v956_v29 = vld [vmem:[%s1174_s12 + $0x8] sm:$0xff] }
  0x43   : > { %v959_v27 = vld [vmem:[%s1174_s12 + $0x20] sm:$0xff]  ;;  %v958_v30 = vld [vmem:[%s1174_s12 + $0x18] sm:$0xff]  ;;  %v960_v31 = vld [vmem:[%s1174_s12 + $0x28] sm:$0xff] }
  0x44   : > { %562 = vmatpush.bf16.msra.mxu0 %v969_v18  ;;  %974 = vmatpush.bf16.msra.mxu1 %v969_v18  ;;  %v962_v32 = vld [vmem:[%s1174_s12 + $0x38] sm:$0xff]  ;;  %v417_v33 = vld [vmem:[#allocation2] sm:$0xff]  ;;  %v418_v41 = vld [vmem:[#allocation2 + $0x8] sm:$0xff] }
  0x45   : > { %975 = vmatpush.bf16.msra.mxu2 %v969_v18  ;;  %976 = vmatpush.bf16.msra.mxu3 %v969_v18  ;;  %v421_v34 = vld [vmem:[#allocation2 + $0x20] sm:$0xff]  ;;  %v422_v42 = vld [vmem:[#allocation2 + $0x28] sm:$0xff]  ;;  %v419_v53 = vld [vmem:[#allocation2 + $0x10] sm:$0xff] }
  0x46   : > { %v425_v39 = vld [vmem:[#allocation2 + $0x40] sm:$0xff]  ;;  %v426_v51 = vld [vmem:[#allocation2 + $0x48] sm:$0xff]  ;;  %v423_v54 = vld [vmem:[#allocation2 + $0x30] sm:$0xff] }
  0x47   : > { %v429_v40 = vld [vmem:[#allocation2 + $0x60] sm:$0xff]  ;;  %v430_v52 = vld [vmem:[#allocation2 + $0x68] sm:$0xff]  ;;  %v427_v63 = vld [vmem:[#allocation2 + $0x50] sm:$0xff] }
  0x48   : > { %563 = vmatpush.bf16.msra.mxu0 %v968_v19  ;;  %977 = vmatpush.bf16.msra.mxu1 %v968_v19  ;;  %v431_v0 = vld [vmem:[#allocation2 + $0x70] sm:$0xff]  ;;  %v420_v1 = vld [vmem:[#allocation2 + $0x18] sm:$0xff] }
  0x49   : > { %978 = vmatpush.bf16.msra.mxu2 %v968_v19  ;;  %979 = vmatpush.bf16.msra.mxu3 %v968_v19  ;;  %v424_v2 = vld [vmem:[#allocation2 + $0x38] sm:$0xff] }
  0x4a   : > { %v428_v11 = vld [vmem:[#allocation2 + $0x58] sm:$0xff] }
  0x4b   : > { %v432_v12 = vld [vmem:[#allocation2 + $0x78] sm:$0xff] }
  0x4c   : > { %564 = vmatpush.bf16.msra.mxu0 %v967_v20  ;;  %980 = vmatpush.bf16.msra.mxu1 %v967_v20 }
  0x4d   : > { %981 = vmatpush.bf16.msra.mxu2 %v967_v20  ;;  %982 = vmatpush.bf16.msra.mxu3 %v967_v20 }
  0x50   : > { %565 = vmatpush.bf16.msra.mxu0 %v966_v21  ;;  %983 = vmatpush.bf16.msra.mxu1 %v966_v21 }
  0x51   : > { %984 = vmatpush.bf16.msra.mxu2 %v966_v21  ;;  %985 = vmatpush.bf16.msra.mxu3 %v966_v21 }
  0x54   : > { %566 = vmatpush.bf16.msra.mxu0 %v965_v22  ;;  %986 = vmatpush.bf16.msra.mxu1 %v965_v22 }
  0x55   : > { %987 = vmatpush.bf16.msra.mxu2 %v965_v22  ;;  %988 = vmatpush.bf16.msra.mxu3 %v965_v22 }
  0x58   : > { %567 = vmatpush.bf16.msra.mxu0 %v964_v23  ;;  %989 = vmatpush.bf16.msra.mxu1 %v964_v23 }
  0x59   : > { %990 = vmatpush.bf16.msra.mxu2 %v964_v23  ;;  %991 = vmatpush.bf16.msra.mxu3 %v964_v23 }
  0x5c   : > { %568 = vmatpush.bf16.msra.mxu0 %v963_v24  ;;  %992 = vmatpush.bf16.msra.mxu1 %v963_v24 }
  0x5d   : > { %993 = vmatpush.bf16.msra.mxu2 %v963_v24  ;;  %994 = vmatpush.bf16.msra.mxu3 %v963_v24 }
  0x5f   : > { %569 = vmatmul.bf16.vlgmr.msra.gmra.mxu0 %v955_v25  ;;  %579 = vmatmul.bf16.vlgmr.msra.gmra.mxu1 %v957_v26 }
  0x60   : > { %589 = vmatmul.bf16.vlgmr.msra.gmra.mxu2 %v959_v27  ;;  %599 = vmatmul.bf16.vlgmr.msra.gmra.mxu3 %v961_v28 }
  0x6f   : > { %574 = vmatmul.bf16.gmra.mxu0 %v956_v29  ;;  %584 = vmatmul.bf16.gmra.mxu1 %v958_v30 }
  0x70   : > { %594 = vmatmul.bf16.gmra.mxu2 %v960_v31  ;;  %604 = vmatmul.bf16.gmra.mxu3 %v962_v32 }
  0xdc   : > { %v570_v35 = vpop.f32.mrf.mxu0  ;;  %v580_v36 = vpop.f32.mrf.mxu1 }
  0xdd   : > { %v610_v37 = vadd.f32 %v570_v35, %v417_v33  ;;  %v614_v38 = vadd.f32 %v580_v36, %v421_v34 }
  0xdf   : > { %627 = vst.msk [vmem:[#allocation2] sm:$0xff] %vm626_vm1, %v610_v37 }
  0xe0   : > { %631 = vst.msk [vmem:[#allocation2 + $0x20] sm:$0xff] %vm626_vm1, %v614_v38 }
  0xe3   : > { %v590_v43 = vpop.f32.mrf.mxu2  ;;  %v600_v44 = vpop.f32.mrf.mxu3 }
  0xe4   : > { %v618_v45 = vadd.f32 %v590_v43, %v425_v39  ;;  %v622_v46 = vadd.f32 %v600_v44, %v429_v40  ;;  %v572_v47 = vpop.f32.mrf.mxu0  ;;  %v582_v48 = vpop.f32.mrf.mxu1 }
  0xe5   : > { %v611_v49 = vadd.f32 %v572_v47, %v418_v41  ;;  %v615_v50 = vadd.f32 %v582_v48, %v422_v42 }
  0xe6   : > { %635 = vst.msk [vmem:[#allocation2 + $0x40] sm:$0xff] %vm626_vm1, %v618_v45 }
  0xe7   : > { %639 = vst.msk [vmem:[#allocation2 + $0x60] sm:$0xff] %vm626_vm1, %v622_v46 }
  0xe8   : > { %628 = vst.msk [vmem:[#allocation2 + $0x8] sm:$0xff] %vm626_vm1, %v611_v49 }
  0xe9   : > { %632 = vst.msk [vmem:[#allocation2 + $0x28] sm:$0xff] %vm626_vm1, %v615_v50 }
  0xeb   : > { %v592_v55 = vpop.f32.mrf.mxu2  ;;  %v602_v56 = vpop.f32.mrf.mxu3 }
  0xec   : > { %v619_v57 = vadd.f32 %v592_v55, %v426_v51  ;;  %v623_v58 = vadd.f32 %v602_v56, %v430_v52  ;;  %v575_v59 = vpop.f32.mrf.mxu0  ;;  %v585_v60 = vpop.f32.mrf.mxu1 }
  0xed   : > { %v612_v61 = vadd.f32 %v575_v59, %v419_v53  ;;  %v616_v62 = vadd.f32 %v585_v60, %v423_v54 }
  0xee   : > { %636 = vst.msk [vmem:[#allocation2 + $0x48] sm:$0xff] %vm626_vm1, %v619_v57 }
  0xef   : > { %640 = vst.msk [vmem:[#allocation2 + $0x68] sm:$0xff] %vm626_vm1, %v623_v58 }
  0xf0   : > { %629 = vst.msk [vmem:[#allocation2 + $0x10] sm:$0xff] %vm626_vm1, %v612_v61 }
  0xf1   : > { %633 = vst.msk [vmem:[#allocation2 + $0x30] sm:$0xff] %vm626_vm1, %v616_v62 }
  0xf3   : > { %v595_v3 = vpop.f32.mrf.mxu2  ;;  %v605_v4 = vpop.f32.mrf.mxu3 }
  0xf4   : > { %v620_v5 = vadd.f32 %v595_v3, %v427_v63  ;;  %v624_v6 = vadd.f32 %v605_v4, %v431_v0  ;;  %v577_v7 = vpop.f32.mrf.mxu0  ;;  %v587_v8 = vpop.f32.mrf.mxu1 }
  0xf5   : > { %v613_v9 = vadd.f32 %v577_v7, %v420_v1  ;;  %v617_v10 = vadd.f32 %v587_v8, %v424_v2 }
  0xf6   : > { %637 = vst.msk [vmem:[#allocation2 + $0x50] sm:$0xff] %vm626_vm1, %v620_v5 }
  0xf7   : > { %641 = vst.msk [vmem:[#allocation2 + $0x70] sm:$0xff] %vm626_vm1, %v624_v6 }
  0xf8   : > { %630 = vst.msk [vmem:[#allocation2 + $0x18] sm:$0xff] %vm626_vm1, %v613_v9 }
  0xf9   : > { %634 = vst.msk [vmem:[#allocation2 + $0x38] sm:$0xff] %vm626_vm1, %v617_v10 }
  0xfb   : > { %v597_v13 = vpop.f32.mrf.mxu2  ;;  %v607_v14 = vpop.f32.mrf.mxu3  ;;  %646 = sbr.rel (%p950_p11) target bundleno = 282 (0x11a), region = 85 }
  0xfc   : > { %v621_v15 = vadd.f32 %v597_v13, %v428_v11  ;;  %v625_v16 = vadd.f32 %v607_v14, %v432_v12 }
  0xfe   : > { %638 = vst.msk [vmem:[#allocation2 + $0x58] sm:$0xff] %vm626_vm1, %v621_v15 }
  0xff   : > { %642 = vst.msk [vmem:[#allocation2 + $0x78] sm:$0xff] %vm626_vm1, %v625_v16 }
 0x100   : > { %v647_v17 = vld [vmem:[#allocation2] sm:$0xff]  ;;  %v648_v20 = vld [vmem:[#allocation2 + $0x8] sm:$0xff]  ;;  %v649_v23 = vld [vmem:[#allocation2 + $0x10] sm:$0xff]  ;;  %vm735_vm2 = vcmask 519168  }
 0x101   : > { %v1229_v18 = vld [vmem:[%s1349_s2] ss:$0 sm:$0xff]  ;;  %v650_v24 = vld [vmem:[#allocation2 + $0x18] sm:$0xff]  ;;  %v652_v29 = vld [vmem:[#allocation2 + $0x28] sm:$0xff] }
 0x102   : > { %v1234_v19 = vld [vmem:[%s1350_s3] ss:$0 sm:$0xff]  ;;  %v667_v21 = vmul.f32 %v1229_v18, %v647_v17  ;;  %v668_v22 = vmul.f32 %v1229_v18, %v648_v20  ;;  %v669_v26 = vmul.f32 %v1229_v18, %v649_v23  ;;  %v670_v27 = vmul.f32 %v1229_v18, %v650_v24  ;;  %v653_v30 = vld [vmem:[#allocation2 + $0x30] sm:$0xff]  ;;  %v654_v31 = vld [vmem:[#allocation2 + $0x38] sm:$0xff] }
 0x103   : > { %v651_v25 = vld [vmem:[#allocation2 + $0x20] sm:$0xff]  ;;  %v672_v34 = vmul.f32 %v1229_v18, %v652_v29  ;;  %v673_v35 = vmul.f32 %v1229_v18, %v653_v30  ;;  %v674_v39 = vmul.f32 %v1229_v18, %v654_v31  ;;  %v656_v49 = vld [vmem:[#allocation2 + $0x48] sm:$0xff]  ;;  %v657_v54 = vld [vmem:[#allocation2 + $0x50] sm:$0xff] }
 0x104   : > { %v671_v28 = vmul.f32 %v1229_v18, %v651_v25  ;;  %v687_v32 = vadd.f32 %v1234_v19, %v667_v21  ;;  %v688_v33 = vadd.f32 %v1234_v19, %v668_v22  ;;  %v689_v36 = vadd.f32 %v1234_v19, %v669_v26  ;;  %v655_v48 = vld [vmem:[#allocation2 + $0x40] sm:$0xff]  ;;  %v660_v61 = vld [vmem:[#allocation2 + $0x68] sm:$0xff]  ;;  %v661_v62 = vld [vmem:[#allocation2 + $0x70] sm:$0xff] }
 0x105   : > { %v690_v37 = vadd.f32 %v1234_v19, %v670_v27  ;;  %v692_v42 = vadd.f32 %v1234_v19, %v672_v34  ;;  %v693_v43 = vadd.f32 %v1234_v19, %v673_v35  ;;  %v694_v47 = vadd.f32 %v1234_v19, %v674_v39  ;;  %v658_v55 = vld [vmem:[#allocation2 + $0x58] sm:$0xff]  ;;  %v659_v56 = vld [vmem:[#allocation2 + $0x60] sm:$0xff] }
 0x106   : > { %v691_v38 = vadd.f32 %v1234_v19, %v671_v28  ;;  %v703_v40 = vmax.f32 %v687_v32, 0.0  ;;  %v704_v41 = vmax.f32 %v688_v33, 0.0  ;;  %v705_v44 = vmax.f32 %v689_v36, 0.0  ;;  %v662_v3 = vld [vmem:[#allocation2 + $0x78] sm:$0xff] }
 0x107   : > { %v706_v45 = vmax.f32 %v690_v37, 0.0  ;;  %v708_v52 = vmax.f32 %v692_v42, 0.0  ;;  %v709_v53 = vmax.f32 %v693_v43, 0.0  ;;  %v710_v60 = vmax.f32 %v694_v47, 0.0 }
 0x108   : > { %v707_v46 = vmax.f32 %v691_v38, 0.0  ;;  %v719_v50 = vpack.c.bf16 %v703_v40, %v703_v40  ;;  %v720_v51 = vpack.c.bf16 %v704_v41, %v704_v41  ;;  %v721_v57 = vpack.c.bf16 %v705_v44, %v705_v44 }
 0x109   : > { %v722_v58 = vpack.c.bf16 %v706_v45, %v706_v45  ;;  %v724_v63 = vpack.c.bf16 %v708_v52, %v708_v52  ;;  %v725_v0 = vpack.c.bf16 %v709_v53, %v709_v53  ;;  %v675_v1 = vmul.f32 %v1229_v18, %v655_v48 }
 0x10a   : > { %v723_v59 = vpack.c.bf16 %v707_v46, %v707_v46  ;;  %736 = vst.msk [vmem:[%s1351_s4] sm:$0xf] %vm735_vm2, %v719_v50  ;;  %v676_v2 = vmul.f32 %v1229_v18, %v656_v49  ;;  %v726_v4 = vpack.c.bf16 %v710_v60, %v710_v60  ;;  %v677_v5 = vmul.f32 %v1229_v18, %v657_v54 }
 0x10b   : > { %737 = vst.msk [vmem:[%s1351_s4 + $0x4] sm:$0xf] %vm735_vm2, %v720_v51  ;;  %v678_v6 = vmul.f32 %v1229_v18, %v658_v55  ;;  %v679_v7 = vmul.f32 %v1229_v18, %v659_v56  ;;  %v695_v8 = vadd.f32 %v1234_v19, %v675_v1  ;;  %v680_v10 = vmul.f32 %v1229_v18, %v660_v61 }
 0x10c   : > { %738 = vst.msk [vmem:[%s1351_s4 + $0x8] sm:$0xf] %vm735_vm2, %v721_v57  ;;  %v696_v9 = vadd.f32 %v1234_v19, %v676_v2  ;;  %v681_v11 = vmul.f32 %v1229_v18, %v661_v62  ;;  %v697_v12 = vadd.f32 %v1234_v19, %v677_v5  ;;  %v682_v15 = vmul.f32 %v1229_v18, %v662_v3 }
 0x10d   : > { %739 = vst.msk [vmem:[%s1351_s4 + $0xc] sm:$0xf] %vm735_vm2, %v722_v58  ;;  %v698_v13 = vadd.f32 %v1234_v19, %v678_v6  ;;  %v699_v14 = vadd.f32 %v1234_v19, %v679_v7  ;;  %v711_v16 = vmax.f32 %v695_v8, 0.0  ;;  %v700_v20 = vadd.f32 %v1234_v19, %v680_v10 }
 0x10e   : > { %740 = vst.msk [vmem:[%s1351_s4 + $0x10] sm:$0xf] %vm735_vm2, %v723_v59  ;;  %v712_v17 = vmax.f32 %v696_v9, 0.0  ;;  %v701_v21 = vadd.f32 %v1234_v19, %v681_v11  ;;  %v713_v22 = vmax.f32 %v697_v12, 0.0  ;;  %v702_v18 = vadd.f32 %v1234_v19, %v682_v15 }
 0x10f   : > { %741 = vst.msk [vmem:[%s1351_s4 + $0x14] sm:$0xf] %vm735_vm2, %v724_v63  ;;  %v714_v23 = vmax.f32 %v698_v13, 0.0  ;;  %v715_v24 = vmax.f32 %v699_v14, 0.0  ;;  %v727_v25 = vpack.c.bf16 %v711_v16, %v711_v16  ;;  %v716_v27 = vmax.f32 %v700_v20, 0.0 }
 0x110   : > { %742 = vst.msk [vmem:[%s1351_s4 + $0x18] sm:$0xf] %vm735_vm2, %v725_v0  ;;  %v728_v26 = vpack.c.bf16 %v712_v17, %v712_v17  ;;  %v717_v28 = vmax.f32 %v701_v21, 0.0  ;;  %v729_v29 = vpack.c.bf16 %v713_v22, %v713_v22  ;;  %v718_v31 = vmax.f32 %v702_v18, 0.0 }
 0x111   : > { %743 = vst.msk [vmem:[%s1351_s4 + $0x1c] sm:$0xf] %vm735_vm2, %v726_v4  ;;  %v730_v30 = vpack.c.bf16 %v714_v23, %v714_v23  ;;  %v731_v19 = vpack.c.bf16 %v715_v24, %v715_v24  ;;  %v732_v32 = vpack.c.bf16 %v716_v27, %v716_v27 }
 0x112   : > { %744 = vst.msk [vmem:[%s1351_s4 + $0x20] sm:$0xf] %vm735_vm2, %v727_v25  ;;  %v733_v33 = vpack.c.bf16 %v717_v28, %v717_v28  ;;  %v734_v34 = vpack.c.bf16 %v718_v31, %v718_v31 }
 0x113   : > { %745 = vst.msk [vmem:[%s1351_s4 + $0x24] sm:$0xf] %vm735_vm2, %v728_v26 }
 0x114   : > { %746 = vst.msk [vmem:[%s1351_s4 + $0x28] sm:$0xf] %vm735_vm2, %v729_v29 }
 0x115   : > { %747 = vst.msk [vmem:[%s1351_s4 + $0x2c] sm:$0xf] %vm735_vm2, %v730_v30 }
 0x116   : > { %748 = vst.msk [vmem:[%s1351_s4 + $0x30] sm:$0xf] %vm735_vm2, %v731_v19 }
 0x117   : > { %749 = vst.msk [vmem:[%s1351_s4 + $0x34] sm:$0xf] %vm735_vm2, %v732_v32 }
 0x118   : > { %750 = vst.msk [vmem:[%s1351_s4 + $0x38] sm:$0xf] %vm735_vm2, %v733_v33 }
 0x119   : > { %751 = vst.msk [vmem:[%s1351_s4 + $0x3c] sm:$0xf] %vm735_vm2, %v734_v34 }
 0x11a PF: > { %s14_s19 = sadd.s32 1, %s1076_s19   ;;  %s1352_s15 = smov %s1064_s16 }
 0x11b   : > { %p11_p12 = scmp.ge.s32.totalorder %s14_s19, 7   ;;  %s1353_s16 = smov %s1139_s23 }
 0x11c   : > { %s1354_s17 = smov %s1072_s18  ;;  %s1355_s18 = smov %s1357_s20 }
 0x11d   :  { %13 = sbr.rel (!%p11_p12) target bundleno = 3 (0x3), region = 129 }

// kernel: _lambda_.29
= control target key start
LH: loop header
LB: loop body
LE: loop exit
PB: predicated region body
PF: predicated region fallthrough
CT: control target
= control target key end

     0   :  { %s820_s15 = smov 0   ;;  %s822_s16 = smov 0   ;;  %s916_s0 = inlined_call_operand.vmem [shape: bf16[32,640], index: 0, kind: input, shape index: {}]   ;;  %s917_s1 = inlined_call_operand.vmem [shape: bf16[640,128], index: 1, kind: input, shape index: {}]   ;;  %s918_s2 = inlined_call_operand.vmem [shape: f32[1,128], index: 2, kind: input, shape index: {}]   ;;  %s919_s3 = inlined_call_operand.vmem [shape: f32[1,128], index: 3, kind: input, shape index: {}]   ;;  %s920_s4 = inlined_call_operand.vmem [shape: bf16[32,128], index: 4, kind: output, shape index: {}]  }
   0x1   :  { %s824_s17 = smov 0   ;;  %s826_s18 = smov 0  }
   0x2   :  { %s828_s19 = smov 0  }
   0x3 LB: > { %s26_s20 = sadd.s32 1, %s788_s18  ;;  %p49_p1 = scmp.ne.s32.totalorder %s780_s16, %s776_s15  ;;  %s792_s19 = sphi %s828_s19, %s14_s19   ;;  %s788_s18 = sphi %s826_s18, %s924_s18   ;;  %s784_s17 = sphi %s824_s17, %s923_s17   ;;  %s780_s16 = sphi %s822_s16, %s922_s16   ;;  %s776_s15 = sphi %s820_s15, %s921_s15  }
   0x4   : > { %p27_p0 = scmp.ge.s32.totalorder %s26_s20, 5  ;;  %p50_p2 = scmp.eq.s32.totalorder %s792_s19, 0 }
   0x5   : > { %s42_s22 = sadd.s32 1, %s780_s16  ;;  %p629_p5 = scmp.ge.s32.totalorder %s792_s19, 5 }
   0x6   : > { %s926_s20 = smov (%p27_p0, %s26_s20), 0  ;;  %p51_p3 = por %p50_p2, %p49_p1 }
   0x7   : > { %s38_s21 = ssub.s32 %s788_s18, %s926_s20  ;;  %195 = sbr.rel (%p629_p5) target bundleno = 20 (0x14), region = 24 }
   0x8   : > { %p40_p4 = scmp.eq.s32.totalorder %s38_s21, 0 }
   0xa   : > { %s855_s23 = scalar_select %p40_p4, %s780_s16, %s42_s22  }
   0xc   : > { %198 = sbr.rel (!%p51_p3) target bundleno = 20 (0x14), region = 28  ;;  %s200_s24 = sand.u32 (%p51_p3), 1, %s780_s16  }
   0xd   : > { %s631_s25 = sshll.u32 (%p51_p3), %s788_s18, 2  ;;  %s630_s26 = sshll.u32 (%p51_p3), %s200_s24, 4 }
   0xe   : > { %s207_s29 = scalar_lea.vmem (%p51_p3), %s916_s0, %s631_s25  ;;  %s202_s30 = scalar_lea.vmem (%p51_p3), [#allocation3], %s630_s26 }
   0xf   : > { %v224_v0 = vld [vmem:[%s207_s29] sm:$0xf] (%p51_p3)  ;;  %v226_v1 = vld [vmem:[%s207_s29 + $0x14] sm:$0xf] (%p51_p3)  ;;  %v228_v2 = vld [vmem:[%s207_s29 + $0x28] sm:$0xf] (%p51_p3) }
  0x10   : > { %225 = vst [vmem:[%s202_s30] sm:$0xf] (%p51_p3), %v224_v0  ;;  %v230_v3 = vld [vmem:[%s207_s29 + $0x3c] sm:$0xf] (%p51_p3) }
  0x11   : > { %227 = vst [vmem:[%s202_s30 + $0x4] sm:$0xf] %v226_v1 }
  0x12   : > { %229 = vst [vmem:[%s202_s30 + $0x8] sm:$0xf] %v228_v2 }
  0x13   : > { %231 = vst [vmem:[%s202_s30 + $0xc] sm:$0xf] %v230_v3 }
  0x14 PF: > { %p632_p6 = scmp.ge.s32.totalorder %s792_s19, 1  ;;  %p274_p7 = scmp.lt.s32.totalorder %s792_s19, 6 }
  0x16   : > { %p275_p8 = pnand %p632_p6, %p274_p7 }
  0x17   : > { %s281_s5 = sand.u32 (!%p275_p8), 1, %s776_s15   ;;  %s634_s6 = sshll.u32 (!%p275_p8), %s784_s17, 4 }
  0x18   : > { %278 = sbr.rel (%p275_p8) target bundleno = 225 (0xe1), region = 73  ;;  %s867_s7 = sshll.u32 (!%p275_p8), %s281_s5, 4 }
  0x19   : > { %p325_p9 = scmp.lt.s32.totalorder (!%p275_p8), %s634_s6, 79  ;;  %s283_s12 = scalar_lea.vmem (!%p275_p8), [#allocation3], %s867_s7 }
  0x1a   : > { %p636_p10 = scmp.ne.s32.totalorder (!%p275_p8), %s784_s17, 0 }
  0x1d   : > { %s928_s6 = smov (!%p325_p9, %s634_s6), 79  ;;  %351 = sbr.rel (%p636_p10) target bundleno = 39 (0x27), region = 81 }
  0x1e   : > { %s635_s8 = sshll.u32 %s928_s6, 2 }
  0x1f   : > { %s872_s11 = scalar_lea.vmem %s917_s1, %s635_s8 }
  0x22   : > { %v794_v4 = vmov 0.0  }
  0x23   : > { %352 = vst [vmem:[#allocation2 + $0x10] sm:$0xff] %v794_v4 }
  0x24   : > { %353 = vst [vmem:[#allocation2] sm:$0xff] %v794_v4 }
  0x25   : > { %354 = vst [vmem:[#allocation2 + $0x18] sm:$0xff] %v794_v4 }
  0x26   : > { %355 = vst [vmem:[#allocation2 + $0x8] sm:$0xff] %v794_v4 }
  0x27 PF: > { %v691_v5 = vld [vmem:[%s872_s11 + $0x38] sm:$0xff]  ;;  %v690_v6 = vld [vmem:[%s872_s11 + $0x30] sm:$0xff]  ;;  %v689_v7 = vld [vmem:[%s872_s11 + $0x28] sm:$0xff]  ;;  %p677_p11 = scmp.ne.s32.totalorder %s784_s17, 4 }
  0x28   : > { %440 = vmatpush.bf16.msra.mxu0 %v691_v5  ;;  %703 = vmatpush.bf16.msra.mxu1 %v691_v5  ;;  %v688_v8 = vld [vmem:[%s872_s11 + $0x20] sm:$0xff]  ;;  %v687_v9 = vld [vmem:[%s872_s11 + $0x18] sm:$0xff]  ;;  %v686_v10 = vld [vmem:[%s872_s11 + $0x10] sm:$0xff] }
  0x29   : > { %v685_v11 = vld [vmem:[%s872_s11 + $0x8] sm:$0xff]  ;;  %v684_v12 = vld [vmem:[%s872_s11] sm:$0xff] }
  0x2a   : > { %v682_v13 = vld [vmem:[%s283_s12] sm:$0xff]  ;;  %v683_v14 = vld [vmem:[%s283_s12 + $0x8] sm:$0xff] }
  0x2b   : > { %v356_v15 = vld [vmem:[#allocation2 + $0x10] sm:$0xff]  ;;  %v357_v21 = vld [vmem:[#allocation2] sm:$0xff] }
  0x2c   : > { %441 = vmatpush.bf16.msra.mxu0 %v690_v6  ;;  %704 = vmatpush.bf16.msra.mxu1 %v690_v6  ;;  %v358_v16 = vld [vmem:[#allocation2 + $0x18] sm:$0xff] }
  0x2d   : > { %v359_v22 = vld [vmem:[#allocation2 + $0x8] sm:$0xff] }
  0x30   : > { %442 = vmatpush.bf16.msra.mxu0 %v689_v7  ;;  %705 = vmatpush.bf16.msra.mxu1 %v689_v7 }
  0x34   : > { %443 = vmatpush.bf16.msra.mxu0 %v688_v8  ;;  %706 = vmatpush.bf16.msra.mxu1 %v688_v8 }
  0x38   : > { %444 = vmatpush.bf16.msra.mxu0 %v687_v9  ;;  %707 = vmatpush.bf16.msra.mxu1 %v687_v9 }
  0x3c   : > { %445 = vmatpush.bf16.msra.mxu0 %v686_v10  ;;  %708 = vmatpush.bf16.msra.mxu1 %v686_v10 }
  0x40   : > { %446 = vmatpush.bf16.msra.mxu0 %v685_v11  ;;  %709 = vmatpush.bf16.msra.mxu1 %v685_v11 }
  0x44   : > { %447 = vmatpush.bf16.msra.mxu0 %v684_v12  ;;  %710 = vmatpush.bf16.msra.mxu1 %v684_v12 }
  0x47   : > { %448 = vmatmul.bf16.vlgmr.msra.gmra.mxu0 %v682_v13  ;;  %453 = vmatmul.bf16.vlgmr.msra.gmra.mxu1 %v683_v14 }
  0xc4   : > { %v449_v17 = vpop.f32.mrf.mxu0  ;;  %v454_v18 = vpop.f32.mrf.mxu1 }
  0xc5   : > { %v459_v19 = vadd.f32 %v449_v17, %v356_v15  ;;  %v461_v20 = vadd.f32 %v454_v18, %v358_v16 }
  0xc7   : > { %463 = vst [vmem:[#allocation2 + $0x10] sm:$0xff] %v459_v19 }
  0xc8   : > { %465 = vst [vmem:[#allocation2 + $0x18] sm:$0xff] %v461_v20 }
  0xcc   : > { %v451_v23 = vpop.f32.mrf.mxu0  ;;  %v456_v24 = vpop.f32.mrf.mxu1  ;;  %470 = sbr.rel (%p677_p11) target bundleno = 225 (0xe1), region = 85 }
  0xcd   : > { %v460_v25 = vadd.f32 %v451_v23, %v357_v21  ;;  %v462_v26 = vadd.f32 %v456_v24, %v359_v22 }
  0xcf   : > { %464 = vst [vmem:[#allocation2] sm:$0xff] %v460_v25 }
  0xd0   : > { %466 = vst [vmem:[#allocation2 + $0x8] sm:$0xff] %v462_v26 }
  0xd1   : > { %v471_v27 = vld [vmem:[#allocation2 + $0x10] sm:$0xff]  ;;  %v752_v29 = vld [vmem:[%s918_s2] ss:$0 sm:$0xff]  ;;  %v473_v31 = vld [vmem:[#allocation2 + $0x18] sm:$0xff] }
  0xd2   : > { %v753_v30 = vld [vmem:[%s919_s3] ss:$0 sm:$0xff]  ;;  %v479_v33 = vmul.f32 %v752_v29, %v471_v27  ;;  %v481_v35 = vmul.f32 %v752_v29, %v473_v31 }
  0xd4   : > { %v487_v37 = vadd.f32 %v753_v30, %v479_v33  ;;  %v489_v39 = vadd.f32 %v753_v30, %v481_v35 }
  0xd6   : > { %v472_v28 = vld [vmem:[#allocation2] sm:$0xff]  ;;  %v491_v41 = vmax.f32 %v487_v37, 0.0  ;;  %v493_v43 = vmax.f32 %v489_v39, 0.0 }
  0xd7   : > { %v474_v32 = vld [vmem:[#allocation2 + $0x8] sm:$0xff]  ;;  %v480_v34 = vmul.f32 %v752_v29, %v472_v28 }
  0xd8   : > { %v482_v36 = vmul.f32 %v752_v29, %v474_v32 }
  0xd9   : > { %v488_v38 = vadd.f32 %v753_v30, %v480_v34 }
  0xda   : > { %v490_v40 = vadd.f32 %v753_v30, %v482_v36 }
  0xdb   : > { %v492_v42 = vmax.f32 %v488_v38, 0.0 }
  0xdc   : > { %v494_v44 = vmax.f32 %v490_v40, 0.0 }
  0xdd   : > { %v695_v45 = vpack.c.bf16 %v492_v42, %v491_v41 }
  0xde   : > { %v700_v46 = vpack.c.bf16 %v494_v44, %v493_v43 }
  0xdf   : > { %696 = vst [vmem:[%s920_s4] sm:$0xff] %v695_v45  }
  0xe0   : > { %702 = vst [vmem:[%s920_s4 + $0x8] sm:$0xff] %v700_v46  }
  0xe1 PF: > { %s14_s19 = sadd.s32 1, %s792_s19   ;;  %s921_s15 = smov %s780_s16 }
  0xe2   : > { %p11_p12 = scmp.ge.s32.totalorder %s14_s19, 7   ;;  %s922_s16 = smov %s855_s23 }
  0xe3   : > { %s923_s17 = smov %s788_s18  ;;  %s924_s18 = smov %s926_s20 }
  0xe4   :  { %13 = sbr.rel (!%p11_p12) target bundleno = 3 (0x3), region = 129 }

// kernel: _lambda_.28
= control target key start
LH: loop header
LB: loop body
LE: loop exit
PB: predicated region body
PF: predicated region fallthrough
CT: control target
= control target key end

     0   :  { %s309_s1 = inlined_call_operand.vmem [shape: bf16[128,128], index: 1, kind: input, shape index: {}]   ;;  %s310_s2 = inlined_call_operand.vmem [shape: f32[1,128], index: 2, kind: input, shape index: {}]   ;;  %s311_s3 = inlined_call_operand.vmem [shape: f32[1,128], index: 3, kind: input, shape index: {}]   ;;  %s312_s0 = inlined_call_operand.vmem [shape: bf16[32,128], index: 0, kind: input, shape index: {}]   ;;  %s313_s4 = inlined_call_operand.vmem [shape: bf16[32,128], index: 4, kind: output, shape index: {}]  }
   0x1   :  { %v220_v0 = vld [vmem:[%s309_s1 + $0x38] sm:$0xff]  ;;  %v219_v1 = vld [vmem:[%s309_s1 + $0x30] sm:$0xff]  ;;  %v218_v2 = vld [vmem:[%s309_s1 + $0x28] sm:$0xff] }
   0x2   :  { %109 = vmatpush.bf16.msra.mxu0 %v220_v0  ;;  %232 = vmatpush.bf16.msra.mxu1 %v220_v0  ;;  %v217_v3 = vld [vmem:[%s309_s1 + $0x20] sm:$0xff]  ;;  %v216_v4 = vld [vmem:[%s309_s1 + $0x18] sm:$0xff]  ;;  %v215_v5 = vld [vmem:[%s309_s1 + $0x10] sm:$0xff] }
   0x3   :  { %v214_v6 = vld [vmem:[%s309_s1 + $0x8] sm:$0xff]  ;;  %v213_v7 = vld [vmem:[%s309_s1] sm:$0xff] }
   0x4   :  { %v211_v8 = vld [vmem:[%s312_s0] sm:$0xff]  ;;  %v212_v9 = vld [vmem:[%s312_s0 + $0x8] sm:$0xff] }
   0x5   :  { %v240_v12 = vld [vmem:[%s310_s2] ss:$0 sm:$0xff] }
   0x6   :  { %110 = vmatpush.bf16.msra.mxu0 %v219_v1  ;;  %233 = vmatpush.bf16.msra.mxu1 %v219_v1  ;;  %v241_v14 = vld [vmem:[%s311_s3] ss:$0 sm:$0xff] }
   0xa   :  { %111 = vmatpush.bf16.msra.mxu0 %v218_v2  ;;  %234 = vmatpush.bf16.msra.mxu1 %v218_v2 }
   0xe   :  { %112 = vmatpush.bf16.msra.mxu0 %v217_v3  ;;  %235 = vmatpush.bf16.msra.mxu1 %v217_v3 }
  0x12   :  { %113 = vmatpush.bf16.msra.mxu0 %v216_v4  ;;  %236 = vmatpush.bf16.msra.mxu1 %v216_v4 }
  0x16   :  { %114 = vmatpush.bf16.msra.mxu0 %v215_v5  ;;  %237 = vmatpush.bf16.msra.mxu1 %v215_v5 }
  0x1a   :  { %115 = vmatpush.bf16.msra.mxu0 %v214_v6  ;;  %238 = vmatpush.bf16.msra.mxu1 %v214_v6 }
  0x1e   :  { %116 = vmatpush.bf16.msra.mxu0 %v213_v7  ;;  %239 = vmatpush.bf16.msra.mxu1 %v213_v7 }
  0x21   :  { %117 = vmatmul.bf16.vlgmr.msra.gmra.mxu0 %v211_v8  ;;  %122 = vmatmul.bf16.vlgmr.msra.gmra.mxu1 %v212_v9 }
  0x9e   :  { %v118_v10 = vpop.f32.mrf.mxu0  ;;  %v123_v11 = vpop.f32.mrf.mxu1 }
  0x9f   :  { %v147_v13 = vmul.f32 %v240_v12, %v118_v10  ;;  %v149_v15 = vmul.f32 %v240_v12, %v123_v11 }
  0xa1   :  { %v155_v20 = vadd.f32 %v241_v14, %v147_v13  ;;  %v157_v21 = vadd.f32 %v241_v14, %v149_v15 }
  0xa6   :  { %v120_v16 = vpop.f32.mrf.mxu0  ;;  %v125_v17 = vpop.f32.mrf.mxu1 }
  0xa7   :  { %v148_v18 = vmul.f32 %v240_v12, %v120_v16  ;;  %v150_v19 = vmul.f32 %v240_v12, %v125_v17 }
  0xa9   :  { %v156_v22 = vadd.f32 %v241_v14, %v148_v18  ;;  %v158_v23 = vadd.f32 %v241_v14, %v150_v19 }
  0xab   :  { %v224_v24 = vpack.c.bf16 %v156_v22, %v155_v20  ;;  %v229_v25 = vpack.c.bf16 %v158_v23, %v157_v21 }
  0xad   :  { %225 = vst [vmem:[%s313_s4] sm:$0xff] %v224_v24  }
  0xae   :  { %231 = vst [vmem:[%s313_s4 + $0x8] sm:$0xff] %v229_v25  }

// kernel: _lambda_.30
= control target key start
LH: loop header
LB: loop body
LE: loop exit
PB: predicated region body
PF: predicated region fallthrough
CT: control target
= control target key end

     0   :  { %s925_s18 = smov 0   ;;  %s927_s19 = smov 0   ;;  %s1027_s0 = inlined_call_operand.vmem [shape: bf16[32,1152], index: 0, kind: input, shape index: {}]   ;;  %s1028_s1 = inlined_call_operand.vmem [shape: bf16[1152,128], index: 1, kind: input, shape index: {}]   ;;  %s1029_s2 = inlined_call_operand.vmem [shape: f32[1,128], index: 2, kind: input, shape index: {}]   ;;  %s1030_s3 = inlined_call_operand.vmem [shape: f32[1,128], index: 3, kind: input, shape index: {}]   ;;  %s1031_s4 = inlined_call_operand.vmem [shape: bf16[32,128], index: 4, kind: input, shape index: {}]   ;;  %s1032_s5 = inlined_call_operand.vmem [shape: bf16[32,128], index: 5, kind: output, shape index: {}]  }
   0x1   :  { %s929_s20 = smov 0   ;;  %s931_s21 = smov 0  }
   0x2   :  { %s933_s22 = smov 0  }
   0x3 LB: > { %s27_s23 = sadd.s32 1, %s888_s21  ;;  %p50_p1 = scmp.ne.s32.totalorder %s880_s19, %s876_s18  ;;  %s892_s22 = sphi %s933_s22, %s15_s22   ;;  %s888_s21 = sphi %s931_s21, %s1036_s21   ;;  %s884_s20 = sphi %s929_s20, %s1035_s20   ;;  %s880_s19 = sphi %s927_s19, %s1034_s19   ;;  %s876_s18 = sphi %s925_s18, %s1033_s18  }
   0x4   : > { %p28_p0 = scmp.ge.s32.totalorder %s27_s23, 9  ;;  %p51_p2 = scmp.eq.s32.totalorder %s892_s22, 0 }
   0x5   : > { %s43_s25 = sadd.s32 1, %s880_s19  ;;  %p720_p5 = scmp.ge.s32.totalorder %s892_s22, 9 }
   0x6   : > { %s1038_s23 = smov (%p28_p0, %s27_s23), 0  ;;  %p52_p3 = por %p51_p2, %p50_p1 }
   0x7   : > { %s39_s24 = ssub.s32 %s888_s21, %s1038_s23  ;;  %236 = sbr.rel (%p720_p5) target bundleno = 20 (0x14), region = 28 }
   0x8   : > { %p41_p4 = scmp.eq.s32.totalorder %s39_s24, 0 }
   0xa   : > { %s960_s26 = scalar_select %p41_p4, %s880_s19, %s43_s25  }
   0xc   : > { %239 = sbr.rel (!%p52_p3) target bundleno = 20 (0x14), region = 32  ;;  %s241_s27 = sand.u32 (%p52_p3), 1, %s880_s19  }
   0xd   : > { %s722_s28 = sshll.u32 (%p52_p3), %s888_s21, 2  ;;  %s721_s29 = sshll.u32 (%p52_p3), %s241_s27, 4 }
   0xe   : > { %s248_s7 = scalar_lea.vmem (%p52_p3), %s1027_s0, %s722_s28  ;;  %s243_s8 = scalar_lea.vmem (%p52_p3), [#allocation3], %s721_s29 }
   0xf   : > { %v265_v0 = vld [vmem:[%s248_s7] sm:$0xf] (%p52_p3)  ;;  %v267_v1 = vld [vmem:[%s248_s7 + $0x24] sm:$0xf] (%p52_p3)  ;;  %v269_v2 = vld [vmem:[%s248_s7 + $0x48] sm:$0xf] (%p52_p3) }
  0x10   : > { %266 = vst [vmem:[%s243_s8] sm:$0xf] (%p52_p3), %v265_v0  ;;  %v271_v3 = vld [vmem:[%s248_s7 + $0x6c] sm:$0xf] (%p52_p3) }
  0x11   : > { %268 = vst [vmem:[%s243_s8 + $0x4] sm:$0xf] %v267_v1 }
  0x12   : > { %270 = vst [vmem:[%s243_s8 + $0x8] sm:$0xf] %v269_v2 }
  0x13   : > { %272 = vst [vmem:[%s243_s8 + $0xc] sm:$0xf] %v271_v3 }
  0x14 PF: > { %p723_p6 = scmp.ge.s32.totalorder %s892_s22, 1  ;;  %p315_p7 = scmp.lt.s32.totalorder %s892_s22, 10 }
  0x16   : > { %p316_p8 = pnand %p723_p6, %p315_p7 }
  0x17   : > { %s322_s9 = sand.u32 (!%p316_p8), 1, %s876_s18   ;;  %s725_s10 = sshll.u32 (!%p316_p8), %s884_s20, 4 }
  0x18   : > { %319 = sbr.rel (%p316_p8) target bundleno = 227 (0xe3), region = 77  ;;  %s972_s11 = sshll.u32 (!%p316_p8), %s322_s9, 4 }
  0x19   : > { %p376_p9 = scmp.lt.s32.totalorder (!%p316_p8), %s725_s10, 143  ;;  %s324_s16 = scalar_lea.vmem (!%p316_p8), [#allocation3], %s972_s11 }
  0x1a   : > { %p727_p10 = scmp.ne.s32.totalorder (!%p316_p8), %s884_s20, 0 }
  0x1d   : > { %s1040_s10 = smov (!%p376_p9, %s725_s10), 143  ;;  %411 = sbr.rel (%p727_p10) target bundleno = 39 (0x27), region = 85 }
  0x1e   : > { %s726_s12 = sshll.u32 %s1040_s10, 2 }
  0x1f   : > { %s977_s15 = scalar_lea.vmem %s1028_s1, %s726_s12 }
  0x22   : > { %v894_v4 = vmov 0.0  }
  0x23   : > { %412 = vst [vmem:[#allocation2 + $0x10] sm:$0xff] %v894_v4 }
  0x24   : > { %413 = vst [vmem:[#allocation2] sm:$0xff] %v894_v4 }
  0x25   : > { %414 = vst [vmem:[#allocation2 + $0x18] sm:$0xff] %v894_v4 }
  0x26   : > { %415 = vst [vmem:[#allocation2 + $0x8] sm:$0xff] %v894_v4 }
  0x27 PF: > { %v782_v5 = vld [vmem:[%s977_s15 + $0x38] sm:$0xff]  ;;  %v781_v6 = vld [vmem:[%s977_s15 + $0x30] sm:$0xff]  ;;  %v780_v7 = vld [vmem:[%s977_s15 + $0x28] sm:$0xff]  ;;  %p768_p11 = scmp.ne.s32.totalorder %s884_s20, 8 }
  0x28   : > { %500 = vmatpush.bf16.msra.mxu0 %v782_v5  ;;  %803 = vmatpush.bf16.msra.mxu1 %v782_v5  ;;  %v779_v8 = vld [vmem:[%s977_s15 + $0x20] sm:$0xff]  ;;  %v778_v9 = vld [vmem:[%s977_s15 + $0x18] sm:$0xff]  ;;  %v777_v10 = vld [vmem:[%s977_s15 + $0x10] sm:$0xff] }
  0x29   : > { %v776_v11 = vld [vmem:[%s977_s15 + $0x8] sm:$0xff]  ;;  %v775_v12 = vld [vmem:[%s977_s15] sm:$0xff] }
  0x2a   : > { %v773_v13 = vld [vmem:[%s324_s16] sm:$0xff]  ;;  %v774_v14 = vld [vmem:[%s324_s16 + $0x8] sm:$0xff] }
  0x2b   : > { %v416_v15 = vld [vmem:[#allocation2 + $0x10] sm:$0xff]  ;;  %v417_v21 = vld [vmem:[#allocation2] sm:$0xff] }
  0x2c   : > { %501 = vmatpush.bf16.msra.mxu0 %v781_v6  ;;  %804 = vmatpush.bf16.msra.mxu1 %v781_v6  ;;  %v418_v16 = vld [vmem:[#allocation2 + $0x18] sm:$0xff] }
  0x2d   : > { %v419_v22 = vld [vmem:[#allocation2 + $0x8] sm:$0xff] }
  0x30   : > { %502 = vmatpush.bf16.msra.mxu0 %v780_v7  ;;  %805 = vmatpush.bf16.msra.mxu1 %v780_v7 }
  0x34   : > { %503 = vmatpush.bf16.msra.mxu0 %v779_v8  ;;  %806 = vmatpush.bf16.msra.mxu1 %v779_v8 }
  0x38   : > { %504 = vmatpush.bf16.msra.mxu0 %v778_v9  ;;  %807 = vmatpush.bf16.msra.mxu1 %v778_v9 }
  0x3c   : > { %505 = vmatpush.bf16.msra.mxu0 %v777_v10  ;;  %808 = vmatpush.bf16.msra.mxu1 %v777_v10 }
  0x40   : > { %506 = vmatpush.bf16.msra.mxu0 %v776_v11  ;;  %809 = vmatpush.bf16.msra.mxu1 %v776_v11 }
  0x44   : > { %507 = vmatpush.bf16.msra.mxu0 %v775_v12  ;;  %810 = vmatpush.bf16.msra.mxu1 %v775_v12 }
  0x47   : > { %508 = vmatmul.bf16.vlgmr.msra.gmra.mxu0 %v773_v13  ;;  %513 = vmatmul.bf16.vlgmr.msra.gmra.mxu1 %v774_v14 }
  0xc4   : > { %v509_v17 = vpop.f32.mrf.mxu0  ;;  %v514_v18 = vpop.f32.mrf.mxu1 }
  0xc5   : > { %v519_v19 = vadd.f32 %v509_v17, %v416_v15  ;;  %v521_v20 = vadd.f32 %v514_v18, %v418_v16 }
  0xc7   : > { %523 = vst [vmem:[#allocation2 + $0x10] sm:$0xff] %v519_v19 }
  0xc8   : > { %525 = vst [vmem:[#allocation2 + $0x18] sm:$0xff] %v521_v20 }
  0xcc   : > { %v511_v23 = vpop.f32.mrf.mxu0  ;;  %v516_v24 = vpop.f32.mrf.mxu1  ;;  %530 = sbr.rel (%p768_p11) target bundleno = 227 (0xe3), region = 89 }
  0xcd   : > { %v520_v25 = vadd.f32 %v511_v23, %v417_v21  ;;  %v522_v26 = vadd.f32 %v516_v24, %v419_v22 }
  0xcf   : > { %524 = vst [vmem:[#allocation2] sm:$0xff] %v520_v25 }
  0xd0   : > { %526 = vst [vmem:[#allocation2 + $0x8] sm:$0xff] %v522_v26 }
  0xd1   : > { %v531_v27 = vld [vmem:[#allocation2 + $0x10] sm:$0xff]  ;;  %v852_v29 = vld [vmem:[%s1029_s2] ss:$0 sm:$0xff]  ;;  %v533_v32 = vld [vmem:[#allocation2 + $0x18] sm:$0xff] }
  0xd2   : > { %v853_v30 = vld [vmem:[%s1030_s3] ss:$0 sm:$0xff]  ;;  %v539_v34 = vmul.f32 %v852_v29, %v531_v27  ;;  %v801_v38 = vld [vmem:[%s1031_s4 + $0x8] sm:$0xff]   ;;  %v541_v39 = vmul.f32 %v852_v29, %v533_v32 }
  0xd3   : > { %v784_v31 = vld [vmem:[%s1031_s4] sm:$0xff]   ;;  %v789_v41 = vunpack.c.l.bf16 %v801_v38  ;;  %v790_v42 = vunpack.c.h.bf16 %v801_v38 }
  0xd4   : > { %v785_v36 = vunpack.c.l.bf16 %v784_v31  ;;  %v786_v37 = vunpack.c.h.bf16 %v784_v31  ;;  %v547_v43 = vadd.f32 %v853_v30, %v539_v34  ;;  %v549_v45 = vadd.f32 %v853_v30, %v541_v39 }
  0xd6   : > { %v532_v28 = vld [vmem:[#allocation2] sm:$0xff]  ;;  %v559_v47 = vadd.f32 %v785_v36, %v547_v43  ;;  %v561_v49 = vadd.f32 %v789_v41, %v549_v45 }
  0xd7   : > { %v534_v33 = vld [vmem:[#allocation2 + $0x8] sm:$0xff]  ;;  %v540_v35 = vmul.f32 %v852_v29, %v532_v28 }
  0xd8   : > { %v542_v40 = vmul.f32 %v852_v29, %v534_v33  ;;  %v563_v51 = vmax.f32 %v559_v47, 0.0  ;;  %v565_v53 = vmax.f32 %v561_v49, 0.0 }
  0xd9   : > { %v548_v44 = vadd.f32 %v853_v30, %v540_v35 }
  0xda   : > { %v550_v46 = vadd.f32 %v853_v30, %v542_v40 }
  0xdb   : > { %v560_v48 = vadd.f32 %v786_v37, %v548_v44 }
  0xdc   : > { %v562_v50 = vadd.f32 %v790_v42, %v550_v46 }
  0xdd   : > { %v564_v52 = vmax.f32 %v560_v48, 0.0 }
  0xde   : > { %v566_v54 = vmax.f32 %v562_v50, 0.0 }
  0xdf   : > { %v794_v55 = vpack.c.bf16 %v564_v52, %v563_v51 }
  0xe0   : > { %v799_v56 = vpack.c.bf16 %v566_v54, %v565_v53 }
  0xe1   : > { %795 = vst [vmem:[%s1032_s5] sm:$0xff] %v794_v55  }
  0xe2   : > { %802 = vst [vmem:[%s1032_s5 + $0x8] sm:$0xff] %v799_v56  }
  0xe3 PF: > { %s15_s22 = sadd.s32 1, %s892_s22   ;;  %s1033_s18 = smov %s880_s19 }
  0xe4   : > { %p12_p12 = scmp.ge.s32.totalorder %s15_s22, 11   ;;  %s1034_s19 = smov %s960_s26 }
  0xe5   : > { %s1035_s20 = smov %s888_s21  ;;  %s1036_s21 = smov %s1038_s23 }
  0xe6   :  { %14 = sbr.rel (!%p12_p12) target bundleno = 3 (0x3), region = 136 }

// kernel: _lambda_.31
= control target key start
LH: loop header
LB: loop body
LE: loop exit
PB: predicated region body
PF: predicated region fallthrough
CT: control target
= control target key end

     0   :  { %s820_s15 = smov 0   ;;  %s822_s16 = smov 0   ;;  %s916_s0 = inlined_call_operand.vmem [shape: bf16[32,1152], index: 0, kind: input, shape index: {}]   ;;  %s917_s1 = inlined_call_operand.vmem [shape: bf16[1152,128], index: 1, kind: input, shape index: {}]   ;;  %s918_s2 = inlined_call_operand.vmem [shape: f32[1,128], index: 2, kind: input, shape index: {}]   ;;  %s919_s3 = inlined_call_operand.vmem [shape: f32[1,128], index: 3, kind: input, shape index: {}]   ;;  %s920_s4 = inlined_call_operand.vmem [shape: bf16[32,128], index: 4, kind: output, shape index: {}]  }
   0x1   :  { %s824_s17 = smov 0   ;;  %s826_s18 = smov 0  }
   0x2   :  { %s828_s19 = smov 0  }
   0x3 LB: > { %s26_s20 = sadd.s32 1, %s788_s18  ;;  %p49_p1 = scmp.ne.s32.totalorder %s780_s16, %s776_s15  ;;  %s792_s19 = sphi %s828_s19, %s14_s19   ;;  %s788_s18 = sphi %s826_s18, %s924_s18   ;;  %s784_s17 = sphi %s824_s17, %s923_s17   ;;  %s780_s16 = sphi %s822_s16, %s922_s16   ;;  %s776_s15 = sphi %s820_s15, %s921_s15  }
   0x4   : > { %p27_p0 = scmp.ge.s32.totalorder %s26_s20, 9  ;;  %p50_p2 = scmp.eq.s32.totalorder %s792_s19, 0 }
   0x5   : > { %s42_s22 = sadd.s32 1, %s780_s16  ;;  %p629_p5 = scmp.ge.s32.totalorder %s792_s19, 9 }
   0x6   : > { %s926_s20 = smov (%p27_p0, %s26_s20), 0  ;;  %p51_p3 = por %p50_p2, %p49_p1 }
   0x7   : > { %s38_s21 = ssub.s32 %s788_s18, %s926_s20  ;;  %195 = sbr.rel (%p629_p5) target bundleno = 20 (0x14), region = 24 }
   0x8   : > { %p40_p4 = scmp.eq.s32.totalorder %s38_s21, 0 }
   0xa   : > { %s855_s23 = scalar_select %p40_p4, %s780_s16, %s42_s22  }
   0xc   : > { %198 = sbr.rel (!%p51_p3) target bundleno = 20 (0x14), region = 28  ;;  %s200_s24 = sand.u32 (%p51_p3), 1, %s780_s16  }
   0xd   : > { %s631_s25 = sshll.u32 (%p51_p3), %s788_s18, 2  ;;  %s630_s26 = sshll.u32 (%p51_p3), %s200_s24, 4 }
   0xe   : > { %s207_s29 = scalar_lea.vmem (%p51_p3), %s916_s0, %s631_s25  ;;  %s202_s30 = scalar_lea.vmem (%p51_p3), [#allocation3], %s630_s26 }
   0xf   : > { %v224_v0 = vld [vmem:[%s207_s29] sm:$0xf] (%p51_p3)  ;;  %v226_v1 = vld [vmem:[%s207_s29 + $0x24] sm:$0xf] (%p51_p3)  ;;  %v228_v2 = vld [vmem:[%s207_s29 + $0x48] sm:$0xf] (%p51_p3) }
  0x10   : > { %225 = vst [vmem:[%s202_s30] sm:$0xf] (%p51_p3), %v224_v0  ;;  %v230_v3 = vld [vmem:[%s207_s29 + $0x6c] sm:$0xf] (%p51_p3) }
  0x11   : > { %227 = vst [vmem:[%s202_s30 + $0x4] sm:$0xf] %v226_v1 }
  0x12   : > { %229 = vst [vmem:[%s202_s30 + $0x8] sm:$0xf] %v228_v2 }
  0x13   : > { %231 = vst [vmem:[%s202_s30 + $0xc] sm:$0xf] %v230_v3 }
  0x14 PF: > { %p632_p6 = scmp.ge.s32.totalorder %s792_s19, 1  ;;  %p274_p7 = scmp.lt.s32.totalorder %s792_s19, 10 }
  0x16   : > { %p275_p8 = pnand %p632_p6, %p274_p7 }
  0x17   : > { %s281_s5 = sand.u32 (!%p275_p8), 1, %s776_s15   ;;  %s634_s6 = sshll.u32 (!%p275_p8), %s784_s17, 4 }
  0x18   : > { %278 = sbr.rel (%p275_p8) target bundleno = 225 (0xe1), region = 73  ;;  %s867_s7 = sshll.u32 (!%p275_p8), %s281_s5, 4 }
  0x19   : > { %p325_p9 = scmp.lt.s32.totalorder (!%p275_p8), %s634_s6, 143  ;;  %s283_s12 = scalar_lea.vmem (!%p275_p8), [#allocation3], %s867_s7 }
  0x1a   : > { %p636_p10 = scmp.ne.s32.totalorder (!%p275_p8), %s784_s17, 0 }
  0x1d   : > { %s928_s6 = smov (!%p325_p9, %s634_s6), 143  ;;  %351 = sbr.rel (%p636_p10) target bundleno = 39 (0x27), region = 81 }
  0x1e   : > { %s635_s8 = sshll.u32 %s928_s6, 2 }
  0x1f   : > { %s872_s11 = scalar_lea.vmem %s917_s1, %s635_s8 }
  0x22   : > { %v794_v4 = vmov 0.0  }
  0x23   : > { %352 = vst [vmem:[#allocation2 + $0x10] sm:$0xff] %v794_v4 }
  0x24   : > { %353 = vst [vmem:[#allocation2] sm:$0xff] %v794_v4 }
  0x25   : > { %354 = vst [vmem:[#allocation2 + $0x18] sm:$0xff] %v794_v4 }
  0x26   : > { %355 = vst [vmem:[#allocation2 + $0x8] sm:$0xff] %v794_v4 }
  0x27 PF: > { %v691_v5 = vld [vmem:[%s872_s11 + $0x38] sm:$0xff]  ;;  %v690_v6 = vld [vmem:[%s872_s11 + $0x30] sm:$0xff]  ;;  %v689_v7 = vld [vmem:[%s872_s11 + $0x28] sm:$0xff]  ;;  %p677_p11 = scmp.ne.s32.totalorder %s784_s17, 8 }
  0x28   : > { %440 = vmatpush.bf16.msra.mxu0 %v691_v5  ;;  %703 = vmatpush.bf16.msra.mxu1 %v691_v5  ;;  %v688_v8 = vld [vmem:[%s872_s11 + $0x20] sm:$0xff]  ;;  %v687_v9 = vld [vmem:[%s872_s11 + $0x18] sm:$0xff]  ;;  %v686_v10 = vld [vmem:[%s872_s11 + $0x10] sm:$0xff] }
  0x29   : > { %v685_v11 = vld [vmem:[%s872_s11 + $0x8] sm:$0xff]  ;;  %v684_v12 = vld [vmem:[%s872_s11] sm:$0xff] }
  0x2a   : > { %v682_v13 = vld [vmem:[%s283_s12] sm:$0xff]  ;;  %v683_v14 = vld [vmem:[%s283_s12 + $0x8] sm:$0xff] }
  0x2b   : > { %v356_v15 = vld [vmem:[#allocation2 + $0x10] sm:$0xff]  ;;  %v357_v21 = vld [vmem:[#allocation2] sm:$0xff] }
  0x2c   : > { %441 = vmatpush.bf16.msra.mxu0 %v690_v6  ;;  %704 = vmatpush.bf16.msra.mxu1 %v690_v6  ;;  %v358_v16 = vld [vmem:[#allocation2 + $0x18] sm:$0xff] }
  0x2d   : > { %v359_v22 = vld [vmem:[#allocation2 + $0x8] sm:$0xff] }
  0x30   : > { %442 = vmatpush.bf16.msra.mxu0 %v689_v7  ;;  %705 = vmatpush.bf16.msra.mxu1 %v689_v7 }
  0x34   : > { %443 = vmatpush.bf16.msra.mxu0 %v688_v8  ;;  %706 = vmatpush.bf16.msra.mxu1 %v688_v8 }
  0x38   : > { %444 = vmatpush.bf16.msra.mxu0 %v687_v9  ;;  %707 = vmatpush.bf16.msra.mxu1 %v687_v9 }
  0x3c   : > { %445 = vmatpush.bf16.msra.mxu0 %v686_v10  ;;  %708 = vmatpush.bf16.msra.mxu1 %v686_v10 }
  0x40   : > { %446 = vmatpush.bf16.msra.mxu0 %v685_v11  ;;  %709 = vmatpush.bf16.msra.mxu1 %v685_v11 }
  0x44   : > { %447 = vmatpush.bf16.msra.mxu0 %v684_v12  ;;  %710 = vmatpush.bf16.msra.mxu1 %v684_v12 }
  0x47   : > { %448 = vmatmul.bf16.vlgmr.msra.gmra.mxu0 %v682_v13  ;;  %453 = vmatmul.bf16.vlgmr.msra.gmra.mxu1 %v683_v14 }
  0xc4   : > { %v449_v17 = vpop.f32.mrf.mxu0  ;;  %v454_v18 = vpop.f32.mrf.mxu1 }
  0xc5   : > { %v459_v19 = vadd.f32 %v449_v17, %v356_v15  ;;  %v461_v20 = vadd.f32 %v454_v18, %v358_v16 }
  0xc7   : > { %463 = vst [vmem:[#allocation2 + $0x10] sm:$0xff] %v459_v19 }
  0xc8   : > { %465 = vst [vmem:[#allocation2 + $0x18] sm:$0xff] %v461_v20 }
  0xcc   : > { %v451_v23 = vpop.f32.mrf.mxu0  ;;  %v456_v24 = vpop.f32.mrf.mxu1  ;;  %470 = sbr.rel (%p677_p11) target bundleno = 225 (0xe1), region = 85 }
  0xcd   : > { %v460_v25 = vadd.f32 %v451_v23, %v357_v21  ;;  %v462_v26 = vadd.f32 %v456_v24, %v359_v22 }
  0xcf   : > { %464 = vst [vmem:[#allocation2] sm:$0xff] %v460_v25 }
  0xd0   : > { %466 = vst [vmem:[#allocation2 + $0x8] sm:$0xff] %v462_v26 }
  0xd1   : > { %v471_v27 = vld [vmem:[#allocation2 + $0x10] sm:$0xff]  ;;  %v752_v29 = vld [vmem:[%s918_s2] ss:$0 sm:$0xff]  ;;  %v473_v31 = vld [vmem:[#allocation2 + $0x18] sm:$0xff] }
  0xd2   : > { %v753_v30 = vld [vmem:[%s919_s3] ss:$0 sm:$0xff]  ;;  %v479_v33 = vmul.f32 %v752_v29, %v471_v27  ;;  %v481_v35 = vmul.f32 %v752_v29, %v473_v31 }
  0xd4   : > { %v487_v37 = vadd.f32 %v753_v30, %v479_v33  ;;  %v489_v39 = vadd.f32 %v753_v30, %v481_v35 }
  0xd6   : > { %v472_v28 = vld [vmem:[#allocation2] sm:$0xff]  ;;  %v491_v41 = vmax.f32 %v487_v37, 0.0  ;;  %v493_v43 = vmax.f32 %v489_v39, 0.0 }
  0xd7   : > { %v474_v32 = vld [vmem:[#allocation2 + $0x8] sm:$0xff]  ;;  %v480_v34 = vmul.f32 %v752_v29, %v472_v28 }
  0xd8   : > { %v482_v36 = vmul.f32 %v752_v29, %v474_v32 }
  0xd9   : > { %v488_v38 = vadd.f32 %v753_v30, %v480_v34 }
  0xda   : > { %v490_v40 = vadd.f32 %v753_v30, %v482_v36 }
  0xdb   : > { %v492_v42 = vmax.f32 %v488_v38, 0.0 }
  0xdc   : > { %v494_v44 = vmax.f32 %v490_v40, 0.0 }
  0xdd   : > { %v695_v45 = vpack.c.bf16 %v492_v42, %v491_v41 }
  0xde   : > { %v700_v46 = vpack.c.bf16 %v494_v44, %v493_v43 }
  0xdf   : > { %696 = vst [vmem:[%s920_s4] sm:$0xff] %v695_v45  }
  0xe0   : > { %702 = vst [vmem:[%s920_s4 + $0x8] sm:$0xff] %v700_v46  }
  0xe1 PF: > { %s14_s19 = sadd.s32 1, %s792_s19   ;;  %s921_s15 = smov %s780_s16 }
  0xe2   : > { %p11_p12 = scmp.ge.s32.totalorder %s14_s19, 11   ;;  %s922_s16 = smov %s855_s23 }
  0xe3   : > { %s923_s17 = smov %s788_s18  ;;  %s924_s18 = smov %s926_s20 }
  0xe4   :  { %13 = sbr.rel (!%p11_p12) target bundleno = 3 (0x3), region = 129 }

// kernel: _lambda_.34
= control target key start
LH: loop header
LB: loop body
LE: loop exit
PB: predicated region body
PF: predicated region fallthrough
CT: control target
= control target key end

     0   :  { %s780_s15 = smov 0   ;;  %s782_s16 = smov 0   ;;  %s866_s0 = inlined_call_operand.vmem [shape: bf16[8,1152], index: 0, kind: input, shape index: {}]   ;;  %s867_s1 = inlined_call_operand.vmem [shape: bf16[1152,256], index: 1, kind: input, shape index: {}]   ;;  %s868_s2 = inlined_call_operand.vmem [shape: f32[1,256], index: 2, kind: input, shape index: {}]   ;;  %s869_s3 = inlined_call_operand.vmem [shape: f32[1,256], index: 3, kind: input, shape index: {}]   ;;  %s870_s4 = inlined_call_operand.vmem [shape: bf16[8,256], index: 4, kind: output, shape index: {}]  }
   0x1   :  { %s784_s17 = smov 0  }
   0x2 LB: > { %s26_s18 = sadd.s32 1, %s748_s16  ;;  %p613_p0 = scmp.ge.s32.totalorder %s752_s17, 1  ;;  %s752_s17 = sphi %s784_s17, %s14_s17   ;;  %s748_s16 = sphi %s782_s16, %s872_s16   ;;  %s744_s15 = sphi %s780_s15, %s871_s15  }
   0x3   : > { %p27_p1 = scmp.ge.s32.totalorder %s26_s18, 9  ;;  %p227_p2 = scmp.lt.s32.totalorder %s752_s17, 10 }
   0x5   : > { %s874_s18 = smov (%p27_p1, %s26_s18), 0  ;;  %p228_p3 = pnand %p613_p0, %p227_p2 }
   0x6   : > { %p280_p4 = scmp.lt.s32.totalorder (!%p228_p3), %s744_s15, 8  ;;  %s615_s19 = sshll.u32 (!%p228_p3), %s744_s15, 4 }
   0x7   : > { %231 = sbr.rel (%p228_p3) target bundleno = 203 (0xcb), region = 36  ;;  %p288_p5 = scmp.lt.s32.totalorder (!%p228_p3), %s615_s19, 143 }
   0x8   : > { %p618_p6 = scmp.ne.s32.totalorder (!%p228_p3), %s744_s15, 0 }
   0xc   : > { %s281_s20 = scalar_select %p280_p4, %s744_s15, 8 }
   0xd   : > { %s876_s19 = smov (!%p288_p5, %s615_s19), 143  ;;  %321 = sbr.rel (%p618_p6) target bundleno = 21 (0x15), region = 40 }
   0xe   : > { %s614_s21 = sshll.u32 %s281_s20, 2  ;;  %s688_s25 = sshll.u32 %s876_s19, 3 }
   0xf   : > { %s806_s24 = scalar_lea.vmem %s866_s0, %s614_s21  ;;  %s811_s28 = scalar_lea.vmem %s867_s1, %s688_s25 }
  0x12   : > { %v754_v0 = vmov 0.0  }
  0x13   : > { %322 = vst [vmem:[#allocation2] sm:$0xff] %v754_v0 }
  0x14   : > { %323 = vst [vmem:[#allocation2 + $0x8] sm:$0xff] %v754_v0 }
  0x15 PF: > { %v677_v1 = vld [vmem:[%s811_s28 + $0x70] sm:$0xf]  ;;  %v704_v2 = vld [vmem:[%s811_s28 + $0x74] sm:$0xf0]  ;;  %v703_v3 = vld [vmem:[%s811_s28 + $0x74] sm:$0xf] }
  0x16   : > { %v678_v4 = vor.u32 %v704_v2, %v677_v1  ;;  %v679_v5 = vld [vmem:[%s811_s28 + $0x78] sm:$0xf0]  ;;  %v669_v6 = vld [vmem:[%s811_s28 + $0x60] sm:$0xf]  ;;  %v702_v7 = vld [vmem:[%s811_s28 + $0x64] sm:$0xf0] }
  0x17   : > { %v682_v8 = vor.u32 %v703_v3, %v679_v5  ;;  %v701_v9 = vld [vmem:[%s811_s28 + $0x64] sm:$0xf]  ;;  %v671_v10 = vld [vmem:[%s811_s28 + $0x68] sm:$0xf0]  ;;  %v670_v11 = vor.u32 %v702_v7, %v669_v6  ;;  %v661_v13 = vld [vmem:[%s811_s28 + $0x50] sm:$0xf] }
  0x18   : > { %423 = vmatpush.bf16.msra.mxu0 %v678_v4  ;;  %v674_v12 = vor.u32 %v701_v9, %v671_v10  ;;  %v700_v14 = vld [vmem:[%s811_s28 + $0x54] sm:$0xf0]  ;;  %v699_v15 = vld [vmem:[%s811_s28 + $0x54] sm:$0xf]  ;;  %v663_v16 = vld [vmem:[%s811_s28 + $0x58] sm:$0xf0] }
  0x19   : > { %436 = vmatpush.bf16.msra.mxu1 %v682_v8  ;;  %v662_v17 = vor.u32 %v700_v14, %v661_v13  ;;  %v666_v18 = vor.u32 %v699_v15, %v663_v16  ;;  %v653_v19 = vld [vmem:[%s811_s28 + $0x40] sm:$0xf]  ;;  %v698_v20 = vld [vmem:[%s811_s28 + $0x44] sm:$0xf0]  ;;  %v697_v21 = vld [vmem:[%s811_s28 + $0x44] sm:$0xf] }
  0x1a   : > { %v655_v22 = vld [vmem:[%s811_s28 + $0x48] sm:$0xf0]  ;;  %v654_v23 = vor.u32 %v698_v20, %v653_v19  ;;  %v645_v25 = vld [vmem:[%s811_s28 + $0x30] sm:$0xf]  ;;  %v696_v26 = vld [vmem:[%s811_s28 + $0x34] sm:$0xf0] }
  0x1b   : > { %v658_v24 = vor.u32 %v697_v21, %v655_v22  ;;  %v695_v27 = vld [vmem:[%s811_s28 + $0x34] sm:$0xf]  ;;  %v647_v28 = vld [vmem:[%s811_s28 + $0x38] sm:$0xf0]  ;;  %v646_v29 = vor.u32 %v696_v26, %v645_v25  ;;  %v637_v31 = vld [vmem:[%s811_s28 + $0x20] sm:$0xf] }
  0x1c   : > { %424 = vmatpush.bf16.msra.mxu0 %v670_v11  ;;  %v650_v30 = vor.u32 %v695_v27, %v647_v28  ;;  %v694_v32 = vld [vmem:[%s811_s28 + $0x24] sm:$0xf0]  ;;  %v693_v33 = vld [vmem:[%s811_s28 + $0x24] sm:$0xf]  ;;  %v639_v34 = vld [vmem:[%s811_s28 + $0x28] sm:$0xf0] }
  0x1d   : > { %437 = vmatpush.bf16.msra.mxu1 %v674_v12  ;;  %v638_v35 = vor.u32 %v694_v32, %v637_v31  ;;  %v642_v36 = vor.u32 %v693_v33, %v639_v34  ;;  %v629_v37 = vld [vmem:[%s811_s28 + $0x10] sm:$0xf]  ;;  %v692_v38 = vld [vmem:[%s811_s28 + $0x14] sm:$0xf0]  ;;  %v691_v39 = vld [vmem:[%s811_s28 + $0x14] sm:$0xf] }
  0x1e   : > { %v631_v40 = vld [vmem:[%s811_s28 + $0x18] sm:$0xf0]  ;;  %v630_v41 = vor.u32 %v692_v38, %v629_v37  ;;  %v621_v43 = vld [vmem:[%s811_s28] sm:$0xf]  ;;  %v690_v44 = vld [vmem:[%s811_s28 + $0x4] sm:$0xf0] }
  0x1f   : > { %v634_v42 = vor.u32 %v691_v39, %v631_v40  ;;  %v689_v45 = vld [vmem:[%s811_s28 + $0x4] sm:$0xf]  ;;  %v623_v46 = vld [vmem:[%s811_s28 + $0x8] sm:$0xf0]  ;;  %v622_v47 = vor.u32 %v690_v44, %v621_v43  ;;  %v326_v49 = vld [vmem:[%s806_s24] sm:$0xf] }
  0x20   : > { %425 = vmatpush.bf16.msra.mxu0 %v662_v17  ;;  %v626_v48 = vor.u32 %v689_v45, %v623_v46  ;;  %v324_v50 = vld [vmem:[#allocation2] sm:$0xff]  ;;  %v325_v51 = vld [vmem:[#allocation2 + $0x8] sm:$0xff]  ;;  %p683_p7 = scmp.ne.s32.totalorder %s744_s15, 8 }
  0x21   : > { %438 = vmatpush.bf16.msra.mxu1 %v666_v18 }
  0x24   : > { %426 = vmatpush.bf16.msra.mxu0 %v654_v23 }
  0x25   : > { %439 = vmatpush.bf16.msra.mxu1 %v658_v24 }
  0x28   : > { %427 = vmatpush.bf16.msra.mxu0 %v646_v29 }
  0x29   : > { %440 = vmatpush.bf16.msra.mxu1 %v650_v30 }
  0x2c   : > { %428 = vmatpush.bf16.msra.mxu0 %v638_v35 }
  0x2d   : > { %441 = vmatpush.bf16.msra.mxu1 %v642_v36 }
  0x30   : > { %429 = vmatpush.bf16.msra.mxu0 %v630_v41 }
  0x31   : > { %442 = vmatpush.bf16.msra.mxu1 %v634_v42 }
  0x34   : > { %430 = vmatpush.bf16.msra.mxu0 %v622_v47 }
  0x35   : > { %443 = vmatpush.bf16.msra.mxu1 %v626_v48 }
  0x37   : > { %431 = vmatmul.bf16.vlgmr.msra.gmra.mxu0 %v326_v49 }
  0x38   : > { %444 = vmatmul.bf16.vlgmr.msra.gmra.mxu1 %v326_v49 }
  0xb4   : > { %v432_v52 = vpop.f32.mrf.mxu0 }
  0xb5   : > { %v449_v53 = vadd.f32 %v432_v52, %v324_v50  ;;  %v445_v54 = vpop.f32.mrf.mxu1 }
  0xb6   : > { %v450_v55 = vadd.f32 %v445_v54, %v325_v51 }
  0xb7   : > { %451 = vst [vmem:[#allocation2] sm:$0xff] %v449_v53 }
  0xb8   : > { %452 = vst [vmem:[#allocation2 + $0x8] sm:$0xff] %v450_v55 }
  0xb9   : > { %456 = sbr.rel (%p683_p7) target bundleno = 203 (0xcb), region = 44 }
  0xbc   : > { %v434_v56 = vpop.f32.mrf.mxu0 }
  0xbd   : > { %v447_v57 = vpop.f32.mrf.mxu1 }
  0xbe   : > { %v457_v58 = vld [vmem:[#allocation2] sm:$0xff] }
  0xbf   : > { %v458_v59 = vld [vmem:[#allocation2 + $0x8] sm:$0xff]  ;;  %v459_v60 = vld [vmem:[%s868_s2] sm:$0x3] }
  0xc0   : > { %v461_v61 = vperm.slane %v459_v60, 0  ;;  %v462_v62 = vperm.slane %v459_v60, 1  ;;  %v467_v63 = vld [vmem:[%s869_s3] sm:$0x3] }
  0xc1   : > { %v469_v0 = vperm.slane %v467_v63, 0  ;;  %v470_v1 = vperm.slane %v467_v63, 1 }
  0xc2   : > { %v465_v2 = vmul.f32 %v461_v61, %v457_v58  ;;  %v466_v3 = vmul.f32 %v462_v62, %v458_v59 }
  0xc4   : > { %v473_v4 = vadd.f32 %v469_v0, %v465_v2  ;;  %v474_v5 = vadd.f32 %v470_v1, %v466_v3 }
  0xc6   : > { %v475_v6 = vmax.f32 %v473_v4, 0.0  ;;  %v476_v7 = vmax.f32 %v474_v5, 0.0 }
  0xc8   : > { %v477_v8 = vpack.c.bf16 %v476_v7, %v475_v6 }
  0xca   : > { %478 = vst [vmem:[%s870_s4] sm:$0xff] %v477_v8 }
  0xcb PF: > { %s14_s17 = sadd.s32 1, %s752_s17   ;;  %s871_s15 = smov %s748_s16 }
  0xcc   : > { %p11_p8 = scmp.ge.s32.totalorder %s14_s17, 11   ;;  %s872_s16 = smov %s874_s18 }
  0xce   :  { %13 = sbr.rel (!%p11_p8) target bundleno = 2 (0x2), region = 83 }

// kernel: _lambda_.33
= control target key start
LH: loop header
LB: loop body
LE: loop exit
PB: predicated region body
PF: predicated region fallthrough
CT: control target
= control target key end

     0   :  { %s392_s1 = inlined_call_operand.vmem [shape: bf16[128,256], index: 1, kind: input, shape index: {}]   ;;  %s393_s0 = inlined_call_operand.vmem [shape: bf16[8,128], index: 0, kind: input, shape index: {}]   ;;  %s394_s2 = inlined_call_operand.vmem [shape: f32[1,256], index: 2, kind: input, shape index: {}]   ;;  %s395_s3 = inlined_call_operand.vmem [shape: f32[1,256], index: 3, kind: input, shape index: {}]   ;;  %s396_s4 = inlined_call_operand.vmem [shape: bf16[8,256], index: 4, kind: output, shape index: {}]  }
   0x1   :  { %v237_v0 = vld [vmem:[%s392_s1 + $0x70] sm:$0xf]  ;;  %v258_v1 = vld [vmem:[%s392_s1 + $0x74] sm:$0xf0]  ;;  %v257_v2 = vld [vmem:[%s392_s1 + $0x74] sm:$0xf] }
   0x2   :  { %v238_v3 = vor.u32 %v258_v1, %v237_v0  ;;  %v239_v4 = vld [vmem:[%s392_s1 + $0x78] sm:$0xf0]  ;;  %v229_v5 = vld [vmem:[%s392_s1 + $0x60] sm:$0xf]  ;;  %v256_v6 = vld [vmem:[%s392_s1 + $0x64] sm:$0xf0] }
   0x3   :  { %v242_v7 = vor.u32 %v257_v2, %v239_v4  ;;  %v255_v8 = vld [vmem:[%s392_s1 + $0x64] sm:$0xf]  ;;  %v231_v9 = vld [vmem:[%s392_s1 + $0x68] sm:$0xf0]  ;;  %v230_v10 = vor.u32 %v256_v6, %v229_v5  ;;  %v221_v12 = vld [vmem:[%s392_s1 + $0x50] sm:$0xf] }
   0x4   :  { %122 = vmatpush.bf16.msra.mxu0 %v238_v3  ;;  %v234_v11 = vor.u32 %v255_v8, %v231_v9  ;;  %v254_v13 = vld [vmem:[%s392_s1 + $0x54] sm:$0xf0]  ;;  %v253_v14 = vld [vmem:[%s392_s1 + $0x54] sm:$0xf]  ;;  %v223_v15 = vld [vmem:[%s392_s1 + $0x58] sm:$0xf0] }
   0x5   :  { %135 = vmatpush.bf16.msra.mxu1 %v242_v7  ;;  %v222_v16 = vor.u32 %v254_v13, %v221_v12  ;;  %v226_v17 = vor.u32 %v253_v14, %v223_v15  ;;  %v213_v18 = vld [vmem:[%s392_s1 + $0x40] sm:$0xf]  ;;  %v252_v19 = vld [vmem:[%s392_s1 + $0x44] sm:$0xf0]  ;;  %v251_v20 = vld [vmem:[%s392_s1 + $0x44] sm:$0xf] }
   0x6   :  { %v215_v21 = vld [vmem:[%s392_s1 + $0x48] sm:$0xf0]  ;;  %v214_v22 = vor.u32 %v252_v19, %v213_v18  ;;  %v205_v24 = vld [vmem:[%s392_s1 + $0x30] sm:$0xf]  ;;  %v250_v25 = vld [vmem:[%s392_s1 + $0x34] sm:$0xf0] }
   0x7   :  { %v218_v23 = vor.u32 %v251_v20, %v215_v21  ;;  %v249_v26 = vld [vmem:[%s392_s1 + $0x34] sm:$0xf]  ;;  %v207_v27 = vld [vmem:[%s392_s1 + $0x38] sm:$0xf0]  ;;  %v206_v28 = vor.u32 %v250_v25, %v205_v24  ;;  %v197_v30 = vld [vmem:[%s392_s1 + $0x20] sm:$0xf] }
   0x8   :  { %123 = vmatpush.bf16.msra.mxu0 %v230_v10  ;;  %v210_v29 = vor.u32 %v249_v26, %v207_v27  ;;  %v248_v31 = vld [vmem:[%s392_s1 + $0x24] sm:$0xf0]  ;;  %v247_v32 = vld [vmem:[%s392_s1 + $0x24] sm:$0xf]  ;;  %v199_v33 = vld [vmem:[%s392_s1 + $0x28] sm:$0xf0] }
   0x9   :  { %136 = vmatpush.bf16.msra.mxu1 %v234_v11  ;;  %v198_v34 = vor.u32 %v248_v31, %v197_v30  ;;  %v202_v35 = vor.u32 %v247_v32, %v199_v33  ;;  %v189_v36 = vld [vmem:[%s392_s1 + $0x10] sm:$0xf]  ;;  %v246_v37 = vld [vmem:[%s392_s1 + $0x14] sm:$0xf0]  ;;  %v245_v38 = vld [vmem:[%s392_s1 + $0x14] sm:$0xf] }
   0xa   :  { %v191_v39 = vld [vmem:[%s392_s1 + $0x18] sm:$0xf0]  ;;  %v190_v40 = vor.u32 %v246_v37, %v189_v36  ;;  %v181_v42 = vld [vmem:[%s392_s1] sm:$0xf]  ;;  %v244_v43 = vld [vmem:[%s392_s1 + $0x4] sm:$0xf0] }
   0xb   :  { %v194_v41 = vor.u32 %v245_v38, %v191_v39  ;;  %v243_v44 = vld [vmem:[%s392_s1 + $0x4] sm:$0xf]  ;;  %v183_v45 = vld [vmem:[%s392_s1 + $0x8] sm:$0xf0]  ;;  %v182_v46 = vor.u32 %v244_v43, %v181_v42  ;;  %v25_v48 = vld [vmem:[%s393_s0] sm:$0xf] }
   0xc   :  { %124 = vmatpush.bf16.msra.mxu0 %v222_v16  ;;  %v186_v47 = vor.u32 %v243_v44, %v183_v45  ;;  %v157_v49 = vld [vmem:[%s394_s2] sm:$0x3] }
   0xd   :  { %137 = vmatpush.bf16.msra.mxu1 %v226_v17  ;;  %v165_v50 = vld [vmem:[%s395_s3] sm:$0x3]  ;;  %v159_v51 = vperm.slane %v157_v49, 0  ;;  %v160_v52 = vperm.slane %v157_v49, 1 }
   0xe   :  { %v167_v53 = vperm.slane %v165_v50, 0  ;;  %v168_v55 = vperm.slane %v165_v50, 1 }
  0x10   :  { %125 = vmatpush.bf16.msra.mxu0 %v214_v22 }
  0x11   :  { %138 = vmatpush.bf16.msra.mxu1 %v218_v23 }
  0x14   :  { %126 = vmatpush.bf16.msra.mxu0 %v206_v28 }
  0x15   :  { %139 = vmatpush.bf16.msra.mxu1 %v210_v29 }
  0x18   :  { %127 = vmatpush.bf16.msra.mxu0 %v198_v34 }
  0x19   :  { %140 = vmatpush.bf16.msra.mxu1 %v202_v35 }
  0x1c   :  { %128 = vmatpush.bf16.msra.mxu0 %v190_v40 }
  0x1d   :  { %141 = vmatpush.bf16.msra.mxu1 %v194_v41 }
  0x20   :  { %129 = vmatpush.bf16.msra.mxu0 %v182_v46 }
  0x21   :  { %142 = vmatpush.bf16.msra.mxu1 %v186_v47 }
  0x23   :  { %130 = vmatmul.bf16.vlgmr.msra.gmra.mxu0 %v25_v48 }
  0x24   :  { %143 = vmatmul.bf16.vlgmr.msra.gmra.mxu1 %v25_v48 }
  0xa0   :  { %v131_v54 = vpop.f32.mrf.mxu0 }
  0xa1   :  { %v163_v56 = vmul.f32 %v159_v51, %v131_v54  ;;  %v144_v57 = vpop.f32.mrf.mxu1 }
  0xa2   :  { %v164_v58 = vmul.f32 %v160_v52, %v144_v57 }
  0xa3   :  { %v171_v59 = vadd.f32 %v167_v53, %v163_v56 }
  0xa4   :  { %v172_v60 = vadd.f32 %v168_v55, %v164_v58 }
  0xa6   :  { %v173_v61 = vpack.c.bf16 %v172_v60, %v171_v59 }
  0xa8   :  { %174 = vst [vmem:[%s396_s4] sm:$0xff] %v173_v61  ;;  %v133_v62 = vpop.f32.mrf.mxu0 }
  0xa9   :  { %v146_v63 = vpop.f32.mrf.mxu1 }

// kernel: _lambda_.35
= control target key start
LH: loop header
LB: loop body
LE: loop exit
PB: predicated region body
PF: predicated region fallthrough
CT: control target
= control target key end

     0   :  { %s1090_s18 = smov 0   ;;  %s1092_s19 = smov 0   ;;  %s1210_s0 = inlined_call_operand.vmem [shape: bf16[8,2304], index: 0, kind: input, shape index: {}]   ;;  %s1211_s1 = inlined_call_operand.vmem [shape: bf16[2304,256], index: 1, kind: input, shape index: {}]   ;;  %s1212_s2 = inlined_call_operand.vmem [shape: f32[1,256], index: 2, kind: input, shape index: {}]   ;;  %s1213_s3 = inlined_call_operand.vmem [shape: f32[1,256], index: 3, kind: input, shape index: {}]   ;;  %s1214_s4 = inlined_call_operand.vmem [shape: bf16[8,256], index: 4, kind: input, shape index: {}]   ;;  %s1215_s5 = inlined_call_operand.vmem [shape: bf16[8,256], index: 5, kind: output, shape index: {}]  }
   0x1   :  { %s1094_s20 = smov 0  }
   0x2 LB: > { %s27_s21 = sadd.s32 1, %s1053_s19  ;;  %p837_p0 = scmp.ge.s32.totalorder %s1057_s20, 1  ;;  %s1057_s20 = sphi %s1094_s20, %s15_s20   ;;  %s1053_s19 = sphi %s1092_s19, %s1217_s19   ;;  %s1049_s18 = sphi %s1090_s18, %s1216_s18  }
   0x3   : > { %p28_p1 = scmp.ge.s32.totalorder %s27_s21, 9  ;;  %p271_p2 = scmp.lt.s32.totalorder %s1057_s20, 10 }
   0x5   : > { %s1219_s21 = smov (%p28_p1, %s27_s21), 0  ;;  %p272_p3 = pnand %p837_p0, %p271_p2 }
   0x6   : > { %s838_s22 = sshll.u32 (!%p272_p3), %s1049_s18, 1  ;;  %s840_s23 = sshll.u32 (!%p272_p3), %s1049_s18, 5 }
   0x7   : > { %275 = sbr.rel (%p272_p3) target bundleno = 214 (0xd6), region = 40  ;;  %p337_p4 = scmp.lt.s32.totalorder (!%p272_p3), %s838_s22, 17 }
   0x8   : > { %p346_p5 = scmp.lt.s32.totalorder (!%p272_p3), %s840_s23, 287  ;;  %p843_p6 = scmp.ne.s32.totalorder (!%p272_p3), %s1049_s18, 0 }
   0xc   : > { %s1221_s22 = smov (!%p337_p4, %s838_s22), 17  ;;  %s1223_s23 = smov (!%p346_p5, %s840_s23), 287 }
   0xd   : > { %s839_s24 = sshll.u32 %s1221_s22, 2  ;;  %s977_s28 = sshll.u32 %s1223_s23, 3 }
   0xe   : > { %s1115_s27 = scalar_lea.vmem %s1210_s0, %s839_s24  ;;  %s1120_s6 = scalar_lea.vmem %s1211_s1, %s977_s28 }
   0xf   : > { %389 = sbr.rel (%p843_p6) target bundleno = 23 (0x17), region = 44 }
  0x14   : > { %v1059_v0 = vmov 0.0  }
  0x15   : > { %390 = vst [vmem:[#allocation2] sm:$0xff] %v1059_v0 }
  0x16   : > { %391 = vst [vmem:[#allocation2 + $0x8] sm:$0xff] %v1059_v0 }
  0x17 PF: > { %v902_v1 = vld [vmem:[%s1120_s6 + $0x70] sm:$0xf]  ;;  %v993_v2 = vld [vmem:[%s1120_s6 + $0x74] sm:$0xf0]  ;;  %v992_v6 = vld [vmem:[%s1120_s6 + $0x74] sm:$0xf] }
  0x18   : > { %v966_v3 = vld [vmem:[%s1120_s6 + $0xf0] sm:$0xf]  ;;  %v903_v4 = vor.u32 %v993_v2, %v902_v1  ;;  %v1009_v5 = vld [vmem:[%s1120_s6 + $0xf4] sm:$0xf0]  ;;  %v904_v7 = vld [vmem:[%s1120_s6 + $0x78] sm:$0xf0] }
  0x19   : > { %v967_v8 = vor.u32 %v1009_v5, %v966_v3  ;;  %v907_v9 = vor.u32 %v992_v6, %v904_v7  ;;  %v1008_v10 = vld [vmem:[%s1120_s6 + $0xf4] sm:$0xf]  ;;  %v968_v11 = vld [vmem:[%s1120_s6 + $0xf8] sm:$0xf0]  ;;  %v894_v12 = vld [vmem:[%s1120_s6 + $0x60] sm:$0xf] }
  0x1a   : > { %594 = vmatpush.bf16.msra.mxu0 %v903_v4  ;;  %v971_v13 = vor.u32 %v1008_v10, %v968_v11  ;;  %v991_v14 = vld [vmem:[%s1120_s6 + $0x64] sm:$0xf0]  ;;  %v958_v15 = vld [vmem:[%s1120_s6 + $0xe0] sm:$0xf]  ;;  %v990_v19 = vld [vmem:[%s1120_s6 + $0x64] sm:$0xf] }
  0x1b   : > { %v1007_v16 = vld [vmem:[%s1120_s6 + $0xe4] sm:$0xf0]  ;;  %607 = vmatpush.bf16.msra.mxu1 %v967_v8  ;;  %620 = vmatpush.bf16.msra.mxu2 %v907_v9  ;;  %v895_v17 = vor.u32 %v991_v14, %v894_v12  ;;  %v896_v20 = vld [vmem:[%s1120_s6 + $0x68] sm:$0xf0]  ;;  %v1006_v21 = vld [vmem:[%s1120_s6 + $0xe4] sm:$0xf] }
  0x1c   : > { %v959_v18 = vor.u32 %v1007_v16, %v958_v15  ;;  %633 = vmatpush.bf16.msra.mxu3 %v971_v13  ;;  %v899_v22 = vor.u32 %v990_v19, %v896_v20  ;;  %v960_v23 = vld [vmem:[%s1120_s6 + $0xe8] sm:$0xf0]  ;;  %v886_v24 = vld [vmem:[%s1120_s6 + $0x50] sm:$0xf]  ;;  %v989_v25 = vld [vmem:[%s1120_s6 + $0x54] sm:$0xf0] }
  0x1d   : > { %v963_v26 = vor.u32 %v1006_v21, %v960_v23  ;;  %v950_v27 = vld [vmem:[%s1120_s6 + $0xd0] sm:$0xf]  ;;  %v1005_v28 = vld [vmem:[%s1120_s6 + $0xd4] sm:$0xf0]  ;;  %v988_v29 = vld [vmem:[%s1120_s6 + $0x54] sm:$0xf]  ;;  %v887_v30 = vor.u32 %v989_v25, %v886_v24 }
  0x1e   : > { %595 = vmatpush.bf16.msra.mxu0 %v895_v17  ;;  %v888_v31 = vld [vmem:[%s1120_s6 + $0x58] sm:$0xf0]  ;;  %v1004_v32 = vld [vmem:[%s1120_s6 + $0xd4] sm:$0xf]  ;;  %v951_v34 = vor.u32 %v1005_v28, %v950_v27  ;;  %v878_v36 = vld [vmem:[%s1120_s6 + $0x40] sm:$0xf] }
  0x1f   : > { %v952_v33 = vld [vmem:[%s1120_s6 + $0xd8] sm:$0xf0]  ;;  %608 = vmatpush.bf16.msra.mxu1 %v959_v18  ;;  %621 = vmatpush.bf16.msra.mxu2 %v899_v22  ;;  %v891_v35 = vor.u32 %v988_v29, %v888_v31  ;;  %v987_v37 = vld [vmem:[%s1120_s6 + $0x44] sm:$0xf0]  ;;  %v942_v38 = vld [vmem:[%s1120_s6 + $0xc0] sm:$0xf] }
  0x20   : > { %634 = vmatpush.bf16.msra.mxu3 %v963_v26  ;;  %v955_v39 = vor.u32 %v1004_v32, %v952_v33  ;;  %v1003_v40 = vld [vmem:[%s1120_s6 + $0xc4] sm:$0xf0]  ;;  %v986_v41 = vld [vmem:[%s1120_s6 + $0x44] sm:$0xf]  ;;  %v880_v42 = vld [vmem:[%s1120_s6 + $0x48] sm:$0xf0]  ;;  %v879_v45 = vor.u32 %v987_v37, %v878_v36 }
  0x21   : > { %v1002_v43 = vld [vmem:[%s1120_s6 + $0xc4] sm:$0xf]  ;;  %v944_v44 = vld [vmem:[%s1120_s6 + $0xc8] sm:$0xf0]  ;;  %v943_v46 = vor.u32 %v1003_v40, %v942_v38  ;;  %v883_v47 = vor.u32 %v986_v41, %v880_v42  ;;  %v870_v48 = vld [vmem:[%s1120_s6 + $0x30] sm:$0xf] }
  0x22   : > { %596 = vmatpush.bf16.msra.mxu0 %v887_v30  ;;  %v985_v49 = vld [vmem:[%s1120_s6 + $0x34] sm:$0xf0]  ;;  %v934_v50 = vld [vmem:[%s1120_s6 + $0xb0] sm:$0xf]  ;;  %v947_v51 = vor.u32 %v1002_v43, %v944_v44  ;;  %v984_v53 = vld [vmem:[%s1120_s6 + $0x34] sm:$0xf] }
  0x23   : > { %609 = vmatpush.bf16.msra.mxu1 %v951_v34  ;;  %622 = vmatpush.bf16.msra.mxu2 %v891_v35  ;;  %v1001_v52 = vld [vmem:[%s1120_s6 + $0xb4] sm:$0xf0]  ;;  %v872_v54 = vld [vmem:[%s1120_s6 + $0x38] sm:$0xf0]  ;;  %v1000_v55 = vld [vmem:[%s1120_s6 + $0xb4] sm:$0xf]  ;;  %v871_v57 = vor.u32 %v985_v49, %v870_v48 }
  0x24   : > { %635 = vmatpush.bf16.msra.mxu3 %v955_v39  ;;  %v936_v56 = vld [vmem:[%s1120_s6 + $0xb8] sm:$0xf0]  ;;  %v935_v58 = vor.u32 %v1001_v52, %v934_v50  ;;  %v875_v59 = vor.u32 %v984_v53, %v872_v54  ;;  %v862_v60 = vld [vmem:[%s1120_s6 + $0x20] sm:$0xf]  ;;  %v983_v61 = vld [vmem:[%s1120_s6 + $0x24] sm:$0xf0] }
  0x25   : > { %v926_v62 = vld [vmem:[%s1120_s6 + $0xa0] sm:$0xf]  ;;  %v939_v63 = vor.u32 %v1000_v55, %v936_v56  ;;  %v999_v0 = vld [vmem:[%s1120_s6 + $0xa4] sm:$0xf0]  ;;  %v982_v1 = vld [vmem:[%s1120_s6 + $0x24] sm:$0xf]  ;;  %v863_v5 = vor.u32 %v983_v61, %v862_v60 }
  0x26   : > { %597 = vmatpush.bf16.msra.mxu0 %v879_v45  ;;  %v864_v2 = vld [vmem:[%s1120_s6 + $0x28] sm:$0xf0]  ;;  %v998_v3 = vld [vmem:[%s1120_s6 + $0xa4] sm:$0xf]  ;;  %v927_v6 = vor.u32 %v999_v0, %v926_v62  ;;  %v854_v8 = vld [vmem:[%s1120_s6 + $0x10] sm:$0xf] }
  0x27   : > { %610 = vmatpush.bf16.msra.mxu1 %v943_v46  ;;  %623 = vmatpush.bf16.msra.mxu2 %v883_v47  ;;  %v928_v4 = vld [vmem:[%s1120_s6 + $0xa8] sm:$0xf0]  ;;  %v867_v7 = vor.u32 %v982_v1, %v864_v2  ;;  %v981_v9 = vld [vmem:[%s1120_s6 + $0x14] sm:$0xf0]  ;;  %v918_v10 = vld [vmem:[%s1120_s6 + $0x90] sm:$0xf] }
  0x28   : > { %636 = vmatpush.bf16.msra.mxu3 %v947_v51  ;;  %v931_v11 = vor.u32 %v998_v3, %v928_v4  ;;  %v997_v12 = vld [vmem:[%s1120_s6 + $0x94] sm:$0xf0]  ;;  %v980_v13 = vld [vmem:[%s1120_s6 + $0x14] sm:$0xf]  ;;  %v856_v14 = vld [vmem:[%s1120_s6 + $0x18] sm:$0xf0]  ;;  %v855_v17 = vor.u32 %v981_v9, %v854_v8 }
  0x29   : > { %v996_v15 = vld [vmem:[%s1120_s6 + $0x94] sm:$0xf]  ;;  %v920_v16 = vld [vmem:[%s1120_s6 + $0x98] sm:$0xf0]  ;;  %v394_v18 = vld [vmem:[%s1115_s27] sm:$0xff]  ;;  %v919_v19 = vor.u32 %v997_v12, %v918_v10  ;;  %v859_v20 = vor.u32 %v980_v13, %v856_v14  ;;  %p972_p7 = scmp.ne.s32.totalorder %s1049_s18, 8 }
  0x2a   : > { %598 = vmatpush.bf16.msra.mxu0 %v871_v57  ;;  %v846_v21 = vld [vmem:[%s1120_s6] sm:$0xf]  ;;  %v979_v22 = vld [vmem:[%s1120_s6 + $0x4] sm:$0xf0]  ;;  %v923_v24 = vor.u32 %v996_v15, %v920_v16  ;;  %v978_v26 = vld [vmem:[%s1120_s6 + $0x4] sm:$0xf]  ;;  %v428_v30 = vunpack.c.l.b16 %v394_v18  ;;  %v429_v32 = vunpack.c.h.b16 %v394_v18 }
  0x2b   : > { %611 = vmatpush.bf16.msra.mxu1 %v935_v58  ;;  %624 = vmatpush.bf16.msra.mxu2 %v875_v59  ;;  %v910_v23 = vld [vmem:[%s1120_s6 + $0x80] sm:$0xf]  ;;  %v995_v25 = vld [vmem:[%s1120_s6 + $0x84] sm:$0xf0]  ;;  %v848_v27 = vld [vmem:[%s1120_s6 + $0x8] sm:$0xf0]  ;;  %v847_v31 = vor.u32 %v979_v22, %v846_v21 }
  0x2c   : > { %637 = vmatpush.bf16.msra.mxu3 %v939_v63  ;;  %v994_v28 = vld [vmem:[%s1120_s6 + $0x84] sm:$0xf]  ;;  %v912_v29 = vld [vmem:[%s1120_s6 + $0x88] sm:$0xf0]  ;;  %v911_v33 = vor.u32 %v995_v25, %v910_v23  ;;  %v851_v34 = vor.u32 %v978_v26, %v848_v27  ;;  %v430_v36 = vpack.c.b16 %v428_v30, %v428_v30  ;;  %v431_v37 = vpack.c.b16 %v429_v32, %v429_v32 }
  0x2d   : > { %v915_v35 = vor.u32 %v994_v28, %v912_v29  ;;  %v392_v39 = vld [vmem:[#allocation2] sm:$0xff]  ;;  %v393_v44 = vld [vmem:[#allocation2 + $0x8] sm:$0xff] }
  0x2e   : > { %599 = vmatpush.bf16.msra.mxu0 %v863_v5 }
  0x2f   : > { %612 = vmatpush.bf16.msra.mxu1 %v927_v6  ;;  %625 = vmatpush.bf16.msra.mxu2 %v867_v7 }
  0x30   : > { %638 = vmatpush.bf16.msra.mxu3 %v931_v11 }
  0x32   : > { %600 = vmatpush.bf16.msra.mxu0 %v855_v17 }
  0x33   : > { %613 = vmatpush.bf16.msra.mxu1 %v919_v19  ;;  %626 = vmatpush.bf16.msra.mxu2 %v859_v20 }
  0x34   : > { %639 = vmatpush.bf16.msra.mxu3 %v923_v24 }
  0x36   : > { %601 = vmatpush.bf16.msra.mxu0 %v847_v31 }
  0x37   : > { %614 = vmatpush.bf16.msra.mxu1 %v911_v33  ;;  %627 = vmatpush.bf16.msra.mxu2 %v851_v34 }
  0x38   : > { %640 = vmatpush.bf16.msra.mxu3 %v915_v35 }
  0x39   : > { %602 = vmatmul.bf16.vlgmr.msra.gmra.mxu0 %v430_v36 }
  0x3a   : > { %615 = vmatmul.bf16.vlgmr.msra.gmra.mxu1 %v431_v37  ;;  %628 = vmatmul.bf16.vlgmr.msra.gmra.mxu2 %v430_v36 }
  0x3b   : > { %641 = vmatmul.bf16.vlgmr.msra.gmra.mxu3 %v431_v37 }
  0xb6   : > { %v603_v38 = vpop.f32.mrf.mxu0 }
  0xb7   : > { %v616_v40 = vpop.f32.mrf.mxu1 }
  0xb8   : > { %v617_v41 = vadd.f32 %v616_v40, %v603_v38 }
  0xba   : > { %v646_v42 = vadd.f32 %v617_v41, %v392_v39 }
  0xbc   : > { %648 = vst [vmem:[#allocation2] sm:$0xff] %v646_v42 }
  0xbd   : > { %v629_v43 = vpop.f32.mrf.mxu2 }
  0xbe   : > { %v642_v45 = vpop.f32.mrf.mxu3  ;;  %v605_v46 = vpop.f32.mrf.mxu0 }
  0xbf   : > { %v643_v47 = vadd.f32 %v642_v45, %v629_v43  ;;  %v618_v48 = vpop.f32.mrf.mxu1 }
  0xc1   : > { %v647_v49 = vadd.f32 %v643_v47, %v393_v44 }
  0xc2   : > { %653 = sbr.rel (%p972_p7) target bundleno = 214 (0xd6), region = 48 }
  0xc3   : > { %649 = vst [vmem:[#allocation2 + $0x8] sm:$0xff] %v647_v49 }
  0xc5   : > { %v631_v50 = vpop.f32.mrf.mxu2 }
  0xc6   : > { %v644_v51 = vpop.f32.mrf.mxu3 }
  0xc7   : > { %v654_v52 = vld [vmem:[#allocation2] sm:$0xff] }
  0xc8   : > { %v656_v54 = vld [vmem:[%s1212_s2] sm:$0x3] }
  0xc9   : > { %v658_v55 = vperm.slane %v656_v54, 0  ;;  %v659_v56 = vperm.slane %v656_v54, 1  ;;  %v664_v57 = vld [vmem:[%s1213_s3] sm:$0x3] }
  0xca   : > { %v655_v53 = vld [vmem:[#allocation2 + $0x8] sm:$0xff]  ;;  %v672_v58 = vld [vmem:[%s1214_s4] sm:$0xff]  ;;  %v666_v59 = vperm.slane %v664_v57, 0  ;;  %v667_v60 = vperm.slane %v664_v57, 1 }
  0xcb   : > { %v662_v61 = vmul.f32 %v658_v55, %v654_v52  ;;  %v663_v62 = vmul.f32 %v659_v56, %v655_v53  ;;  %v673_v63 = vunpack.c.l.bf16 %v672_v58  ;;  %v674_v0 = vunpack.c.h.bf16 %v672_v58 }
  0xcd   : > { %v670_v1 = vadd.f32 %v666_v59, %v662_v61  ;;  %v671_v2 = vadd.f32 %v667_v60, %v663_v62 }
  0xcf   : > { %v675_v3 = vadd.f32 %v673_v63, %v670_v1  ;;  %v676_v4 = vadd.f32 %v674_v0, %v671_v2 }
  0xd1   : > { %v677_v5 = vmax.f32 %v675_v3, 0.0  ;;  %v678_v6 = vmax.f32 %v676_v4, 0.0 }
  0xd3   : > { %v679_v7 = vpack.c.bf16 %v678_v6, %v677_v5 }
  0xd5   : > { %680 = vst [vmem:[%s1215_s5] sm:$0xff] %v679_v7 }
  0xd6 PF: > { %s15_s20 = sadd.s32 1, %s1057_s20   ;;  %s1216_s18 = smov %s1053_s19 }
  0xd7   : > { %p12_p8 = scmp.ge.s32.totalorder %s15_s20, 11   ;;  %s1217_s19 = smov %s1219_s21 }
  0xd9   :  { %14 = sbr.rel (!%p12_p8) target bundleno = 2 (0x2), region = 90 }

// kernel: _lambda_.36
= control target key start
LH: loop header
LB: loop body
LE: loop exit
PB: predicated region body
PF: predicated region fallthrough
CT: control target
= control target key end

     0   :  { %s995_s15 = smov 0   ;;  %s997_s16 = smov 0   ;;  %s1112_s0 = inlined_call_operand.vmem [shape: bf16[8,2304], index: 0, kind: input, shape index: {}]   ;;  %s1113_s1 = inlined_call_operand.vmem [shape: bf16[2304,256], index: 1, kind: input, shape index: {}]   ;;  %s1114_s2 = inlined_call_operand.vmem [shape: f32[1,256], index: 2, kind: input, shape index: {}]   ;;  %s1115_s3 = inlined_call_operand.vmem [shape: f32[1,256], index: 3, kind: input, shape index: {}]   ;;  %s1116_s4 = inlined_call_operand.vmem [shape: bf16[8,256], index: 4, kind: output, shape index: {}]  }
   0x1   :  { %s999_s17 = smov 0  }
   0x2 LB: > { %s26_s18 = sadd.s32 1, %s963_s16  ;;  %p747_p0 = scmp.ge.s32.totalorder %s967_s17, 1  ;;  %s967_s17 = sphi %s999_s17, %s14_s17   ;;  %s963_s16 = sphi %s997_s16, %s1118_s16   ;;  %s959_s15 = sphi %s995_s15, %s1117_s15  }
   0x3   : > { %p27_p1 = scmp.ge.s32.totalorder %s26_s18, 9  ;;  %p229_p2 = scmp.lt.s32.totalorder %s967_s17, 10 }
   0x5   : > { %s1120_s18 = smov (%p27_p1, %s26_s18), 0  ;;  %p230_p3 = pnand %p747_p0, %p229_p2 }
   0x6   : > { %s748_s19 = sshll.u32 (!%p230_p3), %s959_s15, 1  ;;  %s750_s20 = sshll.u32 (!%p230_p3), %s959_s15, 5 }
   0x7   : > { %233 = sbr.rel (%p230_p3) target bundleno = 212 (0xd4), region = 36  ;;  %p284_p4 = scmp.lt.s32.totalorder (!%p230_p3), %s748_s19, 17 }
   0x8   : > { %p293_p5 = scmp.lt.s32.totalorder (!%p230_p3), %s750_s20, 287  ;;  %p753_p6 = scmp.ne.s32.totalorder (!%p230_p3), %s959_s15, 0 }
   0xc   : > { %s1122_s19 = smov (!%p284_p4, %s748_s19), 17  ;;  %s1124_s20 = smov (!%p293_p5, %s750_s20), 287 }
   0xd   : > { %s749_s21 = sshll.u32 %s1122_s19, 2  ;;  %s887_s25 = sshll.u32 %s1124_s20, 3 }
   0xe   : > { %s1020_s24 = scalar_lea.vmem %s1112_s0, %s749_s21  ;;  %s1025_s28 = scalar_lea.vmem %s1113_s1, %s887_s25 }
   0xf   : > { %326 = sbr.rel (%p753_p6) target bundleno = 23 (0x17), region = 40 }
  0x14   : > { %v969_v0 = vmov 0.0  }
  0x15   : > { %327 = vst [vmem:[#allocation2] sm:$0xff] %v969_v0 }
  0x16   : > { %328 = vst [vmem:[#allocation2 + $0x8] sm:$0xff] %v969_v0 }
  0x17 PF: > { %v812_v1 = vld [vmem:[%s1025_s28 + $0x70] sm:$0xf]  ;;  %v903_v2 = vld [vmem:[%s1025_s28 + $0x74] sm:$0xf0]  ;;  %v902_v6 = vld [vmem:[%s1025_s28 + $0x74] sm:$0xf] }
  0x18   : > { %v876_v3 = vld [vmem:[%s1025_s28 + $0xf0] sm:$0xf]  ;;  %v813_v4 = vor.u32 %v903_v2, %v812_v1  ;;  %v919_v5 = vld [vmem:[%s1025_s28 + $0xf4] sm:$0xf0]  ;;  %v814_v7 = vld [vmem:[%s1025_s28 + $0x78] sm:$0xf0] }
  0x19   : > { %v877_v8 = vor.u32 %v919_v5, %v876_v3  ;;  %v817_v9 = vor.u32 %v902_v6, %v814_v7  ;;  %v918_v10 = vld [vmem:[%s1025_s28 + $0xf4] sm:$0xf]  ;;  %v878_v11 = vld [vmem:[%s1025_s28 + $0xf8] sm:$0xf0]  ;;  %v804_v12 = vld [vmem:[%s1025_s28 + $0x60] sm:$0xf] }
  0x1a   : > { %531 = vmatpush.bf16.msra.mxu0 %v813_v4  ;;  %v881_v13 = vor.u32 %v918_v10, %v878_v11  ;;  %v901_v14 = vld [vmem:[%s1025_s28 + $0x64] sm:$0xf0]  ;;  %v868_v15 = vld [vmem:[%s1025_s28 + $0xe0] sm:$0xf]  ;;  %v900_v19 = vld [vmem:[%s1025_s28 + $0x64] sm:$0xf] }
  0x1b   : > { %v917_v16 = vld [vmem:[%s1025_s28 + $0xe4] sm:$0xf0]  ;;  %544 = vmatpush.bf16.msra.mxu1 %v877_v8  ;;  %557 = vmatpush.bf16.msra.mxu2 %v817_v9  ;;  %v805_v17 = vor.u32 %v901_v14, %v804_v12  ;;  %v806_v20 = vld [vmem:[%s1025_s28 + $0x68] sm:$0xf0]  ;;  %v916_v21 = vld [vmem:[%s1025_s28 + $0xe4] sm:$0xf] }
  0x1c   : > { %v869_v18 = vor.u32 %v917_v16, %v868_v15  ;;  %570 = vmatpush.bf16.msra.mxu3 %v881_v13  ;;  %v809_v22 = vor.u32 %v900_v19, %v806_v20  ;;  %v870_v23 = vld [vmem:[%s1025_s28 + $0xe8] sm:$0xf0]  ;;  %v796_v24 = vld [vmem:[%s1025_s28 + $0x50] sm:$0xf]  ;;  %v899_v25 = vld [vmem:[%s1025_s28 + $0x54] sm:$0xf0] }
  0x1d   : > { %v873_v26 = vor.u32 %v916_v21, %v870_v23  ;;  %v860_v27 = vld [vmem:[%s1025_s28 + $0xd0] sm:$0xf]  ;;  %v915_v28 = vld [vmem:[%s1025_s28 + $0xd4] sm:$0xf0]  ;;  %v898_v29 = vld [vmem:[%s1025_s28 + $0x54] sm:$0xf]  ;;  %v797_v30 = vor.u32 %v899_v25, %v796_v24 }
  0x1e   : > { %532 = vmatpush.bf16.msra.mxu0 %v805_v17  ;;  %v798_v31 = vld [vmem:[%s1025_s28 + $0x58] sm:$0xf0]  ;;  %v914_v32 = vld [vmem:[%s1025_s28 + $0xd4] sm:$0xf]  ;;  %v861_v34 = vor.u32 %v915_v28, %v860_v27  ;;  %v788_v36 = vld [vmem:[%s1025_s28 + $0x40] sm:$0xf] }
  0x1f   : > { %v862_v33 = vld [vmem:[%s1025_s28 + $0xd8] sm:$0xf0]  ;;  %545 = vmatpush.bf16.msra.mxu1 %v869_v18  ;;  %558 = vmatpush.bf16.msra.mxu2 %v809_v22  ;;  %v801_v35 = vor.u32 %v898_v29, %v798_v31  ;;  %v897_v37 = vld [vmem:[%s1025_s28 + $0x44] sm:$0xf0]  ;;  %v852_v38 = vld [vmem:[%s1025_s28 + $0xc0] sm:$0xf] }
  0x20   : > { %571 = vmatpush.bf16.msra.mxu3 %v873_v26  ;;  %v865_v39 = vor.u32 %v914_v32, %v862_v33  ;;  %v913_v40 = vld [vmem:[%s1025_s28 + $0xc4] sm:$0xf0]  ;;  %v896_v41 = vld [vmem:[%s1025_s28 + $0x44] sm:$0xf]  ;;  %v790_v42 = vld [vmem:[%s1025_s28 + $0x48] sm:$0xf0]  ;;  %v789_v45 = vor.u32 %v897_v37, %v788_v36 }
  0x21   : > { %v912_v43 = vld [vmem:[%s1025_s28 + $0xc4] sm:$0xf]  ;;  %v854_v44 = vld [vmem:[%s1025_s28 + $0xc8] sm:$0xf0]  ;;  %v853_v46 = vor.u32 %v913_v40, %v852_v38  ;;  %v793_v47 = vor.u32 %v896_v41, %v790_v42  ;;  %v780_v48 = vld [vmem:[%s1025_s28 + $0x30] sm:$0xf] }
  0x22   : > { %533 = vmatpush.bf16.msra.mxu0 %v797_v30  ;;  %v895_v49 = vld [vmem:[%s1025_s28 + $0x34] sm:$0xf0]  ;;  %v844_v50 = vld [vmem:[%s1025_s28 + $0xb0] sm:$0xf]  ;;  %v857_v51 = vor.u32 %v912_v43, %v854_v44  ;;  %v894_v53 = vld [vmem:[%s1025_s28 + $0x34] sm:$0xf] }
  0x23   : > { %546 = vmatpush.bf16.msra.mxu1 %v861_v34  ;;  %559 = vmatpush.bf16.msra.mxu2 %v801_v35  ;;  %v911_v52 = vld [vmem:[%s1025_s28 + $0xb4] sm:$0xf0]  ;;  %v782_v54 = vld [vmem:[%s1025_s28 + $0x38] sm:$0xf0]  ;;  %v910_v55 = vld [vmem:[%s1025_s28 + $0xb4] sm:$0xf]  ;;  %v781_v57 = vor.u32 %v895_v49, %v780_v48 }
  0x24   : > { %572 = vmatpush.bf16.msra.mxu3 %v865_v39  ;;  %v846_v56 = vld [vmem:[%s1025_s28 + $0xb8] sm:$0xf0]  ;;  %v845_v58 = vor.u32 %v911_v52, %v844_v50  ;;  %v785_v59 = vor.u32 %v894_v53, %v782_v54  ;;  %v772_v60 = vld [vmem:[%s1025_s28 + $0x20] sm:$0xf]  ;;  %v893_v61 = vld [vmem:[%s1025_s28 + $0x24] sm:$0xf0] }
  0x25   : > { %v836_v62 = vld [vmem:[%s1025_s28 + $0xa0] sm:$0xf]  ;;  %v849_v63 = vor.u32 %v910_v55, %v846_v56  ;;  %v909_v0 = vld [vmem:[%s1025_s28 + $0xa4] sm:$0xf0]  ;;  %v892_v1 = vld [vmem:[%s1025_s28 + $0x24] sm:$0xf]  ;;  %v773_v5 = vor.u32 %v893_v61, %v772_v60 }
  0x26   : > { %534 = vmatpush.bf16.msra.mxu0 %v789_v45  ;;  %v774_v2 = vld [vmem:[%s1025_s28 + $0x28] sm:$0xf0]  ;;  %v908_v3 = vld [vmem:[%s1025_s28 + $0xa4] sm:$0xf]  ;;  %v837_v6 = vor.u32 %v909_v0, %v836_v62  ;;  %v764_v8 = vld [vmem:[%s1025_s28 + $0x10] sm:$0xf] }
  0x27   : > { %547 = vmatpush.bf16.msra.mxu1 %v853_v46  ;;  %560 = vmatpush.bf16.msra.mxu2 %v793_v47  ;;  %v838_v4 = vld [vmem:[%s1025_s28 + $0xa8] sm:$0xf0]  ;;  %v777_v7 = vor.u32 %v892_v1, %v774_v2  ;;  %v891_v9 = vld [vmem:[%s1025_s28 + $0x14] sm:$0xf0]  ;;  %v828_v10 = vld [vmem:[%s1025_s28 + $0x90] sm:$0xf] }
  0x28   : > { %573 = vmatpush.bf16.msra.mxu3 %v857_v51  ;;  %v841_v11 = vor.u32 %v908_v3, %v838_v4  ;;  %v907_v12 = vld [vmem:[%s1025_s28 + $0x94] sm:$0xf0]  ;;  %v890_v13 = vld [vmem:[%s1025_s28 + $0x14] sm:$0xf]  ;;  %v766_v14 = vld [vmem:[%s1025_s28 + $0x18] sm:$0xf0]  ;;  %v765_v17 = vor.u32 %v891_v9, %v764_v8 }
  0x29   : > { %v906_v15 = vld [vmem:[%s1025_s28 + $0x94] sm:$0xf]  ;;  %v830_v16 = vld [vmem:[%s1025_s28 + $0x98] sm:$0xf0]  ;;  %v331_v18 = vld [vmem:[%s1020_s24] sm:$0xff]  ;;  %v829_v19 = vor.u32 %v907_v12, %v828_v10  ;;  %v769_v20 = vor.u32 %v890_v13, %v766_v14  ;;  %p882_p7 = scmp.ne.s32.totalorder %s959_s15, 8 }
  0x2a   : > { %535 = vmatpush.bf16.msra.mxu0 %v781_v57  ;;  %v756_v21 = vld [vmem:[%s1025_s28] sm:$0xf]  ;;  %v889_v22 = vld [vmem:[%s1025_s28 + $0x4] sm:$0xf0]  ;;  %v833_v24 = vor.u32 %v906_v15, %v830_v16  ;;  %v888_v26 = vld [vmem:[%s1025_s28 + $0x4] sm:$0xf]  ;;  %v365_v30 = vunpack.c.l.b16 %v331_v18  ;;  %v366_v32 = vunpack.c.h.b16 %v331_v18 }
  0x2b   : > { %548 = vmatpush.bf16.msra.mxu1 %v845_v58  ;;  %561 = vmatpush.bf16.msra.mxu2 %v785_v59  ;;  %v820_v23 = vld [vmem:[%s1025_s28 + $0x80] sm:$0xf]  ;;  %v905_v25 = vld [vmem:[%s1025_s28 + $0x84] sm:$0xf0]  ;;  %v758_v27 = vld [vmem:[%s1025_s28 + $0x8] sm:$0xf0]  ;;  %v757_v31 = vor.u32 %v889_v22, %v756_v21 }
  0x2c   : > { %574 = vmatpush.bf16.msra.mxu3 %v849_v63  ;;  %v904_v28 = vld [vmem:[%s1025_s28 + $0x84] sm:$0xf]  ;;  %v822_v29 = vld [vmem:[%s1025_s28 + $0x88] sm:$0xf0]  ;;  %v821_v33 = vor.u32 %v905_v25, %v820_v23  ;;  %v761_v34 = vor.u32 %v888_v26, %v758_v27  ;;  %v367_v36 = vpack.c.b16 %v365_v30, %v365_v30  ;;  %v368_v37 = vpack.c.b16 %v366_v32, %v366_v32 }
  0x2d   : > { %v825_v35 = vor.u32 %v904_v28, %v822_v29  ;;  %v329_v39 = vld [vmem:[#allocation2] sm:$0xff]  ;;  %v330_v44 = vld [vmem:[#allocation2 + $0x8] sm:$0xff] }
  0x2e   : > { %536 = vmatpush.bf16.msra.mxu0 %v773_v5 }
  0x2f   : > { %549 = vmatpush.bf16.msra.mxu1 %v837_v6  ;;  %562 = vmatpush.bf16.msra.mxu2 %v777_v7 }
  0x30   : > { %575 = vmatpush.bf16.msra.mxu3 %v841_v11 }
  0x32   : > { %537 = vmatpush.bf16.msra.mxu0 %v765_v17 }
  0x33   : > { %550 = vmatpush.bf16.msra.mxu1 %v829_v19  ;;  %563 = vmatpush.bf16.msra.mxu2 %v769_v20 }
  0x34   : > { %576 = vmatpush.bf16.msra.mxu3 %v833_v24 }
  0x36   : > { %538 = vmatpush.bf16.msra.mxu0 %v757_v31 }
  0x37   : > { %551 = vmatpush.bf16.msra.mxu1 %v821_v33  ;;  %564 = vmatpush.bf16.msra.mxu2 %v761_v34 }
  0x38   : > { %577 = vmatpush.bf16.msra.mxu3 %v825_v35 }
  0x39   : > { %539 = vmatmul.bf16.vlgmr.msra.gmra.mxu0 %v367_v36 }
  0x3a   : > { %552 = vmatmul.bf16.vlgmr.msra.gmra.mxu1 %v368_v37  ;;  %565 = vmatmul.bf16.vlgmr.msra.gmra.mxu2 %v367_v36 }
  0x3b   : > { %578 = vmatmul.bf16.vlgmr.msra.gmra.mxu3 %v368_v37 }
  0xb6   : > { %v540_v38 = vpop.f32.mrf.mxu0 }
  0xb7   : > { %v553_v40 = vpop.f32.mrf.mxu1 }
  0xb8   : > { %v554_v41 = vadd.f32 %v553_v40, %v540_v38 }
  0xba   : > { %v583_v42 = vadd.f32 %v554_v41, %v329_v39 }
  0xbc   : > { %585 = vst [vmem:[#allocation2] sm:$0xff] %v583_v42 }
  0xbd   : > { %v566_v43 = vpop.f32.mrf.mxu2 }
  0xbe   : > { %v579_v45 = vpop.f32.mrf.mxu3  ;;  %v542_v46 = vpop.f32.mrf.mxu0 }
  0xbf   : > { %v580_v47 = vadd.f32 %v579_v45, %v566_v43  ;;  %v555_v48 = vpop.f32.mrf.mxu1 }
  0xc1   : > { %v584_v49 = vadd.f32 %v580_v47, %v330_v44 }
  0xc2   : > { %590 = sbr.rel (%p882_p7) target bundleno = 212 (0xd4), region = 44 }
  0xc3   : > { %586 = vst [vmem:[#allocation2 + $0x8] sm:$0xff] %v584_v49 }
  0xc5   : > { %v568_v50 = vpop.f32.mrf.mxu2 }
  0xc6   : > { %v581_v51 = vpop.f32.mrf.mxu3 }
  0xc7   : > { %v591_v52 = vld [vmem:[#allocation2] sm:$0xff] }
  0xc8   : > { %v593_v54 = vld [vmem:[%s1114_s2] sm:$0x3] }
  0xc9   : > { %v595_v55 = vperm.slane %v593_v54, 0  ;;  %v596_v56 = vperm.slane %v593_v54, 1  ;;  %v601_v57 = vld [vmem:[%s1115_s3] sm:$0x3] }
  0xca   : > { %v592_v53 = vld [vmem:[#allocation2 + $0x8] sm:$0xff]  ;;  %v603_v58 = vperm.slane %v601_v57, 0  ;;  %v604_v59 = vperm.slane %v601_v57, 1 }
  0xcb   : > { %v599_v60 = vmul.f32 %v595_v55, %v591_v52  ;;  %v600_v61 = vmul.f32 %v596_v56, %v592_v53 }
  0xcd   : > { %v607_v62 = vadd.f32 %v603_v58, %v599_v60  ;;  %v608_v63 = vadd.f32 %v604_v59, %v600_v61 }
  0xcf   : > { %v609_v0 = vmax.f32 %v607_v62, 0.0  ;;  %v610_v1 = vmax.f32 %v608_v63, 0.0 }
  0xd1   : > { %v611_v2 = vpack.c.bf16 %v610_v1, %v609_v0 }
  0xd3   : > { %612 = vst [vmem:[%s1116_s4] sm:$0xff] %v611_v2 }
  0xd4 PF: > { %s14_s17 = sadd.s32 1, %s967_s17   ;;  %s1117_s15 = smov %s963_s16 }
  0xd5   : > { %p11_p8 = scmp.ge.s32.totalorder %s14_s17, 11   ;;  %s1118_s16 = smov %s1120_s18 }
  0xd7   :  { %13 = sbr.rel (!%p11_p8) target bundleno = 2 (0x2), region = 83 }

// kernel: _lambda_.39
= control target key start
LH: loop header
LB: loop body
LE: loop exit
PB: predicated region body
PF: predicated region fallthrough
CT: control target
= control target key end

     0   :  { %s1208_s15 = smov 0   ;;  %s1210_s16 = smov 0   ;;  %s1473_s0 = inlined_call_operand.vmem [shape: bf16[2,2304], index: 0, kind: input, shape index: {}]   ;;  %s1474_s1 = inlined_call_operand.vmem [shape: bf16[2304,512], index: 1, kind: input, shape index: {}]   ;;  %s1475_s2 = inlined_call_operand.vmem [shape: f32[1,512], index: 2, kind: input, shape index: {}]   ;;  %s1476_s3 = inlined_call_operand.vmem [shape: f32[1,512], index: 3, kind: input, shape index: {}]   ;;  %s1477_s4 = inlined_call_operand.vmem [shape: bf16[2,512], index: 4, kind: output, shape index: {}]  }
   0x1   :  { %s1212_s17 = smov 0   ;;  %s1214_s18 = smov 0  }
   0x2   :  { %s1216_s19 = smov 0   ;;  %s1218_s20 = smov 0  }
   0x3   :  { %s1220_s21 = smov 0  }
   0x4 LB: > { %s26_s22 = sadd.s32 1, %s1172_s19  ;;  %s29_s23 = sadd.s32 1, %s1176_s20  ;;  %s1180_s21 = sphi %s1220_s21, %s14_s21   ;;  %s1176_s20 = sphi %s1218_s20, %s1483_s20   ;;  %s1172_s19 = sphi %s1216_s19, %s1482_s19   ;;  %s1168_s18 = sphi %s1214_s18, %s1481_s18   ;;  %s1164_s17 = sphi %s1212_s17, %s1480_s17   ;;  %s1160_s16 = sphi %s1210_s16, %s1479_s16   ;;  %s1156_s15 = sphi %s1208_s15, %s1478_s15  }
   0x5   : > { %p27_p0 = scmp.ge.s32.totalorder %s26_s22, 9  ;;  %p77_p1 = scmp.ne.s32.totalorder %s1160_s16, %s1156_s15 }
   0x6   : > { %p78_p2 = scmp.eq.s32.totalorder %s1180_s21, 0  ;;  %s70_s27 = sadd.s32 1, %s1160_s16 }
   0x7   : > { %s1485_s22 = smov (%p27_p0, %s26_s22), 0  ;;  %s1487_s23 = smov (!%p27_p0, %s29_s23), %s1176_s20 }
   0x8   : > { %p79_p3 = por %p78_p2, %p77_p1  ;;  %p31_p4 = scmp.ge.s32.totalorder %s1487_s23, 2 }
   0x9   : > { %s65_s24 = ssub.s32 %s1172_s19, %s1485_s22  ;;  %p892_p6 = scmp.ge.s32.totalorder %s1180_s21, 18 }
   0xa   : > { %s1489_s23 = smov (%p31_p4, %s1487_s23), 0 }
   0xb   : > { %s66_s25 = ssub.s32 %s1176_s20, %s1489_s23  ;;  %183 = sbr.rel (%p892_p6) target bundleno = 55 (0x37), region = 16 }
   0xc   : > { %s67_s26 = sor.u32 %s66_s25, %s65_s24 }
   0xd   : > { %p68_p5 = scmp.eq.s32.totalorder %s67_s26, 0 }
   0xf   : > { %s1259_s28 = scalar_select %p68_p5, %s1160_s16, %s70_s27  }
  0x10   : > { %198 = sbr.rel (!%p79_p3) target bundleno = 55 (0x37), region = 24  ;;  %s200_s29 = sand.u32 (%p79_p3), 1, %s1160_s16  }
  0x11   : > { %s895_s30 = sshll.u32 (%p79_p3), %s1176_s20, 1  ;;  %s893_s5 = sshll.u32 (%p79_p3), %s200_s29, 8 }
  0x12   : > { %s1036_s6 = sshll.u32 (%p79_p3), %s1172_s19, 7  ;;  %s1273_s12 = scalar_lea.vmem (%p79_p3), [#allocation3], %s893_s5 }
  0x13   : > { %s206_s7 = sadd.s32 (%p79_p3), %s1036_s6, %s895_s30 }
  0x14   : > { %s897_s8 = sshll.u32 (%p79_p3), %s206_s7, 2 }
  0x15   : > { %s1268_s11 = scalar_lea.vmem %s1474_s1, %s897_s8 }
  0x16   : > { %v299_v0 = vld [vmem:[%s1268_s11] sm:$0xff]  ;;  %v301_v1 = vld [vmem:[%s1268_s11 + $0x10] sm:$0xff] }
  0x17   : > { %v303_v2 = vld [vmem:[%s1268_s11 + $0x20] sm:$0xff]  ;;  %300 = vst [vmem:[%s1273_s12] sm:$0xff] %v299_v0  ;;  %v305_v3 = vld [vmem:[%s1268_s11 + $0x30] sm:$0xff] }
  0x18   : > { %302 = vst [vmem:[%s1273_s12 + $0x8] sm:$0xff] %v301_v1  ;;  %v307_v4 = vld [vmem:[%s1268_s11 + $0x40] sm:$0xff]  ;;  %v309_v5 = vld [vmem:[%s1268_s11 + $0x50] sm:$0xff] }
  0x19   : > { %304 = vst [vmem:[%s1273_s12 + $0x10] sm:$0xff] %v303_v2  ;;  %v311_v6 = vld [vmem:[%s1268_s11 + $0x60] sm:$0xff]  ;;  %v313_v7 = vld [vmem:[%s1268_s11 + $0x70] sm:$0xff] }
  0x1a   : > { %306 = vst [vmem:[%s1273_s12 + $0x18] sm:$0xff] %v305_v3  ;;  %v315_v8 = vld [vmem:[%s1268_s11 + $0x80] sm:$0xff]  ;;  %v317_v9 = vld [vmem:[%s1268_s11 + $0x90] sm:$0xff] }
  0x1b   : > { %308 = vst [vmem:[%s1273_s12 + $0x20] sm:$0xff] %v307_v4  ;;  %v319_v10 = vld [vmem:[%s1268_s11 + $0xa0] sm:$0xff]  ;;  %v321_v11 = vld [vmem:[%s1268_s11 + $0xb0] sm:$0xff] }
  0x1c   : > { %310 = vst [vmem:[%s1273_s12 + $0x28] sm:$0xff] %v309_v5  ;;  %v323_v12 = vld [vmem:[%s1268_s11 + $0xc0] sm:$0xff]  ;;  %v325_v13 = vld [vmem:[%s1268_s11 + $0xd0] sm:$0xff] }
  0x1d   : > { %312 = vst [vmem:[%s1273_s12 + $0x30] sm:$0xff] %v311_v6  ;;  %v327_v14 = vld [vmem:[%s1268_s11 + $0xe0] sm:$0xff]  ;;  %v329_v15 = vld [vmem:[%s1268_s11 + $0xf0] sm:$0xff] }
  0x1e   : > { %314 = vst [vmem:[%s1273_s12 + $0x38] sm:$0xff] %v313_v7  ;;  %v331_v16 = vld [vmem:[%s1268_s11 + $0x100] sm:$0xff]  ;;  %v333_v17 = vld [vmem:[%s1268_s11 + $0x110] sm:$0xff] }
  0x1f   : > { %316 = vst [vmem:[%s1273_s12 + $0x40] sm:$0xff] %v315_v8  ;;  %v335_v18 = vld [vmem:[%s1268_s11 + $0x120] sm:$0xff]  ;;  %v337_v19 = vld [vmem:[%s1268_s11 + $0x130] sm:$0xff] }
  0x20   : > { %318 = vst [vmem:[%s1273_s12 + $0x48] sm:$0xff] %v317_v9  ;;  %v339_v20 = vld [vmem:[%s1268_s11 + $0x140] sm:$0xff]  ;;  %v341_v21 = vld [vmem:[%s1268_s11 + $0x150] sm:$0xff] }
  0x21   : > { %320 = vst [vmem:[%s1273_s12 + $0x50] sm:$0xff] %v319_v10  ;;  %v343_v22 = vld [vmem:[%s1268_s11 + $0x160] sm:$0xff]  ;;  %v345_v23 = vld [vmem:[%s1268_s11 + $0x170] sm:$0xff] }
  0x22   : > { %322 = vst [vmem:[%s1273_s12 + $0x58] sm:$0xff] %v321_v11  ;;  %v347_v24 = vld [vmem:[%s1268_s11 + $0x180] sm:$0xff]  ;;  %v349_v25 = vld [vmem:[%s1268_s11 + $0x190] sm:$0xff] }
  0x23   : > { %324 = vst [vmem:[%s1273_s12 + $0x60] sm:$0xff] %v323_v12  ;;  %v351_v26 = vld [vmem:[%s1268_s11 + $0x1a0] sm:$0xff]  ;;  %v353_v27 = vld [vmem:[%s1268_s11 + $0x1b0] sm:$0xff] }
  0x24   : > { %326 = vst [vmem:[%s1273_s12 + $0x68] sm:$0xff] %v325_v13  ;;  %v355_v28 = vld [vmem:[%s1268_s11 + $0x1c0] sm:$0xff]  ;;  %v357_v29 = vld [vmem:[%s1268_s11 + $0x1d0] sm:$0xff] }
  0x25   : > { %328 = vst [vmem:[%s1273_s12 + $0x70] sm:$0xff] %v327_v14  ;;  %v359_v30 = vld [vmem:[%s1268_s11 + $0x1e0] sm:$0xff]  ;;  %v361_v31 = vld [vmem:[%s1268_s11 + $0x1f0] sm:$0xff] }
  0x26   : > { %330 = vst [vmem:[%s1273_s12 + $0x78] sm:$0xff] %v329_v15 }
  0x27   : > { %332 = vst [vmem:[%s1273_s12 + $0x80] sm:$0xff] %v331_v16 }
  0x28   : > { %334 = vst [vmem:[%s1273_s12 + $0x88] sm:$0xff] %v333_v17 }
  0x29   : > { %336 = vst [vmem:[%s1273_s12 + $0x90] sm:$0xff] %v335_v18 }
  0x2a   : > { %338 = vst [vmem:[%s1273_s12 + $0x98] sm:$0xff] %v337_v19 }
  0x2b   : > { %340 = vst [vmem:[%s1273_s12 + $0xa0] sm:$0xff] %v339_v20 }
  0x2c   : > { %342 = vst [vmem:[%s1273_s12 + $0xa8] sm:$0xff] %v341_v21 }
  0x2d   : > { %344 = vst [vmem:[%s1273_s12 + $0xb0] sm:$0xff] %v343_v22 }
  0x2e   : > { %346 = vst [vmem:[%s1273_s12 + $0xb8] sm:$0xff] %v345_v23 }
  0x2f   : > { %348 = vst [vmem:[%s1273_s12 + $0xc0] sm:$0xff] %v347_v24 }
  0x30   : > { %350 = vst [vmem:[%s1273_s12 + $0xc8] sm:$0xff] %v349_v25 }
  0x31   : > { %352 = vst [vmem:[%s1273_s12 + $0xd0] sm:$0xff] %v351_v26 }
  0x32   : > { %354 = vst [vmem:[%s1273_s12 + $0xd8] sm:$0xff] %v353_v27 }
  0x33   : > { %356 = vst [vmem:[%s1273_s12 + $0xe0] sm:$0xff] %v355_v28 }
  0x34   : > { %358 = vst [vmem:[%s1273_s12 + $0xe8] sm:$0xff] %v357_v29 }
  0x35   : > { %360 = vst [vmem:[%s1273_s12 + $0xf0] sm:$0xff] %v359_v30 }
  0x36   : > { %362 = vst [vmem:[%s1273_s12 + $0xf8] sm:$0xff] %v361_v31 }
  0x37 PF: > { %p898_p7 = scmp.ge.s32.totalorder %s1180_s21, 1  ;;  %p383_p8 = scmp.lt.s32.totalorder %s1180_s21, 19 }
  0x39   : > { %p384_p9 = pnand %p898_p7, %p383_p8 }
  0x3a   : > { %s390_s13 = sand.u32 (!%p384_p9), 1, %s1156_s15   ;;  %s900_s14 = sshll.u32 (!%p384_p9), %s1164_s17, 1 }
  0x3b   : > { %387 = sbr.rel (%p384_p9) target bundleno = 277 (0x115), region = 70  ;;  %s899_s24 = sshll.u32 (!%p384_p9), %s390_s13, 8 }
  0x3c   : > { %p437_p10 = scmp.lt.s32.totalorder (!%p384_p9), %s900_s14, 17  ;;  %s901_s25 = sshll.u32 (!%p384_p9), %s1168_s18, 1 }
  0x3d   : > { %p446_p11 = scmp.lt.s32.totalorder (!%p384_p9), %s901_s25, 3  ;;  %s1361_s11 = scalar_lea.vmem (!%p384_p9), [#allocation3], %s899_s24 }
  0x3e   : > { %p904_p12 = scmp.ne.s32.totalorder (!%p384_p9), %s1164_s17, 0 }
  0x40   : > { %s1491_s14 = smov (!%p437_p10, %s900_s14), 17  ;;  %s1493_s25 = smov (!%p446_p11, %s901_s25), 3 }
  0x41   : > { %s441_s29 = scalar_lea.vmem %s1473_s0, %s1491_s14  ;;  %s448_s15 = scalar_lea.vmem %s1475_s2, %s1493_s25 }
  0x42   : > { %s453_s18 = scalar_lea.vmem %s1476_s3, %s1493_s25  ;;  %s462_s10 = scalar_lea.vmem %s1477_s4, %s1493_s25 }
  0x43   : > { %467 = sbr.rel (%p904_p12) target bundleno = 74 (0x4a), region = 78 }
  0x48   : > { %v1182_v32 = vmov 0.0  }
  0x49   : > { %468 = vst [vmem:[#allocation2] sm:$0xf] %v1182_v32 }
  0x4a PF: > { %v963_v33 = vld [vmem:[%s1361_s11 + $0x70] sm:$0xf]  ;;  %v1052_v34 = vld [vmem:[%s1361_s11 + $0x74] sm:$0xf0]  ;;  %v1051_v38 = vld [vmem:[%s1361_s11 + $0x74] sm:$0xf] }
  0x4b   : > { %v1027_v35 = vld [vmem:[%s1361_s11 + $0xf0] sm:$0xf]  ;;  %v964_v36 = vor.u32 %v1052_v34, %v963_v33  ;;  %v1068_v37 = vld [vmem:[%s1361_s11 + $0xf4] sm:$0xf0]  ;;  %v965_v39 = vld [vmem:[%s1361_s11 + $0x78] sm:$0xf0] }
  0x4c   : > { %v1028_v40 = vor.u32 %v1068_v37, %v1027_v35  ;;  %v968_v41 = vor.u32 %v1051_v38, %v965_v39  ;;  %v1067_v42 = vld [vmem:[%s1361_s11 + $0xf4] sm:$0xf]  ;;  %v1029_v43 = vld [vmem:[%s1361_s11 + $0xf8] sm:$0xf0]  ;;  %v955_v44 = vld [vmem:[%s1361_s11 + $0x60] sm:$0xf] }
  0x4d   : > { %669 = vmatpush.bf16.msra.mxu0 %v964_v36  ;;  %v1032_v45 = vor.u32 %v1067_v42, %v1029_v43  ;;  %v1050_v46 = vld [vmem:[%s1361_s11 + $0x64] sm:$0xf0]  ;;  %v1019_v47 = vld [vmem:[%s1361_s11 + $0xe0] sm:$0xf]  ;;  %v1049_v51 = vld [vmem:[%s1361_s11 + $0x64] sm:$0xf] }
  0x4e   : > { %v1066_v48 = vld [vmem:[%s1361_s11 + $0xe4] sm:$0xf0]  ;;  %682 = vmatpush.bf16.msra.mxu1 %v1028_v40  ;;  %695 = vmatpush.bf16.msra.mxu2 %v968_v41  ;;  %v956_v49 = vor.u32 %v1050_v46, %v955_v44  ;;  %v957_v52 = vld [vmem:[%s1361_s11 + $0x68] sm:$0xf0]  ;;  %v1065_v53 = vld [vmem:[%s1361_s11 + $0xe4] sm:$0xf] }
  0x4f   : > { %v1020_v50 = vor.u32 %v1066_v48, %v1019_v47  ;;  %708 = vmatpush.bf16.msra.mxu3 %v1032_v45  ;;  %v960_v54 = vor.u32 %v1049_v51, %v957_v52  ;;  %v1021_v55 = vld [vmem:[%s1361_s11 + $0xe8] sm:$0xf0]  ;;  %v947_v56 = vld [vmem:[%s1361_s11 + $0x50] sm:$0xf]  ;;  %v1048_v57 = vld [vmem:[%s1361_s11 + $0x54] sm:$0xf0] }
  0x50   : > { %v1024_v58 = vor.u32 %v1065_v53, %v1021_v55  ;;  %v1011_v59 = vld [vmem:[%s1361_s11 + $0xd0] sm:$0xf]  ;;  %v1064_v60 = vld [vmem:[%s1361_s11 + $0xd4] sm:$0xf0]  ;;  %v1047_v61 = vld [vmem:[%s1361_s11 + $0x54] sm:$0xf]  ;;  %v948_v62 = vor.u32 %v1048_v57, %v947_v56 }
  0x51   : > { %670 = vmatpush.bf16.msra.mxu0 %v956_v49  ;;  %v949_v63 = vld [vmem:[%s1361_s11 + $0x58] sm:$0xf0]  ;;  %v1063_v0 = vld [vmem:[%s1361_s11 + $0xd4] sm:$0xf]  ;;  %v1012_v2 = vor.u32 %v1064_v60, %v1011_v59  ;;  %v939_v4 = vld [vmem:[%s1361_s11 + $0x40] sm:$0xf] }
  0x52   : > { %v1013_v1 = vld [vmem:[%s1361_s11 + $0xd8] sm:$0xf0]  ;;  %683 = vmatpush.bf16.msra.mxu1 %v1020_v50  ;;  %696 = vmatpush.bf16.msra.mxu2 %v960_v54  ;;  %v952_v3 = vor.u32 %v1047_v61, %v949_v63  ;;  %v1046_v5 = vld [vmem:[%s1361_s11 + $0x44] sm:$0xf0]  ;;  %v1003_v6 = vld [vmem:[%s1361_s11 + $0xc0] sm:$0xf] }
  0x53   : > { %709 = vmatpush.bf16.msra.mxu3 %v1024_v58  ;;  %v1016_v7 = vor.u32 %v1063_v0, %v1013_v1  ;;  %v1062_v8 = vld [vmem:[%s1361_s11 + $0xc4] sm:$0xf0]  ;;  %v1045_v9 = vld [vmem:[%s1361_s11 + $0x44] sm:$0xf]  ;;  %v941_v10 = vld [vmem:[%s1361_s11 + $0x48] sm:$0xf0]  ;;  %v940_v13 = vor.u32 %v1046_v5, %v939_v4 }
  0x54   : > { %v1061_v11 = vld [vmem:[%s1361_s11 + $0xc4] sm:$0xf]  ;;  %v1005_v12 = vld [vmem:[%s1361_s11 + $0xc8] sm:$0xf0]  ;;  %v1004_v14 = vor.u32 %v1062_v8, %v1003_v6  ;;  %v944_v15 = vor.u32 %v1045_v9, %v941_v10  ;;  %v931_v16 = vld [vmem:[%s1361_s11 + $0x30] sm:$0xf] }
  0x55   : > { %671 = vmatpush.bf16.msra.mxu0 %v948_v62  ;;  %v1044_v17 = vld [vmem:[%s1361_s11 + $0x34] sm:$0xf0]  ;;  %v995_v18 = vld [vmem:[%s1361_s11 + $0xb0] sm:$0xf]  ;;  %v1008_v19 = vor.u32 %v1061_v11, %v1005_v12  ;;  %v1043_v21 = vld [vmem:[%s1361_s11 + $0x34] sm:$0xf] }
  0x56   : > { %684 = vmatpush.bf16.msra.mxu1 %v1012_v2  ;;  %697 = vmatpush.bf16.msra.mxu2 %v952_v3  ;;  %v1060_v20 = vld [vmem:[%s1361_s11 + $0xb4] sm:$0xf0]  ;;  %v933_v22 = vld [vmem:[%s1361_s11 + $0x38] sm:$0xf0]  ;;  %v1059_v23 = vld [vmem:[%s1361_s11 + $0xb4] sm:$0xf]  ;;  %v932_v25 = vor.u32 %v1044_v17, %v931_v16 }
  0x57   : > { %710 = vmatpush.bf16.msra.mxu3 %v1016_v7  ;;  %v997_v24 = vld [vmem:[%s1361_s11 + $0xb8] sm:$0xf0]  ;;  %v996_v26 = vor.u32 %v1060_v20, %v995_v18  ;;  %v936_v27 = vor.u32 %v1043_v21, %v933_v22  ;;  %v923_v28 = vld [vmem:[%s1361_s11 + $0x20] sm:$0xf]  ;;  %v1042_v29 = vld [vmem:[%s1361_s11 + $0x24] sm:$0xf0] }
  0x58   : > { %v987_v30 = vld [vmem:[%s1361_s11 + $0xa0] sm:$0xf]  ;;  %v1000_v31 = vor.u32 %v1059_v23, %v997_v24  ;;  %v1058_v32 = vld [vmem:[%s1361_s11 + $0xa4] sm:$0xf0]  ;;  %v1041_v33 = vld [vmem:[%s1361_s11 + $0x24] sm:$0xf]  ;;  %v924_v37 = vor.u32 %v1042_v29, %v923_v28 }
  0x59   : > { %672 = vmatpush.bf16.msra.mxu0 %v940_v13  ;;  %v925_v34 = vld [vmem:[%s1361_s11 + $0x28] sm:$0xf0]  ;;  %v1057_v35 = vld [vmem:[%s1361_s11 + $0xa4] sm:$0xf]  ;;  %v915_v38 = vld [vmem:[%s1361_s11 + $0x10] sm:$0xf]  ;;  %v988_v39 = vor.u32 %v1058_v32, %v987_v30 }
  0x5a   : > { %685 = vmatpush.bf16.msra.mxu1 %v1004_v14  ;;  %698 = vmatpush.bf16.msra.mxu2 %v944_v15  ;;  %v989_v36 = vld [vmem:[%s1361_s11 + $0xa8] sm:$0xf0]  ;;  %v928_v40 = vor.u32 %v1041_v33, %v925_v34  ;;  %v1040_v41 = vld [vmem:[%s1361_s11 + $0x14] sm:$0xf0]  ;;  %v979_v42 = vld [vmem:[%s1361_s11 + $0x90] sm:$0xf] }
  0x5b   : > { %711 = vmatpush.bf16.msra.mxu3 %v1008_v19  ;;  %v1056_v43 = vld [vmem:[%s1361_s11 + $0x94] sm:$0xf0]  ;;  %v992_v44 = vor.u32 %v1057_v35, %v989_v36  ;;  %v1039_v45 = vld [vmem:[%s1361_s11 + $0x14] sm:$0xf]  ;;  %v917_v46 = vld [vmem:[%s1361_s11 + $0x18] sm:$0xf0]  ;;  %v916_v50 = vor.u32 %v1040_v41, %v915_v38 }
  0x5c   : > { %v470_v47 = vld [vmem:[%s441_s29] sm:$0x3]  ;;  %v981_v49 = vld [vmem:[%s1361_s11 + $0x98] sm:$0xf0]  ;;  %v980_v51 = vor.u32 %v1056_v43, %v979_v42  ;;  %v920_v52 = vor.u32 %v1039_v45, %v917_v46  ;;  %v907_v53 = vld [vmem:[%s1361_s11] sm:$0xf] }
  0x5d   : > { %673 = vmatpush.bf16.msra.mxu0 %v932_v25  ;;  %v1055_v48 = vld [vmem:[%s1361_s11 + $0x94] sm:$0xf]  ;;  %504 = vst [vmem:[#allocation1] ss:$9 sm:$0xff] %v470_v47  ;;  %v1038_v54 = vld [vmem:[%s1361_s11 + $0x4] sm:$0xf0] }
  0x5e   : > { %686 = vmatpush.bf16.msra.mxu1 %v996_v26  ;;  %699 = vmatpush.bf16.msra.mxu2 %v936_v27  ;;  %v971_v55 = vld [vmem:[%s1361_s11 + $0x80] sm:$0xf]  ;;  %v984_v56 = vor.u32 %v1055_v48, %v981_v49  ;;  %v1054_v57 = vld [vmem:[%s1361_s11 + $0x84] sm:$0xf0]  ;;  %v1037_v58 = vld [vmem:[%s1361_s11 + $0x4] sm:$0xf]  ;;  %v908_v62 = vor.u32 %v1038_v54, %v907_v53 }
  0x5f   : > { %712 = vmatpush.bf16.msra.mxu3 %v1000_v31  ;;  %v909_v59 = vld [vmem:[%s1361_s11 + $0x8] sm:$0xf0]  ;;  %v1053_v60 = vld [vmem:[%s1361_s11 + $0x84] sm:$0xf]  ;;  %v972_v63 = vor.u32 %v1054_v57, %v971_v55  ;;  %vm724_vm0 = vcmask 1041408   ;;  %p1033_p13 = scmp.ne.s32.totalorder %s1164_s17, 8 }
  0x60   : > { %v973_v61 = vld [vmem:[%s1361_s11 + $0x88] sm:$0xf0]  ;;  %v912_v0 = vor.u32 %v1037_v58, %v909_v59  ;;  %v469_v12 = vld [vmem:[#allocation2] sm:$0xf] }
  0x61   : > { %674 = vmatpush.bf16.msra.mxu0 %v924_v37  ;;  %v976_v1 = vor.u32 %v1053_v60, %v973_v61 }
  0x62   : > { %687 = vmatpush.bf16.msra.mxu1 %v988_v39  ;;  %700 = vmatpush.bf16.msra.mxu2 %v928_v40 }
  0x63   : > { %713 = vmatpush.bf16.msra.mxu3 %v992_v44 }
  0x64   : > { %v505_v2 = vld [vmem:[#allocation1] sm:$0xff]  ;;  %v506_v3 = vld [vmem:[#allocation1 + $0x9] sm:$0xff] }
  0x65   : > { %675 = vmatpush.bf16.msra.mxu0 %v916_v50 }
  0x66   : > { %688 = vmatpush.bf16.msra.mxu1 %v980_v51  ;;  %701 = vmatpush.bf16.msra.mxu2 %v920_v52 }
  0x67   : > { %714 = vmatpush.bf16.msra.mxu3 %v984_v56 }
  0x69   : > { %676 = vmatpush.bf16.msra.mxu0 %v908_v62 }
  0x6a   : > { %689 = vmatpush.bf16.msra.mxu1 %v972_v63  ;;  %702 = vmatpush.bf16.msra.mxu2 %v912_v0 }
  0x6b   : > { %715 = vmatpush.bf16.msra.mxu3 %v976_v1 }
  0x6c   : > { %677 = vmatmul.bf16.vlgmr.msra.gmra.mxu0 %v505_v2 }
  0x6d   : > { %690 = vmatmul.bf16.vlgmr.msra.gmra.mxu1 %v506_v3  ;;  %703 = vmatmul.bf16.vlgmr.msra.gmra.mxu2 %v505_v2 }
  0x6e   : > { %716 = vmatmul.bf16.vlgmr.msra.gmra.mxu3 %v506_v3 }
  0xe9   : > { %v678_v4 = vpop.f32.mrf.mxu0 }
  0xea   : > { %v691_v5 = vpop.f32.mrf.mxu1 }
  0xeb   : > { %v692_v11 = vadd.f32 %v691_v5, %v678_v4 }
  0xf0   : > { %v704_v6 = vpop.f32.mrf.mxu2 }
  0xf1   : > { %v717_v7 = vpop.f32.mrf.mxu3  ;;  %v680_v8 = vpop.f32.mrf.mxu0 }
  0xf2   : > { %v718_v9 = vadd.f32 %v717_v7, %v704_v6  ;;  %v693_v10 = vpop.f32.mrf.mxu1 }
  0xf4   : > { %v723_v13 = vrot.slane %v718_v9, 6 }
  0xf5   : > { %732 = sbr.rel (%p1033_p13) target bundleno = 277 (0x115), region = 82 }
  0xf6   : > { %v725_v14 = vsel %vm724_vm0, %v692_v11, %v723_v13 }
  0xf7   : > { %v727_v15 = vadd.f32 %v725_v14, %v469_v12 }
  0xf8   : > { %v706_v16 = vpop.f32.mrf.mxu2 }
  0xf9   : > { %728 = vst [vmem:[#allocation2] sm:$0xf] %v727_v15  ;;  %v719_v17 = vpop.f32.mrf.mxu3 }
  0xfa   : > { %v734_v18 = vld [vmem:[%s448_s15] sm:$0x3]  ;;  %vm760_vm1 = vcmask 1040384  }
  0xfb   : > { %v742_v19 = vld [vmem:[%s453_s18] sm:$0x3]  ;;  %v736_v20 = vperm.slane %v734_v18, 0  ;;  %v737_v21 = vperm.slane %v734_v18, 1 }
  0xfc   : > { %v744_v22 = vperm.slane %v742_v19, 0  ;;  %v745_v23 = vperm.slane %v742_v19, 1 }
  0xfd   : > { %v738_v25 = vrot.slane %v737_v21, 6 }
  0xfe   : > { %v746_v26 = vrot.slane %v745_v23, 6 }
  0xff   : > { %v739_v27 = vsel %vm724_vm0, %v736_v20, %v738_v25 }
 0x100   : > { %v733_v24 = vld [vmem:[#allocation2] sm:$0xf]  ;;  %v747_v28 = vsel %vm724_vm0, %v744_v22, %v746_v26 }
 0x101   : > { %v741_v29 = vmul.f32 %v739_v27, %v733_v24 }
 0x103   : > { %v749_v30 = vadd.f32 %v747_v28, %v741_v29 }
 0x105   : > { %v750_v31 = vmax.f32 %v749_v30, 0.0 }
 0x107   : > { %752 = vst [vmem:[#allocation1] ss:$4 sm:$0xff] %v750_v31 }
 0x10e   : > { %v753_v32 = vld.sshfl [vmem:[#allocation1] sm:$0xff pattern:$0x73625140]  ;;  %v754_v33 = vld.sshfl [vmem:[#allocation1 + $0x8] sm:$0xff pattern:$0x73625140] }
 0x10f   : > { %v757_v34 = vpack.c.bf16 %v754_v33, %v753_v32 }
 0x111   : > { %v759_v35 = vrot.slane %v757_v34, 3 }
 0x113   : > { %v763_v36 = vsel %vm760_vm1, %v757_v34, %v759_v35 }
 0x114   : > { %765 = vst [vmem:[%s462_s10] sm:$0x3] %v763_v36 }
 0x115 PF: > { %s14_s21 = sadd.s32 1, %s1180_s21   ;;  %s1478_s15 = smov %s1160_s16 }
 0x116   : > { %p11_p0 = scmp.ge.s32.totalorder %s14_s21, 20   ;;  %s1479_s16 = smov %s1259_s28 }
 0x117   : > { %s1480_s17 = smov %s1172_s19  ;;  %s1481_s18 = smov %s1176_s20 }
 0x118   : > { %s1482_s19 = smov %s1485_s22  ;;  %s1483_s20 = smov %s1489_s23 }
 0x119   :  { %13 = sbr.rel (!%p11_p0) target bundleno = 4 (0x4), region = 126 }

// kernel: _lambda_.38
= control target key start
LH: loop header
LB: loop body
LE: loop exit
PB: predicated region body
PF: predicated region fallthrough
CT: control target
= control target key end

     0   :  { %s1170_s15 = smov 0   ;;  %s1172_s16 = smov 0   ;;  %s1386_s0 = inlined_call_operand.vmem [shape: bf16[2,256], index: 0, kind: input, shape index: {}]   ;;  %s1387_s1 = inlined_call_operand.vmem [shape: bf16[256,512], index: 1, kind: input, shape index: {}]   ;;  %s1388_s2 = inlined_call_operand.vmem [shape: f32[1,512], index: 2, kind: input, shape index: {}]   ;;  %s1389_s3 = inlined_call_operand.vmem [shape: f32[1,512], index: 3, kind: input, shape index: {}]   ;;  %s1390_s4 = inlined_call_operand.vmem [shape: bf16[2,512], index: 4, kind: output, shape index: {}]  }
   0x1   :  { %s1174_s17 = smov 0   ;;  %s1176_s18 = smov 0  }
   0x2   :  { %s1178_s19 = smov 0  }
   0x3 LB: > { %s29_s20 = sadd.s32 1, %s1138_s18  ;;  %p77_p1 = scmp.ne.s32.totalorder %s1130_s16, %s1126_s15  ;;  %s1142_s19 = sphi %s1178_s19, %s14_s19   ;;  %s1138_s18 = sphi %s1176_s18, %s1394_s18   ;;  %s1134_s17 = sphi %s1174_s17, %s1393_s17   ;;  %s1130_s16 = sphi %s1172_s16, %s1392_s16   ;;  %s1126_s15 = sphi %s1170_s15, %s1391_s15  }
   0x4   : > { %p31_p0 = scmp.ge.s32.totalorder %s29_s20, 2  ;;  %p78_p2 = scmp.eq.s32.totalorder %s1142_s19, 0 }
   0x5   : > { %s70_s22 = sadd.s32 1, %s1130_s16  ;;  %p891_p5 = scmp.ge.s32.totalorder %s1142_s19, 2 }
   0x6   : > { %s1396_s20 = smov (%p31_p0, %s29_s20), 0  ;;  %p79_p3 = por %p78_p2, %p77_p1 }
   0x7   : > { %s66_s21 = ssub.s32 %s1138_s18, %s1396_s20  ;;  %195 = sbr.rel (%p891_p5) target bundleno = 48 (0x30), region = 20 }
   0x8   : > { %p68_p4 = scmp.eq.s32.totalorder %s66_s21, 0 }
   0xa   : > { %s1205_s23 = scalar_select %p68_p4, %s1130_s16, %s70_s22  }
   0xc   : > { %198 = sbr.rel (!%p79_p3) target bundleno = 48 (0x30), region = 24  ;;  %s200_s24 = sand.u32 (%p79_p3), 1, %s1130_s16  }
   0xd   : > { %s1030_s25 = sshll.u32 (%p79_p3), %s1138_s18, 3  ;;  %s892_s26 = sshll.u32 (%p79_p3), %s200_s24, 8 }
   0xe   : > { %s1213_s29 = scalar_lea.vmem (%p79_p3), %s1387_s1, %s1030_s25  ;;  %s1218_s30 = scalar_lea.vmem (%p79_p3), [#allocation3], %s892_s26 }
   0xf   : > { %v299_v0 = vld [vmem:[%s1213_s29] sm:$0xff] (%p79_p3)  ;;  %v301_v1 = vld [vmem:[%s1213_s29 + $0x10] sm:$0xff] (%p79_p3) }
  0x10   : > { %v303_v2 = vld [vmem:[%s1213_s29 + $0x20] sm:$0xff] (%p79_p3)  ;;  %300 = vst [vmem:[%s1218_s30] sm:$0xff] (%p79_p3), %v299_v0  ;;  %v305_v3 = vld [vmem:[%s1213_s29 + $0x30] sm:$0xff] (%p79_p3) }
  0x11   : > { %302 = vst [vmem:[%s1218_s30 + $0x8] sm:$0xff] %v301_v1  ;;  %v307_v4 = vld [vmem:[%s1213_s29 + $0x40] sm:$0xff]  ;;  %v309_v5 = vld [vmem:[%s1213_s29 + $0x50] sm:$0xff] }
  0x12   : > { %304 = vst [vmem:[%s1218_s30 + $0x10] sm:$0xff] %v303_v2  ;;  %v311_v6 = vld [vmem:[%s1213_s29 + $0x60] sm:$0xff]  ;;  %v313_v7 = vld [vmem:[%s1213_s29 + $0x70] sm:$0xff] }
  0x13   : > { %306 = vst [vmem:[%s1218_s30 + $0x18] sm:$0xff] %v305_v3  ;;  %v315_v8 = vld [vmem:[%s1213_s29 + $0x80] sm:$0xff]  ;;  %v317_v9 = vld [vmem:[%s1213_s29 + $0x90] sm:$0xff] }
  0x14   : > { %308 = vst [vmem:[%s1218_s30 + $0x20] sm:$0xff] %v307_v4  ;;  %v319_v10 = vld [vmem:[%s1213_s29 + $0xa0] sm:$0xff]  ;;  %v321_v11 = vld [vmem:[%s1213_s29 + $0xb0] sm:$0xff] }
  0x15   : > { %310 = vst [vmem:[%s1218_s30 + $0x28] sm:$0xff] %v309_v5  ;;  %v323_v12 = vld [vmem:[%s1213_s29 + $0xc0] sm:$0xff]  ;;  %v325_v13 = vld [vmem:[%s1213_s29 + $0xd0] sm:$0xff] }
  0x16   : > { %312 = vst [vmem:[%s1218_s30 + $0x30] sm:$0xff] %v311_v6  ;;  %v327_v14 = vld [vmem:[%s1213_s29 + $0xe0] sm:$0xff]  ;;  %v329_v15 = vld [vmem:[%s1213_s29 + $0xf0] sm:$0xff] }
  0x17   : > { %314 = vst [vmem:[%s1218_s30 + $0x38] sm:$0xff] %v313_v7  ;;  %v331_v16 = vld [vmem:[%s1213_s29 + $0x100] sm:$0xff]  ;;  %v333_v17 = vld [vmem:[%s1213_s29 + $0x110] sm:$0xff] }
  0x18   : > { %316 = vst [vmem:[%s1218_s30 + $0x40] sm:$0xff] %v315_v8  ;;  %v335_v18 = vld [vmem:[%s1213_s29 + $0x120] sm:$0xff]  ;;  %v337_v19 = vld [vmem:[%s1213_s29 + $0x130] sm:$0xff] }
  0x19   : > { %318 = vst [vmem:[%s1218_s30 + $0x48] sm:$0xff] %v317_v9  ;;  %v339_v20 = vld [vmem:[%s1213_s29 + $0x140] sm:$0xff]  ;;  %v341_v21 = vld [vmem:[%s1213_s29 + $0x150] sm:$0xff] }
  0x1a   : > { %320 = vst [vmem:[%s1218_s30 + $0x50] sm:$0xff] %v319_v10  ;;  %v343_v22 = vld [vmem:[%s1213_s29 + $0x160] sm:$0xff]  ;;  %v345_v23 = vld [vmem:[%s1213_s29 + $0x170] sm:$0xff] }
  0x1b   : > { %322 = vst [vmem:[%s1218_s30 + $0x58] sm:$0xff] %v321_v11  ;;  %v347_v24 = vld [vmem:[%s1213_s29 + $0x180] sm:$0xff]  ;;  %v349_v25 = vld [vmem:[%s1213_s29 + $0x190] sm:$0xff] }
  0x1c   : > { %324 = vst [vmem:[%s1218_s30 + $0x60] sm:$0xff] %v323_v12  ;;  %v351_v26 = vld [vmem:[%s1213_s29 + $0x1a0] sm:$0xff]  ;;  %v353_v27 = vld [vmem:[%s1213_s29 + $0x1b0] sm:$0xff] }
  0x1d   : > { %326 = vst [vmem:[%s1218_s30 + $0x68] sm:$0xff] %v325_v13  ;;  %v355_v28 = vld [vmem:[%s1213_s29 + $0x1c0] sm:$0xff]  ;;  %v357_v29 = vld [vmem:[%s1213_s29 + $0x1d0] sm:$0xff] }
  0x1e   : > { %328 = vst [vmem:[%s1218_s30 + $0x70] sm:$0xff] %v327_v14  ;;  %v359_v30 = vld [vmem:[%s1213_s29 + $0x1e0] sm:$0xff]  ;;  %v361_v31 = vld [vmem:[%s1213_s29 + $0x1f0] sm:$0xff] }
  0x1f   : > { %330 = vst [vmem:[%s1218_s30 + $0x78] sm:$0xff] %v329_v15 }
  0x20   : > { %332 = vst [vmem:[%s1218_s30 + $0x80] sm:$0xff] %v331_v16 }
  0x21   : > { %334 = vst [vmem:[%s1218_s30 + $0x88] sm:$0xff] %v333_v17 }
  0x22   : > { %336 = vst [vmem:[%s1218_s30 + $0x90] sm:$0xff] %v335_v18 }
  0x23   : > { %338 = vst [vmem:[%s1218_s30 + $0x98] sm:$0xff] %v337_v19 }
  0x24   : > { %340 = vst [vmem:[%s1218_s30 + $0xa0] sm:$0xff] %v339_v20 }
  0x25   : > { %342 = vst [vmem:[%s1218_s30 + $0xa8] sm:$0xff] %v341_v21 }
  0x26   : > { %344 = vst [vmem:[%s1218_s30 + $0xb0] sm:$0xff] %v343_v22 }
  0x27   : > { %346 = vst [vmem:[%s1218_s30 + $0xb8] sm:$0xff] %v345_v23 }
  0x28   : > { %348 = vst [vmem:[%s1218_s30 + $0xc0] sm:$0xff] %v347_v24 }
  0x29   : > { %350 = vst [vmem:[%s1218_s30 + $0xc8] sm:$0xff] %v349_v25 }
  0x2a   : > { %352 = vst [vmem:[%s1218_s30 + $0xd0] sm:$0xff] %v351_v26 }
  0x2b   : > { %354 = vst [vmem:[%s1218_s30 + $0xd8] sm:$0xff] %v353_v27 }
  0x2c   : > { %356 = vst [vmem:[%s1218_s30 + $0xe0] sm:$0xff] %v355_v28 }
  0x2d   : > { %358 = vst [vmem:[%s1218_s30 + $0xe8] sm:$0xff] %v357_v29 }
  0x2e   : > { %360 = vst [vmem:[%s1218_s30 + $0xf0] sm:$0xff] %v359_v30 }
  0x2f   : > { %362 = vst [vmem:[%s1218_s30 + $0xf8] sm:$0xff] %v361_v31 }
  0x30 PF: > { %p895_p6 = scmp.ge.s32.totalorder %s1142_s19, 1  ;;  %p383_p7 = scmp.lt.s32.totalorder %s1142_s19, 3 }
  0x32   : > { %p384_p8 = pnand %p895_p6, %p383_p7 }
  0x33   : > { %s390_s5 = sand.u32 (!%p384_p8), 1, %s1126_s15   ;;  %s897_s10 = sshll.u32 (!%p384_p8), %s1134_s17, 1 }
  0x34   : > { %387 = sbr.rel (%p384_p8) target bundleno = 259 (0x103), region = 70  ;;  %s896_s8 = sshll.u32 (!%p384_p8), %s390_s5, 8 }
  0x35   : > { %s1287_s9 = scalar_lea.vmem (!%p384_p8), [#allocation3], %s896_s8  ;;  %p446_p9 = scmp.lt.s32.totalorder (!%p384_p8), %s897_s10, 3 }
  0x39   : > { %v470_v32 = vld [vmem:[%s1386_s0] sm:$0x3]  ;;  %v958_v33 = vld [vmem:[%s1287_s9 + $0x70] sm:$0xf]  ;;  %v1046_v34 = vld [vmem:[%s1287_s9 + $0x74] sm:$0xf0] }
  0x3a   : > { %504 = vst [vmem:[#allocation1] ss:$9 sm:$0xff] %v470_v32  ;;  %v1022_v35 = vld [vmem:[%s1287_s9 + $0xf0] sm:$0xf]  ;;  %v959_v36 = vor.u32 %v1046_v34, %v958_v33  ;;  %v1062_v37 = vld [vmem:[%s1287_s9 + $0xf4] sm:$0xf0] }
  0x3b   : > { %v1045_v38 = vld [vmem:[%s1287_s9 + $0x74] sm:$0xf]  ;;  %v960_v39 = vld [vmem:[%s1287_s9 + $0x78] sm:$0xf0]  ;;  %v1023_v40 = vor.u32 %v1062_v37, %v1022_v35  ;;  %v950_v44 = vld [vmem:[%s1287_s9 + $0x60] sm:$0xf] }
  0x3c   : > { %v963_v41 = vor.u32 %v1045_v38, %v960_v39  ;;  %v1061_v42 = vld [vmem:[%s1287_s9 + $0xf4] sm:$0xf]  ;;  %v1024_v43 = vld [vmem:[%s1287_s9 + $0xf8] sm:$0xf0]  ;;  %669 = vmatpush.bf16.msra.mxu0 %v959_v36  ;;  %v1044_v46 = vld [vmem:[%s1287_s9 + $0x64] sm:$0xf0] }
  0x3d   : > { %v1027_v45 = vor.u32 %v1061_v42, %v1024_v43  ;;  %v1014_v47 = vld [vmem:[%s1287_s9 + $0xe0] sm:$0xf]  ;;  %v1060_v48 = vld [vmem:[%s1287_s9 + $0xe4] sm:$0xf0]  ;;  %682 = vmatpush.bf16.msra.mxu1 %v1023_v40  ;;  %v951_v49 = vor.u32 %v1044_v46, %v950_v44  ;;  %v1043_v51 = vld [vmem:[%s1287_s9 + $0x64] sm:$0xf] }
  0x3e   : > { %695 = vmatpush.bf16.msra.mxu2 %v963_v41  ;;  %v1015_v50 = vor.u32 %v1060_v48, %v1014_v47  ;;  %v952_v52 = vld [vmem:[%s1287_s9 + $0x68] sm:$0xf0]  ;;  %v1059_v53 = vld [vmem:[%s1287_s9 + $0xe4] sm:$0xf]  ;;  %v942_v56 = vld [vmem:[%s1287_s9 + $0x50] sm:$0xf] }
  0x3f   : > { %708 = vmatpush.bf16.msra.mxu3 %v1027_v45  ;;  %v955_v54 = vor.u32 %v1043_v51, %v952_v52  ;;  %v1016_v55 = vld [vmem:[%s1287_s9 + $0xe8] sm:$0xf0]  ;;  %v1042_v57 = vld [vmem:[%s1287_s9 + $0x54] sm:$0xf0]  ;;  %v1006_v59 = vld [vmem:[%s1287_s9 + $0xd0] sm:$0xf] }
  0x40   : > { %v1019_v58 = vor.u32 %v1059_v53, %v1016_v55  ;;  %v1058_v60 = vld [vmem:[%s1287_s9 + $0xd4] sm:$0xf0]  ;;  %v1041_v61 = vld [vmem:[%s1287_s9 + $0x54] sm:$0xf]  ;;  %670 = vmatpush.bf16.msra.mxu0 %v951_v49  ;;  %v943_v62 = vor.u32 %v1042_v57, %v942_v56  ;;  %v944_v63 = vld [vmem:[%s1287_s9 + $0x58] sm:$0xf0] }
  0x41   : > { %v1057_v0 = vld [vmem:[%s1287_s9 + $0xd4] sm:$0xf]  ;;  %v1008_v1 = vld [vmem:[%s1287_s9 + $0xd8] sm:$0xf0]  ;;  %683 = vmatpush.bf16.msra.mxu1 %v1015_v50  ;;  %v1007_v2 = vor.u32 %v1058_v60, %v1006_v59  ;;  %v947_v3 = vor.u32 %v1041_v61, %v944_v63  ;;  %v934_v4 = vld [vmem:[%s1287_s9 + $0x40] sm:$0xf] }
  0x42   : > { %696 = vmatpush.bf16.msra.mxu2 %v955_v54  ;;  %v1040_v5 = vld [vmem:[%s1287_s9 + $0x44] sm:$0xf0]  ;;  %v998_v6 = vld [vmem:[%s1287_s9 + $0xc0] sm:$0xf]  ;;  %v1011_v7 = vor.u32 %v1057_v0, %v1008_v1  ;;  %v1039_v9 = vld [vmem:[%s1287_s9 + $0x44] sm:$0xf] }
  0x43   : > { %709 = vmatpush.bf16.msra.mxu3 %v1019_v58  ;;  %v1056_v8 = vld [vmem:[%s1287_s9 + $0xc4] sm:$0xf0]  ;;  %v936_v10 = vld [vmem:[%s1287_s9 + $0x48] sm:$0xf0]  ;;  %v1055_v11 = vld [vmem:[%s1287_s9 + $0xc4] sm:$0xf]  ;;  %v935_v13 = vor.u32 %v1040_v5, %v934_v4 }
  0x44   : > { %v1000_v12 = vld [vmem:[%s1287_s9 + $0xc8] sm:$0xf0]  ;;  %671 = vmatpush.bf16.msra.mxu0 %v943_v62  ;;  %v999_v14 = vor.u32 %v1056_v8, %v998_v6  ;;  %v939_v15 = vor.u32 %v1039_v9, %v936_v10  ;;  %v926_v16 = vld [vmem:[%s1287_s9 + $0x30] sm:$0xf]  ;;  %v1038_v17 = vld [vmem:[%s1287_s9 + $0x34] sm:$0xf0] }
  0x45   : > { %684 = vmatpush.bf16.msra.mxu1 %v1007_v2  ;;  %v990_v18 = vld [vmem:[%s1287_s9 + $0xb0] sm:$0xf]  ;;  %v1003_v19 = vor.u32 %v1055_v11, %v1000_v12  ;;  %v1054_v20 = vld [vmem:[%s1287_s9 + $0xb4] sm:$0xf0]  ;;  %v1037_v21 = vld [vmem:[%s1287_s9 + $0x34] sm:$0xf]  ;;  %v927_v25 = vor.u32 %v1038_v17, %v926_v16 }
  0x46   : > { %697 = vmatpush.bf16.msra.mxu2 %v947_v3  ;;  %v928_v22 = vld [vmem:[%s1287_s9 + $0x38] sm:$0xf0]  ;;  %v1053_v23 = vld [vmem:[%s1287_s9 + $0xb4] sm:$0xf]  ;;  %v991_v26 = vor.u32 %v1054_v20, %v990_v18  ;;  %v918_v28 = vld [vmem:[%s1287_s9 + $0x20] sm:$0xf] }
  0x47   : > { %710 = vmatpush.bf16.msra.mxu3 %v1011_v7  ;;  %v992_v24 = vld [vmem:[%s1287_s9 + $0xb8] sm:$0xf0]  ;;  %v931_v27 = vor.u32 %v1037_v21, %v928_v22  ;;  %v1036_v29 = vld [vmem:[%s1287_s9 + $0x24] sm:$0xf0]  ;;  %v982_v30 = vld [vmem:[%s1287_s9 + $0xa0] sm:$0xf] }
  0x48   : > { %672 = vmatpush.bf16.msra.mxu0 %v935_v13  ;;  %v995_v31 = vor.u32 %v1053_v23, %v992_v24  ;;  %v1052_v32 = vld [vmem:[%s1287_s9 + $0xa4] sm:$0xf0]  ;;  %v1035_v33 = vld [vmem:[%s1287_s9 + $0x24] sm:$0xf]  ;;  %v920_v34 = vld [vmem:[%s1287_s9 + $0x28] sm:$0xf0]  ;;  %v919_v37 = vor.u32 %v1036_v29, %v918_v28 }
  0x49   : > { %685 = vmatpush.bf16.msra.mxu1 %v999_v14  ;;  %v1051_v35 = vld [vmem:[%s1287_s9 + $0xa4] sm:$0xf]  ;;  %v984_v36 = vld [vmem:[%s1287_s9 + $0xa8] sm:$0xf0]  ;;  %v983_v38 = vor.u32 %v1052_v32, %v982_v30  ;;  %v923_v39 = vor.u32 %v1035_v33, %v920_v34  ;;  %v910_v40 = vld [vmem:[%s1287_s9 + $0x10] sm:$0xf] }
  0x4a   : > { %698 = vmatpush.bf16.msra.mxu2 %v939_v15  ;;  %v1034_v41 = vld [vmem:[%s1287_s9 + $0x14] sm:$0xf0]  ;;  %v974_v42 = vld [vmem:[%s1287_s9 + $0x90] sm:$0xf]  ;;  %v987_v43 = vor.u32 %v1051_v35, %v984_v36  ;;  %v1033_v45 = vld [vmem:[%s1287_s9 + $0x14] sm:$0xf] }
  0x4b   : > { %711 = vmatpush.bf16.msra.mxu3 %v1003_v19  ;;  %v1050_v44 = vld [vmem:[%s1287_s9 + $0x94] sm:$0xf0]  ;;  %v912_v46 = vld [vmem:[%s1287_s9 + $0x18] sm:$0xf0]  ;;  %v1049_v47 = vld [vmem:[%s1287_s9 + $0x94] sm:$0xf]  ;;  %v911_v49 = vor.u32 %v1034_v41, %v910_v40 }
  0x4c   : > { %673 = vmatpush.bf16.msra.mxu0 %v927_v25  ;;  %v976_v48 = vld [vmem:[%s1287_s9 + $0x98] sm:$0xf0]  ;;  %v975_v50 = vor.u32 %v1050_v44, %v974_v42  ;;  %v915_v51 = vor.u32 %v1033_v45, %v912_v46  ;;  %v902_v52 = vld [vmem:[%s1287_s9] sm:$0xf]  ;;  %v1032_v53 = vld [vmem:[%s1287_s9 + $0x4] sm:$0xf0] }
  0x4d   : > { %686 = vmatpush.bf16.msra.mxu1 %v991_v26  ;;  %v966_v54 = vld [vmem:[%s1287_s9 + $0x80] sm:$0xf]  ;;  %v979_v55 = vor.u32 %v1049_v47, %v976_v48  ;;  %v1048_v56 = vld [vmem:[%s1287_s9 + $0x84] sm:$0xf0]  ;;  %v1031_v57 = vld [vmem:[%s1287_s9 + $0x4] sm:$0xf]  ;;  %v903_v61 = vor.u32 %v1032_v53, %v902_v52 }
  0x4e   : > { %699 = vmatpush.bf16.msra.mxu2 %v931_v27  ;;  %v904_v58 = vld [vmem:[%s1287_s9 + $0x8] sm:$0xf0]  ;;  %v1047_v59 = vld [vmem:[%s1287_s9 + $0x84] sm:$0xf]  ;;  %v967_v62 = vor.u32 %v1048_v56, %v966_v54  ;;  %v505_v1 = vld [vmem:[#allocation1] sm:$0xff]  ;;  %v1144_v3 = vmov 0.0  }
  0x4f   : > { %712 = vmatpush.bf16.msra.mxu3 %v995_v31  ;;  %v968_v60 = vld [vmem:[%s1287_s9 + $0x88] sm:$0xf0]  ;;  %v907_v63 = vor.u32 %v1031_v57, %v904_v58  ;;  %v506_v2 = vld [vmem:[#allocation1 + $0x9] sm:$0xff]  ;;  %468 = vst [vmem:[#allocation2] sm:$0xf] %v1144_v3  ;;  %s1398_s10 = smov (!%p446_p9, %s897_s10), 3 }
  0x50   : > { %674 = vmatpush.bf16.msra.mxu0 %v919_v37  ;;  %v971_v0 = vor.u32 %v1047_v59, %v968_v60  ;;  %s448_s13 = scalar_lea.vmem %s1388_s2, %s1398_s10  ;;  %s453_s21 = scalar_lea.vmem %s1389_s3, %s1398_s10  ;;  %vm724_vm0 = vcmask 1041408   ;;  %vm758_vm1 = vcmask 1040384  }
  0x51   : > { %687 = vmatpush.bf16.msra.mxu1 %v983_v38  ;;  %v733_v12 = vld [vmem:[%s448_s13] sm:$0x3]  ;;  %s462_s24 = scalar_lea.vmem %s1390_s4, %s1398_s10 }
  0x52   : > { %700 = vmatpush.bf16.msra.mxu2 %v923_v39  ;;  %v741_v15 = vld [vmem:[%s453_s21] sm:$0x3]  ;;  %v736_v17 = vperm.slane %v733_v12, 1  ;;  %v735_v22 = vperm.slane %v733_v12, 0 }
  0x53   : > { %713 = vmatpush.bf16.msra.mxu3 %v987_v43  ;;  %v744_v19 = vperm.slane %v741_v15, 1  ;;  %v743_v24 = vperm.slane %v741_v15, 0 }
  0x54   : > { %675 = vmatpush.bf16.msra.mxu0 %v911_v49  ;;  %v737_v23 = vrot.slane %v736_v17, 6 }
  0x55   : > { %688 = vmatpush.bf16.msra.mxu1 %v975_v50  ;;  %v745_v25 = vrot.slane %v744_v19, 6 }
  0x56   : > { %701 = vmatpush.bf16.msra.mxu2 %v915_v51  ;;  %v469_v13 = vld [vmem:[#allocation2] sm:$0xf]  ;;  %v738_v26 = vsel %vm724_vm0, %v735_v22, %v737_v23 }
  0x57   : > { %714 = vmatpush.bf16.msra.mxu3 %v979_v55  ;;  %v746_v28 = vsel %vm724_vm0, %v743_v24, %v745_v25 }
  0x58   : > { %676 = vmatpush.bf16.msra.mxu0 %v903_v61 }
  0x59   : > { %689 = vmatpush.bf16.msra.mxu1 %v967_v62 }
  0x5a   : > { %702 = vmatpush.bf16.msra.mxu2 %v907_v63 }
  0x5b   : > { %715 = vmatpush.bf16.msra.mxu3 %v971_v0  ;;  %677 = vmatmul.bf16.vlgmr.msra.gmra.mxu0 %v505_v1 }
  0x5c   : > { %690 = vmatmul.bf16.vlgmr.msra.gmra.mxu1 %v506_v2 }
  0x5d   : > { %703 = vmatmul.bf16.vlgmr.msra.gmra.mxu2 %v505_v1 }
  0x5e   : > { %716 = vmatmul.bf16.vlgmr.msra.gmra.mxu3 %v506_v2 }
  0xd8   : > { %v678_v4 = vpop.f32.mrf.mxu0 }
  0xd9   : > { %v691_v5 = vpop.f32.mrf.mxu1 }
  0xda   : > { %v692_v9 = vadd.f32 %v691_v5, %v678_v4 }
  0xe0   : > { %v704_v6 = vpop.f32.mrf.mxu2  ;;  %v680_v8 = vpop.f32.mrf.mxu0 }
  0xe1   : > { %v717_v7 = vpop.f32.mrf.mxu3  ;;  %v693_v11 = vpop.f32.mrf.mxu1 }
  0xe2   : > { %v718_v10 = vadd.f32 %v717_v7, %v704_v6 }
  0xe4   : > { %v723_v14 = vrot.slane %v718_v10, 6 }
  0xe6   : > { %v725_v16 = vsel %vm724_vm0, %v692_v9, %v723_v14 }
  0xe7   : > { %v727_v18 = vadd.f32 %v725_v16, %v469_v13 }
  0xe8   : > { %v706_v20 = vpop.f32.mrf.mxu2 }
  0xe9   : > { %728 = vst [vmem:[#allocation2] sm:$0xf] %v727_v18  ;;  %v719_v21 = vpop.f32.mrf.mxu3 }
  0xf0   : > { %v732_v27 = vld [vmem:[#allocation2] sm:$0xf] }
  0xf1   : > { %v740_v29 = vmul.f32 %v738_v26, %v732_v27 }
  0xf3   : > { %v748_v30 = vadd.f32 %v746_v28, %v740_v29 }
  0xf5   : > { %750 = vst [vmem:[#allocation1] ss:$4 sm:$0xff] %v748_v30 }
  0xfc   : > { %v751_v31 = vld.sshfl [vmem:[#allocation1] sm:$0xff pattern:$0x73625140]  ;;  %v752_v32 = vld.sshfl [vmem:[#allocation1 + $0x8] sm:$0xff pattern:$0x73625140] }
  0xfd   : > { %v755_v33 = vpack.c.bf16 %v752_v32, %v751_v31 }
  0xff   : > { %v757_v34 = vrot.slane %v755_v33, 3 }
 0x101   : > { %v761_v35 = vsel %vm758_vm1, %v755_v33, %v757_v34 }
 0x102   : > { %763 = vst [vmem:[%s462_s24] sm:$0x3] %v761_v35 }
 0x103 PF: > { %s14_s19 = sadd.s32 1, %s1142_s19   ;;  %s1391_s15 = smov %s1130_s16 }
 0x104   : > { %p11_p10 = scmp.ge.s32.totalorder %s14_s19, 4   ;;  %s1392_s16 = smov %s1205_s23 }
 0x105   : > { %s1393_s17 = smov %s1138_s18  ;;  %s1394_s18 = smov %s1396_s20 }
 0x106   :  { %13 = sbr.rel (!%p11_p10) target bundleno = 3 (0x3), region = 126 }

// kernel: _lambda_.41
= control target key start
LH: loop header
LB: loop body
LE: loop exit
PB: predicated region body
PF: predicated region fallthrough
CT: control target
= control target key end

     0   :  { %s1744_s15 = smov 0   ;;  %s1746_s16 = smov 0   ;;  %s2153_s0 = inlined_call_operand.vmem [shape: bf16[2,4608], index: 0, kind: input, shape index: {}]   ;;  %s2154_s1 = inlined_call_operand.vmem [shape: bf16[4608,512], index: 1, kind: input, shape index: {}]   ;;  %s2155_s2 = inlined_call_operand.vmem [shape: f32[1,512], index: 2, kind: input, shape index: {}]   ;;  %s2156_s3 = inlined_call_operand.vmem [shape: f32[1,512], index: 3, kind: input, shape index: {}]   ;;  %s2157_s4 = inlined_call_operand.vmem [shape: bf16[2,512], index: 4, kind: output, shape index: {}]  }
   0x1   :  { %s1748_s17 = smov 0   ;;  %s1750_s18 = smov 0  }
   0x2   :  { %s1752_s19 = smov 0   ;;  %s1754_s20 = smov 0  }
   0x3   :  { %s1756_s21 = smov 0  }
   0x4 LB: > { %s26_s22 = sadd.s32 1, %s1708_s19  ;;  %s29_s23 = sadd.s32 1, %s1712_s20  ;;  %s1716_s21 = sphi %s1756_s21, %s14_s21   ;;  %s1712_s20 = sphi %s1754_s20, %s2163_s20   ;;  %s1708_s19 = sphi %s1752_s19, %s2162_s19   ;;  %s1704_s18 = sphi %s1750_s18, %s2161_s18   ;;  %s1700_s17 = sphi %s1748_s17, %s2160_s17   ;;  %s1696_s16 = sphi %s1746_s16, %s2159_s16   ;;  %s1692_s15 = sphi %s1744_s15, %s2158_s15  }
   0x5   : > { %p27_p0 = scmp.ge.s32.totalorder %s26_s22, 9  ;;  %p77_p1 = scmp.ne.s32.totalorder %s1696_s16, %s1692_s15 }
   0x6   : > { %p78_p2 = scmp.eq.s32.totalorder %s1716_s21, 0  ;;  %s70_s27 = sadd.s32 1, %s1696_s16 }
   0x7   : > { %s2165_s22 = smov (%p27_p0, %s26_s22), 0  ;;  %s2167_s23 = smov (!%p27_p0, %s29_s23), %s1712_s20 }
   0x8   : > { %p79_p3 = por %p78_p2, %p77_p1  ;;  %p31_p4 = scmp.ge.s32.totalorder %s2167_s23, 2 }
   0x9   : > { %s65_s24 = ssub.s32 %s1708_s19, %s2165_s22  ;;  %p1268_p6 = scmp.ge.s32.totalorder %s1716_s21, 18 }
   0xa   : > { %s2169_s23 = smov (%p31_p4, %s2167_s23), 0 }
   0xb   : > { %s66_s25 = ssub.s32 %s1712_s20, %s2169_s23  ;;  %183 = sbr.rel (%p1268_p6) target bundleno = 87 (0x57), region = 16 }
   0xc   : > { %s67_s26 = sor.u32 %s66_s25, %s65_s24 }
   0xd   : > { %p68_p5 = scmp.eq.s32.totalorder %s67_s26, 0 }
   0xf   : > { %s1795_s28 = scalar_select %p68_p5, %s1696_s16, %s70_s27  }
  0x10   : > { %198 = sbr.rel (!%p79_p3) target bundleno = 87 (0x57), region = 24  ;;  %s200_s29 = sand.u32 (%p79_p3), 1, %s1696_s16  }
  0x11   : > { %s1271_s30 = sshll.u32 (%p79_p3), %s1712_s20, 1  ;;  %s1269_s5 = sshll.u32 (%p79_p3), %s200_s29, 9 }
  0x12   : > { %s1540_s6 = sshll.u32 (%p79_p3), %s1708_s19, 8  ;;  %s1809_s12 = scalar_lea.vmem (%p79_p3), [#allocation3], %s1269_s5 }
  0x13   : > { %s206_s7 = sadd.s32 (%p79_p3), %s1540_s6, %s1271_s30 }
  0x14   : > { %s1273_s8 = sshll.u32 (%p79_p3), %s206_s7, 2 }
  0x15   : > { %s1804_s11 = scalar_lea.vmem %s2154_s1, %s1273_s8 }
  0x16   : > { %v363_v0 = vld [vmem:[%s1804_s11] sm:$0xff]  ;;  %v365_v1 = vld [vmem:[%s1804_s11 + $0x10] sm:$0xff] }
  0x17   : > { %v367_v2 = vld [vmem:[%s1804_s11 + $0x20] sm:$0xff]  ;;  %364 = vst [vmem:[%s1809_s12] sm:$0xff] %v363_v0  ;;  %v369_v3 = vld [vmem:[%s1804_s11 + $0x30] sm:$0xff] }
  0x18   : > { %366 = vst [vmem:[%s1809_s12 + $0x8] sm:$0xff] %v365_v1  ;;  %v371_v4 = vld [vmem:[%s1804_s11 + $0x40] sm:$0xff]  ;;  %v373_v5 = vld [vmem:[%s1804_s11 + $0x50] sm:$0xff] }
  0x19   : > { %368 = vst [vmem:[%s1809_s12 + $0x10] sm:$0xff] %v367_v2  ;;  %v375_v6 = vld [vmem:[%s1804_s11 + $0x60] sm:$0xff]  ;;  %v377_v7 = vld [vmem:[%s1804_s11 + $0x70] sm:$0xff] }
  0x1a   : > { %370 = vst [vmem:[%s1809_s12 + $0x18] sm:$0xff] %v369_v3  ;;  %v379_v8 = vld [vmem:[%s1804_s11 + $0x80] sm:$0xff]  ;;  %v381_v9 = vld [vmem:[%s1804_s11 + $0x90] sm:$0xff] }
  0x1b   : > { %372 = vst [vmem:[%s1809_s12 + $0x20] sm:$0xff] %v371_v4  ;;  %v383_v10 = vld [vmem:[%s1804_s11 + $0xa0] sm:$0xff]  ;;  %v385_v11 = vld [vmem:[%s1804_s11 + $0xb0] sm:$0xff] }
  0x1c   : > { %374 = vst [vmem:[%s1809_s12 + $0x28] sm:$0xff] %v373_v5  ;;  %v387_v12 = vld [vmem:[%s1804_s11 + $0xc0] sm:$0xff]  ;;  %v389_v13 = vld [vmem:[%s1804_s11 + $0xd0] sm:$0xff] }
  0x1d   : > { %376 = vst [vmem:[%s1809_s12 + $0x30] sm:$0xff] %v375_v6  ;;  %v391_v14 = vld [vmem:[%s1804_s11 + $0xe0] sm:$0xff]  ;;  %v393_v15 = vld [vmem:[%s1804_s11 + $0xf0] sm:$0xff] }
  0x1e   : > { %378 = vst [vmem:[%s1809_s12 + $0x38] sm:$0xff] %v377_v7  ;;  %v395_v16 = vld [vmem:[%s1804_s11 + $0x100] sm:$0xff]  ;;  %v397_v17 = vld [vmem:[%s1804_s11 + $0x110] sm:$0xff] }
  0x1f   : > { %380 = vst [vmem:[%s1809_s12 + $0x40] sm:$0xff] %v379_v8  ;;  %v399_v18 = vld [vmem:[%s1804_s11 + $0x120] sm:$0xff]  ;;  %v401_v19 = vld [vmem:[%s1804_s11 + $0x130] sm:$0xff] }
  0x20   : > { %382 = vst [vmem:[%s1809_s12 + $0x48] sm:$0xff] %v381_v9  ;;  %v403_v20 = vld [vmem:[%s1804_s11 + $0x140] sm:$0xff]  ;;  %v405_v21 = vld [vmem:[%s1804_s11 + $0x150] sm:$0xff] }
  0x21   : > { %384 = vst [vmem:[%s1809_s12 + $0x50] sm:$0xff] %v383_v10  ;;  %v407_v22 = vld [vmem:[%s1804_s11 + $0x160] sm:$0xff]  ;;  %v409_v23 = vld [vmem:[%s1804_s11 + $0x170] sm:$0xff] }
  0x22   : > { %386 = vst [vmem:[%s1809_s12 + $0x58] sm:$0xff] %v385_v11  ;;  %v411_v24 = vld [vmem:[%s1804_s11 + $0x180] sm:$0xff]  ;;  %v413_v25 = vld [vmem:[%s1804_s11 + $0x190] sm:$0xff] }
  0x23   : > { %388 = vst [vmem:[%s1809_s12 + $0x60] sm:$0xff] %v387_v12  ;;  %v415_v26 = vld [vmem:[%s1804_s11 + $0x1a0] sm:$0xff]  ;;  %v417_v27 = vld [vmem:[%s1804_s11 + $0x1b0] sm:$0xff] }
  0x24   : > { %390 = vst [vmem:[%s1809_s12 + $0x68] sm:$0xff] %v389_v13  ;;  %v419_v28 = vld [vmem:[%s1804_s11 + $0x1c0] sm:$0xff]  ;;  %v421_v29 = vld [vmem:[%s1804_s11 + $0x1d0] sm:$0xff] }
  0x25   : > { %392 = vst [vmem:[%s1809_s12 + $0x70] sm:$0xff] %v391_v14  ;;  %v423_v30 = vld [vmem:[%s1804_s11 + $0x1e0] sm:$0xff]  ;;  %v425_v31 = vld [vmem:[%s1804_s11 + $0x1f0] sm:$0xff] }
  0x26   : > { %394 = vst [vmem:[%s1809_s12 + $0x78] sm:$0xff] %v393_v15  ;;  %v427_v32 = vld [vmem:[%s1804_s11 + $0x200] sm:$0xff]  ;;  %v429_v33 = vld [vmem:[%s1804_s11 + $0x210] sm:$0xff] }
  0x27   : > { %396 = vst [vmem:[%s1809_s12 + $0x80] sm:$0xff] %v395_v16  ;;  %v431_v34 = vld [vmem:[%s1804_s11 + $0x220] sm:$0xff]  ;;  %v433_v35 = vld [vmem:[%s1804_s11 + $0x230] sm:$0xff] }
  0x28   : > { %398 = vst [vmem:[%s1809_s12 + $0x88] sm:$0xff] %v397_v17  ;;  %v435_v36 = vld [vmem:[%s1804_s11 + $0x240] sm:$0xff]  ;;  %v437_v37 = vld [vmem:[%s1804_s11 + $0x250] sm:$0xff] }
  0x29   : > { %400 = vst [vmem:[%s1809_s12 + $0x90] sm:$0xff] %v399_v18  ;;  %v439_v38 = vld [vmem:[%s1804_s11 + $0x260] sm:$0xff]  ;;  %v441_v39 = vld [vmem:[%s1804_s11 + $0x270] sm:$0xff] }
  0x2a   : > { %402 = vst [vmem:[%s1809_s12 + $0x98] sm:$0xff] %v401_v19  ;;  %v443_v40 = vld [vmem:[%s1804_s11 + $0x280] sm:$0xff]  ;;  %v445_v41 = vld [vmem:[%s1804_s11 + $0x290] sm:$0xff] }
  0x2b   : > { %404 = vst [vmem:[%s1809_s12 + $0xa0] sm:$0xff] %v403_v20  ;;  %v447_v42 = vld [vmem:[%s1804_s11 + $0x2a0] sm:$0xff]  ;;  %v449_v43 = vld [vmem:[%s1804_s11 + $0x2b0] sm:$0xff] }
  0x2c   : > { %406 = vst [vmem:[%s1809_s12 + $0xa8] sm:$0xff] %v405_v21  ;;  %v451_v44 = vld [vmem:[%s1804_s11 + $0x2c0] sm:$0xff]  ;;  %v453_v45 = vld [vmem:[%s1804_s11 + $0x2d0] sm:$0xff] }
  0x2d   : > { %408 = vst [vmem:[%s1809_s12 + $0xb0] sm:$0xff] %v407_v22  ;;  %v455_v46 = vld [vmem:[%s1804_s11 + $0x2e0] sm:$0xff]  ;;  %v457_v47 = vld [vmem:[%s1804_s11 + $0x2f0] sm:$0xff] }
  0x2e   : > { %410 = vst [vmem:[%s1809_s12 + $0xb8] sm:$0xff] %v409_v23  ;;  %v459_v48 = vld [vmem:[%s1804_s11 + $0x300] sm:$0xff]  ;;  %v461_v49 = vld [vmem:[%s1804_s11 + $0x310] sm:$0xff] }
  0x2f   : > { %412 = vst [vmem:[%s1809_s12 + $0xc0] sm:$0xff] %v411_v24  ;;  %v463_v50 = vld [vmem:[%s1804_s11 + $0x320] sm:$0xff]  ;;  %v465_v51 = vld [vmem:[%s1804_s11 + $0x330] sm:$0xff] }
  0x30   : > { %414 = vst [vmem:[%s1809_s12 + $0xc8] sm:$0xff] %v413_v25  ;;  %v467_v52 = vld [vmem:[%s1804_s11 + $0x340] sm:$0xff]  ;;  %v469_v53 = vld [vmem:[%s1804_s11 + $0x350] sm:$0xff] }
  0x31   : > { %416 = vst [vmem:[%s1809_s12 + $0xd0] sm:$0xff] %v415_v26  ;;  %v471_v54 = vld [vmem:[%s1804_s11 + $0x360] sm:$0xff]  ;;  %v473_v55 = vld [vmem:[%s1804_s11 + $0x370] sm:$0xff] }
  0x32   : > { %418 = vst [vmem:[%s1809_s12 + $0xd8] sm:$0xff] %v417_v27  ;;  %v475_v56 = vld [vmem:[%s1804_s11 + $0x380] sm:$0xff]  ;;  %v477_v57 = vld [vmem:[%s1804_s11 + $0x390] sm:$0xff] }
  0x33   : > { %420 = vst [vmem:[%s1809_s12 + $0xe0] sm:$0xff] %v419_v28  ;;  %v479_v58 = vld [vmem:[%s1804_s11 + $0x3a0] sm:$0xff]  ;;  %v481_v59 = vld [vmem:[%s1804_s11 + $0x3b0] sm:$0xff] }
  0x34   : > { %422 = vst [vmem:[%s1809_s12 + $0xe8] sm:$0xff] %v421_v29  ;;  %v483_v60 = vld [vmem:[%s1804_s11 + $0x3c0] sm:$0xff]  ;;  %v485_v61 = vld [vmem:[%s1804_s11 + $0x3d0] sm:$0xff] }
  0x35   : > { %424 = vst [vmem:[%s1809_s12 + $0xf0] sm:$0xff] %v423_v30  ;;  %v487_v62 = vld [vmem:[%s1804_s11 + $0x3e0] sm:$0xff]  ;;  %v489_v63 = vld [vmem:[%s1804_s11 + $0x3f0] sm:$0xff] }
  0x36   : > { %426 = vst [vmem:[%s1809_s12 + $0xf8] sm:$0xff] %v425_v31 }
  0x37   : > { %428 = vst [vmem:[%s1809_s12 + $0x100] sm:$0xff] %v427_v32 }
  0x38   : > { %430 = vst [vmem:[%s1809_s12 + $0x108] sm:$0xff] %v429_v33 }
  0x39   : > { %432 = vst [vmem:[%s1809_s12 + $0x110] sm:$0xff] %v431_v34 }
  0x3a   : > { %434 = vst [vmem:[%s1809_s12 + $0x118] sm:$0xff] %v433_v35 }
  0x3b   : > { %436 = vst [vmem:[%s1809_s12 + $0x120] sm:$0xff] %v435_v36 }
  0x3c   : > { %438 = vst [vmem:[%s1809_s12 + $0x128] sm:$0xff] %v437_v37 }
  0x3d   : > { %440 = vst [vmem:[%s1809_s12 + $0x130] sm:$0xff] %v439_v38 }
  0x3e   : > { %442 = vst [vmem:[%s1809_s12 + $0x138] sm:$0xff] %v441_v39 }
  0x3f   : > { %444 = vst [vmem:[%s1809_s12 + $0x140] sm:$0xff] %v443_v40 }
  0x40   : > { %446 = vst [vmem:[%s1809_s12 + $0x148] sm:$0xff] %v445_v41 }
  0x41   : > { %448 = vst [vmem:[%s1809_s12 + $0x150] sm:$0xff] %v447_v42 }
  0x42   : > { %450 = vst [vmem:[%s1809_s12 + $0x158] sm:$0xff] %v449_v43 }
  0x43   : > { %452 = vst [vmem:[%s1809_s12 + $0x160] sm:$0xff] %v451_v44 }
  0x44   : > { %454 = vst [vmem:[%s1809_s12 + $0x168] sm:$0xff] %v453_v45 }
  0x45   : > { %456 = vst [vmem:[%s1809_s12 + $0x170] sm:$0xff] %v455_v46 }
  0x46   : > { %458 = vst [vmem:[%s1809_s12 + $0x178] sm:$0xff] %v457_v47 }
  0x47   : > { %460 = vst [vmem:[%s1809_s12 + $0x180] sm:$0xff] %v459_v48 }
  0x48   : > { %462 = vst [vmem:[%s1809_s12 + $0x188] sm:$0xff] %v461_v49 }
  0x49   : > { %464 = vst [vmem:[%s1809_s12 + $0x190] sm:$0xff] %v463_v50 }
  0x4a   : > { %466 = vst [vmem:[%s1809_s12 + $0x198] sm:$0xff] %v465_v51 }
  0x4b   : > { %468 = vst [vmem:[%s1809_s12 + $0x1a0] sm:$0xff] %v467_v52 }
  0x4c   : > { %470 = vst [vmem:[%s1809_s12 + $0x1a8] sm:$0xff] %v469_v53 }
  0x4d   : > { %472 = vst [vmem:[%s1809_s12 + $0x1b0] sm:$0xff] %v471_v54 }
  0x4e   : > { %474 = vst [vmem:[%s1809_s12 + $0x1b8] sm:$0xff] %v473_v55 }
  0x4f   : > { %476 = vst [vmem:[%s1809_s12 + $0x1c0] sm:$0xff] %v475_v56 }
  0x50   : > { %478 = vst [vmem:[%s1809_s12 + $0x1c8] sm:$0xff] %v477_v57 }
  0x51   : > { %480 = vst [vmem:[%s1809_s12 + $0x1d0] sm:$0xff] %v479_v58 }
  0x52   : > { %482 = vst [vmem:[%s1809_s12 + $0x1d8] sm:$0xff] %v481_v59 }
  0x53   : > { %484 = vst [vmem:[%s1809_s12 + $0x1e0] sm:$0xff] %v483_v60 }
  0x54   : > { %486 = vst [vmem:[%s1809_s12 + $0x1e8] sm:$0xff] %v485_v61 }
  0x55   : > { %488 = vst [vmem:[%s1809_s12 + $0x1f0] sm:$0xff] %v487_v62 }
  0x56   : > { %490 = vst [vmem:[%s1809_s12 + $0x1f8] sm:$0xff] %v489_v63 }
  0x57 PF: > { %p1274_p7 = scmp.ge.s32.totalorder %s1716_s21, 1  ;;  %p511_p8 = scmp.lt.s32.totalorder %s1716_s21, 19 }
  0x59   : > { %p512_p9 = pnand %p1274_p7, %p511_p8 }
  0x5a   : > { %s518_s13 = sand.u32 (!%p512_p9), 1, %s1692_s15   ;;  %s1276_s14 = sshll.u32 (!%p512_p9), %s1700_s17, 2 }
  0x5b   : > { %515 = sbr.rel (%p512_p9) target bundleno = 343 (0x157), region = 70  ;;  %s1275_s24 = sshll.u32 (!%p512_p9), %s518_s13, 9 }
  0x5c   : > { %p565_p10 = scmp.lt.s32.totalorder (!%p512_p9), %s1276_s14, 35  ;;  %s1277_s25 = sshll.u32 (!%p512_p9), %s1704_s18, 1 }
  0x5d   : > { %p574_p11 = scmp.lt.s32.totalorder (!%p512_p9), %s1277_s25, 3  ;;  %s1961_s11 = scalar_lea.vmem (!%p512_p9), [#allocation3], %s1275_s24 }
  0x5e   : > { %p1280_p12 = scmp.ne.s32.totalorder (!%p512_p9), %s1700_s17, 0 }
  0x60   : > { %s2171_s14 = smov (!%p565_p10, %s1276_s14), 35  ;;  %s2173_s25 = smov (!%p574_p11, %s1277_s25), 3 }
  0x61   : > { %s569_s29 = scalar_lea.vmem %s2153_s0, %s2171_s14  ;;  %s576_s15 = scalar_lea.vmem %s2155_s2, %s2173_s25 }
  0x62   : > { %s581_s18 = scalar_lea.vmem %s2156_s3, %s2173_s25  ;;  %s590_s10 = scalar_lea.vmem %s2157_s4, %s2173_s25 }
  0x63   : > { %595 = sbr.rel (%p1280_p12) target bundleno = 106 (0x6a), region = 78 }
  0x68   : > { %v1718_v0 = vmov 0.0  }
  0x69   : > { %596 = vst [vmem:[#allocation2] sm:$0xf] %v1718_v0 }
  0x6a PF: > { %v1339_v1 = vld [vmem:[%s1961_s11 + $0x70] sm:$0xf]  ;;  %v1556_v2 = vld [vmem:[%s1961_s11 + $0x74] sm:$0xf0]  ;;  %v1331_v12 = vld [vmem:[%s1961_s11 + $0x60] sm:$0xf] }
  0x6b   : > { %v1403_v3 = vld [vmem:[%s1961_s11 + $0xf0] sm:$0xf]  ;;  %v1340_v4 = vor.u32 %v1556_v2, %v1339_v1  ;;  %v1572_v5 = vld [vmem:[%s1961_s11 + $0xf4] sm:$0xf0]  ;;  %v1554_v14 = vld [vmem:[%s1961_s11 + $0x64] sm:$0xf0] }
  0x6c   : > { %v1467_v6 = vld [vmem:[%s1961_s11 + $0x170] sm:$0xf]  ;;  %v1588_v7 = vld [vmem:[%s1961_s11 + $0x174] sm:$0xf0]  ;;  %v1404_v8 = vor.u32 %v1572_v5, %v1403_v3  ;;  %v1395_v15 = vld [vmem:[%s1961_s11 + $0xe0] sm:$0xf]  ;;  %v1332_v17 = vor.u32 %v1554_v14, %v1331_v12 }
  0x6d   : > { %v1468_v9 = vor.u32 %v1588_v7, %v1467_v6  ;;  %v1531_v10 = vld [vmem:[%s1961_s11 + $0x1f0] sm:$0xf]  ;;  %v1604_v11 = vld [vmem:[%s1961_s11 + $0x1f4] sm:$0xf0]  ;;  %993 = vmatpush.bf16.msra.mxu0 %v1340_v4  ;;  %v1570_v16 = vld [vmem:[%s1961_s11 + $0xe4] sm:$0xf0] }
  0x6e   : > { %v1532_v13 = vor.u32 %v1604_v11, %v1531_v10  ;;  %1006 = vmatpush.bf16.msra.mxu1 %v1404_v8  ;;  %v1396_v18 = vor.u32 %v1570_v16, %v1395_v15  ;;  %v1459_v19 = vld [vmem:[%s1961_s11 + $0x160] sm:$0xf]  ;;  %v1586_v20 = vld [vmem:[%s1961_s11 + $0x164] sm:$0xf0]  ;;  %v1323_v24 = vld [vmem:[%s1961_s11 + $0x50] sm:$0xf] }
  0x6f   : > { %1019 = vmatpush.bf16.msra.mxu2 %v1468_v9  ;;  %v1523_v21 = vld [vmem:[%s1961_s11 + $0x1e0] sm:$0xf]  ;;  %v1460_v22 = vor.u32 %v1586_v20, %v1459_v19  ;;  %v1602_v23 = vld [vmem:[%s1961_s11 + $0x1e4] sm:$0xf0]  ;;  %v1552_v25 = vld [vmem:[%s1961_s11 + $0x54] sm:$0xf0] }
  0x70   : > { %1032 = vmatpush.bf16.msra.mxu3 %v1532_v13  ;;  %v1524_v26 = vor.u32 %v1602_v23, %v1523_v21  ;;  %v1387_v27 = vld [vmem:[%s1961_s11 + $0xd0] sm:$0xf]  ;;  %v1568_v28 = vld [vmem:[%s1961_s11 + $0xd4] sm:$0xf0]  ;;  %v1324_v30 = vor.u32 %v1552_v25, %v1323_v24  ;;  %v1315_v36 = vld [vmem:[%s1961_s11 + $0x40] sm:$0xf] }
  0x71   : > { %v1451_v29 = vld [vmem:[%s1961_s11 + $0x150] sm:$0xf]  ;;  %994 = vmatpush.bf16.msra.mxu0 %v1332_v17  ;;  %v1584_v31 = vld [vmem:[%s1961_s11 + $0x154] sm:$0xf0]  ;;  %v1388_v34 = vor.u32 %v1568_v28, %v1387_v27  ;;  %v1550_v37 = vld [vmem:[%s1961_s11 + $0x44] sm:$0xf0] }
  0x72   : > { %v1515_v32 = vld [vmem:[%s1961_s11 + $0x1d0] sm:$0xf]  ;;  %v1600_v33 = vld [vmem:[%s1961_s11 + $0x1d4] sm:$0xf0]  ;;  %1007 = vmatpush.bf16.msra.mxu1 %v1396_v18  ;;  %v1452_v35 = vor.u32 %v1584_v31, %v1451_v29  ;;  %v1379_v38 = vld [vmem:[%s1961_s11 + $0xc0] sm:$0xf]  ;;  %v1316_v45 = vor.u32 %v1550_v37, %v1315_v36 }
  0x73   : > { %1020 = vmatpush.bf16.msra.mxu2 %v1460_v22  ;;  %v1516_v39 = vor.u32 %v1600_v33, %v1515_v32  ;;  %v1566_v40 = vld [vmem:[%s1961_s11 + $0xc4] sm:$0xf0]  ;;  %v1443_v41 = vld [vmem:[%s1961_s11 + $0x140] sm:$0xf]  ;;  %v1307_v48 = vld [vmem:[%s1961_s11 + $0x30] sm:$0xf] }
  0x74   : > { %1033 = vmatpush.bf16.msra.mxu3 %v1524_v26  ;;  %v1582_v42 = vld [vmem:[%s1961_s11 + $0x144] sm:$0xf0]  ;;  %v1507_v43 = vld [vmem:[%s1961_s11 + $0x1c0] sm:$0xf]  ;;  %v1380_v46 = vor.u32 %v1566_v40, %v1379_v38  ;;  %v1548_v49 = vld [vmem:[%s1961_s11 + $0x34] sm:$0xf0] }
  0x75   : > { %v1598_v44 = vld [vmem:[%s1961_s11 + $0x1c4] sm:$0xf0]  ;;  %995 = vmatpush.bf16.msra.mxu0 %v1324_v30  ;;  %v1444_v47 = vor.u32 %v1582_v42, %v1443_v41  ;;  %v1371_v50 = vld [vmem:[%s1961_s11 + $0xb0] sm:$0xf]  ;;  %v1564_v52 = vld [vmem:[%s1961_s11 + $0xb4] sm:$0xf0]  ;;  %v1308_v57 = vor.u32 %v1548_v49, %v1307_v48 }
  0x76   : > { %1008 = vmatpush.bf16.msra.mxu1 %v1388_v34  ;;  %v1508_v51 = vor.u32 %v1598_v44, %v1507_v43  ;;  %v1435_v53 = vld [vmem:[%s1961_s11 + $0x130] sm:$0xf]  ;;  %v1580_v54 = vld [vmem:[%s1961_s11 + $0x134] sm:$0xf0]  ;;  %v1372_v58 = vor.u32 %v1564_v52, %v1371_v50  ;;  %v1299_v60 = vld [vmem:[%s1961_s11 + $0x20] sm:$0xf] }
  0x77   : > { %1021 = vmatpush.bf16.msra.mxu2 %v1452_v35  ;;  %v1499_v55 = vld [vmem:[%s1961_s11 + $0x1b0] sm:$0xf]  ;;  %v1596_v56 = vld [vmem:[%s1961_s11 + $0x1b4] sm:$0xf0]  ;;  %v1436_v59 = vor.u32 %v1580_v54, %v1435_v53  ;;  %v1546_v61 = vld [vmem:[%s1961_s11 + $0x24] sm:$0xf0] }
  0x78   : > { %1034 = vmatpush.bf16.msra.mxu3 %v1516_v39  ;;  %v1363_v62 = vld [vmem:[%s1961_s11 + $0xa0] sm:$0xf]  ;;  %v1500_v63 = vor.u32 %v1596_v56, %v1499_v55  ;;  %v1562_v0 = vld [vmem:[%s1961_s11 + $0xa4] sm:$0xf0]  ;;  %v1300_v5 = vor.u32 %v1546_v61, %v1299_v60  ;;  %v1291_v8 = vld [vmem:[%s1961_s11 + $0x10] sm:$0xf] }
  0x79   : > { %996 = vmatpush.bf16.msra.mxu0 %v1316_v45  ;;  %v1427_v1 = vld [vmem:[%s1961_s11 + $0x120] sm:$0xf]  ;;  %v1578_v2 = vld [vmem:[%s1961_s11 + $0x124] sm:$0xf0]  ;;  %v1364_v6 = vor.u32 %v1562_v0, %v1363_v62  ;;  %v1544_v9 = vld [vmem:[%s1961_s11 + $0x14] sm:$0xf0] }
  0x7a   : > { %1009 = vmatpush.bf16.msra.mxu1 %v1380_v46  ;;  %v1491_v3 = vld [vmem:[%s1961_s11 + $0x1a0] sm:$0xf]  ;;  %v1594_v4 = vld [vmem:[%s1961_s11 + $0x1a4] sm:$0xf0]  ;;  %v1428_v7 = vor.u32 %v1578_v2, %v1427_v1  ;;  %v1355_v10 = vld [vmem:[%s1961_s11 + $0x90] sm:$0xf]  ;;  %v1292_v18 = vor.u32 %v1544_v9, %v1291_v8 }
  0x7b   : > { %1022 = vmatpush.bf16.msra.mxu2 %v1444_v47  ;;  %v1492_v11 = vor.u32 %v1594_v4, %v1491_v3  ;;  %v1560_v12 = vld [vmem:[%s1961_s11 + $0x94] sm:$0xf0]  ;;  %v1419_v13 = vld [vmem:[%s1961_s11 + $0x110] sm:$0xf]  ;;  %v1283_v17 = vld [vmem:[%s1961_s11] sm:$0xf] }
  0x7c   : > { %1035 = vmatpush.bf16.msra.mxu3 %v1508_v51  ;;  %v1576_v14 = vld [vmem:[%s1961_s11 + $0x114] sm:$0xf0]  ;;  %v1483_v15 = vld [vmem:[%s1961_s11 + $0x190] sm:$0xf]  ;;  %v1542_v19 = vld [vmem:[%s1961_s11 + $0x4] sm:$0xf0]  ;;  %v1356_v22 = vor.u32 %v1560_v12, %v1355_v10 }
  0x7d   : > { %997 = vmatpush.bf16.msra.mxu0 %v1308_v57  ;;  %v1592_v16 = vld [vmem:[%s1961_s11 + $0x194] sm:$0xf0]  ;;  %v1347_v20 = vld [vmem:[%s1961_s11 + $0x80] sm:$0xf]  ;;  %v1558_v21 = vld [vmem:[%s1961_s11 + $0x84] sm:$0xf0]  ;;  %v1420_v23 = vor.u32 %v1576_v14, %v1419_v13  ;;  %v1284_v34 = vor.u32 %v1542_v19, %v1283_v17 }
  0x7e   : > { %1010 = vmatpush.bf16.msra.mxu1 %v1372_v58  ;;  %v1411_v24 = vld [vmem:[%s1961_s11 + $0x100] sm:$0xf]  ;;  %v1574_v25 = vld [vmem:[%s1961_s11 + $0x104] sm:$0xf0]  ;;  %v1484_v27 = vor.u32 %v1592_v16, %v1483_v15  ;;  %v1555_v29 = vld [vmem:[%s1961_s11 + $0x74] sm:$0xf]  ;;  %v1348_v37 = vor.u32 %v1558_v21, %v1347_v20 }
  0x7f   : > { %1023 = vmatpush.bf16.msra.mxu2 %v1436_v59  ;;  %v1475_v26 = vld [vmem:[%s1961_s11 + $0x180] sm:$0xf]  ;;  %v1590_v28 = vld [vmem:[%s1961_s11 + $0x184] sm:$0xf0]  ;;  %v1341_v30 = vld [vmem:[%s1961_s11 + $0x78] sm:$0xf0]  ;;  %v1412_v38 = vor.u32 %v1574_v25, %v1411_v24 }
  0x80   : > { %1036 = vmatpush.bf16.msra.mxu3 %v1500_v63  ;;  %v1571_v31 = vld [vmem:[%s1961_s11 + $0xf4] sm:$0xf]  ;;  %v1405_v32 = vld [vmem:[%s1961_s11 + $0xf8] sm:$0xf0]  ;;  %v1476_v41 = vor.u32 %v1590_v28, %v1475_v26  ;;  %v1344_v42 = vor.u32 %v1555_v29, %v1341_v30  ;;  %v1553_v45 = vld [vmem:[%s1961_s11 + $0x64] sm:$0xf] }
  0x81   : > { %998 = vmatpush.bf16.msra.mxu0 %v1300_v5  ;;  %v598_v33 = vld [vmem:[%s569_s29] sm:$0xf]  ;;  %v1469_v36 = vld [vmem:[%s1961_s11 + $0x178] sm:$0xf0]  ;;  %v1408_v43 = vor.u32 %v1571_v31, %v1405_v32  ;;  %v1333_v46 = vld [vmem:[%s1961_s11 + $0x68] sm:$0xf0] }
  0x82   : > { %1011 = vmatpush.bf16.msra.mxu1 %v1364_v6  ;;  %v1587_v35 = vld [vmem:[%s1961_s11 + $0x174] sm:$0xf]  ;;  %664 = vst [vmem:[#allocation1] ss:$9 sm:$0xff] %v598_v33  ;;  %v1533_v40 = vld [vmem:[%s1961_s11 + $0x1f8] sm:$0xf0]  ;;  %v1336_v55 = vor.u32 %v1553_v45, %v1333_v46 }
  0x83   : > { %1024 = vmatpush.bf16.msra.mxu2 %v1428_v7  ;;  %v1603_v39 = vld [vmem:[%s1961_s11 + $0x1f4] sm:$0xf]  ;;  %v1472_v44 = vor.u32 %v1587_v35, %v1469_v36  ;;  %v1569_v47 = vld [vmem:[%s1961_s11 + $0xe4] sm:$0xf]  ;;  %v1397_v49 = vld [vmem:[%s1961_s11 + $0xe8] sm:$0xf0] }
  0x84   : > { %1037 = vmatpush.bf16.msra.mxu3 %v1492_v11  ;;  %v1536_v48 = vor.u32 %v1603_v39, %v1533_v40  ;;  %v1585_v50 = vld [vmem:[%s1961_s11 + $0x164] sm:$0xf]  ;;  %v1461_v51 = vld [vmem:[%s1961_s11 + $0x168] sm:$0xf0]  ;;  %v1551_v54 = vld [vmem:[%s1961_s11 + $0x54] sm:$0xf]  ;;  %v1400_v59 = vor.u32 %v1569_v47, %v1397_v49 }
  0x85   : > { %999 = vmatpush.bf16.msra.mxu0 %v1292_v18  ;;  %v1601_v52 = vld [vmem:[%s1961_s11 + $0x1e4] sm:$0xf]  ;;  %v1525_v53 = vld [vmem:[%s1961_s11 + $0x1e8] sm:$0xf0]  ;;  %v1325_v56 = vld [vmem:[%s1961_s11 + $0x58] sm:$0xf0]  ;;  %v1464_v60 = vor.u32 %v1585_v50, %v1461_v51 }
  0x86   : > { %1012 = vmatpush.bf16.msra.mxu1 %v1356_v22  ;;  %v1567_v57 = vld [vmem:[%s1961_s11 + $0xd4] sm:$0xf]  ;;  %v1389_v58 = vld [vmem:[%s1961_s11 + $0xd8] sm:$0xf0]  ;;  %v1528_v0 = vor.u32 %v1601_v52, %v1525_v53  ;;  %v1328_v6 = vor.u32 %v1551_v54, %v1325_v56  ;;  %v1549_v9 = vld [vmem:[%s1961_s11 + $0x44] sm:$0xf] }
  0x87   : > { %1025 = vmatpush.bf16.msra.mxu2 %v1420_v23  ;;  %v1583_v1 = vld [vmem:[%s1961_s11 + $0x154] sm:$0xf]  ;;  %v1453_v2 = vld [vmem:[%s1961_s11 + $0x158] sm:$0xf0]  ;;  %v1392_v7 = vor.u32 %v1567_v57, %v1389_v58  ;;  %v1317_v10 = vld [vmem:[%s1961_s11 + $0x48] sm:$0xf0] }
  0x88   : > { %1038 = vmatpush.bf16.msra.mxu3 %v1484_v27  ;;  %v1599_v4 = vld [vmem:[%s1961_s11 + $0x1d4] sm:$0xf]  ;;  %v1517_v5 = vld [vmem:[%s1961_s11 + $0x1d8] sm:$0xf0]  ;;  %v1456_v8 = vor.u32 %v1583_v1, %v1453_v2  ;;  %v1565_v11 = vld [vmem:[%s1961_s11 + $0xc4] sm:$0xf]  ;;  %v1320_v18 = vor.u32 %v1549_v9, %v1317_v10 }
  0x89   : > { %1000 = vmatpush.bf16.msra.mxu0 %v1284_v34  ;;  %v2053_v61 = vld [vmem:[#allocation1 + $0x12] sm:$0xff]  ;;  %v2055_v62 = vld [vmem:[#allocation1 + $0x1b] sm:$0xff]  ;;  %v2062_v3 = vld [vmem:[#allocation1 + $0x9] sm:$0xff]  ;;  %v1520_v12 = vor.u32 %v1599_v4, %v1517_v5  ;;  %vm1100_vm0 = vcmask 1041408   ;;  %p1537_p13 = scmp.ne.s32.totalorder %s1700_s17, 8 }
  0x8a   : > { %1013 = vmatpush.bf16.msra.mxu1 %v1348_v37  ;;  %v2057_v63 = vld [vmem:[#allocation1] sm:$0xff]  ;;  %v1381_v13 = vld [vmem:[%s1961_s11 + $0xc8] sm:$0xf0]  ;;  %v1581_v14 = vld [vmem:[%s1961_s11 + $0x144] sm:$0xf] }
  0x8b   : > { %1026 = vmatpush.bf16.msra.mxu2 %v1412_v38  ;;  %v1445_v15 = vld [vmem:[%s1961_s11 + $0x148] sm:$0xf0]  ;;  %v1597_v16 = vld [vmem:[%s1961_s11 + $0x1c4] sm:$0xf]  ;;  %v1384_v19 = vor.u32 %v1565_v11, %v1381_v13  ;;  %v1547_v21 = vld [vmem:[%s1961_s11 + $0x34] sm:$0xf] }
  0x8c   : > { %1039 = vmatpush.bf16.msra.mxu3 %v1476_v41  ;;  %1001 = vmatmul.bf16.vlgmr.msra.gmra.mxu0 %v2057_v63  ;;  %v1509_v17 = vld [vmem:[%s1961_s11 + $0x1c8] sm:$0xf0]  ;;  %v1448_v20 = vor.u32 %v1581_v14, %v1445_v15  ;;  %v1309_v22 = vld [vmem:[%s1961_s11 + $0x38] sm:$0xf0]  ;;  %v1563_v23 = vld [vmem:[%s1961_s11 + $0xb4] sm:$0xf] }
  0x8d   : > { %1045 = vmatpush.bf16.msrb.mxu0 %v1344_v42  ;;  %1014 = vmatmul.bf16.vlgmr.msra.gmra.mxu1 %v2062_v3  ;;  %v1512_v24 = vor.u32 %v1597_v16, %v1509_v17  ;;  %v1373_v25 = vld [vmem:[%s1961_s11 + $0xb8] sm:$0xf0]  ;;  %v1579_v26 = vld [vmem:[%s1961_s11 + $0x134] sm:$0xf]  ;;  %v1312_v30 = vor.u32 %v1547_v21, %v1309_v22  ;;  %v1545_v33 = vld [vmem:[%s1961_s11 + $0x24] sm:$0xf] }
  0x8e   : > { %1058 = vmatpush.bf16.msrb.mxu1 %v1408_v43  ;;  %1027 = vmatmul.bf16.vlgmr.msra.gmra.mxu2 %v2053_v61  ;;  %v1437_v27 = vld [vmem:[%s1961_s11 + $0x138] sm:$0xf0]  ;;  %v1595_v28 = vld [vmem:[%s1961_s11 + $0x1b4] sm:$0xf]  ;;  %v1376_v31 = vor.u32 %v1563_v23, %v1373_v25  ;;  %v1301_v34 = vld [vmem:[%s1961_s11 + $0x28] sm:$0xf0] }
  0x8f   : > { %1071 = vmatpush.bf16.msrb.mxu2 %v1472_v44  ;;  %1040 = vmatmul.bf16.vlgmr.msra.gmra.mxu3 %v2055_v62  ;;  %v1501_v29 = vld [vmem:[%s1961_s11 + $0x1b8] sm:$0xf0]  ;;  %v1440_v32 = vor.u32 %v1579_v26, %v1437_v27  ;;  %v1561_v35 = vld [vmem:[%s1961_s11 + $0xa4] sm:$0xf]  ;;  %v1365_v37 = vld [vmem:[%s1961_s11 + $0xa8] sm:$0xf0]  ;;  %v1304_v42 = vor.u32 %v1545_v33, %v1301_v34 }
  0x90   : > { %1084 = vmatpush.bf16.msrb.mxu3 %v1536_v48  ;;  %v1504_v36 = vor.u32 %v1595_v28, %v1501_v29  ;;  %v1577_v38 = vld [vmem:[%s1961_s11 + $0x124] sm:$0xf]  ;;  %v1429_v39 = vld [vmem:[%s1961_s11 + $0x128] sm:$0xf0]  ;;  %v1368_v43 = vor.u32 %v1561_v35, %v1365_v37  ;;  %v1543_v45 = vld [vmem:[%s1961_s11 + $0x14] sm:$0xf] }
  0x91   : > { %1046 = vmatpush.bf16.msrb.mxu0 %v1336_v55  ;;  %v1593_v40 = vld [vmem:[%s1961_s11 + $0x1a4] sm:$0xf]  ;;  %v1493_v41 = vld [vmem:[%s1961_s11 + $0x1a8] sm:$0xf0]  ;;  %v1432_v44 = vor.u32 %v1577_v38, %v1429_v39  ;;  %v1293_v46 = vld [vmem:[%s1961_s11 + $0x18] sm:$0xf0] }
  0x92   : > { %1059 = vmatpush.bf16.msrb.mxu1 %v1400_v59  ;;  %v1559_v47 = vld [vmem:[%s1961_s11 + $0x94] sm:$0xf]  ;;  %v1496_v48 = vor.u32 %v1593_v40, %v1493_v41  ;;  %v1357_v49 = vld [vmem:[%s1961_s11 + $0x98] sm:$0xf0]  ;;  %v1296_v54 = vor.u32 %v1543_v45, %v1293_v46  ;;  %v1541_v57 = vld [vmem:[%s1961_s11 + $0x4] sm:$0xf] }
  0x93   : > { %1072 = vmatpush.bf16.msrb.mxu2 %v1464_v60  ;;  %v1575_v50 = vld [vmem:[%s1961_s11 + $0x114] sm:$0xf]  ;;  %v1421_v51 = vld [vmem:[%s1961_s11 + $0x118] sm:$0xf0]  ;;  %v1360_v55 = vor.u32 %v1559_v47, %v1357_v49  ;;  %v1285_v58 = vld [vmem:[%s1961_s11 + $0x8] sm:$0xf0] }
  0x94   : > { %1085 = vmatpush.bf16.msrb.mxu3 %v1528_v0  ;;  %v1591_v52 = vld [vmem:[%s1961_s11 + $0x194] sm:$0xf]  ;;  %v1485_v53 = vld [vmem:[%s1961_s11 + $0x198] sm:$0xf0]  ;;  %v1424_v56 = vor.u32 %v1575_v50, %v1421_v51  ;;  %v1557_v59 = vld [vmem:[%s1961_s11 + $0x84] sm:$0xf] }
  0x95   : > { %1047 = vmatpush.bf16.msrb.mxu0 %v1328_v6  ;;  %v1488_v60 = vor.u32 %v1591_v52, %v1485_v53  ;;  %v1349_v0 = vld [vmem:[%s1961_s11 + $0x88] sm:$0xf0]  ;;  %v1573_v1 = vld [vmem:[%s1961_s11 + $0x104] sm:$0xf]  ;;  %v1288_v6 = vor.u32 %v1541_v57, %v1285_v58  ;;  %v597_v26 = vld [vmem:[#allocation2] sm:$0xf] }
  0x96   : > { %1060 = vmatpush.bf16.msrb.mxu1 %v1392_v7  ;;  %v1413_v2 = vld [vmem:[%s1961_s11 + $0x108] sm:$0xf0]  ;;  %v1589_v4 = vld [vmem:[%s1961_s11 + $0x184] sm:$0xf]  ;;  %v1352_v7 = vor.u32 %v1557_v59, %v1349_v0 }
  0x97   : > { %1073 = vmatpush.bf16.msrb.mxu2 %v1456_v8  ;;  %v1477_v5 = vld [vmem:[%s1961_s11 + $0x188] sm:$0xf0]  ;;  %v1416_v8 = vor.u32 %v1573_v1, %v1413_v2 }
  0x98   : > { %1086 = vmatpush.bf16.msrb.mxu3 %v1520_v12  ;;  %v1480_v9 = vor.u32 %v1589_v4, %v1477_v5 }
  0x99   : > { %1048 = vmatpush.bf16.msrb.mxu0 %v1320_v18 }
  0x9a   : > { %1061 = vmatpush.bf16.msrb.mxu1 %v1384_v19 }
  0x9b   : > { %1074 = vmatpush.bf16.msrb.mxu2 %v1448_v20 }
  0x9c   : > { %1087 = vmatpush.bf16.msrb.mxu3 %v1512_v24 }
  0x9d   : > { %1049 = vmatpush.bf16.msrb.mxu0 %v1312_v30 }
  0x9e   : > { %1062 = vmatpush.bf16.msrb.mxu1 %v1376_v31 }
  0x9f   : > { %1075 = vmatpush.bf16.msrb.mxu2 %v1440_v32 }
  0xa0   : > { %1088 = vmatpush.bf16.msrb.mxu3 %v1504_v36 }
  0xa1   : > { %1050 = vmatpush.bf16.msrb.mxu0 %v1304_v42 }
  0xa2   : > { %1063 = vmatpush.bf16.msrb.mxu1 %v1368_v43 }
  0xa3   : > { %1076 = vmatpush.bf16.msrb.mxu2 %v1432_v44 }
  0xa4   : > { %1089 = vmatpush.bf16.msrb.mxu3 %v1496_v48 }
  0xa5   : > { %1051 = vmatpush.bf16.msrb.mxu0 %v1296_v54 }
  0xa6   : > { %1064 = vmatpush.bf16.msrb.mxu1 %v1360_v55 }
  0xa7   : > { %1077 = vmatpush.bf16.msrb.mxu2 %v1424_v56 }
  0xa8   : > { %1090 = vmatpush.bf16.msrb.mxu3 %v1488_v60 }
  0xa9   : > { %1052 = vmatpush.bf16.msrb.mxu0 %v1288_v6 }
  0xaa   : > { %1065 = vmatpush.bf16.msrb.mxu1 %v1352_v7 }
  0xab   : > { %1078 = vmatpush.bf16.msrb.mxu2 %v1416_v8 }
  0xac   : > { %1091 = vmatpush.bf16.msrb.mxu3 %v1480_v9  ;;  %1053 = vmatmul.bf16.vlgmr.msrb.gmra.mxu0 %v2057_v63 }
  0xad   : > { %1066 = vmatmul.bf16.vlgmr.msrb.gmra.mxu1 %v2062_v3 }
  0xae   : > { %1079 = vmatmul.bf16.vlgmr.msrb.gmra.mxu2 %v2053_v61 }
  0xaf   : > { %1092 = vmatmul.bf16.vlgmr.msrb.gmra.mxu3 %v2055_v62 }
 0x109   : > { %v1002_v10 = vpop.f32.mrf.mxu0 }
 0x10a   : > { %v1015_v11 = vpop.f32.mrf.mxu1 }
 0x10b   : > { %v1016_v20 = vadd.f32 %v1015_v11, %v1002_v10 }
 0x111   : > { %v1028_v12 = vpop.f32.mrf.mxu2  ;;  %v1004_v14 = vpop.f32.mrf.mxu0 }
 0x112   : > { %v1041_v13 = vpop.f32.mrf.mxu3  ;;  %v1017_v15 = vpop.f32.mrf.mxu1  ;;  %v1029_v63 = vadd.f32 %v1028_v12, %v1016_v20 }
 0x114   : > { %v1042_v62 = vadd.f32 %v1041_v13, %v1029_v63 }
 0x119   : > { %v1030_v16 = vpop.f32.mrf.mxu2 }
 0x11a   : > { %v1043_v17 = vpop.f32.mrf.mxu3 }
 0x129   : > { %v1054_v18 = vpop.f32.mrf.mxu0 }
 0x12a   : > { %v1067_v19 = vpop.f32.mrf.mxu1 }
 0x12b   : > { %v1068_v21 = vadd.f32 %v1067_v19, %v1054_v18 }
 0x131   : > { %v1080_v22 = vpop.f32.mrf.mxu2  ;;  %v1056_v24 = vpop.f32.mrf.mxu0 }
 0x132   : > { %v1081_v23 = vadd.f32 %v1080_v22, %v1068_v21  ;;  %v1093_v3 = vpop.f32.mrf.mxu3  ;;  %v1069_v61 = vpop.f32.mrf.mxu1 }
 0x134   : > { %v1094_v25 = vadd.f32 %v1093_v3, %v1081_v23 }
 0x136   : > { %v1099_v27 = vrot.slane %v1094_v25, 6 }
 0x137   : > { %1108 = sbr.rel (%p1537_p13) target bundleno = 343 (0x157), region = 82 }
 0x138   : > { %v1101_v28 = vsel %vm1100_vm0, %v1042_v62, %v1099_v27 }
 0x139   : > { %v1103_v29 = vadd.f32 %v1101_v28, %v597_v26  ;;  %v1082_v30 = vpop.f32.mrf.mxu2 }
 0x13a   : > { %v1095_v31 = vpop.f32.mrf.mxu3 }
 0x13b   : > { %1104 = vst [vmem:[#allocation2] sm:$0xf] %v1103_v29 }
 0x13c   : > { %v1110_v32 = vld [vmem:[%s576_s15] sm:$0x3]  ;;  %vm1136_vm1 = vcmask 1040384  }
 0x13d   : > { %v1118_v33 = vld [vmem:[%s581_s18] sm:$0x3]  ;;  %v1112_v34 = vperm.slane %v1110_v32, 0  ;;  %v1113_v35 = vperm.slane %v1110_v32, 1 }
 0x13e   : > { %v1120_v36 = vperm.slane %v1118_v33, 0  ;;  %v1121_v37 = vperm.slane %v1118_v33, 1 }
 0x13f   : > { %v1114_v39 = vrot.slane %v1113_v35, 6 }
 0x140   : > { %v1122_v40 = vrot.slane %v1121_v37, 6 }
 0x141   : > { %v1115_v41 = vsel %vm1100_vm0, %v1112_v34, %v1114_v39 }
 0x142   : > { %v1109_v38 = vld [vmem:[#allocation2] sm:$0xf]  ;;  %v1123_v42 = vsel %vm1100_vm0, %v1120_v36, %v1122_v40 }
 0x143   : > { %v1117_v43 = vmul.f32 %v1115_v41, %v1109_v38 }
 0x145   : > { %v1125_v44 = vadd.f32 %v1123_v42, %v1117_v43 }
 0x147   : > { %v1126_v45 = vmax.f32 %v1125_v44, 0.0 }
 0x149   : > { %1128 = vst [vmem:[#allocation1] ss:$4 sm:$0xff] %v1126_v45 }
 0x150   : > { %v1129_v46 = vld.sshfl [vmem:[#allocation1] sm:$0xff pattern:$0x73625140]  ;;  %v1130_v47 = vld.sshfl [vmem:[#allocation1 + $0x8] sm:$0xff pattern:$0x73625140] }
 0x151   : > { %v1133_v48 = vpack.c.bf16 %v1130_v47, %v1129_v46 }
 0x153   : > { %v1135_v49 = vrot.slane %v1133_v48, 3 }
 0x155   : > { %v1139_v50 = vsel %vm1136_vm1, %v1133_v48, %v1135_v49 }
 0x156   : > { %1141 = vst [vmem:[%s590_s10] sm:$0x3] %v1139_v50 }
 0x157 PF: > { %s14_s21 = sadd.s32 1, %s1716_s21   ;;  %s2158_s15 = smov %s1696_s16 }
 0x158   : > { %p11_p0 = scmp.ge.s32.totalorder %s14_s21, 20   ;;  %s2159_s16 = smov %s1795_s28 }
 0x159   : > { %s2160_s17 = smov %s1708_s19  ;;  %s2161_s18 = smov %s1712_s20 }
 0x15a   : > { %s2162_s19 = smov %s2165_s22  ;;  %s2163_s20 = smov %s2169_s23 }
 0x15b   :  { %13 = sbr.rel (!%p11_p0) target bundleno = 4 (0x4), region = 126 }

// kernel: _lambda_.40
= control target key start
LH: loop header
LB: loop body
LE: loop exit
PB: predicated region body
PF: predicated region fallthrough
CT: control target
= control target key end

     0   :  { %s1828_s18 = smov 0   ;;  %s1830_s19 = smov 0   ;;  %s2246_s0 = inlined_call_operand.vmem [shape: bf16[2,4608], index: 0, kind: input, shape index: {}]   ;;  %s2247_s1 = inlined_call_operand.vmem [shape: bf16[4608,512], index: 1, kind: input, shape index: {}]   ;;  %s2248_s2 = inlined_call_operand.vmem [shape: f32[1,512], index: 2, kind: input, shape index: {}]   ;;  %s2249_s3 = inlined_call_operand.vmem [shape: f32[1,512], index: 3, kind: input, shape index: {}]   ;;  %s2250_s4 = inlined_call_operand.vmem [shape: bf16[2,512], index: 4, kind: input, shape index: {}]   ;;  %s2251_s5 = inlined_call_operand.vmem [shape: bf16[2,512], index: 5, kind: output, shape index: {}]  }
   0x1   :  { %s1832_s20 = smov 0   ;;  %s1834_s21 = smov 0  }
   0x2   :  { %s1836_s22 = smov 0   ;;  %s1838_s23 = smov 0  }
   0x3   :  { %s1840_s24 = smov 0  }
   0x4 LB: > { %s27_s25 = sadd.s32 1, %s1787_s22  ;;  %s30_s26 = sadd.s32 1, %s1791_s23  ;;  %s1795_s24 = sphi %s1840_s24, %s15_s24   ;;  %s1791_s23 = sphi %s1838_s23, %s2257_s23   ;;  %s1787_s22 = sphi %s1836_s22, %s2256_s22   ;;  %s1783_s21 = sphi %s1834_s21, %s2255_s21   ;;  %s1779_s20 = sphi %s1832_s20, %s2254_s20   ;;  %s1775_s19 = sphi %s1830_s19, %s2253_s19   ;;  %s1771_s18 = sphi %s1828_s18, %s2252_s18  }
   0x5   : > { %p28_p0 = scmp.ge.s32.totalorder %s27_s25, 9  ;;  %p78_p1 = scmp.ne.s32.totalorder %s1775_s19, %s1771_s18 }
   0x6   : > { %p79_p2 = scmp.eq.s32.totalorder %s1795_s24, 0  ;;  %s71_s30 = sadd.s32 1, %s1775_s19 }
   0x7   : > { %s2259_s25 = smov (%p28_p0, %s27_s25), 0  ;;  %s2261_s26 = smov (!%p28_p0, %s30_s26), %s1791_s23 }
   0x8   : > { %p80_p3 = por %p79_p2, %p78_p1  ;;  %p32_p4 = scmp.ge.s32.totalorder %s2261_s26, 2 }
   0x9   : > { %s66_s27 = ssub.s32 %s1787_s22, %s2259_s25  ;;  %p1346_p6 = scmp.ge.s32.totalorder %s1795_s24, 18 }
   0xa   : > { %s2263_s26 = smov (%p32_p4, %s2261_s26), 0 }
   0xb   : > { %s67_s28 = ssub.s32 %s1791_s23, %s2263_s26  ;;  %212 = sbr.rel (%p1346_p6) target bundleno = 87 (0x57), region = 16 }
   0xc   : > { %s68_s29 = sor.u32 %s67_s28, %s66_s27 }
   0xd   : > { %p69_p5 = scmp.eq.s32.totalorder %s68_s29, 0 }
   0xf   : > { %s1879_s6 = scalar_select %p69_p5, %s1775_s19, %s71_s30  }
  0x10   : > { %227 = sbr.rel (!%p80_p3) target bundleno = 87 (0x57), region = 24  ;;  %s229_s7 = sand.u32 (%p80_p3), 1, %s1775_s19  }
  0x11   : > { %s1349_s8 = sshll.u32 (%p80_p3), %s1791_s23, 1  ;;  %s1347_s9 = sshll.u32 (%p80_p3), %s229_s7, 9 }
  0x12   : > { %s1619_s10 = sshll.u32 (%p80_p3), %s1787_s22, 8  ;;  %s1893_s16 = scalar_lea.vmem (%p80_p3), [#allocation3], %s1347_s9 }
  0x13   : > { %s235_s11 = sadd.s32 (%p80_p3), %s1619_s10, %s1349_s8 }
  0x14   : > { %s1351_s12 = sshll.u32 (%p80_p3), %s235_s11, 2 }
  0x15   : > { %s1888_s15 = scalar_lea.vmem %s2247_s1, %s1351_s12 }
  0x16   : > { %v392_v0 = vld [vmem:[%s1888_s15] sm:$0xff]  ;;  %v394_v1 = vld [vmem:[%s1888_s15 + $0x10] sm:$0xff] }
  0x17   : > { %v396_v2 = vld [vmem:[%s1888_s15 + $0x20] sm:$0xff]  ;;  %393 = vst [vmem:[%s1893_s16] sm:$0xff] %v392_v0  ;;  %v398_v3 = vld [vmem:[%s1888_s15 + $0x30] sm:$0xff] }
  0x18   : > { %395 = vst [vmem:[%s1893_s16 + $0x8] sm:$0xff] %v394_v1  ;;  %v400_v4 = vld [vmem:[%s1888_s15 + $0x40] sm:$0xff]  ;;  %v402_v5 = vld [vmem:[%s1888_s15 + $0x50] sm:$0xff] }
  0x19   : > { %397 = vst [vmem:[%s1893_s16 + $0x10] sm:$0xff] %v396_v2  ;;  %v404_v6 = vld [vmem:[%s1888_s15 + $0x60] sm:$0xff]  ;;  %v406_v7 = vld [vmem:[%s1888_s15 + $0x70] sm:$0xff] }
  0x1a   : > { %399 = vst [vmem:[%s1893_s16 + $0x18] sm:$0xff] %v398_v3  ;;  %v408_v8 = vld [vmem:[%s1888_s15 + $0x80] sm:$0xff]  ;;  %v410_v9 = vld [vmem:[%s1888_s15 + $0x90] sm:$0xff] }
  0x1b   : > { %401 = vst [vmem:[%s1893_s16 + $0x20] sm:$0xff] %v400_v4  ;;  %v412_v10 = vld [vmem:[%s1888_s15 + $0xa0] sm:$0xff]  ;;  %v414_v11 = vld [vmem:[%s1888_s15 + $0xb0] sm:$0xff] }
  0x1c   : > { %403 = vst [vmem:[%s1893_s16 + $0x28] sm:$0xff] %v402_v5  ;;  %v416_v12 = vld [vmem:[%s1888_s15 + $0xc0] sm:$0xff]  ;;  %v418_v13 = vld [vmem:[%s1888_s15 + $0xd0] sm:$0xff] }
  0x1d   : > { %405 = vst [vmem:[%s1893_s16 + $0x30] sm:$0xff] %v404_v6  ;;  %v420_v14 = vld [vmem:[%s1888_s15 + $0xe0] sm:$0xff]  ;;  %v422_v15 = vld [vmem:[%s1888_s15 + $0xf0] sm:$0xff] }
  0x1e   : > { %407 = vst [vmem:[%s1893_s16 + $0x38] sm:$0xff] %v406_v7  ;;  %v424_v16 = vld [vmem:[%s1888_s15 + $0x100] sm:$0xff]  ;;  %v426_v17 = vld [vmem:[%s1888_s15 + $0x110] sm:$0xff] }
  0x1f   : > { %409 = vst [vmem:[%s1893_s16 + $0x40] sm:$0xff] %v408_v8  ;;  %v428_v18 = vld [vmem:[%s1888_s15 + $0x120] sm:$0xff]  ;;  %v430_v19 = vld [vmem:[%s1888_s15 + $0x130] sm:$0xff] }
  0x20   : > { %411 = vst [vmem:[%s1893_s16 + $0x48] sm:$0xff] %v410_v9  ;;  %v432_v20 = vld [vmem:[%s1888_s15 + $0x140] sm:$0xff]  ;;  %v434_v21 = vld [vmem:[%s1888_s15 + $0x150] sm:$0xff] }
  0x21   : > { %413 = vst [vmem:[%s1893_s16 + $0x50] sm:$0xff] %v412_v10  ;;  %v436_v22 = vld [vmem:[%s1888_s15 + $0x160] sm:$0xff]  ;;  %v438_v23 = vld [vmem:[%s1888_s15 + $0x170] sm:$0xff] }
  0x22   : > { %415 = vst [vmem:[%s1893_s16 + $0x58] sm:$0xff] %v414_v11  ;;  %v440_v24 = vld [vmem:[%s1888_s15 + $0x180] sm:$0xff]  ;;  %v442_v25 = vld [vmem:[%s1888_s15 + $0x190] sm:$0xff] }
  0x23   : > { %417 = vst [vmem:[%s1893_s16 + $0x60] sm:$0xff] %v416_v12  ;;  %v444_v26 = vld [vmem:[%s1888_s15 + $0x1a0] sm:$0xff]  ;;  %v446_v27 = vld [vmem:[%s1888_s15 + $0x1b0] sm:$0xff] }
  0x24   : > { %419 = vst [vmem:[%s1893_s16 + $0x68] sm:$0xff] %v418_v13  ;;  %v448_v28 = vld [vmem:[%s1888_s15 + $0x1c0] sm:$0xff]  ;;  %v450_v29 = vld [vmem:[%s1888_s15 + $0x1d0] sm:$0xff] }
  0x25   : > { %421 = vst [vmem:[%s1893_s16 + $0x70] sm:$0xff] %v420_v14  ;;  %v452_v30 = vld [vmem:[%s1888_s15 + $0x1e0] sm:$0xff]  ;;  %v454_v31 = vld [vmem:[%s1888_s15 + $0x1f0] sm:$0xff] }
  0x26   : > { %423 = vst [vmem:[%s1893_s16 + $0x78] sm:$0xff] %v422_v15  ;;  %v456_v32 = vld [vmem:[%s1888_s15 + $0x200] sm:$0xff]  ;;  %v458_v33 = vld [vmem:[%s1888_s15 + $0x210] sm:$0xff] }
  0x27   : > { %425 = vst [vmem:[%s1893_s16 + $0x80] sm:$0xff] %v424_v16  ;;  %v460_v34 = vld [vmem:[%s1888_s15 + $0x220] sm:$0xff]  ;;  %v462_v35 = vld [vmem:[%s1888_s15 + $0x230] sm:$0xff] }
  0x28   : > { %427 = vst [vmem:[%s1893_s16 + $0x88] sm:$0xff] %v426_v17  ;;  %v464_v36 = vld [vmem:[%s1888_s15 + $0x240] sm:$0xff]  ;;  %v466_v37 = vld [vmem:[%s1888_s15 + $0x250] sm:$0xff] }
  0x29   : > { %429 = vst [vmem:[%s1893_s16 + $0x90] sm:$0xff] %v428_v18  ;;  %v468_v38 = vld [vmem:[%s1888_s15 + $0x260] sm:$0xff]  ;;  %v470_v39 = vld [vmem:[%s1888_s15 + $0x270] sm:$0xff] }
  0x2a   : > { %431 = vst [vmem:[%s1893_s16 + $0x98] sm:$0xff] %v430_v19  ;;  %v472_v40 = vld [vmem:[%s1888_s15 + $0x280] sm:$0xff]  ;;  %v474_v41 = vld [vmem:[%s1888_s15 + $0x290] sm:$0xff] }
  0x2b   : > { %433 = vst [vmem:[%s1893_s16 + $0xa0] sm:$0xff] %v432_v20  ;;  %v476_v42 = vld [vmem:[%s1888_s15 + $0x2a0] sm:$0xff]  ;;  %v478_v43 = vld [vmem:[%s1888_s15 + $0x2b0] sm:$0xff] }
  0x2c   : > { %435 = vst [vmem:[%s1893_s16 + $0xa8] sm:$0xff] %v434_v21  ;;  %v480_v44 = vld [vmem:[%s1888_s15 + $0x2c0] sm:$0xff]  ;;  %v482_v45 = vld [vmem:[%s1888_s15 + $0x2d0] sm:$0xff] }
  0x2d   : > { %437 = vst [vmem:[%s1893_s16 + $0xb0] sm:$0xff] %v436_v22  ;;  %v484_v46 = vld [vmem:[%s1888_s15 + $0x2e0] sm:$0xff]  ;;  %v486_v47 = vld [vmem:[%s1888_s15 + $0x2f0] sm:$0xff] }
  0x2e   : > { %439 = vst [vmem:[%s1893_s16 + $0xb8] sm:$0xff] %v438_v23  ;;  %v488_v48 = vld [vmem:[%s1888_s15 + $0x300] sm:$0xff]  ;;  %v490_v49 = vld [vmem:[%s1888_s15 + $0x310] sm:$0xff] }
  0x2f   : > { %441 = vst [vmem:[%s1893_s16 + $0xc0] sm:$0xff] %v440_v24  ;;  %v492_v50 = vld [vmem:[%s1888_s15 + $0x320] sm:$0xff]  ;;  %v494_v51 = vld [vmem:[%s1888_s15 + $0x330] sm:$0xff] }
  0x30   : > { %443 = vst [vmem:[%s1893_s16 + $0xc8] sm:$0xff] %v442_v25  ;;  %v496_v52 = vld [vmem:[%s1888_s15 + $0x340] sm:$0xff]  ;;  %v498_v53 = vld [vmem:[%s1888_s15 + $0x350] sm:$0xff] }
  0x31   : > { %445 = vst [vmem:[%s1893_s16 + $0xd0] sm:$0xff] %v444_v26  ;;  %v500_v54 = vld [vmem:[%s1888_s15 + $0x360] sm:$0xff]  ;;  %v502_v55 = vld [vmem:[%s1888_s15 + $0x370] sm:$0xff] }
  0x32   : > { %447 = vst [vmem:[%s1893_s16 + $0xd8] sm:$0xff] %v446_v27  ;;  %v504_v56 = vld [vmem:[%s1888_s15 + $0x380] sm:$0xff]  ;;  %v506_v57 = vld [vmem:[%s1888_s15 + $0x390] sm:$0xff] }
  0x33   : > { %449 = vst [vmem:[%s1893_s16 + $0xe0] sm:$0xff] %v448_v28  ;;  %v508_v58 = vld [vmem:[%s1888_s15 + $0x3a0] sm:$0xff]  ;;  %v510_v59 = vld [vmem:[%s1888_s15 + $0x3b0] sm:$0xff] }
  0x34   : > { %451 = vst [vmem:[%s1893_s16 + $0xe8] sm:$0xff] %v450_v29  ;;  %v512_v60 = vld [vmem:[%s1888_s15 + $0x3c0] sm:$0xff]  ;;  %v514_v61 = vld [vmem:[%s1888_s15 + $0x3d0] sm:$0xff] }
  0x35   : > { %453 = vst [vmem:[%s1893_s16 + $0xf0] sm:$0xff] %v452_v30  ;;  %v516_v62 = vld [vmem:[%s1888_s15 + $0x3e0] sm:$0xff]  ;;  %v518_v63 = vld [vmem:[%s1888_s15 + $0x3f0] sm:$0xff] }
  0x36   : > { %455 = vst [vmem:[%s1893_s16 + $0xf8] sm:$0xff] %v454_v31 }
  0x37   : > { %457 = vst [vmem:[%s1893_s16 + $0x100] sm:$0xff] %v456_v32 }
  0x38   : > { %459 = vst [vmem:[%s1893_s16 + $0x108] sm:$0xff] %v458_v33 }
  0x39   : > { %461 = vst [vmem:[%s1893_s16 + $0x110] sm:$0xff] %v460_v34 }
  0x3a   : > { %463 = vst [vmem:[%s1893_s16 + $0x118] sm:$0xff] %v462_v35 }
  0x3b   : > { %465 = vst [vmem:[%s1893_s16 + $0x120] sm:$0xff] %v464_v36 }
  0x3c   : > { %467 = vst [vmem:[%s1893_s16 + $0x128] sm:$0xff] %v466_v37 }
  0x3d   : > { %469 = vst [vmem:[%s1893_s16 + $0x130] sm:$0xff] %v468_v38 }
  0x3e   : > { %471 = vst [vmem:[%s1893_s16 + $0x138] sm:$0xff] %v470_v39 }
  0x3f   : > { %473 = vst [vmem:[%s1893_s16 + $0x140] sm:$0xff] %v472_v40 }
  0x40   : > { %475 = vst [vmem:[%s1893_s16 + $0x148] sm:$0xff] %v474_v41 }
  0x41   : > { %477 = vst [vmem:[%s1893_s16 + $0x150] sm:$0xff] %v476_v42 }
  0x42   : > { %479 = vst [vmem:[%s1893_s16 + $0x158] sm:$0xff] %v478_v43 }
  0x43   : > { %481 = vst [vmem:[%s1893_s16 + $0x160] sm:$0xff] %v480_v44 }
  0x44   : > { %483 = vst [vmem:[%s1893_s16 + $0x168] sm:$0xff] %v482_v45 }
  0x45   : > { %485 = vst [vmem:[%s1893_s16 + $0x170] sm:$0xff] %v484_v46 }
  0x46   : > { %487 = vst [vmem:[%s1893_s16 + $0x178] sm:$0xff] %v486_v47 }
  0x47   : > { %489 = vst [vmem:[%s1893_s16 + $0x180] sm:$0xff] %v488_v48 }
  0x48   : > { %491 = vst [vmem:[%s1893_s16 + $0x188] sm:$0xff] %v490_v49 }
  0x49   : > { %493 = vst [vmem:[%s1893_s16 + $0x190] sm:$0xff] %v492_v50 }
  0x4a   : > { %495 = vst [vmem:[%s1893_s16 + $0x198] sm:$0xff] %v494_v51 }
  0x4b   : > { %497 = vst [vmem:[%s1893_s16 + $0x1a0] sm:$0xff] %v496_v52 }
  0x4c   : > { %499 = vst [vmem:[%s1893_s16 + $0x1a8] sm:$0xff] %v498_v53 }
  0x4d   : > { %501 = vst [vmem:[%s1893_s16 + $0x1b0] sm:$0xff] %v500_v54 }
  0x4e   : > { %503 = vst [vmem:[%s1893_s16 + $0x1b8] sm:$0xff] %v502_v55 }
  0x4f   : > { %505 = vst [vmem:[%s1893_s16 + $0x1c0] sm:$0xff] %v504_v56 }
  0x50   : > { %507 = vst [vmem:[%s1893_s16 + $0x1c8] sm:$0xff] %v506_v57 }
  0x51   : > { %509 = vst [vmem:[%s1893_s16 + $0x1d0] sm:$0xff] %v508_v58 }
  0x52   : > { %511 = vst [vmem:[%s1893_s16 + $0x1d8] sm:$0xff] %v510_v59 }
  0x53   : > { %513 = vst [vmem:[%s1893_s16 + $0x1e0] sm:$0xff] %v512_v60 }
  0x54   : > { %515 = vst [vmem:[%s1893_s16 + $0x1e8] sm:$0xff] %v514_v61 }
  0x55   : > { %517 = vst [vmem:[%s1893_s16 + $0x1f0] sm:$0xff] %v516_v62 }
  0x56   : > { %519 = vst [vmem:[%s1893_s16 + $0x1f8] sm:$0xff] %v518_v63 }
  0x57 PF: > { %p1352_p7 = scmp.ge.s32.totalorder %s1795_s24, 1  ;;  %p552_p8 = scmp.lt.s32.totalorder %s1795_s24, 19 }
  0x59   : > { %p553_p9 = pnand %p1352_p7, %p552_p8 }
  0x5a   : > { %s559_s17 = sand.u32 (!%p553_p9), 1, %s1771_s18   ;;  %s1354_s27 = sshll.u32 (!%p553_p9), %s1779_s20, 2 }
  0x5b   : > { %556 = sbr.rel (%p553_p9) target bundleno = 345 (0x159), region = 74  ;;  %s1353_s28 = sshll.u32 (!%p553_p9), %s559_s17, 9 }
  0x5c   : > { %p616_p10 = scmp.lt.s32.totalorder (!%p553_p9), %s1354_s27, 35  ;;  %s1355_s29 = sshll.u32 (!%p553_p9), %s1783_s21, 1 }
  0x5d   : > { %p625_p11 = scmp.lt.s32.totalorder (!%p553_p9), %s1355_s29, 3  ;;  %s2049_s7 = scalar_lea.vmem (!%p553_p9), [#allocation3], %s1353_s28 }
  0x5e   : > { %p1359_p12 = scmp.ne.s32.totalorder (!%p553_p9), %s1779_s20, 0 }
  0x60   : > { %s2265_s27 = smov (!%p616_p10, %s1354_s27), 35  ;;  %s2267_s29 = smov (!%p625_p11, %s1355_s29), 3 }
  0x61   : > { %s620_s8 = scalar_lea.vmem %s2246_s0, %s2265_s27  ;;  %s627_s18 = scalar_lea.vmem %s2248_s2, %s2267_s29 }
  0x62   : > { %s632_s12 = scalar_lea.vmem %s2249_s3, %s2267_s29  ;;  %s641_s15 = scalar_lea.vmem %s2250_s4, %s2267_s29 }
  0x63   : > { %s650_s30 = scalar_lea.vmem %s2251_s5, %s2267_s29  ;;  %655 = sbr.rel (%p1359_p12) target bundleno = 106 (0x6a), region = 82 }
  0x68   : > { %v1797_v0 = vmov 0.0  }
  0x69   : > { %656 = vst [vmem:[#allocation2] sm:$0xf] %v1797_v0 }
  0x6a PF: > { %v1418_v1 = vld [vmem:[%s2049_s7 + $0x70] sm:$0xf]  ;;  %v1635_v2 = vld [vmem:[%s2049_s7 + $0x74] sm:$0xf0]  ;;  %v1410_v12 = vld [vmem:[%s2049_s7 + $0x60] sm:$0xf] }
  0x6b   : > { %v1482_v3 = vld [vmem:[%s2049_s7 + $0xf0] sm:$0xf]  ;;  %v1419_v4 = vor.u32 %v1635_v2, %v1418_v1  ;;  %v1651_v5 = vld [vmem:[%s2049_s7 + $0xf4] sm:$0xf0]  ;;  %v1633_v14 = vld [vmem:[%s2049_s7 + $0x64] sm:$0xf0] }
  0x6c   : > { %v1546_v6 = vld [vmem:[%s2049_s7 + $0x170] sm:$0xf]  ;;  %v1667_v7 = vld [vmem:[%s2049_s7 + $0x174] sm:$0xf0]  ;;  %v1483_v8 = vor.u32 %v1651_v5, %v1482_v3  ;;  %v1474_v15 = vld [vmem:[%s2049_s7 + $0xe0] sm:$0xf]  ;;  %v1411_v17 = vor.u32 %v1633_v14, %v1410_v12 }
  0x6d   : > { %v1547_v9 = vor.u32 %v1667_v7, %v1546_v6  ;;  %v1610_v10 = vld [vmem:[%s2049_s7 + $0x1f0] sm:$0xf]  ;;  %v1683_v11 = vld [vmem:[%s2049_s7 + $0x1f4] sm:$0xf0]  ;;  %1053 = vmatpush.bf16.msra.mxu0 %v1419_v4  ;;  %v1649_v16 = vld [vmem:[%s2049_s7 + $0xe4] sm:$0xf0] }
  0x6e   : > { %v1611_v13 = vor.u32 %v1683_v11, %v1610_v10  ;;  %1066 = vmatpush.bf16.msra.mxu1 %v1483_v8  ;;  %v1475_v18 = vor.u32 %v1649_v16, %v1474_v15  ;;  %v1538_v19 = vld [vmem:[%s2049_s7 + $0x160] sm:$0xf]  ;;  %v1665_v20 = vld [vmem:[%s2049_s7 + $0x164] sm:$0xf0]  ;;  %v1402_v24 = vld [vmem:[%s2049_s7 + $0x50] sm:$0xf] }
  0x6f   : > { %1079 = vmatpush.bf16.msra.mxu2 %v1547_v9  ;;  %v1602_v21 = vld [vmem:[%s2049_s7 + $0x1e0] sm:$0xf]  ;;  %v1539_v22 = vor.u32 %v1665_v20, %v1538_v19  ;;  %v1681_v23 = vld [vmem:[%s2049_s7 + $0x1e4] sm:$0xf0]  ;;  %v1631_v25 = vld [vmem:[%s2049_s7 + $0x54] sm:$0xf0] }
  0x70   : > { %1092 = vmatpush.bf16.msra.mxu3 %v1611_v13  ;;  %v1603_v26 = vor.u32 %v1681_v23, %v1602_v21  ;;  %v1466_v27 = vld [vmem:[%s2049_s7 + $0xd0] sm:$0xf]  ;;  %v1647_v28 = vld [vmem:[%s2049_s7 + $0xd4] sm:$0xf0]  ;;  %v1403_v30 = vor.u32 %v1631_v25, %v1402_v24  ;;  %v1394_v36 = vld [vmem:[%s2049_s7 + $0x40] sm:$0xf] }
  0x71   : > { %v1530_v29 = vld [vmem:[%s2049_s7 + $0x150] sm:$0xf]  ;;  %1054 = vmatpush.bf16.msra.mxu0 %v1411_v17  ;;  %v1663_v31 = vld [vmem:[%s2049_s7 + $0x154] sm:$0xf0]  ;;  %v1467_v34 = vor.u32 %v1647_v28, %v1466_v27  ;;  %v1629_v37 = vld [vmem:[%s2049_s7 + $0x44] sm:$0xf0] }
  0x72   : > { %v1594_v32 = vld [vmem:[%s2049_s7 + $0x1d0] sm:$0xf]  ;;  %v1679_v33 = vld [vmem:[%s2049_s7 + $0x1d4] sm:$0xf0]  ;;  %1067 = vmatpush.bf16.msra.mxu1 %v1475_v18  ;;  %v1531_v35 = vor.u32 %v1663_v31, %v1530_v29  ;;  %v1458_v38 = vld [vmem:[%s2049_s7 + $0xc0] sm:$0xf]  ;;  %v1395_v45 = vor.u32 %v1629_v37, %v1394_v36 }
  0x73   : > { %1080 = vmatpush.bf16.msra.mxu2 %v1539_v22  ;;  %v1595_v39 = vor.u32 %v1679_v33, %v1594_v32  ;;  %v1645_v40 = vld [vmem:[%s2049_s7 + $0xc4] sm:$0xf0]  ;;  %v1522_v41 = vld [vmem:[%s2049_s7 + $0x140] sm:$0xf]  ;;  %v1386_v48 = vld [vmem:[%s2049_s7 + $0x30] sm:$0xf] }
  0x74   : > { %1093 = vmatpush.bf16.msra.mxu3 %v1603_v26  ;;  %v1661_v42 = vld [vmem:[%s2049_s7 + $0x144] sm:$0xf0]  ;;  %v1586_v43 = vld [vmem:[%s2049_s7 + $0x1c0] sm:$0xf]  ;;  %v1459_v46 = vor.u32 %v1645_v40, %v1458_v38  ;;  %v1627_v49 = vld [vmem:[%s2049_s7 + $0x34] sm:$0xf0] }
  0x75   : > { %v1677_v44 = vld [vmem:[%s2049_s7 + $0x1c4] sm:$0xf0]  ;;  %1055 = vmatpush.bf16.msra.mxu0 %v1403_v30  ;;  %v1523_v47 = vor.u32 %v1661_v42, %v1522_v41  ;;  %v1450_v50 = vld [vmem:[%s2049_s7 + $0xb0] sm:$0xf]  ;;  %v1643_v52 = vld [vmem:[%s2049_s7 + $0xb4] sm:$0xf0]  ;;  %v1387_v57 = vor.u32 %v1627_v49, %v1386_v48 }
  0x76   : > { %1068 = vmatpush.bf16.msra.mxu1 %v1467_v34  ;;  %v1587_v51 = vor.u32 %v1677_v44, %v1586_v43  ;;  %v1514_v53 = vld [vmem:[%s2049_s7 + $0x130] sm:$0xf]  ;;  %v1659_v54 = vld [vmem:[%s2049_s7 + $0x134] sm:$0xf0]  ;;  %v1451_v58 = vor.u32 %v1643_v52, %v1450_v50  ;;  %v1378_v60 = vld [vmem:[%s2049_s7 + $0x20] sm:$0xf] }
  0x77   : > { %1081 = vmatpush.bf16.msra.mxu2 %v1531_v35  ;;  %v1578_v55 = vld [vmem:[%s2049_s7 + $0x1b0] sm:$0xf]  ;;  %v1675_v56 = vld [vmem:[%s2049_s7 + $0x1b4] sm:$0xf0]  ;;  %v1515_v59 = vor.u32 %v1659_v54, %v1514_v53  ;;  %v1625_v61 = vld [vmem:[%s2049_s7 + $0x24] sm:$0xf0] }
  0x78   : > { %1094 = vmatpush.bf16.msra.mxu3 %v1595_v39  ;;  %v1442_v62 = vld [vmem:[%s2049_s7 + $0xa0] sm:$0xf]  ;;  %v1579_v63 = vor.u32 %v1675_v56, %v1578_v55  ;;  %v1641_v0 = vld [vmem:[%s2049_s7 + $0xa4] sm:$0xf0]  ;;  %v1379_v5 = vor.u32 %v1625_v61, %v1378_v60  ;;  %v1370_v8 = vld [vmem:[%s2049_s7 + $0x10] sm:$0xf] }
  0x79   : > { %1056 = vmatpush.bf16.msra.mxu0 %v1395_v45  ;;  %v1506_v1 = vld [vmem:[%s2049_s7 + $0x120] sm:$0xf]  ;;  %v1657_v2 = vld [vmem:[%s2049_s7 + $0x124] sm:$0xf0]  ;;  %v1443_v6 = vor.u32 %v1641_v0, %v1442_v62  ;;  %v1623_v9 = vld [vmem:[%s2049_s7 + $0x14] sm:$0xf0] }
  0x7a   : > { %1069 = vmatpush.bf16.msra.mxu1 %v1459_v46  ;;  %v1570_v3 = vld [vmem:[%s2049_s7 + $0x1a0] sm:$0xf]  ;;  %v1673_v4 = vld [vmem:[%s2049_s7 + $0x1a4] sm:$0xf0]  ;;  %v1507_v7 = vor.u32 %v1657_v2, %v1506_v1  ;;  %v1434_v10 = vld [vmem:[%s2049_s7 + $0x90] sm:$0xf]  ;;  %v1371_v18 = vor.u32 %v1623_v9, %v1370_v8 }
  0x7b   : > { %1082 = vmatpush.bf16.msra.mxu2 %v1523_v47  ;;  %v1571_v11 = vor.u32 %v1673_v4, %v1570_v3  ;;  %v1639_v12 = vld [vmem:[%s2049_s7 + $0x94] sm:$0xf0]  ;;  %v1498_v13 = vld [vmem:[%s2049_s7 + $0x110] sm:$0xf]  ;;  %v1362_v17 = vld [vmem:[%s2049_s7] sm:$0xf] }
  0x7c   : > { %1095 = vmatpush.bf16.msra.mxu3 %v1587_v51  ;;  %v1655_v14 = vld [vmem:[%s2049_s7 + $0x114] sm:$0xf0]  ;;  %v1562_v15 = vld [vmem:[%s2049_s7 + $0x190] sm:$0xf]  ;;  %v1621_v19 = vld [vmem:[%s2049_s7 + $0x4] sm:$0xf0]  ;;  %v1435_v22 = vor.u32 %v1639_v12, %v1434_v10 }
  0x7d   : > { %1057 = vmatpush.bf16.msra.mxu0 %v1387_v57  ;;  %v1671_v16 = vld [vmem:[%s2049_s7 + $0x194] sm:$0xf0]  ;;  %v1426_v20 = vld [vmem:[%s2049_s7 + $0x80] sm:$0xf]  ;;  %v1637_v21 = vld [vmem:[%s2049_s7 + $0x84] sm:$0xf0]  ;;  %v1499_v23 = vor.u32 %v1655_v14, %v1498_v13  ;;  %v1363_v34 = vor.u32 %v1621_v19, %v1362_v17 }
  0x7e   : > { %1070 = vmatpush.bf16.msra.mxu1 %v1451_v58  ;;  %v1490_v24 = vld [vmem:[%s2049_s7 + $0x100] sm:$0xf]  ;;  %v1653_v25 = vld [vmem:[%s2049_s7 + $0x104] sm:$0xf0]  ;;  %v1563_v27 = vor.u32 %v1671_v16, %v1562_v15  ;;  %v1634_v29 = vld [vmem:[%s2049_s7 + $0x74] sm:$0xf]  ;;  %v1427_v37 = vor.u32 %v1637_v21, %v1426_v20 }
  0x7f   : > { %1083 = vmatpush.bf16.msra.mxu2 %v1515_v59  ;;  %v1554_v26 = vld [vmem:[%s2049_s7 + $0x180] sm:$0xf]  ;;  %v1669_v28 = vld [vmem:[%s2049_s7 + $0x184] sm:$0xf0]  ;;  %v1420_v30 = vld [vmem:[%s2049_s7 + $0x78] sm:$0xf0]  ;;  %v1491_v38 = vor.u32 %v1653_v25, %v1490_v24 }
  0x80   : > { %1096 = vmatpush.bf16.msra.mxu3 %v1579_v63  ;;  %v1650_v31 = vld [vmem:[%s2049_s7 + $0xf4] sm:$0xf]  ;;  %v1484_v32 = vld [vmem:[%s2049_s7 + $0xf8] sm:$0xf0]  ;;  %v1555_v41 = vor.u32 %v1669_v28, %v1554_v26  ;;  %v1423_v42 = vor.u32 %v1634_v29, %v1420_v30  ;;  %v1632_v45 = vld [vmem:[%s2049_s7 + $0x64] sm:$0xf] }
  0x81   : > { %1058 = vmatpush.bf16.msra.mxu0 %v1379_v5  ;;  %v658_v33 = vld [vmem:[%s620_s8] sm:$0xf]  ;;  %v1548_v36 = vld [vmem:[%s2049_s7 + $0x178] sm:$0xf0]  ;;  %v1487_v43 = vor.u32 %v1650_v31, %v1484_v32  ;;  %v1412_v46 = vld [vmem:[%s2049_s7 + $0x68] sm:$0xf0] }
  0x82   : > { %1071 = vmatpush.bf16.msra.mxu1 %v1443_v6  ;;  %v1666_v35 = vld [vmem:[%s2049_s7 + $0x174] sm:$0xf]  ;;  %724 = vst [vmem:[#allocation1] ss:$9 sm:$0xff] %v658_v33  ;;  %v1612_v40 = vld [vmem:[%s2049_s7 + $0x1f8] sm:$0xf0]  ;;  %v1415_v55 = vor.u32 %v1632_v45, %v1412_v46 }
  0x83   : > { %1084 = vmatpush.bf16.msra.mxu2 %v1507_v7  ;;  %v1682_v39 = vld [vmem:[%s2049_s7 + $0x1f4] sm:$0xf]  ;;  %v1551_v44 = vor.u32 %v1666_v35, %v1548_v36  ;;  %v1648_v47 = vld [vmem:[%s2049_s7 + $0xe4] sm:$0xf]  ;;  %v1476_v49 = vld [vmem:[%s2049_s7 + $0xe8] sm:$0xf0] }
  0x84   : > { %1097 = vmatpush.bf16.msra.mxu3 %v1571_v11  ;;  %v1615_v48 = vor.u32 %v1682_v39, %v1612_v40  ;;  %v1664_v50 = vld [vmem:[%s2049_s7 + $0x164] sm:$0xf]  ;;  %v1540_v51 = vld [vmem:[%s2049_s7 + $0x168] sm:$0xf0]  ;;  %v1630_v54 = vld [vmem:[%s2049_s7 + $0x54] sm:$0xf]  ;;  %v1479_v59 = vor.u32 %v1648_v47, %v1476_v49 }
  0x85   : > { %1059 = vmatpush.bf16.msra.mxu0 %v1371_v18  ;;  %v1680_v52 = vld [vmem:[%s2049_s7 + $0x1e4] sm:$0xf]  ;;  %v1604_v53 = vld [vmem:[%s2049_s7 + $0x1e8] sm:$0xf0]  ;;  %v1404_v56 = vld [vmem:[%s2049_s7 + $0x58] sm:$0xf0]  ;;  %v1543_v60 = vor.u32 %v1664_v50, %v1540_v51 }
  0x86   : > { %1072 = vmatpush.bf16.msra.mxu1 %v1435_v22  ;;  %v1646_v57 = vld [vmem:[%s2049_s7 + $0xd4] sm:$0xf]  ;;  %v1468_v58 = vld [vmem:[%s2049_s7 + $0xd8] sm:$0xf0]  ;;  %v1607_v0 = vor.u32 %v1680_v52, %v1604_v53  ;;  %v1407_v6 = vor.u32 %v1630_v54, %v1404_v56  ;;  %v1628_v9 = vld [vmem:[%s2049_s7 + $0x44] sm:$0xf] }
  0x87   : > { %1085 = vmatpush.bf16.msra.mxu2 %v1499_v23  ;;  %v1662_v1 = vld [vmem:[%s2049_s7 + $0x154] sm:$0xf]  ;;  %v1532_v2 = vld [vmem:[%s2049_s7 + $0x158] sm:$0xf0]  ;;  %v1471_v7 = vor.u32 %v1646_v57, %v1468_v58  ;;  %v1396_v10 = vld [vmem:[%s2049_s7 + $0x48] sm:$0xf0] }
  0x88   : > { %1098 = vmatpush.bf16.msra.mxu3 %v1563_v27  ;;  %v1678_v4 = vld [vmem:[%s2049_s7 + $0x1d4] sm:$0xf]  ;;  %v1596_v5 = vld [vmem:[%s2049_s7 + $0x1d8] sm:$0xf0]  ;;  %v1535_v8 = vor.u32 %v1662_v1, %v1532_v2  ;;  %v1644_v11 = vld [vmem:[%s2049_s7 + $0xc4] sm:$0xf]  ;;  %v1399_v18 = vor.u32 %v1628_v9, %v1396_v10 }
  0x89   : > { %1060 = vmatpush.bf16.msra.mxu0 %v1363_v34  ;;  %v2141_v61 = vld [vmem:[#allocation1 + $0x12] sm:$0xff]  ;;  %v2143_v62 = vld [vmem:[#allocation1 + $0x1b] sm:$0xff]  ;;  %v2150_v3 = vld [vmem:[#allocation1 + $0x9] sm:$0xff]  ;;  %v1599_v12 = vor.u32 %v1678_v4, %v1596_v5  ;;  %vm1160_vm0 = vcmask 1041408   ;;  %p1616_p13 = scmp.ne.s32.totalorder %s1779_s20, 8 }
  0x8a   : > { %1073 = vmatpush.bf16.msra.mxu1 %v1427_v37  ;;  %v2145_v63 = vld [vmem:[#allocation1] sm:$0xff]  ;;  %v1460_v13 = vld [vmem:[%s2049_s7 + $0xc8] sm:$0xf0]  ;;  %v1660_v14 = vld [vmem:[%s2049_s7 + $0x144] sm:$0xf] }
  0x8b   : > { %1086 = vmatpush.bf16.msra.mxu2 %v1491_v38  ;;  %v1524_v15 = vld [vmem:[%s2049_s7 + $0x148] sm:$0xf0]  ;;  %v1676_v16 = vld [vmem:[%s2049_s7 + $0x1c4] sm:$0xf]  ;;  %v1463_v19 = vor.u32 %v1644_v11, %v1460_v13  ;;  %v1626_v21 = vld [vmem:[%s2049_s7 + $0x34] sm:$0xf] }
  0x8c   : > { %1099 = vmatpush.bf16.msra.mxu3 %v1555_v41  ;;  %1061 = vmatmul.bf16.vlgmr.msra.gmra.mxu0 %v2145_v63  ;;  %v1588_v17 = vld [vmem:[%s2049_s7 + $0x1c8] sm:$0xf0]  ;;  %v1527_v20 = vor.u32 %v1660_v14, %v1524_v15  ;;  %v1388_v22 = vld [vmem:[%s2049_s7 + $0x38] sm:$0xf0]  ;;  %v1642_v23 = vld [vmem:[%s2049_s7 + $0xb4] sm:$0xf] }
  0x8d   : > { %1105 = vmatpush.bf16.msrb.mxu0 %v1423_v42  ;;  %1074 = vmatmul.bf16.vlgmr.msra.gmra.mxu1 %v2150_v3  ;;  %v1591_v24 = vor.u32 %v1676_v16, %v1588_v17  ;;  %v1452_v25 = vld [vmem:[%s2049_s7 + $0xb8] sm:$0xf0]  ;;  %v1658_v26 = vld [vmem:[%s2049_s7 + $0x134] sm:$0xf]  ;;  %v1391_v30 = vor.u32 %v1626_v21, %v1388_v22  ;;  %v1624_v33 = vld [vmem:[%s2049_s7 + $0x24] sm:$0xf] }
  0x8e   : > { %1118 = vmatpush.bf16.msrb.mxu1 %v1487_v43  ;;  %1087 = vmatmul.bf16.vlgmr.msra.gmra.mxu2 %v2141_v61  ;;  %v1516_v27 = vld [vmem:[%s2049_s7 + $0x138] sm:$0xf0]  ;;  %v1674_v28 = vld [vmem:[%s2049_s7 + $0x1b4] sm:$0xf]  ;;  %v1455_v31 = vor.u32 %v1642_v23, %v1452_v25  ;;  %v1380_v34 = vld [vmem:[%s2049_s7 + $0x28] sm:$0xf0] }
  0x8f   : > { %1131 = vmatpush.bf16.msrb.mxu2 %v1551_v44  ;;  %1100 = vmatmul.bf16.vlgmr.msra.gmra.mxu3 %v2143_v62  ;;  %v1580_v29 = vld [vmem:[%s2049_s7 + $0x1b8] sm:$0xf0]  ;;  %v1519_v32 = vor.u32 %v1658_v26, %v1516_v27  ;;  %v1640_v35 = vld [vmem:[%s2049_s7 + $0xa4] sm:$0xf]  ;;  %v1444_v37 = vld [vmem:[%s2049_s7 + $0xa8] sm:$0xf0]  ;;  %v1383_v42 = vor.u32 %v1624_v33, %v1380_v34 }
  0x90   : > { %1144 = vmatpush.bf16.msrb.mxu3 %v1615_v48  ;;  %v1583_v36 = vor.u32 %v1674_v28, %v1580_v29  ;;  %v1656_v38 = vld [vmem:[%s2049_s7 + $0x124] sm:$0xf]  ;;  %v1508_v39 = vld [vmem:[%s2049_s7 + $0x128] sm:$0xf0]  ;;  %v1447_v43 = vor.u32 %v1640_v35, %v1444_v37  ;;  %v1622_v45 = vld [vmem:[%s2049_s7 + $0x14] sm:$0xf] }
  0x91   : > { %1106 = vmatpush.bf16.msrb.mxu0 %v1415_v55  ;;  %v1672_v40 = vld [vmem:[%s2049_s7 + $0x1a4] sm:$0xf]  ;;  %v1572_v41 = vld [vmem:[%s2049_s7 + $0x1a8] sm:$0xf0]  ;;  %v1511_v44 = vor.u32 %v1656_v38, %v1508_v39  ;;  %v1372_v46 = vld [vmem:[%s2049_s7 + $0x18] sm:$0xf0] }
  0x92   : > { %1119 = vmatpush.bf16.msrb.mxu1 %v1479_v59  ;;  %v1638_v47 = vld [vmem:[%s2049_s7 + $0x94] sm:$0xf]  ;;  %v1575_v48 = vor.u32 %v1672_v40, %v1572_v41  ;;  %v1436_v49 = vld [vmem:[%s2049_s7 + $0x98] sm:$0xf0]  ;;  %v1375_v54 = vor.u32 %v1622_v45, %v1372_v46  ;;  %v1620_v57 = vld [vmem:[%s2049_s7 + $0x4] sm:$0xf] }
  0x93   : > { %1132 = vmatpush.bf16.msrb.mxu2 %v1543_v60  ;;  %v1654_v50 = vld [vmem:[%s2049_s7 + $0x114] sm:$0xf]  ;;  %v1500_v51 = vld [vmem:[%s2049_s7 + $0x118] sm:$0xf0]  ;;  %v1439_v55 = vor.u32 %v1638_v47, %v1436_v49  ;;  %v1364_v58 = vld [vmem:[%s2049_s7 + $0x8] sm:$0xf0] }
  0x94   : > { %1145 = vmatpush.bf16.msrb.mxu3 %v1607_v0  ;;  %v1670_v52 = vld [vmem:[%s2049_s7 + $0x194] sm:$0xf]  ;;  %v1564_v53 = vld [vmem:[%s2049_s7 + $0x198] sm:$0xf0]  ;;  %v1503_v56 = vor.u32 %v1654_v50, %v1500_v51  ;;  %v1636_v59 = vld [vmem:[%s2049_s7 + $0x84] sm:$0xf] }
  0x95   : > { %1107 = vmatpush.bf16.msrb.mxu0 %v1407_v6  ;;  %v1567_v60 = vor.u32 %v1670_v52, %v1564_v53  ;;  %v1428_v0 = vld [vmem:[%s2049_s7 + $0x88] sm:$0xf0]  ;;  %v1652_v1 = vld [vmem:[%s2049_s7 + $0x104] sm:$0xf]  ;;  %v1367_v6 = vor.u32 %v1620_v57, %v1364_v58  ;;  %v657_v26 = vld [vmem:[#allocation2] sm:$0xf] }
  0x96   : > { %1120 = vmatpush.bf16.msrb.mxu1 %v1471_v7  ;;  %v1492_v2 = vld [vmem:[%s2049_s7 + $0x108] sm:$0xf0]  ;;  %v1668_v4 = vld [vmem:[%s2049_s7 + $0x184] sm:$0xf]  ;;  %v1431_v7 = vor.u32 %v1636_v59, %v1428_v0 }
  0x97   : > { %1133 = vmatpush.bf16.msrb.mxu2 %v1535_v8  ;;  %v1556_v5 = vld [vmem:[%s2049_s7 + $0x188] sm:$0xf0]  ;;  %v1495_v8 = vor.u32 %v1652_v1, %v1492_v2 }
  0x98   : > { %1146 = vmatpush.bf16.msrb.mxu3 %v1599_v12  ;;  %v1559_v9 = vor.u32 %v1668_v4, %v1556_v5 }
  0x99   : > { %1108 = vmatpush.bf16.msrb.mxu0 %v1399_v18 }
  0x9a   : > { %1121 = vmatpush.bf16.msrb.mxu1 %v1463_v19 }
  0x9b   : > { %1134 = vmatpush.bf16.msrb.mxu2 %v1527_v20 }
  0x9c   : > { %1147 = vmatpush.bf16.msrb.mxu3 %v1591_v24 }
  0x9d   : > { %1109 = vmatpush.bf16.msrb.mxu0 %v1391_v30 }
  0x9e   : > { %1122 = vmatpush.bf16.msrb.mxu1 %v1455_v31 }
  0x9f   : > { %1135 = vmatpush.bf16.msrb.mxu2 %v1519_v32 }
  0xa0   : > { %1148 = vmatpush.bf16.msrb.mxu3 %v1583_v36 }
  0xa1   : > { %1110 = vmatpush.bf16.msrb.mxu0 %v1383_v42 }
  0xa2   : > { %1123 = vmatpush.bf16.msrb.mxu1 %v1447_v43 }
  0xa3   : > { %1136 = vmatpush.bf16.msrb.mxu2 %v1511_v44 }
  0xa4   : > { %1149 = vmatpush.bf16.msrb.mxu3 %v1575_v48 }
  0xa5   : > { %1111 = vmatpush.bf16.msrb.mxu0 %v1375_v54 }
  0xa6   : > { %1124 = vmatpush.bf16.msrb.mxu1 %v1439_v55 }
  0xa7   : > { %1137 = vmatpush.bf16.msrb.mxu2 %v1503_v56 }
  0xa8   : > { %1150 = vmatpush.bf16.msrb.mxu3 %v1567_v60 }
  0xa9   : > { %1112 = vmatpush.bf16.msrb.mxu0 %v1367_v6 }
  0xaa   : > { %1125 = vmatpush.bf16.msrb.mxu1 %v1431_v7 }
  0xab   : > { %1138 = vmatpush.bf16.msrb.mxu2 %v1495_v8 }
  0xac   : > { %1151 = vmatpush.bf16.msrb.mxu3 %v1559_v9  ;;  %1113 = vmatmul.bf16.vlgmr.msrb.gmra.mxu0 %v2145_v63 }
  0xad   : > { %1126 = vmatmul.bf16.vlgmr.msrb.gmra.mxu1 %v2150_v3 }
  0xae   : > { %1139 = vmatmul.bf16.vlgmr.msrb.gmra.mxu2 %v2141_v61 }
  0xaf   : > { %1152 = vmatmul.bf16.vlgmr.msrb.gmra.mxu3 %v2143_v62 }
 0x109   : > { %v1062_v10 = vpop.f32.mrf.mxu0 }
 0x10a   : > { %v1075_v11 = vpop.f32.mrf.mxu1 }
 0x10b   : > { %v1076_v20 = vadd.f32 %v1075_v11, %v1062_v10 }
 0x111   : > { %v1088_v12 = vpop.f32.mrf.mxu2  ;;  %v1064_v14 = vpop.f32.mrf.mxu0 }
 0x112   : > { %v1101_v13 = vpop.f32.mrf.mxu3  ;;  %v1077_v15 = vpop.f32.mrf.mxu1  ;;  %v1089_v63 = vadd.f32 %v1088_v12, %v1076_v20 }
 0x114   : > { %v1102_v62 = vadd.f32 %v1101_v13, %v1089_v63 }
 0x119   : > { %v1090_v16 = vpop.f32.mrf.mxu2 }
 0x11a   : > { %v1103_v17 = vpop.f32.mrf.mxu3 }
 0x129   : > { %v1114_v18 = vpop.f32.mrf.mxu0 }
 0x12a   : > { %v1127_v19 = vpop.f32.mrf.mxu1 }
 0x12b   : > { %v1128_v21 = vadd.f32 %v1127_v19, %v1114_v18 }
 0x131   : > { %v1140_v22 = vpop.f32.mrf.mxu2  ;;  %v1116_v24 = vpop.f32.mrf.mxu0 }
 0x132   : > { %v1141_v23 = vadd.f32 %v1140_v22, %v1128_v21  ;;  %v1153_v3 = vpop.f32.mrf.mxu3  ;;  %v1129_v61 = vpop.f32.mrf.mxu1 }
 0x134   : > { %v1154_v25 = vadd.f32 %v1153_v3, %v1141_v23 }
 0x136   : > { %v1159_v27 = vrot.slane %v1154_v25, 6 }
 0x137   : > { %1168 = sbr.rel (%p1616_p13) target bundleno = 345 (0x159), region = 86 }
 0x138   : > { %v1161_v28 = vsel %vm1160_vm0, %v1102_v62, %v1159_v27 }
 0x139   : > { %v1163_v29 = vadd.f32 %v1161_v28, %v657_v26  ;;  %v1142_v30 = vpop.f32.mrf.mxu2 }
 0x13a   : > { %v1155_v31 = vpop.f32.mrf.mxu3 }
 0x13b   : > { %1164 = vst [vmem:[#allocation2] sm:$0xf] %v1163_v29 }
 0x13c   : > { %v1170_v32 = vld [vmem:[%s627_s18] sm:$0x3]  ;;  %vm1199_vm1 = vcmask 1040384  }
 0x13d   : > { %v1178_v33 = vld [vmem:[%s632_s12] sm:$0x3]  ;;  %v1172_v34 = vperm.slane %v1170_v32, 0  ;;  %v1173_v35 = vperm.slane %v1170_v32, 1 }
 0x13e   : > { %v1180_v36 = vperm.slane %v1178_v33, 0  ;;  %v1181_v37 = vperm.slane %v1178_v33, 1  ;;  %v1186_v41 = vld [vmem:[%s641_s15] sm:$0x3] }
 0x13f   : > { %v1174_v39 = vrot.slane %v1173_v35, 6  ;;  %v1187_v45 = vunpack.c.l.bf16 %v1186_v41 }
 0x140   : > { %v1182_v40 = vrot.slane %v1181_v37, 6 }
 0x141   : > { %v1175_v42 = vsel %vm1160_vm0, %v1172_v34, %v1174_v39 }
 0x142   : > { %v1169_v38 = vld [vmem:[#allocation2] sm:$0xf]  ;;  %v1183_v43 = vsel %vm1160_vm0, %v1180_v36, %v1182_v40 }
 0x143   : > { %v1177_v44 = vmul.f32 %v1175_v42, %v1169_v38 }
 0x145   : > { %v1185_v46 = vadd.f32 %v1183_v43, %v1177_v44 }
 0x147   : > { %v1188_v47 = vadd.f32 %v1187_v45, %v1185_v46 }
 0x149   : > { %v1189_v48 = vmax.f32 %v1188_v47, 0.0 }
 0x14b   : > { %1191 = vst [vmem:[#allocation1] ss:$4 sm:$0xff] %v1189_v48 }
 0x152   : > { %v1192_v49 = vld.sshfl [vmem:[#allocation1] sm:$0xff pattern:$0x73625140]  ;;  %v1193_v50 = vld.sshfl [vmem:[#allocation1 + $0x8] sm:$0xff pattern:$0x73625140] }
 0x153   : > { %v1196_v51 = vpack.c.bf16 %v1193_v50, %v1192_v49 }
 0x155   : > { %v1198_v52 = vrot.slane %v1196_v51, 3 }
 0x157   : > { %v1202_v53 = vsel %vm1199_vm1, %v1196_v51, %v1198_v52 }
 0x158   : > { %1204 = vst [vmem:[%s650_s30] sm:$0x3] %v1202_v53 }
 0x159 PF: > { %s15_s24 = sadd.s32 1, %s1795_s24   ;;  %s2252_s18 = smov %s1775_s19 }
 0x15a   : > { %p12_p0 = scmp.ge.s32.totalorder %s15_s24, 20   ;;  %s2253_s19 = smov %s1879_s6 }
 0x15b   : > { %s2254_s20 = smov %s1787_s22  ;;  %s2255_s21 = smov %s1791_s23 }
 0x15c   : > { %s2256_s22 = smov %s2259_s25  ;;  %s2257_s23 = smov %s2263_s26 }
 0x15d   :  { %14 = sbr.rel (!%p12_p0) target bundleno = 4 (0x4), region = 133 }

// kernel: _lambda_.43
= control target key start
LH: loop header
LB: loop body
LE: loop exit
PB: predicated region body
PF: predicated region fallthrough
CT: control target
= control target key end

     0   :  { %s701_s0 = inlined_call_operand.vmem [shape: bf16[2,512], index: 0, kind: input, shape index: {}]   ;;  %s702_s1 = inlined_call_operand.vmem [shape: bf16[512,128], index: 1, kind: input, shape index: {}]   ;;  %s703_s2 = inlined_call_operand.vmem [shape: f32[1,128], index: 2, kind: input, shape index: {}]   ;;  %s704_s3 = inlined_call_operand.vmem [shape: f32[1,128], index: 3, kind: input, shape index: {}]   ;;  %s705_s4 = inlined_call_operand.hbm [shape: f32[2,128], index: 4, kind: output, shape index: {}]  }
   0x1   :  { %v511_v0 = vld [vmem:[%s702_s1 + $0x38] sm:$0xff]  ;;  %v510_v4 = vld [vmem:[%s702_s1 + $0x30] sm:$0xff]  ;;  %v509_v8 = vld [vmem:[%s702_s1 + $0x28] sm:$0xff] }
   0x2   :  { %v519_v1 = vld [vmem:[%s702_s1 + $0x78] sm:$0xff]  ;;  %291 = vmatpush.bf16.msra.mxu0 %v511_v0  ;;  %v518_v5 = vld [vmem:[%s702_s1 + $0x70] sm:$0xff]  ;;  %v517_v9 = vld [vmem:[%s702_s1 + $0x68] sm:$0xff] }
   0x3   :  { %v527_v2 = vld [vmem:[%s702_s1 + $0xb8] sm:$0xff]  ;;  %304 = vmatpush.bf16.msra.mxu1 %v519_v1  ;;  %v526_v6 = vld [vmem:[%s702_s1 + $0xb0] sm:$0xff]  ;;  %v525_v10 = vld [vmem:[%s702_s1 + $0xa8] sm:$0xff] }
   0x4   :  { %v535_v3 = vld [vmem:[%s702_s1 + $0xf8] sm:$0xff]  ;;  %317 = vmatpush.bf16.msra.mxu2 %v527_v2  ;;  %v534_v7 = vld [vmem:[%s702_s1 + $0xf0] sm:$0xff]  ;;  %v533_v11 = vld [vmem:[%s702_s1 + $0xe8] sm:$0xff] }
   0x5   :  { %330 = vmatpush.bf16.msra.mxu3 %v535_v3  ;;  %v508_v12 = vld [vmem:[%s702_s1 + $0x20] sm:$0xff] }
   0x6   :  { %292 = vmatpush.bf16.msra.mxu0 %v510_v4  ;;  %v516_v13 = vld [vmem:[%s702_s1 + $0x60] sm:$0xff] }
   0x7   :  { %305 = vmatpush.bf16.msra.mxu1 %v518_v5  ;;  %v524_v14 = vld [vmem:[%s702_s1 + $0xa0] sm:$0xff] }
   0x8   :  { %318 = vmatpush.bf16.msra.mxu2 %v526_v6  ;;  %v532_v15 = vld [vmem:[%s702_s1 + $0xe0] sm:$0xff] }
   0x9   :  { %331 = vmatpush.bf16.msra.mxu3 %v534_v7  ;;  %v24_v16 = vld [vmem:[%s701_s0] sm:$0xf] }
   0xa   :  { %293 = vmatpush.bf16.msra.mxu0 %v509_v8  ;;  %90 = vst [vmem:[#allocation1] ss:$9 sm:$0xff] %v24_v16 }
   0xb   :  { %306 = vmatpush.bf16.msra.mxu1 %v517_v9 }
   0xc   :  { %319 = vmatpush.bf16.msra.mxu2 %v525_v10 }
   0xd   :  { %332 = vmatpush.bf16.msra.mxu3 %v533_v11 }
   0xe   :  { %9 = vsyncpa [#allocation4], 0  ;;  %294 = vmatpush.bf16.msra.mxu0 %v508_v12  ;;  %v507_v17 = vld [vmem:[%s702_s1 + $0x18] sm:$0xff]  ;;  %v506_v21 = vld [vmem:[%s702_s1 + $0x10] sm:$0xff]  ;;  %v566_v37 = vmov 0.0   ;;  %s567_s30 = smov [#allocation3]  }
   0xf   :  { %307 = vmatpush.bf16.msra.mxu1 %v516_v13  ;;  %v515_v18 = vld [vmem:[%s702_s1 + $0x58] sm:$0xff]  ;;  %v514_v22 = vld [vmem:[%s702_s1 + $0x50] sm:$0xff]  ;;  %v505_v25 = vld [vmem:[%s702_s1 + $0x8] sm:$0xff]  ;;  %22 = vst [vmem:[#allocation2] sm:$0x3] %v566_v37  ;;  %s365_s5 = sshll.u32 %s567_s30, 4  ;;  %s366_s5 = int_to_ptr.vmem [resolvable:$true] %s365_s5 }
  0x10   :  { %320 = vmatpush.bf16.msra.mxu2 %v524_v14  ;;  %v523_v19 = vld [vmem:[%s702_s1 + $0x98] sm:$0xff]  ;;  %v522_v23 = vld [vmem:[%s702_s1 + $0x90] sm:$0xff]  ;;  %v513_v26 = vld [vmem:[%s702_s1 + $0x48] sm:$0xff]  ;;  %s367_s8 = sshll.u32 %s705_s4, 4  ;;  %s368_s8 = int_to_ptr.hbm [resolvable:$true] %s367_s8 }
  0x11   :  { %333 = vmatpush.bf16.msra.mxu3 %v532_v15  ;;  %v531_v20 = vld [vmem:[%s702_s1 + $0xd8] sm:$0xff]  ;;  %v530_v24 = vld [vmem:[%s702_s1 + $0xd0] sm:$0xff]  ;;  %v521_v27 = vld [vmem:[%s702_s1 + $0x88] sm:$0xff] }
  0x12   :  { %295 = vmatpush.bf16.msra.mxu0 %v507_v17  ;;  %v529_v28 = vld [vmem:[%s702_s1 + $0xc8] sm:$0xff]  ;;  %v504_v29 = vld [vmem:[%s702_s1] sm:$0xff]  ;;  %v93_v35 = vld [vmem:[#allocation1 + $0x12] sm:$0xff] }
  0x13   :  { %308 = vmatpush.bf16.msra.mxu1 %v515_v18  ;;  %v512_v30 = vld [vmem:[%s702_s1 + $0x40] sm:$0xff]  ;;  %v92_v34 = vld [vmem:[#allocation1 + $0x9] sm:$0xff] }
  0x14   :  { %321 = vmatpush.bf16.msra.mxu2 %v523_v19  ;;  %v520_v31 = vld [vmem:[%s702_s1 + $0x80] sm:$0xff] }
  0x15   :  { %334 = vmatpush.bf16.msra.mxu3 %v531_v20  ;;  %v528_v32 = vld [vmem:[%s702_s1 + $0xc0] sm:$0xff] }
  0x16   :  { %296 = vmatpush.bf16.msra.mxu0 %v506_v21  ;;  %v91_v33 = vld [vmem:[#allocation1] sm:$0xff]  ;;  %v23_v46 = vld [vmem:[#allocation2] sm:$0x3] }
  0x17   :  { %309 = vmatpush.bf16.msra.mxu1 %v514_v22  ;;  %v94_v36 = vld [vmem:[#allocation1 + $0x1b] sm:$0xff] }
  0x18   :  { %322 = vmatpush.bf16.msra.mxu2 %v522_v23  ;;  %v538_v51 = vld [vmem:[%s703_s2] ss:$0 sm:$0xff] }
  0x19   :  { %335 = vmatpush.bf16.msra.mxu3 %v530_v24  ;;  %v539_v52 = vld [vmem:[%s704_s3] ss:$0 sm:$0xff] }
  0x1a   :  { %297 = vmatpush.bf16.msra.mxu0 %v505_v25 }
  0x1b   :  { %310 = vmatpush.bf16.msra.mxu1 %v513_v26 }
  0x1c   :  { %323 = vmatpush.bf16.msra.mxu2 %v521_v27 }
  0x1d   :  { %336 = vmatpush.bf16.msra.mxu3 %v529_v28 }
  0x1e   :  { %298 = vmatpush.bf16.msra.mxu0 %v504_v29 }
  0x1f   :  { %311 = vmatpush.bf16.msra.mxu1 %v512_v30 }
  0x20   :  { %324 = vmatpush.bf16.msra.mxu2 %v520_v31 }
  0x21   :  { %337 = vmatpush.bf16.msra.mxu3 %v528_v32  ;;  %299 = vmatmul.bf16.vlgmr.msra.gmra.mxu0 %v91_v33 }
  0x22   :  { %312 = vmatmul.bf16.vlgmr.msra.gmra.mxu1 %v92_v34 }
  0x23   :  { %325 = vmatmul.bf16.vlgmr.msra.gmra.mxu2 %v93_v35 }
  0x24   :  { %338 = vmatmul.bf16.vlgmr.msra.gmra.mxu3 %v94_v36 }
  0x9e   :  { %v300_v38 = vpop.f32.mrf.mxu0 }
  0x9f   :  { %v313_v39 = vpop.f32.mrf.mxu1 }
  0xa0   :  { %v314_v40 = vadd.f32 %v313_v39, %v300_v38 }
  0xa6   :  { %v326_v41 = vpop.f32.mrf.mxu2  ;;  %v302_v44 = vpop.f32.mrf.mxu0 }
  0xa7   :  { %v339_v42 = vpop.f32.mrf.mxu3  ;;  %v327_v43 = vadd.f32 %v326_v41, %v314_v40  ;;  %v315_v45 = vpop.f32.mrf.mxu1 }
  0xa9   :  { %v340_v47 = vadd.f32 %v339_v42, %v327_v43 }
  0xab   :  { %v343_v48 = vadd.f32 %v340_v47, %v23_v46 }
  0xad   :  { %344 = vst [vmem:[#allocation2] sm:$0x3] %v343_v48 }
  0xae   :  { %v328_v49 = vpop.f32.mrf.mxu2 }
  0xaf   :  { %v341_v50 = vpop.f32.mrf.mxu3 }
  0xb4   :  { %v348_v53 = vld [vmem:[#allocation2] sm:$0x3] }
  0xb5   :  { %v353_v54 = vmul.f32 %v538_v51, %v348_v53 }
  0xb7   :  { %v358_v55 = vadd.f32 %v539_v52, %v353_v54 }
  0xb9   :  { %359 = vst [vmem:[#allocation3] sm:$0x3] %v358_v55 }
  0xba   :  { %370 = dma.vmem_to_hbm [thread:$0]  %s366_s5, 32, %s368_s8, [#allocation4]  }
  0xbb   :  { %564 = dma.done.wait [#allocation4], 32  }
  0xbc   :  { %565 = vsyncadd [#allocation4], 4294967264 }
  0xbd   :  { %375 = vsyncpa [#allocation4], 1 }

</bundles_post_ra>
